<compile_context>
chip_gen: v7x
topology: tpu7x:2x2x1
jax: 0.10.0
libtpu: 0.0.40
codegen_flags: <defaults>
</compile_context>

<pallas_src>
import math

import jax
import jax.numpy as jnp
from jax import lax
from jax.experimental import pallas as pl
from jax.experimental.pallas import tpu as pltpu


# ----------------------------- config ---------------------------------------
class Config:
    hidden_size = 128
    expert_hidden_size = 256
    num_experts = 4                # one expert of each specialized type
    num_experts_per_token = 2
    expert_dropout = 0.1           # identity in eval mode
    router_jitter_noise = 0.0      # training-only; unused here
    router_z_loss_coef = 0.001
    use_load_balancing = True
    use_expert_choice_routing = False


CFG = Config()
LN_EPS = 1e-5
NUM_MOE_LAYERS = 2
ROUTER_PAD = 128        # router logits live in lanes 0..NE-1 of a full 128-lane slab
TOKEN_TILE = 1024       # max rows per grid step (fits 48 MiB VMEM budget on v7x)
NEG_BIG = -1e30         # finite "-inf" for lane masking

MXU_DTYPE = jnp.bfloat16   # matmul operand dtype (f32 accumulation, f32 VPU math)
APPROX_RECIP = True        # softmax / gate-renorm reciprocal on the EUP (approx)

# vecs slab row indices (per layer); slab width = expert_hidden_size lanes
R_LN_G, R_LN_B = 0, 1
R_E0_SB, R_E0_LG, R_E0_LB = 2, 3, 4
R_E1_B1, R_E1_B2, R_E1_LG, R_E1_LB = 5, 6, 7, 8
R_E2_SB = 9
R_DB = 10               # rows R_DB .. R_DB+NE-1 hold per-expert down-proj biases
VEC_ROWS = 16           # padded to a multiple of 8 sublanes
N_LAYER_INPUTS = 6      # vecs, b_up, w_up, w_spec_a, w_spec_b, w_down


# ------------------------- in-kernel math helpers ----------------------------
def _recip(x):
    # EUP reciprocal: the EUP slot is otherwise idle, removes VALU divides.
    return pl.reciprocal(x, approx=APPROX_RECIP)


_ERF_P = 0.3275911
_ERF_A1, _ERF_A2, _ERF_A3, _ERF_A4, _ERF_A5 = (
    0.254829592, -0.284496736, 1.421413741, -1.453152027, 1.061405429)


def _erf(x):
    # Abramowitz & Stegun 7.1.26 rational approximation, |err| <= 1.5e-7.
    # Used instead of lax.erf (no guaranteed Mosaic lowering).
    ax = jnp.abs(x)
    t = 1.0 / (1.0 + _ERF_P * ax)
    poly = t * (_ERF_A1 + t * (_ERF_A2 + t * (_ERF_A3 + t * (_ERF_A4 + t * _ERF_A5))))
    y = 1.0 - poly * jnp.exp(-(ax * ax))
    return jnp.where(x < 0.0, -y, y)


def _gelu(x):
    # erf-based GELU, matching torch.nn.GELU() default (to ~1.5e-7).
    return 0.5 * x * (1.0 + _erf(x * (1.0 / math.sqrt(2.0))))


def _layer_norm(x, g, b):
    n = x.shape[-1]
    mu = jnp.sum(x, axis=-1, keepdims=True) * (1.0 / n)
    xc = x - mu
    var = jnp.sum(xc * xc, axis=-1, keepdims=True) * (1.0 / n)
    return xc * lax.rsqrt(var + LN_EPS) * g + b


def _mm(a, w):
    # bf16 MXU operands, f32 accumulation.
    return jnp.dot(a.astype(MXU_DTYPE), w.astype(MXU_DTYPE),
                   preferred_element_type=jnp.float32)


def _topk_gate(probs, k):
    """Exactly-k top-k mask with lowest-index tie-breaking (torch.topk semantics),
    then renormalize the selected probabilities."""
    ids = lax.broadcasted_iota(jnp.int32, probs.shape, probs.ndim - 1).astype(probs.dtype)
    big = float(probs.shape[-1])
    mask = jnp.zeros_like(probs)
    p = probs
    for _ in range(k):
        mx = jnp.max(p, axis=-1, keepdims=True)
        sel = jnp.min(jnp.where(p == mx, ids, big), axis=-1, keepdims=True)
        onehot = (ids == sel).astype(probs.dtype)
        mask = mask + onehot
        p = jnp.where(onehot > 0, -1.0, p)
    gate = probs * mask
    return gate * _recip(jnp.sum(gate, axis=-1, keepdims=True))


# ----------------------------- fused kernel ----------------------------------
def make_fused_kernel(cfg, t_actual, t_pad, t_tile, n_layers):
    H = cfg.hidden_size
    EH = cfg.expert_hidden_size
    NE = cfg.num_experts
    K = cfg.num_experts_per_token
    RP = ROUTER_PAD
    needs_mask = t_pad != t_actual
    nP = N_LAYER_INPUTS

    def layer_fwd(x, vecs_ref, b_up_ref, w_up_ref, w_spec_a_ref, w_spec_b_ref,
                  w_down_ref, valid):
        vecs = vecs_ref[...]                                        # [16, EH] f32
        xn = _layer_norm(x, vecs[R_LN_G:R_LN_G + 1, :H], vecs[R_LN_B:R_LN_B + 1, :H])

        # Router + all 4 experts' up-projections in one wide MXU pass.
        y = _mm(xn, w_up_ref[...]) + b_up_ref[...]                  # [tT, RP+NE*EH] f32

        # ---- router (lanes 0..NE-1 of the first 128-lane slab) ----
        lane = lax.broadcasted_iota(jnp.int32, (x.shape[0], RP), 1)
        logits = jnp.where(lane < NE, y[:, :RP], NEG_BIG)
        m = jnp.max(logits, axis=-1, keepdims=True)
        ex = jnp.exp(logits - m)
        denom = jnp.sum(ex, axis=-1, keepdims=True)
        probs = ex * _recip(denom)                                  # 0 on padded lanes
        gate = _topk_gate(probs, K)                                 # exactly-k, renormalized
        g_cols = [gate[:, e:e + 1] for e in range(NE)]

        w_spec_a = w_spec_a_ref[...]                                # [EH, 2*EH+EH//2] bf16

        # ---- experts: specialized branch, gate folded into activations, then
        #      per-expert down-proj accumulation (no concat copy) ----
        o = None
        bias = None
        for e in range(NE):
            h = _gelu(y[:, RP + e * EH: RP + (e + 1) * EH])         # [tT, EH]
            t = e % 4
            if t == 0:
                s = _mm(h, w_spec_a[:, 0:EH]) + vecs[R_E0_SB:R_E0_SB + 1, :EH]
                s = _gelu(_layer_norm(s, vecs[R_E0_LG:R_E0_LG + 1, :EH],
                                      vecs[R_E0_LB:R_E0_LB + 1, :EH]))
            elif t == 1:
                s = _gelu(_mm(h, w_spec_a[:, 2 * EH:2 * EH + EH // 2])
                          + vecs[R_E1_B1:R_E1_B1 + 1, :EH // 2])
                s = _mm(s, w_spec_b_ref[...]) + vecs[R_E1_B2:R_E1_B2 + 1, :EH]
                s = _layer_norm(s, vecs[R_E1_LG:R_E1_LG + 1, :EH],
                                vecs[R_E1_LB:R_E1_LB + 1, :EH])
            elif t == 2:
                s = _gelu(_mm(h, w_spec_a[:, EH:2 * EH]) + vecs[R_E2_SB:R_E2_SB + 1, :EH])
                # TODO(synk): Dropout(0.2) in this specialized block is identity in eval mode.
            else:
                s = h                                               # nn.Identity
            # TODO(synk): expert_dropout is identity in eval mode.
            part = _mm(s * g_cols[e], w_down_ref[e])                # [tT, H]
            o = part if o is None else o + part
            b_e = g_cols[e] * vecs[R_DB + e:R_DB + e + 1, :H]
            bias = b_e if bias is None else bias + b_e

        out = o + bias + x                                          # residual connection

        # ---- per-block aux-loss partial sums, packed into ONE [1,128] row ----
        z = m + jnp.log(denom)                                      # logsumexp(logits)
        zsq = jnp.square(z)
        if valid is not None:
            probs = probs * valid
            zsq = zsq * valid[:, :1]
        usage = jnp.sum(probs, axis=0, keepdims=True)               # lanes >= NE are 0
        zsum = jnp.sum(zsq, axis=0, keepdims=True)                  # (1,1)
        lane_r = lax.broadcasted_iota(jnp.int32, (1, RP), 1)
        stat_row = usage + jnp.where(lane_r == NE, zsum, 0.0)       # zsq sum in lane NE
        return out, stat_row

    def kernel(*refs):
        n_in = 1 + nP * n_layers + 1
        x_ref = refs[0]
        final_ln_ref = refs[n_in - 1]
        out_ref = refs[n_in]
        stat_ref = refs[n_in + 1]

        x = x_ref[...]
        if needs_mask:
            tok = (lax.broadcasted_iota(jnp.int32, (t_tile, RP), 0)
                   + pl.program_id(0) * t_tile)
            valid = (tok < t_actual).astype(jnp.float32)
        else:
            valid = None

        h = x
        stats = jnp.zeros((8, RP), jnp.float32)
        row_idx = lax.broadcasted_iota(jnp.int32, (8, RP), 0)
        for l in range(n_layers):
            p = refs[1 + l * nP: 1 + (l + 1) * nP]
            h, srow = layer_fwd(h, *p, valid)
            stats = jnp.where(row_idx == l, srow, stats)

        fin = final_ln_ref[...]
        out_ref[...] = _layer_norm(h, fin[0:1, :], fin[1:2, :]).astype(out_ref.dtype)
        stat_ref[0] = stats                                         # (8,128) lane-dense block

    return kernel


# --------------------------- parameter initialization ------------------------
def _linear_params(key, fan_in, fan_out):
    """torch.nn.Linear-style init; weight returned as [in, out]."""
    kw, kb = jax.random.split(key)
    lim = 1.0 / math.sqrt(fan_in)
    w = jax.random.uniform(kw, (fan_in, fan_out), jnp.float32, -lim, lim)
    b = jax.random.uniform(kb, (1, fan_out), jnp.float32, -lim, lim)
    return w, b


def _init_expert(key, expert_idx, H, EH):
    t = expert_idx % 4
    ks = jax.random.split(key, 4)
    up_w, up_b = _linear_params(ks[0], H, EH)
    spec = []
    if t == 0:
        sw, sb = _linear_params(ks[1], EH, EH)
        spec = [sw, sb, jnp.ones((1, EH), jnp.float32), jnp.zeros((1, EH), jnp.float32)]
    elif t == 1:
        w1, b1 = _linear_params(ks[1], EH, EH // 2)
        w2, b2 = _linear_params(ks[2], EH // 2, EH)
        spec = [w1, b1, w2, b2,
                jnp.ones((1, EH), jnp.float32), jnp.zeros((1, EH), jnp.float32)]
    elif t == 2:
        sw, sb = _linear_params(ks[1], EH, EH)
        spec = [sw, sb]
    dw, db = _linear_params(ks[3], EH, H)
    return dict(up_w=up_w, up_b=up_b, spec=spec, down_w=dw, down_b=db)


def _init_moe_layer(key, cfg):
    """Initialize torch-equivalent parameters, then pack for the fused kernel."""
    H, EH, NE = cfg.hidden_size, cfg.expert_hidden_size, cfg.num_experts
    RP = ROUTER_PAD
    assert NE == 4, "packing assumes one expert of each specialized type"
    ks = jax.random.split(key, NE + 1)
    router_w = jax.random.normal(ks[0], (H, NE), jnp.float32) * 0.01
    experts = [_init_expert(ks[e + 1], e, H, EH) for e in range(NE)]
    e0, e1, e2, _ = experts

    # --- bf16 MXU weight slabs (f32 accumulation happens in-kernel) ---
    w_up = jnp.concatenate(
        [jnp.pad(router_w, ((0, 0), (0, RP - NE)))] + [ex['up_w'] for ex in experts],
        axis=1).astype(MXU_DTYPE)                                  # [H, RP+NE*EH]
    w_spec_a = jnp.concatenate(                                    # [EH, 2*EH+EH//2]
        [e0['spec'][0], e2['spec'][0], e1['spec'][0]], axis=1).astype(MXU_DTYPE)
    w_spec_b = e1['spec'][2].astype(MXU_DTYPE)                     # [EH//2, EH]
    w_down = jnp.stack([ex['down_w'] for ex in experts], axis=0).astype(MXU_DTYPE)

    b_up = jnp.concatenate([jnp.zeros((1, RP), jnp.float32)] +
                           [ex['up_b'] for ex in experts], axis=1)  # [1, RP+NE*EH] f32

    # --- f32 vector slab: all LN gammas/betas and small biases, one row each ---
    def padw(v):
        return jnp.pad(v, ((0, 0), (0, EH - v.shape[1])))
    rows = [
        padw(jnp.ones((1, H), jnp.float32)),   # R_LN_G
        padw(jnp.zeros((1, H), jnp.float32)),  # R_LN_B
        e0['spec'][1], e0['spec'][2], e0['spec'][3],          # R_E0_SB / LG / LB
        padw(e1['spec'][1]),                                  # R_E1_B1
        e1['spec'][3], e1['spec'][4], e1['spec'][5],          # R_E1_B2 / LG / LB
        e2['spec'][1],                                        # R_E2_SB
    ] + [padw(ex['down_b']) for ex in experts]                # R_DB .. R_DB+NE-1
    vecs = jnp.concatenate(
        rows + [jnp.zeros((VEC_ROWS - len(rows), EH), jnp.float32)], axis=0)

    return {'flat': [vecs, b_up, w_up, w_spec_a, w_spec_b, w_down]}


def init_reasoning_moe(key, cfg):
    ks = jax.random.split(key, NUM_MOE_LAYERS)
    H = cfg.hidden_size
    return {
        'layers': [_init_moe_layer(ks[i], cfg) for i in range(NUM_MOE_LAYERS)],
        'final_ln': jnp.concatenate([jnp.ones((1, H), jnp.float32),
                                     jnp.zeros((1, H), jnp.float32)], axis=0),
    }


# ------------------------------- full forward --------------------------------
def _round_up(n, m):
    return ((n + m - 1) // m) * m


def reasoning_moe_forward(x, params):
    """x: [B, S, H] -> (output [B, S, H], aux_losses dict)."""
    cfg = CFG
    B, S, H = x.shape
    T = B * S
    NE = cfg.num_experts
    n_layers = len(params['layers'])

    xt = x.reshape(T, H)

    # Token tiling: cap at TOKEN_TILE; for small T split into >=2 tiles so both
    # v7x TensorCores get a grid step under dimension_semantics=("parallel",).
    if T <= TOKEN_TILE:
        t_tile = _round_up((T + 1) // 2, 8)
    else:
        t_tile = TOKEN_TILE
    t_pad = _round_up(T, t_tile)
    if t_pad != T:
        xt = jnp.pad(xt, ((0, t_pad - T), (0, 0)))
    grid_steps = t_pad // t_tile

    flat_inputs = [xt]
    for lp in params['layers']:
        flat_inputs += lp['flat']
    flat_inputs.append(params['final_ln'])

    kernel = make_fused_kernel(cfg, T, t_pad, t_tile, n_layers)

    def _const_spec(arr):
        # Grid-invariant parameter: whole array as one block, same block index every
        # step (Pallas does not re-fetch an unchanged block between iterations).
        return pl.BlockSpec(arr.shape, lambda i, _nd=arr.ndim: (0,) * _nd)

    in_specs = [pl.BlockSpec((t_tile, H), lambda i: (i, 0))]
    in_specs += [_const_spec(p) for p in flat_inputs[1:]]

    out_shape = (
        jax.ShapeDtypeStruct((t_pad, H), xt.dtype),
        jax.ShapeDtypeStruct((grid_steps, 8, ROUTER_PAD), jnp.float32),
    )
    out_specs = (
        pl.BlockSpec((t_tile, H), lambda i: (i, 0)),
        pl.BlockSpec((1, 8, ROUTER_PAD), lambda i: (i, 0, 0)),
    )

    out_pad, stats = pl.pallas_call(
        kernel,
        grid=(grid_steps,),
        out_shape=out_shape,
        in_specs=in_specs,
        out_specs=out_specs,
        compiler_params=pltpu.CompilerParams(
            dimension_semantics=("parallel",),    # token tiles shard across v7x's 2 TCs
            vmem_limit_bytes=48 * 1024 * 1024,    # < v7x's 64 MiB/TC; > v5e/v6e defaults
        ),
    )(*flat_inputs)

    out = out_pad[:T].reshape(B, S, H)

    # Tiny per-block partial sums -> final aux losses (same math as the reference).
    aux = {}
    inv_t = 1.0 / T
    for l in range(n_layers):
        row = jnp.sum(stats[:, l, :], axis=0)              # [128]
        if cfg.router_z_loss_coef > 0:
            aux[f'layer_{l}_router_z_loss'] = row[NE] * inv_t * cfg.router_z_loss_coef
        if cfg.use_load_balancing:
            usage = row[:NE] * inv_t
            target = 1.0 / NE
            aux[f'layer_{l}_load_balancing_loss'] = (
                jnp.sum(target * jnp.log(target / usage)) * 0.01)
    return out, aux


# ---------------------------------- main --------------------------------------
if __name__ == "__main__":
    key = jax.random.PRNGKey(0)
    k_x, k_p = jax.random.split(key)
    B, S = 2, 8
    x = jax.random.normal(k_x, (B, S, CFG.hidden_size), jnp.float32)
    params = init_reasoning_moe(k_p, CFG)

    fwd = jax.jit(reasoning_moe_forward)
    out, aux = fwd(x, params)
    jax.block_until_ready(out)
    jax.block_until_ready(aux)

    assert out.shape == (B, S, CFG.hidden_size)
    assert bool(jnp.isfinite(out).all())
    assert all(bool(jnp.isfinite(v).all()) for v in aux.values())
    print("KERNEL_OK")
</pallas_src>

<mosaic_0001>
module attributes {stable_mosaic.version = 11 : i64} {
  func.func @kernel(%arg0: i32, %arg1: memref<8x128xf32, #tpu.memory_space<vmem>>, %arg2: memref<16x256xf32, #tpu.memory_space<vmem>>, %arg3: memref<1x1152xf32, #tpu.memory_space<vmem>>, %arg4: memref<128x1152xbf16, #tpu.memory_space<vmem>>, %arg5: memref<256x640xbf16, #tpu.memory_space<vmem>>, %arg6: memref<128x256xbf16, #tpu.memory_space<vmem>>, %arg7: memref<4x256x128xbf16, #tpu.memory_space<vmem>>, %arg8: memref<16x256xf32, #tpu.memory_space<vmem>>, %arg9: memref<1x1152xf32, #tpu.memory_space<vmem>>, %arg10: memref<128x1152xbf16, #tpu.memory_space<vmem>>, %arg11: memref<256x640xbf16, #tpu.memory_space<vmem>>, %arg12: memref<128x256xbf16, #tpu.memory_space<vmem>>, %arg13: memref<4x256x128xbf16, #tpu.memory_space<vmem>>, %arg14: memref<2x128xf32, #tpu.memory_space<vmem>>, %arg15: memref<8x128xf32, #tpu.memory_space<vmem>>, %arg16: memref<1x8x128xf32, #tpu.memory_space<vmem>>) attributes {dimension_semantics = [#tpu.dimension_semantics<parallel>], iteration_bounds = array<i64: 2>, scalar_prefetch = 0 : i64, scratch_operands = 0 : i64, tpu.core_type = #tpu.core_type<tc>, window_params = [{transform_indices = @transform_0, window_bounds = array<i64: 8, 128>}, {pipeline_mode = #tpu.pipeline_mode<synchronous>, transform_indices = @transform_1, window_bounds = array<i64: 16, 256>}, {pipeline_mode = #tpu.pipeline_mode<synchronous>, transform_indices = @transform_2, window_bounds = array<i64: 1, 1152>}, {pipeline_mode = #tpu.pipeline_mode<synchronous>, transform_indices = @transform_3, window_bounds = array<i64: 128, 1152>}, {pipeline_mode = #tpu.pipeline_mode<synchronous>, transform_indices = @transform_4, window_bounds = array<i64: 256, 640>}, {pipeline_mode = #tpu.pipeline_mode<synchronous>, transform_indices = @transform_5, window_bounds = array<i64: 128, 256>}, {pipeline_mode = #tpu.pipeline_mode<synchronous>, transform_indices = @transform_6, window_bounds = array<i64: 4, 256, 128>}, {pipeline_mode = #tpu.pipeline_mode<synchronous>, transform_indices = @transform_7, window_bounds = array<i64: 16, 256>}, {pipeline_mode = #tpu.pipeline_mode<synchronous>, transform_indices = @transform_8, window_bounds = array<i64: 1, 1152>}, {pipeline_mode = #tpu.pipeline_mode<synchronous>, transform_indices = @transform_9, window_bounds = array<i64: 128, 1152>}, {pipeline_mode = #tpu.pipeline_mode<synchronous>, transform_indices = @transform_10, window_bounds = array<i64: 256, 640>}, {pipeline_mode = #tpu.pipeline_mode<synchronous>, transform_indices = @transform_11, window_bounds = array<i64: 128, 256>}, {pipeline_mode = #tpu.pipeline_mode<synchronous>, transform_indices = @transform_12, window_bounds = array<i64: 4, 256, 128>}, {pipeline_mode = #tpu.pipeline_mode<synchronous>, transform_indices = @transform_13, window_bounds = array<i64: 2, 128>}, {transform_indices = @transform_14, window_bounds = array<i64: 8, 128>}, {transform_indices = @transform_15, window_bounds = array<i64: 1, 8, 128>}]} {
    %c0 = arith.constant 0 : index
    %c0_0 = arith.constant 0 : index
    %0 = vector.load %arg1[%c0, %c0_0] : memref<8x128xf32, #tpu.memory_space<vmem>>, vector<8x128xf32>
    %cst = arith.constant 0.000000e+00 : f32
    %1 = vector.broadcast %cst : f32 to vector<8x128xf32>
    %2 = tpu.iota {dimensions = array<i32: 0>} : vector<8x128xi32>
    %c0_1 = arith.constant 0 : index
    %c0_2 = arith.constant 0 : index
    %3 = vector.load %arg2[%c0_1, %c0_2] : memref<16x256xf32, #tpu.memory_space<vmem>>, vector<16x256xf32>
    %4 = vector.extract_strided_slice %3 {offsets = [0, 0], sizes = [1, 128], strides = [1, 1]} : vector<16x256xf32> to vector<1x128xf32>
    %5 = vector.extract_strided_slice %3 {offsets = [1, 0], sizes = [1, 128], strides = [1, 1]} : vector<16x256xf32> to vector<1x128xf32>
    %cst_3 = arith.constant dense<0.000000e+00> : vector<8xf32>
    %6 = vector.multi_reduction <add>, %0, %cst_3 [1] : vector<8x128xf32> to vector<8xf32>
    %7 = vector.shape_cast %6 : vector<8xf32> to vector<8x1xf32>
    %cst_4 = arith.constant 7.812500e-03 : f32
    %8 = vector.broadcast %cst_4 : f32 to vector<8x1xf32>
    %9 = arith.mulf %7, %8 : vector<8x1xf32>
    %10 = vector.broadcast %9 : vector<8x1xf32> to vector<8x128xf32>
    %11 = arith.subf %0, %10 : vector<8x128xf32>
    %12 = arith.mulf %11, %11 : vector<8x128xf32>
    %cst_5 = arith.constant dense<0.000000e+00> : vector<8xf32>
    %13 = vector.multi_reduction <add>, %12, %cst_5 [1] : vector<8x128xf32> to vector<8xf32>
    %14 = vector.shape_cast %13 : vector<8xf32> to vector<8x1xf32>
    %cst_6 = arith.constant 7.812500e-03 : f32
    %15 = vector.broadcast %cst_6 : f32 to vector<8x1xf32>
    %16 = arith.mulf %14, %15 : vector<8x1xf32>
    %cst_7 = arith.constant 9.99999974E-6 : f32
    %17 = vector.broadcast %cst_7 : f32 to vector<8x1xf32>
    %18 = arith.addf %16, %17 : vector<8x1xf32>
    %19 = math.rsqrt %18 : vector<8x1xf32>
    %20 = vector.broadcast %19 : vector<8x1xf32> to vector<8x128xf32>
    %21 = arith.mulf %11, %20 : vector<8x128xf32>
    %22 = vector.broadcast %4 : vector<1x128xf32> to vector<8x128xf32>
    %23 = arith.mulf %21, %22 : vector<8x128xf32>
    %24 = vector.broadcast %5 : vector<1x128xf32> to vector<8x128xf32>
    %25 = arith.addf %23, %24 : vector<8x128xf32>
    %c0_8 = arith.constant 0 : index
    %c0_9 = arith.constant 0 : index
    %26 = vector.load %arg4[%c0_8, %c0_9] : memref<128x1152xbf16, #tpu.memory_space<vmem>>, vector<128x1152xbf16>
    %27 = arith.truncf %25 : vector<8x128xf32> to vector<8x128xbf16>
    %cst_10 = arith.constant dense<0.000000e+00> : vector<8x1152xf32>
    %28 = tpu.matmul %27, %26, %cst_10 {dimension_numbers = #tpu.dot_dimension_numbers<[1], [0], [0], [1], [0, 0, 1, 1], [], []>} : vector<8x128xbf16>, vector<128x1152xbf16>, vector<8x1152xf32> -> vector<8x1152xf32>
    %c0_11 = arith.constant 0 : index
    %c0_12 = arith.constant 0 : index
    %29 = vector.load %arg3[%c0_11, %c0_12] : memref<1x1152xf32, #tpu.memory_space<vmem>>, vector<1x1152xf32>
    %30 = vector.broadcast %29 : vector<1x1152xf32> to vector<8x1152xf32>
    %31 = arith.addf %28, %30 : vector<8x1152xf32>
    %32 = tpu.iota {dimensions = array<i32: 1>} : vector<8x128xi32>
    %c4_i32 = arith.constant 4 : i32
    %33 = vector.broadcast %c4_i32 : i32 to vector<8x128xi32>
    %34 = arith.cmpi slt, %32, %33 : vector<8x128xi32>
    %35 = vector.extract_strided_slice %31 {offsets = [0, 0], sizes = [8, 128], strides = [1, 1]} : vector<8x1152xf32> to vector<8x128xf32>
    %cst_13 = arith.constant -1.000000e+30 : f32
    %36 = vector.broadcast %cst_13 : f32 to vector<8x128xf32>
    %37 = arith.select %34, %35, %36 : vector<8x128xi1>, vector<8x128xf32>
    %cst_14 = arith.constant dense<0xFF800000> : vector<8xf32>
    %38 = vector.multi_reduction <maximumf>, %37, %cst_14 [1] : vector<8x128xf32> to vector<8xf32>
    %39 = vector.shape_cast %38 : vector<8xf32> to vector<8x1xf32>
    %40 = vector.broadcast %39 : vector<8x1xf32> to vector<8x128xf32>
    %41 = arith.subf %37, %40 : vector<8x128xf32>
    %42 = math.exp %41 : vector<8x128xf32>
    %cst_15 = arith.constant dense<0.000000e+00> : vector<8xf32>
    %43 = vector.multi_reduction <add>, %42, %cst_15 [1] : vector<8x128xf32> to vector<8xf32>
    %44 = vector.shape_cast %43 : vector<8xf32> to vector<8x1xf32>
    %45 = tpu.reciprocal %44 {approx = true} : vector<8x1xf32> -> vector<8x1xf32>
    %46 = vector.broadcast %45 : vector<8x1xf32> to vector<8x128xf32>
    %47 = arith.mulf %42, %46 : vector<8x128xf32>
    %48 = tpu.iota {dimensions = array<i32: 1>} : vector<8x128xi32>
    %49 = arith.sitofp %48 : vector<8x128xi32> to vector<8x128xf32>
    %cst_16 = arith.constant 0.000000e+00 : f32
    %50 = vector.broadcast %cst_16 : f32 to vector<8x128xf32>
    %cst_17 = arith.constant dense<0xFF800000> : vector<8xf32>
    %51 = vector.multi_reduction <maximumf>, %47, %cst_17 [1] : vector<8x128xf32> to vector<8xf32>
    %52 = vector.shape_cast %51 : vector<8xf32> to vector<8x1xf32>
    %53 = vector.broadcast %52 : vector<8x1xf32> to vector<8x128xf32>
    %54 = arith.cmpf oeq, %47, %53 : vector<8x128xf32>
    %cst_18 = arith.constant 1.280000e+02 : f32
    %55 = vector.broadcast %cst_18 : f32 to vector<8x128xf32>
    %56 = arith.select %54, %49, %55 : vector<8x128xi1>, vector<8x128xf32>
    %cst_19 = arith.constant dense<0x7F800000> : vector<8xf32>
    %57 = vector.multi_reduction <minimumf>, %56, %cst_19 [1] : vector<8x128xf32> to vector<8xf32>
    %58 = vector.shape_cast %57 : vector<8xf32> to vector<8x1xf32>
    %59 = vector.broadcast %58 : vector<8x1xf32> to vector<8x128xf32>
    %60 = arith.cmpf oeq, %49, %59 : vector<8x128xf32>
    %61 = arith.extui %60 : vector<8x128xi1> to vector<8x128xi32>
    %62 = arith.sitofp %61 : vector<8x128xi32> to vector<8x128xf32>
    %63 = arith.addf %50, %62 : vector<8x128xf32>
    %cst_20 = arith.constant 0.000000e+00 : f32
    %64 = vector.broadcast %cst_20 : f32 to vector<8x128xf32>
    %65 = arith.cmpf ogt, %62, %64 : vector<8x128xf32>
    %cst_21 = arith.constant -1.000000e+00 : f32
    %66 = vector.broadcast %cst_21 : f32 to vector<8x128xf32>
    %67 = arith.select %65, %66, %47 : vector<8x128xi1>, vector<8x128xf32>
    %cst_22 = arith.constant dense<0xFF800000> : vector<8xf32>
    %68 = vector.multi_reduction <maximumf>, %67, %cst_22 [1] : vector<8x128xf32> to vector<8xf32>
    %69 = vector.shape_cast %68 : vector<8xf32> to vector<8x1xf32>
    %70 = vector.broadcast %69 : vector<8x1xf32> to vector<8x128xf32>
    %71 = arith.cmpf oeq, %67, %70 : vector<8x128xf32>
    %cst_23 = arith.constant 1.280000e+02 : f32
    %72 = vector.broadcast %cst_23 : f32 to vector<8x128xf32>
    %73 = arith.select %71, %49, %72 : vector<8x128xi1>, vector<8x128xf32>
    %cst_24 = arith.constant dense<0x7F800000> : vector<8xf32>
    %74 = vector.multi_reduction <minimumf>, %73, %cst_24 [1] : vector<8x128xf32> to vector<8xf32>
    %75 = vector.shape_cast %74 : vector<8xf32> to vector<8x1xf32>
    %76 = vector.broadcast %75 : vector<8x1xf32> to vector<8x128xf32>
    %77 = arith.cmpf oeq, %49, %76 : vector<8x128xf32>
    %78 = arith.extui %77 : vector<8x128xi1> to vector<8x128xi32>
    %79 = arith.sitofp %78 : vector<8x128xi32> to vector<8x128xf32>
    %80 = arith.addf %63, %79 : vector<8x128xf32>
    %81 = arith.mulf %47, %80 : vector<8x128xf32>
    %cst_25 = arith.constant dense<0.000000e+00> : vector<8xf32>
    %82 = vector.multi_reduction <add>, %81, %cst_25 [1] : vector<8x128xf32> to vector<8xf32>
    %83 = vector.shape_cast %82 : vector<8xf32> to vector<8x1xf32>
    %84 = tpu.reciprocal %83 {approx = true} : vector<8x1xf32> -> vector<8x1xf32>
    %85 = vector.broadcast %84 : vector<8x1xf32> to vector<8x128xf32>
    %86 = arith.mulf %81, %85 : vector<8x128xf32>
    %87 = vector.extract_strided_slice %86 {offsets = [0, 0], sizes = [8, 1], strides = [1, 1]} : vector<8x128xf32> to vector<8x1xf32>
    %88 = vector.extract_strided_slice %86 {offsets = [0, 1], sizes = [8, 1], strides = [1, 1]} : vector<8x128xf32> to vector<8x1xf32>
    %89 = vector.extract_strided_slice %86 {offsets = [0, 2], sizes = [8, 1], strides = [1, 1]} : vector<8x128xf32> to vector<8x1xf32>
    %90 = vector.extract_strided_slice %86 {offsets = [0, 3], sizes = [8, 1], strides = [1, 1]} : vector<8x128xf32> to vector<8x1xf32>
    %c0_26 = arith.constant 0 : index
    %c0_27 = arith.constant 0 : index
    %91 = vector.load %arg5[%c0_26, %c0_27] : memref<256x640xbf16, #tpu.memory_space<vmem>>, vector<256x640xbf16>
    %92 = vector.extract_strided_slice %31 {offsets = [0, 128], sizes = [8, 256], strides = [1, 1]} : vector<8x1152xf32> to vector<8x256xf32>
    %cst_28 = arith.constant 5.000000e-01 : f32
    %93 = vector.broadcast %cst_28 : f32 to vector<8x256xf32>
    %94 = arith.mulf %93, %92 : vector<8x256xf32>
    %cst_29 = arith.constant 0.707106769 : f32
    %95 = vector.broadcast %cst_29 : f32 to vector<8x256xf32>
    %96 = arith.mulf %92, %95 : vector<8x256xf32>
    %97 = math.absf %96 : vector<8x256xf32>
    %cst_30 = arith.constant 0.327591091 : f32
    %98 = vector.broadcast %cst_30 : f32 to vector<8x256xf32>
    %99 = arith.mulf %98, %97 : vector<8x256xf32>
    %cst_31 = arith.constant 1.000000e+00 : f32
    %100 = vector.broadcast %cst_31 : f32 to vector<8x256xf32>
    %101 = arith.addf %100, %99 : vector<8x256xf32>
    %cst_32 = arith.constant 1.000000e+00 : f32
    %102 = vector.broadcast %cst_32 : f32 to vector<8x256xf32>
    %103 = arith.divf %102, %101 : vector<8x256xf32>
    %cst_33 = arith.constant 1.06140542 : f32
    %104 = vector.broadcast %cst_33 : f32 to vector<8x256xf32>
    %105 = arith.mulf %103, %104 : vector<8x256xf32>
    %cst_34 = arith.constant -1.45315206 : f32
    %106 = vector.broadcast %cst_34 : f32 to vector<8x256xf32>
    %107 = arith.addf %106, %105 : vector<8x256xf32>
    %108 = arith.mulf %103, %107 : vector<8x256xf32>
    %cst_35 = arith.constant 1.42141378 : f32
    %109 = vector.broadcast %cst_35 : f32 to vector<8x256xf32>
    %110 = arith.addf %109, %108 : vector<8x256xf32>
    %111 = arith.mulf %103, %110 : vector<8x256xf32>
    %cst_36 = arith.constant -0.284496725 : f32
    %112 = vector.broadcast %cst_36 : f32 to vector<8x256xf32>
    %113 = arith.addf %112, %111 : vector<8x256xf32>
    %114 = arith.mulf %103, %113 : vector<8x256xf32>
    %cst_37 = arith.constant 0.254829586 : f32
    %115 = vector.broadcast %cst_37 : f32 to vector<8x256xf32>
    %116 = arith.addf %115, %114 : vector<8x256xf32>
    %117 = arith.mulf %103, %116 : vector<8x256xf32>
    %118 = arith.mulf %97, %97 : vector<8x256xf32>
    %cst_38 = arith.constant 0.000000e+00 : f32
    %119 = vector.broadcast %cst_38 : f32 to vector<8x256xf32>
    %120 = arith.subf %119, %118 : vector<8x256xf32>
    %121 = math.exp %120 : vector<8x256xf32>
    %122 = arith.mulf %117, %121 : vector<8x256xf32>
    %cst_39 = arith.constant 1.000000e+00 : f32
    %123 = vector.broadcast %cst_39 : f32 to vector<8x256xf32>
    %124 = arith.subf %123, %122 : vector<8x256xf32>
    %cst_40 = arith.constant 0.000000e+00 : f32
    %125 = vector.broadcast %cst_40 : f32 to vector<8x256xf32>
    %126 = arith.cmpf olt, %96, %125 : vector<8x256xf32>
    %cst_41 = arith.constant 0.000000e+00 : f32
    %127 = vector.broadcast %cst_41 : f32 to vector<8x256xf32>
    %128 = arith.subf %127, %124 : vector<8x256xf32>
    %129 = arith.select %126, %128, %124 : vector<8x256xi1>, vector<8x256xf32>
    %cst_42 = arith.constant 1.000000e+00 : f32
    %130 = vector.broadcast %cst_42 : f32 to vector<8x256xf32>
    %131 = arith.addf %130, %129 : vector<8x256xf32>
    %132 = arith.mulf %94, %131 : vector<8x256xf32>
    %133 = vector.extract_strided_slice %91 {offsets = [0, 0], sizes = [256, 256], strides = [1, 1]} : vector<256x640xbf16> to vector<256x256xbf16>
    %134 = arith.truncf %132 : vector<8x256xf32> to vector<8x256xbf16>
    %cst_43 = arith.constant dense<0.000000e+00> : vector<8x256xf32>
    %135 = tpu.matmul %134, %133, %cst_43 {dimension_numbers = #tpu.dot_dimension_numbers<[1], [0], [0], [1], [0, 0, 1, 1], [], []>} : vector<8x256xbf16>, vector<256x256xbf16>, vector<8x256xf32> -> vector<8x256xf32>
    %136 = vector.extract_strided_slice %3 {offsets = [2, 0], sizes = [1, 256], strides = [1, 1]} : vector<16x256xf32> to vector<1x256xf32>
    %137 = vector.broadcast %136 : vector<1x256xf32> to vector<8x256xf32>
    %138 = arith.addf %135, %137 : vector<8x256xf32>
    %139 = vector.extract_strided_slice %3 {offsets = [3, 0], sizes = [1, 256], strides = [1, 1]} : vector<16x256xf32> to vector<1x256xf32>
    %140 = vector.extract_strided_slice %3 {offsets = [4, 0], sizes = [1, 256], strides = [1, 1]} : vector<16x256xf32> to vector<1x256xf32>
    %cst_44 = arith.constant dense<0.000000e+00> : vector<8xf32>
    %141 = vector.multi_reduction <add>, %138, %cst_44 [1] : vector<8x256xf32> to vector<8xf32>
    %142 = vector.shape_cast %141 : vector<8xf32> to vector<8x1xf32>
    %cst_45 = arith.constant 3.906250e-03 : f32
    %143 = vector.broadcast %cst_45 : f32 to vector<8x1xf32>
    %144 = arith.mulf %142, %143 : vector<8x1xf32>
    %145 = vector.broadcast %144 : vector<8x1xf32> to vector<8x256xf32>
    %146 = arith.subf %138, %145 : vector<8x256xf32>
    %147 = arith.mulf %146, %146 : vector<8x256xf32>
    %cst_46 = arith.constant dense<0.000000e+00> : vector<8xf32>
    %148 = vector.multi_reduction <add>, %147, %cst_46 [1] : vector<8x256xf32> to vector<8xf32>
    %149 = vector.shape_cast %148 : vector<8xf32> to vector<8x1xf32>
    %cst_47 = arith.constant 3.906250e-03 : f32
    %150 = vector.broadcast %cst_47 : f32 to vector<8x1xf32>
    %151 = arith.mulf %149, %150 : vector<8x1xf32>
    %cst_48 = arith.constant 9.99999974E-6 : f32
    %152 = vector.broadcast %cst_48 : f32 to vector<8x1xf32>
    %153 = arith.addf %151, %152 : vector<8x1xf32>
    %154 = math.rsqrt %153 : vector<8x1xf32>
    %155 = vector.broadcast %154 : vector<8x1xf32> to vector<8x256xf32>
    %156 = arith.mulf %146, %155 : vector<8x256xf32>
    %157 = vector.broadcast %139 : vector<1x256xf32> to vector<8x256xf32>
    %158 = arith.mulf %156, %157 : vector<8x256xf32>
    %159 = vector.broadcast %140 : vector<1x256xf32> to vector<8x256xf32>
    %160 = arith.addf %158, %159 : vector<8x256xf32>
    %cst_49 = arith.constant 5.000000e-01 : f32
    %161 = vector.broadcast %cst_49 : f32 to vector<8x256xf32>
    %162 = arith.mulf %161, %160 : vector<8x256xf32>
    %cst_50 = arith.constant 0.707106769 : f32
    %163 = vector.broadcast %cst_50 : f32 to vector<8x256xf32>
    %164 = arith.mulf %160, %163 : vector<8x256xf32>
    %165 = math.absf %164 : vector<8x256xf32>
    %cst_51 = arith.constant 0.327591091 : f32
    %166 = vector.broadcast %cst_51 : f32 to vector<8x256xf32>
    %167 = arith.mulf %166, %165 : vector<8x256xf32>
    %cst_52 = arith.constant 1.000000e+00 : f32
    %168 = vector.broadcast %cst_52 : f32 to vector<8x256xf32>
    %169 = arith.addf %168, %167 : vector<8x256xf32>
    %cst_53 = arith.constant 1.000000e+00 : f32
    %170 = vector.broadcast %cst_53 : f32 to vector<8x256xf32>
    %171 = arith.divf %170, %169 : vector<8x256xf32>
    %cst_54 = arith.constant 1.06140542 : f32
    %172 = vector.broadcast %cst_54 : f32 to vector<8x256xf32>
    %173 = arith.mulf %171, %172 : vector<8x256xf32>
    %cst_55 = arith.constant -1.45315206 : f32
    %174 = vector.broadcast %cst_55 : f32 to vector<8x256xf32>
    %175 = arith.addf %174, %173 : vector<8x256xf32>
    %176 = arith.mulf %171, %175 : vector<8x256xf32>
    %cst_56 = arith.constant 1.42141378 : f32
    %177 = vector.broadcast %cst_56 : f32 to vector<8x256xf32>
    %178 = arith.addf %177, %176 : vector<8x256xf32>
    %179 = arith.mulf %171, %178 : vector<8x256xf32>
    %cst_57 = arith.constant -0.284496725 : f32
    %180 = vector.broadcast %cst_57 : f32 to vector<8x256xf32>
    %181 = arith.addf %180, %179 : vector<8x256xf32>
    %182 = arith.mulf %171, %181 : vector<8x256xf32>
    %cst_58 = arith.constant 0.254829586 : f32
    %183 = vector.broadcast %cst_58 : f32 to vector<8x256xf32>
    %184 = arith.addf %183, %182 : vector<8x256xf32>
    %185 = arith.mulf %171, %184 : vector<8x256xf32>
    %186 = arith.mulf %165, %165 : vector<8x256xf32>
    %cst_59 = arith.constant 0.000000e+00 : f32
    %187 = vector.broadcast %cst_59 : f32 to vector<8x256xf32>
    %188 = arith.subf %187, %186 : vector<8x256xf32>
    %189 = math.exp %188 : vector<8x256xf32>
    %190 = arith.mulf %185, %189 : vector<8x256xf32>
    %cst_60 = arith.constant 1.000000e+00 : f32
    %191 = vector.broadcast %cst_60 : f32 to vector<8x256xf32>
    %192 = arith.subf %191, %190 : vector<8x256xf32>
    %cst_61 = arith.constant 0.000000e+00 : f32
    %193 = vector.broadcast %cst_61 : f32 to vector<8x256xf32>
    %194 = arith.cmpf olt, %164, %193 : vector<8x256xf32>
    %cst_62 = arith.constant 0.000000e+00 : f32
    %195 = vector.broadcast %cst_62 : f32 to vector<8x256xf32>
    %196 = arith.subf %195, %192 : vector<8x256xf32>
    %197 = arith.select %194, %196, %192 : vector<8x256xi1>, vector<8x256xf32>
    %cst_63 = arith.constant 1.000000e+00 : f32
    %198 = vector.broadcast %cst_63 : f32 to vector<8x256xf32>
    %199 = arith.addf %198, %197 : vector<8x256xf32>
    %200 = arith.mulf %162, %199 : vector<8x256xf32>
    %201 = vector.broadcast %87 : vector<8x1xf32> to vector<8x256xf32>
    %202 = arith.mulf %200, %201 : vector<8x256xf32>
    %c0_64 = arith.constant 0 : index
    %c0_65 = arith.constant 0 : index
    %c0_66 = arith.constant 0 : index
    %203 = vector.load %arg7[%c0_64, %c0_65, %c0_66] : memref<4x256x128xbf16, #tpu.memory_space<vmem>>, vector<1x256x128xbf16>
    %204 = vector.shape_cast %203 : vector<1x256x128xbf16> to vector<256x128xbf16>
    %205 = arith.truncf %202 : vector<8x256xf32> to vector<8x256xbf16>
    %cst_67 = arith.constant dense<0.000000e+00> : vector<8x128xf32>
    %206 = tpu.matmul %205, %204, %cst_67 {dimension_numbers = #tpu.dot_dimension_numbers<[1], [0], [0], [1], [0, 0, 1, 1], [], []>} : vector<8x256xbf16>, vector<256x128xbf16>, vector<8x128xf32> -> vector<8x128xf32>
    %207 = vector.extract_strided_slice %3 {offsets = [10, 0], sizes = [1, 128], strides = [1, 1]} : vector<16x256xf32> to vector<1x128xf32>
    %208 = vector.broadcast %87 : vector<8x1xf32> to vector<8x128xf32>
    %209 = vector.broadcast %207 : vector<1x128xf32> to vector<8x128xf32>
    %210 = arith.mulf %208, %209 : vector<8x128xf32>
    %211 = vector.extract_strided_slice %31 {offsets = [0, 384], sizes = [8, 256], strides = [1, 1]} : vector<8x1152xf32> to vector<8x256xf32>
    %cst_68 = arith.constant 5.000000e-01 : f32
    %212 = vector.broadcast %cst_68 : f32 to vector<8x256xf32>
    %213 = arith.mulf %212, %211 : vector<8x256xf32>
    %cst_69 = arith.constant 0.707106769 : f32
    %214 = vector.broadcast %cst_69 : f32 to vector<8x256xf32>
    %215 = arith.mulf %211, %214 : vector<8x256xf32>
    %216 = math.absf %215 : vector<8x256xf32>
    %cst_70 = arith.constant 0.327591091 : f32
    %217 = vector.broadcast %cst_70 : f32 to vector<8x256xf32>
    %218 = arith.mulf %217, %216 : vector<8x256xf32>
    %cst_71 = arith.constant 1.000000e+00 : f32
    %219 = vector.broadcast %cst_71 : f32 to vector<8x256xf32>
    %220 = arith.addf %219, %218 : vector<8x256xf32>
    %cst_72 = arith.constant 1.000000e+00 : f32
    %221 = vector.broadcast %cst_72 : f32 to vector<8x256xf32>
    %222 = arith.divf %221, %220 : vector<8x256xf32>
    %cst_73 = arith.constant 1.06140542 : f32
    %223 = vector.broadcast %cst_73 : f32 to vector<8x256xf32>
    %224 = arith.mulf %222, %223 : vector<8x256xf32>
    %cst_74 = arith.constant -1.45315206 : f32
    %225 = vector.broadcast %cst_74 : f32 to vector<8x256xf32>
    %226 = arith.addf %225, %224 : vector<8x256xf32>
    %227 = arith.mulf %222, %226 : vector<8x256xf32>
    %cst_75 = arith.constant 1.42141378 : f32
    %228 = vector.broadcast %cst_75 : f32 to vector<8x256xf32>
    %229 = arith.addf %228, %227 : vector<8x256xf32>
    %230 = arith.mulf %222, %229 : vector<8x256xf32>
    %cst_76 = arith.constant -0.284496725 : f32
    %231 = vector.broadcast %cst_76 : f32 to vector<8x256xf32>
    %232 = arith.addf %231, %230 : vector<8x256xf32>
    %233 = arith.mulf %222, %232 : vector<8x256xf32>
    %cst_77 = arith.constant 0.254829586 : f32
    %234 = vector.broadcast %cst_77 : f32 to vector<8x256xf32>
    %235 = arith.addf %234, %233 : vector<8x256xf32>
    %236 = arith.mulf %222, %235 : vector<8x256xf32>
    %237 = arith.mulf %216, %216 : vector<8x256xf32>
    %cst_78 = arith.constant 0.000000e+00 : f32
    %238 = vector.broadcast %cst_78 : f32 to vector<8x256xf32>
    %239 = arith.subf %238, %237 : vector<8x256xf32>
    %240 = math.exp %239 : vector<8x256xf32>
    %241 = arith.mulf %236, %240 : vector<8x256xf32>
    %cst_79 = arith.constant 1.000000e+00 : f32
    %242 = vector.broadcast %cst_79 : f32 to vector<8x256xf32>
    %243 = arith.subf %242, %241 : vector<8x256xf32>
    %cst_80 = arith.constant 0.000000e+00 : f32
    %244 = vector.broadcast %cst_80 : f32 to vector<8x256xf32>
    %245 = arith.cmpf olt, %215, %244 : vector<8x256xf32>
    %cst_81 = arith.constant 0.000000e+00 : f32
    %246 = vector.broadcast %cst_81 : f32 to vector<8x256xf32>
    %247 = arith.subf %246, %243 : vector<8x256xf32>
    %248 = arith.select %245, %247, %243 : vector<8x256xi1>, vector<8x256xf32>
    %cst_82 = arith.constant 1.000000e+00 : f32
    %249 = vector.broadcast %cst_82 : f32 to vector<8x256xf32>
    %250 = arith.addf %249, %248 : vector<8x256xf32>
    %251 = arith.mulf %213, %250 : vector<8x256xf32>
    %252 = vector.extract_strided_slice %91 {offsets = [0, 512], sizes = [256, 128], strides = [1, 1]} : vector<256x640xbf16> to vector<256x128xbf16>
    %253 = arith.truncf %251 : vector<8x256xf32> to vector<8x256xbf16>
    %cst_83 = arith.constant dense<0.000000e+00> : vector<8x128xf32>
    %254 = tpu.matmul %253, %252, %cst_83 {dimension_numbers = #tpu.dot_dimension_numbers<[1], [0], [0], [1], [0, 0, 1, 1], [], []>} : vector<8x256xbf16>, vector<256x128xbf16>, vector<8x128xf32> -> vector<8x128xf32>
    %255 = vector.extract_strided_slice %3 {offsets = [5, 0], sizes = [1, 128], strides = [1, 1]} : vector<16x256xf32> to vector<1x128xf32>
    %256 = vector.broadcast %255 : vector<1x128xf32> to vector<8x128xf32>
    %257 = arith.addf %254, %256 : vector<8x128xf32>
    %cst_84 = arith.constant 5.000000e-01 : f32
    %258 = vector.broadcast %cst_84 : f32 to vector<8x128xf32>
    %259 = arith.mulf %258, %257 : vector<8x128xf32>
    %cst_85 = arith.constant 0.707106769 : f32
    %260 = vector.broadcast %cst_85 : f32 to vector<8x128xf32>
    %261 = arith.mulf %257, %260 : vector<8x128xf32>
    %262 = math.absf %261 : vector<8x128xf32>
    %cst_86 = arith.constant 0.327591091 : f32
    %263 = vector.broadcast %cst_86 : f32 to vector<8x128xf32>
    %264 = arith.mulf %263, %262 : vector<8x128xf32>
    %cst_87 = arith.constant 1.000000e+00 : f32
    %265 = vector.broadcast %cst_87 : f32 to vector<8x128xf32>
    %266 = arith.addf %265, %264 : vector<8x128xf32>
    %cst_88 = arith.constant 1.000000e+00 : f32
    %267 = vector.broadcast %cst_88 : f32 to vector<8x128xf32>
    %268 = arith.divf %267, %266 : vector<8x128xf32>
    %cst_89 = arith.constant 1.06140542 : f32
    %269 = vector.broadcast %cst_89 : f32 to vector<8x128xf32>
    %270 = arith.mulf %268, %269 : vector<8x128xf32>
    %cst_90 = arith.constant -1.45315206 : f32
    %271 = vector.broadcast %cst_90 : f32 to vector<8x128xf32>
    %272 = arith.addf %271, %270 : vector<8x128xf32>
    %273 = arith.mulf %268, %272 : vector<8x128xf32>
    %cst_91 = arith.constant 1.42141378 : f32
    %274 = vector.broadcast %cst_91 : f32 to vector<8x128xf32>
    %275 = arith.addf %274, %273 : vector<8x128xf32>
    %276 = arith.mulf %268, %275 : vector<8x128xf32>
    %cst_92 = arith.constant -0.284496725 : f32
    %277 = vector.broadcast %cst_92 : f32 to vector<8x128xf32>
    %278 = arith.addf %277, %276 : vector<8x128xf32>
    %279 = arith.mulf %268, %278 : vector<8x128xf32>
    %cst_93 = arith.constant 0.254829586 : f32
    %280 = vector.broadcast %cst_93 : f32 to vector<8x128xf32>
    %281 = arith.addf %280, %279 : vector<8x128xf32>
    %282 = arith.mulf %268, %281 : vector<8x128xf32>
    %283 = arith.mulf %262, %262 : vector<8x128xf32>
    %cst_94 = arith.constant 0.000000e+00 : f32
    %284 = vector.broadcast %cst_94 : f32 to vector<8x128xf32>
    %285 = arith.subf %284, %283 : vector<8x128xf32>
    %286 = math.exp %285 : vector<8x128xf32>
    %287 = arith.mulf %282, %286 : vector<8x128xf32>
    %cst_95 = arith.constant 1.000000e+00 : f32
    %288 = vector.broadcast %cst_95 : f32 to vector<8x128xf32>
    %289 = arith.subf %288, %287 : vector<8x128xf32>
    %cst_96 = arith.constant 0.000000e+00 : f32
    %290 = vector.broadcast %cst_96 : f32 to vector<8x128xf32>
    %291 = arith.cmpf olt, %261, %290 : vector<8x128xf32>
    %cst_97 = arith.constant 0.000000e+00 : f32
    %292 = vector.broadcast %cst_97 : f32 to vector<8x128xf32>
    %293 = arith.subf %292, %289 : vector<8x128xf32>
    %294 = arith.select %291, %293, %289 : vector<8x128xi1>, vector<8x128xf32>
    %cst_98 = arith.constant 1.000000e+00 : f32
    %295 = vector.broadcast %cst_98 : f32 to vector<8x128xf32>
    %296 = arith.addf %295, %294 : vector<8x128xf32>
    %297 = arith.mulf %259, %296 : vector<8x128xf32>
    %c0_99 = arith.constant 0 : index
    %c0_100 = arith.constant 0 : index
    %298 = vector.load %arg6[%c0_99, %c0_100] : memref<128x256xbf16, #tpu.memory_space<vmem>>, vector<128x256xbf16>
    %299 = arith.truncf %297 : vector<8x128xf32> to vector<8x128xbf16>
    %cst_101 = arith.constant dense<0.000000e+00> : vector<8x256xf32>
    %300 = tpu.matmul %299, %298, %cst_101 {dimension_numbers = #tpu.dot_dimension_numbers<[1], [0], [0], [1], [0, 0, 1, 1], [], []>} : vector<8x128xbf16>, vector<128x256xbf16>, vector<8x256xf32> -> vector<8x256xf32>
    %301 = vector.extract_strided_slice %3 {offsets = [6, 0], sizes = [1, 256], strides = [1, 1]} : vector<16x256xf32> to vector<1x256xf32>
    %302 = vector.broadcast %301 : vector<1x256xf32> to vector<8x256xf32>
    %303 = arith.addf %300, %302 : vector<8x256xf32>
    %304 = vector.extract_strided_slice %3 {offsets = [7, 0], sizes = [1, 256], strides = [1, 1]} : vector<16x256xf32> to vector<1x256xf32>
    %305 = vector.extract_strided_slice %3 {offsets = [8, 0], sizes = [1, 256], strides = [1, 1]} : vector<16x256xf32> to vector<1x256xf32>
    %cst_102 = arith.constant dense<0.000000e+00> : vector<8xf32>
    %306 = vector.multi_reduction <add>, %303, %cst_102 [1] : vector<8x256xf32> to vector<8xf32>
    %307 = vector.shape_cast %306 : vector<8xf32> to vector<8x1xf32>
    %cst_103 = arith.constant 3.906250e-03 : f32
    %308 = vector.broadcast %cst_103 : f32 to vector<8x1xf32>
    %309 = arith.mulf %307, %308 : vector<8x1xf32>
    %310 = vector.broadcast %309 : vector<8x1xf32> to vector<8x256xf32>
    %311 = arith.subf %303, %310 : vector<8x256xf32>
    %312 = arith.mulf %311, %311 : vector<8x256xf32>
    %cst_104 = arith.constant dense<0.000000e+00> : vector<8xf32>
    %313 = vector.multi_reduction <add>, %312, %cst_104 [1] : vector<8x256xf32> to vector<8xf32>
    %314 = vector.shape_cast %313 : vector<8xf32> to vector<8x1xf32>
    %cst_105 = arith.constant 3.906250e-03 : f32
    %315 = vector.broadcast %cst_105 : f32 to vector<8x1xf32>
    %316 = arith.mulf %314, %315 : vector<8x1xf32>
    %cst_106 = arith.constant 9.99999974E-6 : f32
    %317 = vector.broadcast %cst_106 : f32 to vector<8x1xf32>
    %318 = arith.addf %316, %317 : vector<8x1xf32>
    %319 = math.rsqrt %318 : vector<8x1xf32>
    %320 = vector.broadcast %319 : vector<8x1xf32> to vector<8x256xf32>
    %321 = arith.mulf %311, %320 : vector<8x256xf32>
    %322 = vector.broadcast %304 : vector<1x256xf32> to vector<8x256xf32>
    %323 = arith.mulf %321, %322 : vector<8x256xf32>
    %324 = vector.broadcast %305 : vector<1x256xf32> to vector<8x256xf32>
    %325 = arith.addf %323, %324 : vector<8x256xf32>
    %326 = vector.broadcast %88 : vector<8x1xf32> to vector<8x256xf32>
    %327 = arith.mulf %325, %326 : vector<8x256xf32>
    %c1 = arith.constant 1 : index
    %c0_107 = arith.constant 0 : index
    %c0_108 = arith.constant 0 : index
    %328 = vector.load %arg7[%c1, %c0_107, %c0_108] : memref<4x256x128xbf16, #tpu.memory_space<vmem>>, vector<1x256x128xbf16>
    %329 = vector.shape_cast %328 : vector<1x256x128xbf16> to vector<256x128xbf16>
    %330 = arith.truncf %327 : vector<8x256xf32> to vector<8x256xbf16>
    %cst_109 = arith.constant dense<0.000000e+00> : vector<8x128xf32>
    %331 = tpu.matmul %330, %329, %cst_109 {dimension_numbers = #tpu.dot_dimension_numbers<[1], [0], [0], [1], [0, 0, 1, 1], [], []>} : vector<8x256xbf16>, vector<256x128xbf16>, vector<8x128xf32> -> vector<8x128xf32>
    %332 = arith.addf %206, %331 : vector<8x128xf32>
    %333 = vector.extract_strided_slice %3 {offsets = [11, 0], sizes = [1, 128], strides = [1, 1]} : vector<16x256xf32> to vector<1x128xf32>
    %334 = vector.broadcast %88 : vector<8x1xf32> to vector<8x128xf32>
    %335 = vector.broadcast %333 : vector<1x128xf32> to vector<8x128xf32>
    %336 = arith.mulf %334, %335 : vector<8x128xf32>
    %337 = arith.addf %210, %336 : vector<8x128xf32>
    %338 = vector.extract_strided_slice %31 {offsets = [0, 640], sizes = [8, 256], strides = [1, 1]} : vector<8x1152xf32> to vector<8x256xf32>
    %cst_110 = arith.constant 5.000000e-01 : f32
    %339 = vector.broadcast %cst_110 : f32 to vector<8x256xf32>
    %340 = arith.mulf %339, %338 : vector<8x256xf32>
    %cst_111 = arith.constant 0.707106769 : f32
    %341 = vector.broadcast %cst_111 : f32 to vector<8x256xf32>
    %342 = arith.mulf %338, %341 : vector<8x256xf32>
    %343 = math.absf %342 : vector<8x256xf32>
    %cst_112 = arith.constant 0.327591091 : f32
    %344 = vector.broadcast %cst_112 : f32 to vector<8x256xf32>
    %345 = arith.mulf %344, %343 : vector<8x256xf32>
    %cst_113 = arith.constant 1.000000e+00 : f32
    %346 = vector.broadcast %cst_113 : f32 to vector<8x256xf32>
    %347 = arith.addf %346, %345 : vector<8x256xf32>
    %cst_114 = arith.constant 1.000000e+00 : f32
    %348 = vector.broadcast %cst_114 : f32 to vector<8x256xf32>
    %349 = arith.divf %348, %347 : vector<8x256xf32>
    %cst_115 = arith.constant 1.06140542 : f32
    %350 = vector.broadcast %cst_115 : f32 to vector<8x256xf32>
    %351 = arith.mulf %349, %350 : vector<8x256xf32>
    %cst_116 = arith.constant -1.45315206 : f32
    %352 = vector.broadcast %cst_116 : f32 to vector<8x256xf32>
    %353 = arith.addf %352, %351 : vector<8x256xf32>
    %354 = arith.mulf %349, %353 : vector<8x256xf32>
    %cst_117 = arith.constant 1.42141378 : f32
    %355 = vector.broadcast %cst_117 : f32 to vector<8x256xf32>
    %356 = arith.addf %355, %354 : vector<8x256xf32>
    %357 = arith.mulf %349, %356 : vector<8x256xf32>
    %cst_118 = arith.constant -0.284496725 : f32
    %358 = vector.broadcast %cst_118 : f32 to vector<8x256xf32>
    %359 = arith.addf %358, %357 : vector<8x256xf32>
    %360 = arith.mulf %349, %359 : vector<8x256xf32>
    %cst_119 = arith.constant 0.254829586 : f32
    %361 = vector.broadcast %cst_119 : f32 to vector<8x256xf32>
    %362 = arith.addf %361, %360 : vector<8x256xf32>
    %363 = arith.mulf %349, %362 : vector<8x256xf32>
    %364 = arith.mulf %343, %343 : vector<8x256xf32>
    %cst_120 = arith.constant 0.000000e+00 : f32
    %365 = vector.broadcast %cst_120 : f32 to vector<8x256xf32>
    %366 = arith.subf %365, %364 : vector<8x256xf32>
    %367 = math.exp %366 : vector<8x256xf32>
    %368 = arith.mulf %363, %367 : vector<8x256xf32>
    %cst_121 = arith.constant 1.000000e+00 : f32
    %369 = vector.broadcast %cst_121 : f32 to vector<8x256xf32>
    %370 = arith.subf %369, %368 : vector<8x256xf32>
    %cst_122 = arith.constant 0.000000e+00 : f32
    %371 = vector.broadcast %cst_122 : f32 to vector<8x256xf32>
    %372 = arith.cmpf olt, %342, %371 : vector<8x256xf32>
    %cst_123 = arith.constant 0.000000e+00 : f32
    %373 = vector.broadcast %cst_123 : f32 to vector<8x256xf32>
    %374 = arith.subf %373, %370 : vector<8x256xf32>
    %375 = arith.select %372, %374, %370 : vector<8x256xi1>, vector<8x256xf32>
    %cst_124 = arith.constant 1.000000e+00 : f32
    %376 = vector.broadcast %cst_124 : f32 to vector<8x256xf32>
    %377 = arith.addf %376, %375 : vector<8x256xf32>
    %378 = arith.mulf %340, %377 : vector<8x256xf32>
    %379 = vector.extract_strided_slice %91 {offsets = [0, 256], sizes = [256, 256], strides = [1, 1]} : vector<256x640xbf16> to vector<256x256xbf16>
    %380 = arith.truncf %378 : vector<8x256xf32> to vector<8x256xbf16>
    %cst_125 = arith.constant dense<0.000000e+00> : vector<8x256xf32>
    %381 = tpu.matmul %380, %379, %cst_125 {dimension_numbers = #tpu.dot_dimension_numbers<[1], [0], [0], [1], [0, 0, 1, 1], [], []>} : vector<8x256xbf16>, vector<256x256xbf16>, vector<8x256xf32> -> vector<8x256xf32>
    %382 = vector.extract_strided_slice %3 {offsets = [9, 0], sizes = [1, 256], strides = [1, 1]} : vector<16x256xf32> to vector<1x256xf32>
    %383 = vector.broadcast %382 : vector<1x256xf32> to vector<8x256xf32>
    %384 = arith.addf %381, %383 : vector<8x256xf32>
    %cst_126 = arith.constant 5.000000e-01 : f32
    %385 = vector.broadcast %cst_126 : f32 to vector<8x256xf32>
    %386 = arith.mulf %385, %384 : vector<8x256xf32>
    %cst_127 = arith.constant 0.707106769 : f32
    %387 = vector.broadcast %cst_127 : f32 to vector<8x256xf32>
    %388 = arith.mulf %384, %387 : vector<8x256xf32>
    %389 = math.absf %388 : vector<8x256xf32>
    %cst_128 = arith.constant 0.327591091 : f32
    %390 = vector.broadcast %cst_128 : f32 to vector<8x256xf32>
    %391 = arith.mulf %390, %389 : vector<8x256xf32>
    %cst_129 = arith.constant 1.000000e+00 : f32
    %392 = vector.broadcast %cst_129 : f32 to vector<8x256xf32>
    %393 = arith.addf %392, %391 : vector<8x256xf32>
    %cst_130 = arith.constant 1.000000e+00 : f32
    %394 = vector.broadcast %cst_130 : f32 to vector<8x256xf32>
    %395 = arith.divf %394, %393 : vector<8x256xf32>
    %cst_131 = arith.constant 1.06140542 : f32
    %396 = vector.broadcast %cst_131 : f32 to vector<8x256xf32>
    %397 = arith.mulf %395, %396 : vector<8x256xf32>
    %cst_132 = arith.constant -1.45315206 : f32
    %398 = vector.broadcast %cst_132 : f32 to vector<8x256xf32>
    %399 = arith.addf %398, %397 : vector<8x256xf32>
    %400 = arith.mulf %395, %399 : vector<8x256xf32>
    %cst_133 = arith.constant 1.42141378 : f32
    %401 = vector.broadcast %cst_133 : f32 to vector<8x256xf32>
    %402 = arith.addf %401, %400 : vector<8x256xf32>
    %403 = arith.mulf %395, %402 : vector<8x256xf32>
    %cst_134 = arith.constant -0.284496725 : f32
    %404 = vector.broadcast %cst_134 : f32 to vector<8x256xf32>
    %405 = arith.addf %404, %403 : vector<8x256xf32>
    %406 = arith.mulf %395, %405 : vector<8x256xf32>
    %cst_135 = arith.constant 0.254829586 : f32
    %407 = vector.broadcast %cst_135 : f32 to vector<8x256xf32>
    %408 = arith.addf %407, %406 : vector<8x256xf32>
    %409 = arith.mulf %395, %408 : vector<8x256xf32>
    %410 = arith.mulf %389, %389 : vector<8x256xf32>
    %cst_136 = arith.constant 0.000000e+00 : f32
    %411 = vector.broadcast %cst_136 : f32 to vector<8x256xf32>
    %412 = arith.subf %411, %410 : vector<8x256xf32>
    %413 = math.exp %412 : vector<8x256xf32>
    %414 = arith.mulf %409, %413 : vector<8x256xf32>
    %cst_137 = arith.constant 1.000000e+00 : f32
    %415 = vector.broadcast %cst_137 : f32 to vector<8x256xf32>
    %416 = arith.subf %415, %414 : vector<8x256xf32>
    %cst_138 = arith.constant 0.000000e+00 : f32
    %417 = vector.broadcast %cst_138 : f32 to vector<8x256xf32>
    %418 = arith.cmpf olt, %388, %417 : vector<8x256xf32>
    %cst_139 = arith.constant 0.000000e+00 : f32
    %419 = vector.broadcast %cst_139 : f32 to vector<8x256xf32>
    %420 = arith.subf %419, %416 : vector<8x256xf32>
    %421 = arith.select %418, %420, %416 : vector<8x256xi1>, vector<8x256xf32>
    %cst_140 = arith.constant 1.000000e+00 : f32
    %422 = vector.broadcast %cst_140 : f32 to vector<8x256xf32>
    %423 = arith.addf %422, %421 : vector<8x256xf32>
    %424 = arith.mulf %386, %423 : vector<8x256xf32>
    %425 = vector.broadcast %89 : vector<8x1xf32> to vector<8x256xf32>
    %426 = arith.mulf %424, %425 : vector<8x256xf32>
    %c2 = arith.constant 2 : index
    %c0_141 = arith.constant 0 : index
    %c0_142 = arith.constant 0 : index
    %427 = vector.load %arg7[%c2, %c0_141, %c0_142] : memref<4x256x128xbf16, #tpu.memory_space<vmem>>, vector<1x256x128xbf16>
    %428 = vector.shape_cast %427 : vector<1x256x128xbf16> to vector<256x128xbf16>
    %429 = arith.truncf %426 : vector<8x256xf32> to vector<8x256xbf16>
    %cst_143 = arith.constant dense<0.000000e+00> : vector<8x128xf32>
    %430 = tpu.matmul %429, %428, %cst_143 {dimension_numbers = #tpu.dot_dimension_numbers<[1], [0], [0], [1], [0, 0, 1, 1], [], []>} : vector<8x256xbf16>, vector<256x128xbf16>, vector<8x128xf32> -> vector<8x128xf32>
    %431 = arith.addf %332, %430 : vector<8x128xf32>
    %432 = vector.extract_strided_slice %3 {offsets = [12, 0], sizes = [1, 128], strides = [1, 1]} : vector<16x256xf32> to vector<1x128xf32>
    %433 = vector.broadcast %89 : vector<8x1xf32> to vector<8x128xf32>
    %434 = vector.broadcast %432 : vector<1x128xf32> to vector<8x128xf32>
    %435 = arith.mulf %433, %434 : vector<8x128xf32>
    %436 = arith.addf %337, %435 : vector<8x128xf32>
    %437 = vector.extract_strided_slice %31 {offsets = [0, 896], sizes = [8, 256], strides = [1, 1]} : vector<8x1152xf32> to vector<8x256xf32>
    %cst_144 = arith.constant 5.000000e-01 : f32
    %438 = vector.broadcast %cst_144 : f32 to vector<8x256xf32>
    %439 = arith.mulf %438, %437 : vector<8x256xf32>
    %cst_145 = arith.constant 0.707106769 : f32
    %440 = vector.broadcast %cst_145 : f32 to vector<8x256xf32>
    %441 = arith.mulf %437, %440 : vector<8x256xf32>
    %442 = math.absf %441 : vector<8x256xf32>
    %cst_146 = arith.constant 0.327591091 : f32
    %443 = vector.broadcast %cst_146 : f32 to vector<8x256xf32>
    %444 = arith.mulf %443, %442 : vector<8x256xf32>
    %cst_147 = arith.constant 1.000000e+00 : f32
    %445 = vector.broadcast %cst_147 : f32 to vector<8x256xf32>
    %446 = arith.addf %445, %444 : vector<8x256xf32>
    %cst_148 = arith.constant 1.000000e+00 : f32
    %447 = vector.broadcast %cst_148 : f32 to vector<8x256xf32>
    %448 = arith.divf %447, %446 : vector<8x256xf32>
    %cst_149 = arith.constant 1.06140542 : f32
    %449 = vector.broadcast %cst_149 : f32 to vector<8x256xf32>
    %450 = arith.mulf %448, %449 : vector<8x256xf32>
    %cst_150 = arith.constant -1.45315206 : f32
    %451 = vector.broadcast %cst_150 : f32 to vector<8x256xf32>
    %452 = arith.addf %451, %450 : vector<8x256xf32>
    %453 = arith.mulf %448, %452 : vector<8x256xf32>
    %cst_151 = arith.constant 1.42141378 : f32
    %454 = vector.broadcast %cst_151 : f32 to vector<8x256xf32>
    %455 = arith.addf %454, %453 : vector<8x256xf32>
    %456 = arith.mulf %448, %455 : vector<8x256xf32>
    %cst_152 = arith.constant -0.284496725 : f32
    %457 = vector.broadcast %cst_152 : f32 to vector<8x256xf32>
    %458 = arith.addf %457, %456 : vector<8x256xf32>
    %459 = arith.mulf %448, %458 : vector<8x256xf32>
    %cst_153 = arith.constant 0.254829586 : f32
    %460 = vector.broadcast %cst_153 : f32 to vector<8x256xf32>
    %461 = arith.addf %460, %459 : vector<8x256xf32>
    %462 = arith.mulf %448, %461 : vector<8x256xf32>
    %463 = arith.mulf %442, %442 : vector<8x256xf32>
    %cst_154 = arith.constant 0.000000e+00 : f32
    %464 = vector.broadcast %cst_154 : f32 to vector<8x256xf32>
    %465 = arith.subf %464, %463 : vector<8x256xf32>
    %466 = math.exp %465 : vector<8x256xf32>
    %467 = arith.mulf %462, %466 : vector<8x256xf32>
    %cst_155 = arith.constant 1.000000e+00 : f32
    %468 = vector.broadcast %cst_155 : f32 to vector<8x256xf32>
    %469 = arith.subf %468, %467 : vector<8x256xf32>
    %cst_156 = arith.constant 0.000000e+00 : f32
    %470 = vector.broadcast %cst_156 : f32 to vector<8x256xf32>
    %471 = arith.cmpf olt, %441, %470 : vector<8x256xf32>
    %cst_157 = arith.constant 0.000000e+00 : f32
    %472 = vector.broadcast %cst_157 : f32 to vector<8x256xf32>
    %473 = arith.subf %472, %469 : vector<8x256xf32>
    %474 = arith.select %471, %473, %469 : vector<8x256xi1>, vector<8x256xf32>
    %cst_158 = arith.constant 1.000000e+00 : f32
    %475 = vector.broadcast %cst_158 : f32 to vector<8x256xf32>
    %476 = arith.addf %475, %474 : vector<8x256xf32>
    %477 = arith.mulf %439, %476 : vector<8x256xf32>
    %478 = vector.broadcast %90 : vector<8x1xf32> to vector<8x256xf32>
    %479 = arith.mulf %477, %478 : vector<8x256xf32>
    %c3 = arith.constant 3 : index
    %c0_159 = arith.constant 0 : index
    %c0_160 = arith.constant 0 : index
    %480 = vector.load %arg7[%c3, %c0_159, %c0_160] : memref<4x256x128xbf16, #tpu.memory_space<vmem>>, vector<1x256x128xbf16>
    %481 = vector.shape_cast %480 : vector<1x256x128xbf16> to vector<256x128xbf16>
    %482 = arith.truncf %479 : vector<8x256xf32> to vector<8x256xbf16>
    %cst_161 = arith.constant dense<0.000000e+00> : vector<8x128xf32>
    %483 = tpu.matmul %482, %481, %cst_161 {dimension_numbers = #tpu.dot_dimension_numbers<[1], [0], [0], [1], [0, 0, 1, 1], [], []>} : vector<8x256xbf16>, vector<256x128xbf16>, vector<8x128xf32> -> vector<8x128xf32>
    %484 = arith.addf %431, %483 : vector<8x128xf32>
    %485 = vector.extract_strided_slice %3 {offsets = [13, 0], sizes = [1, 128], strides = [1, 1]} : vector<16x256xf32> to vector<1x128xf32>
    %486 = vector.broadcast %90 : vector<8x1xf32> to vector<8x128xf32>
    %487 = vector.broadcast %485 : vector<1x128xf32> to vector<8x128xf32>
    %488 = arith.mulf %486, %487 : vector<8x128xf32>
    %489 = arith.addf %436, %488 : vector<8x128xf32>
    %490 = arith.addf %484, %489 : vector<8x128xf32>
    %491 = arith.addf %490, %0 : vector<8x128xf32>
    %492 = math.log %44 : vector<8x1xf32>
    %493 = arith.addf %39, %492 : vector<8x1xf32>
    %494 = arith.mulf %493, %493 : vector<8x1xf32>
    %cst_162 = arith.constant dense<0.000000e+00> : vector<128xf32>
    %495 = vector.multi_reduction <add>, %47, %cst_162 [0] : vector<8x128xf32> to vector<128xf32>
    %496 = vector.shape_cast %495 : vector<128xf32> to vector<1x128xf32>
    %cst_163 = arith.constant dense<0.000000e+00> : vector<1xf32>
    %497 = vector.multi_reduction <add>, %494, %cst_163 [0] : vector<8x1xf32> to vector<1xf32>
    %498 = vector.shape_cast %497 : vector<1xf32> to vector<1x1xf32>
    %499 = tpu.iota {dimensions = array<i32: 1>} : vector<1x128xi32>
    %c4_i32_164 = arith.constant 4 : i32
    %500 = vector.broadcast %c4_i32_164 : i32 to vector<1x128xi32>
    %501 = arith.cmpi eq, %499, %500 : vector<1x128xi32>
    %cst_165 = arith.constant 0.000000e+00 : f32
    %502 = vector.shape_cast %498 : vector<1x1xf32> to vector<1x1xf32>
    %503 = vector.broadcast %502 : vector<1x1xf32> to vector<1x128xf32>
    %504 = vector.broadcast %cst_165 : f32 to vector<1x128xf32>
    %505 = arith.select %501, %503, %504 : vector<1x128xi1>, vector<1x128xf32>
    %506 = arith.addf %496, %505 : vector<1x128xf32>
    %c0_i32 = arith.constant 0 : i32
    %507 = vector.broadcast %c0_i32 : i32 to vector<8x128xi32>
    %508 = arith.cmpi eq, %2, %507 : vector<8x128xi32>
    %509 = vector.shape_cast %506 : vector<1x128xf32> to vector<1x128xf32>
    %510 = vector.broadcast %509 : vector<1x128xf32> to vector<8x128xf32>
    %511 = arith.select %508, %510, %1 : vector<8x128xi1>, vector<8x128xf32>
    %c0_166 = arith.constant 0 : index
    %c0_167 = arith.constant 0 : index
    %512 = vector.load %arg8[%c0_166, %c0_167] : memref<16x256xf32, #tpu.memory_space<vmem>>, vector<16x256xf32>
    %513 = vector.extract_strided_slice %512 {offsets = [0, 0], sizes = [1, 128], strides = [1, 1]} : vector<16x256xf32> to vector<1x128xf32>
    %514 = vector.extract_strided_slice %512 {offsets = [1, 0], sizes = [1, 128], strides = [1, 1]} : vector<16x256xf32> to vector<1x128xf32>
    %cst_168 = arith.constant dense<0.000000e+00> : vector<8xf32>
    %515 = vector.multi_reduction <add>, %491, %cst_168 [1] : vector<8x128xf32> to vector<8xf32>
    %516 = vector.shape_cast %515 : vector<8xf32> to vector<8x1xf32>
    %cst_169 = arith.constant 7.812500e-03 : f32
    %517 = vector.broadcast %cst_169 : f32 to vector<8x1xf32>
    %518 = arith.mulf %516, %517 : vector<8x1xf32>
    %519 = vector.broadcast %518 : vector<8x1xf32> to vector<8x128xf32>
    %520 = arith.subf %491, %519 : vector<8x128xf32>
    %521 = arith.mulf %520, %520 : vector<8x128xf32>
    %cst_170 = arith.constant dense<0.000000e+00> : vector<8xf32>
    %522 = vector.multi_reduction <add>, %521, %cst_170 [1] : vector<8x128xf32> to vector<8xf32>
    %523 = vector.shape_cast %522 : vector<8xf32> to vector<8x1xf32>
    %cst_171 = arith.constant 7.812500e-03 : f32
    %524 = vector.broadcast %cst_171 : f32 to vector<8x1xf32>
    %525 = arith.mulf %523, %524 : vector<8x1xf32>
    %cst_172 = arith.constant 9.99999974E-6 : f32
    %526 = vector.broadcast %cst_172 : f32 to vector<8x1xf32>
    %527 = arith.addf %525, %526 : vector<8x1xf32>
    %528 = math.rsqrt %527 : vector<8x1xf32>
    %529 = vector.broadcast %528 : vector<8x1xf32> to vector<8x128xf32>
    %530 = arith.mulf %520, %529 : vector<8x128xf32>
    %531 = vector.broadcast %513 : vector<1x128xf32> to vector<8x128xf32>
    %532 = arith.mulf %530, %531 : vector<8x128xf32>
    %533 = vector.broadcast %514 : vector<1x128xf32> to vector<8x128xf32>
    %534 = arith.addf %532, %533 : vector<8x128xf32>
    %c0_173 = arith.constant 0 : index
    %c0_174 = arith.constant 0 : index
    %535 = vector.load %arg10[%c0_173, %c0_174] : memref<128x1152xbf16, #tpu.memory_space<vmem>>, vector<128x1152xbf16>
    %536 = arith.truncf %534 : vector<8x128xf32> to vector<8x128xbf16>
    %cst_175 = arith.constant dense<0.000000e+00> : vector<8x1152xf32>
    %537 = tpu.matmul %536, %535, %cst_175 {dimension_numbers = #tpu.dot_dimension_numbers<[1], [0], [0], [1], [0, 0, 1, 1], [], []>} : vector<8x128xbf16>, vector<128x1152xbf16>, vector<8x1152xf32> -> vector<8x1152xf32>
    %c0_176 = arith.constant 0 : index
    %c0_177 = arith.constant 0 : index
    %538 = vector.load %arg9[%c0_176, %c0_177] : memref<1x1152xf32, #tpu.memory_space<vmem>>, vector<1x1152xf32>
    %539 = vector.broadcast %538 : vector<1x1152xf32> to vector<8x1152xf32>
    %540 = arith.addf %537, %539 : vector<8x1152xf32>
    %541 = tpu.iota {dimensions = array<i32: 1>} : vector<8x128xi32>
    %c4_i32_178 = arith.constant 4 : i32
    %542 = vector.broadcast %c4_i32_178 : i32 to vector<8x128xi32>
    %543 = arith.cmpi slt, %541, %542 : vector<8x128xi32>
    %544 = vector.extract_strided_slice %540 {offsets = [0, 0], sizes = [8, 128], strides = [1, 1]} : vector<8x1152xf32> to vector<8x128xf32>
    %cst_179 = arith.constant -1.000000e+30 : f32
    %545 = vector.broadcast %cst_179 : f32 to vector<8x128xf32>
    %546 = arith.select %543, %544, %545 : vector<8x128xi1>, vector<8x128xf32>
    %cst_180 = arith.constant dense<0xFF800000> : vector<8xf32>
    %547 = vector.multi_reduction <maximumf>, %546, %cst_180 [1] : vector<8x128xf32> to vector<8xf32>
    %548 = vector.shape_cast %547 : vector<8xf32> to vector<8x1xf32>
    %549 = vector.broadcast %548 : vector<8x1xf32> to vector<8x128xf32>
    %550 = arith.subf %546, %549 : vector<8x128xf32>
    %551 = math.exp %550 : vector<8x128xf32>
    %cst_181 = arith.constant dense<0.000000e+00> : vector<8xf32>
    %552 = vector.multi_reduction <add>, %551, %cst_181 [1] : vector<8x128xf32> to vector<8xf32>
    %553 = vector.shape_cast %552 : vector<8xf32> to vector<8x1xf32>
    %554 = tpu.reciprocal %553 {approx = true} : vector<8x1xf32> -> vector<8x1xf32>
    %555 = vector.broadcast %554 : vector<8x1xf32> to vector<8x128xf32>
    %556 = arith.mulf %551, %555 : vector<8x128xf32>
    %557 = tpu.iota {dimensions = array<i32: 1>} : vector<8x128xi32>
    %558 = arith.sitofp %557 : vector<8x128xi32> to vector<8x128xf32>
    %cst_182 = arith.constant 0.000000e+00 : f32
    %559 = vector.broadcast %cst_182 : f32 to vector<8x128xf32>
    %cst_183 = arith.constant dense<0xFF800000> : vector<8xf32>
    %560 = vector.multi_reduction <maximumf>, %556, %cst_183 [1] : vector<8x128xf32> to vector<8xf32>
    %561 = vector.shape_cast %560 : vector<8xf32> to vector<8x1xf32>
    %562 = vector.broadcast %561 : vector<8x1xf32> to vector<8x128xf32>
    %563 = arith.cmpf oeq, %556, %562 : vector<8x128xf32>
    %cst_184 = arith.constant 1.280000e+02 : f32
    %564 = vector.broadcast %cst_184 : f32 to vector<8x128xf32>
    %565 = arith.select %563, %558, %564 : vector<8x128xi1>, vector<8x128xf32>
    %cst_185 = arith.constant dense<0x7F800000> : vector<8xf32>
    %566 = vector.multi_reduction <minimumf>, %565, %cst_185 [1] : vector<8x128xf32> to vector<8xf32>
    %567 = vector.shape_cast %566 : vector<8xf32> to vector<8x1xf32>
    %568 = vector.broadcast %567 : vector<8x1xf32> to vector<8x128xf32>
    %569 = arith.cmpf oeq, %558, %568 : vector<8x128xf32>
    %570 = arith.extui %569 : vector<8x128xi1> to vector<8x128xi32>
    %571 = arith.sitofp %570 : vector<8x128xi32> to vector<8x128xf32>
    %572 = arith.addf %559, %571 : vector<8x128xf32>
    %cst_186 = arith.constant 0.000000e+00 : f32
    %573 = vector.broadcast %cst_186 : f32 to vector<8x128xf32>
    %574 = arith.cmpf ogt, %571, %573 : vector<8x128xf32>
    %cst_187 = arith.constant -1.000000e+00 : f32
    %575 = vector.broadcast %cst_187 : f32 to vector<8x128xf32>
    %576 = arith.select %574, %575, %556 : vector<8x128xi1>, vector<8x128xf32>
    %cst_188 = arith.constant dense<0xFF800000> : vector<8xf32>
    %577 = vector.multi_reduction <maximumf>, %576, %cst_188 [1] : vector<8x128xf32> to vector<8xf32>
    %578 = vector.shape_cast %577 : vector<8xf32> to vector<8x1xf32>
    %579 = vector.broadcast %578 : vector<8x1xf32> to vector<8x128xf32>
    %580 = arith.cmpf oeq, %576, %579 : vector<8x128xf32>
    %cst_189 = arith.constant 1.280000e+02 : f32
    %581 = vector.broadcast %cst_189 : f32 to vector<8x128xf32>
    %582 = arith.select %580, %558, %581 : vector<8x128xi1>, vector<8x128xf32>
    %cst_190 = arith.constant dense<0x7F800000> : vector<8xf32>
    %583 = vector.multi_reduction <minimumf>, %582, %cst_190 [1] : vector<8x128xf32> to vector<8xf32>
    %584 = vector.shape_cast %583 : vector<8xf32> to vector<8x1xf32>
    %585 = vector.broadcast %584 : vector<8x1xf32> to vector<8x128xf32>
    %586 = arith.cmpf oeq, %558, %585 : vector<8x128xf32>
    %587 = arith.extui %586 : vector<8x128xi1> to vector<8x128xi32>
    %588 = arith.sitofp %587 : vector<8x128xi32> to vector<8x128xf32>
    %589 = arith.addf %572, %588 : vector<8x128xf32>
    %590 = arith.mulf %556, %589 : vector<8x128xf32>
    %cst_191 = arith.constant dense<0.000000e+00> : vector<8xf32>
    %591 = vector.multi_reduction <add>, %590, %cst_191 [1] : vector<8x128xf32> to vector<8xf32>
    %592 = vector.shape_cast %591 : vector<8xf32> to vector<8x1xf32>
    %593 = tpu.reciprocal %592 {approx = true} : vector<8x1xf32> -> vector<8x1xf32>
    %594 = vector.broadcast %593 : vector<8x1xf32> to vector<8x128xf32>
    %595 = arith.mulf %590, %594 : vector<8x128xf32>
    %596 = vector.extract_strided_slice %595 {offsets = [0, 0], sizes = [8, 1], strides = [1, 1]} : vector<8x128xf32> to vector<8x1xf32>
    %597 = vector.extract_strided_slice %595 {offsets = [0, 1], sizes = [8, 1], strides = [1, 1]} : vector<8x128xf32> to vector<8x1xf32>
    %598 = vector.extract_strided_slice %595 {offsets = [0, 2], sizes = [8, 1], strides = [1, 1]} : vector<8x128xf32> to vector<8x1xf32>
    %599 = vector.extract_strided_slice %595 {offsets = [0, 3], sizes = [8, 1], strides = [1, 1]} : vector<8x128xf32> to vector<8x1xf32>
    %c0_192 = arith.constant 0 : index
    %c0_193 = arith.constant 0 : index
    %600 = vector.load %arg11[%c0_192, %c0_193] : memref<256x640xbf16, #tpu.memory_space<vmem>>, vector<256x640xbf16>
    %601 = vector.extract_strided_slice %540 {offsets = [0, 128], sizes = [8, 256], strides = [1, 1]} : vector<8x1152xf32> to vector<8x256xf32>
    %cst_194 = arith.constant 5.000000e-01 : f32
    %602 = vector.broadcast %cst_194 : f32 to vector<8x256xf32>
    %603 = arith.mulf %602, %601 : vector<8x256xf32>
    %cst_195 = arith.constant 0.707106769 : f32
    %604 = vector.broadcast %cst_195 : f32 to vector<8x256xf32>
    %605 = arith.mulf %601, %604 : vector<8x256xf32>
    %606 = math.absf %605 : vector<8x256xf32>
    %cst_196 = arith.constant 0.327591091 : f32
    %607 = vector.broadcast %cst_196 : f32 to vector<8x256xf32>
    %608 = arith.mulf %607, %606 : vector<8x256xf32>
    %cst_197 = arith.constant 1.000000e+00 : f32
    %609 = vector.broadcast %cst_197 : f32 to vector<8x256xf32>
    %610 = arith.addf %609, %608 : vector<8x256xf32>
    %cst_198 = arith.constant 1.000000e+00 : f32
    %611 = vector.broadcast %cst_198 : f32 to vector<8x256xf32>
    %612 = arith.divf %611, %610 : vector<8x256xf32>
    %cst_199 = arith.constant 1.06140542 : f32
    %613 = vector.broadcast %cst_199 : f32 to vector<8x256xf32>
    %614 = arith.mulf %612, %613 : vector<8x256xf32>
    %cst_200 = arith.constant -1.45315206 : f32
    %615 = vector.broadcast %cst_200 : f32 to vector<8x256xf32>
    %616 = arith.addf %615, %614 : vector<8x256xf32>
    %617 = arith.mulf %612, %616 : vector<8x256xf32>
    %cst_201 = arith.constant 1.42141378 : f32
    %618 = vector.broadcast %cst_201 : f32 to vector<8x256xf32>
    %619 = arith.addf %618, %617 : vector<8x256xf32>
    %620 = arith.mulf %612, %619 : vector<8x256xf32>
    %cst_202 = arith.constant -0.284496725 : f32
    %621 = vector.broadcast %cst_202 : f32 to vector<8x256xf32>
    %622 = arith.addf %621, %620 : vector<8x256xf32>
    %623 = arith.mulf %612, %622 : vector<8x256xf32>
    %cst_203 = arith.constant 0.254829586 : f32
    %624 = vector.broadcast %cst_203 : f32 to vector<8x256xf32>
    %625 = arith.addf %624, %623 : vector<8x256xf32>
    %626 = arith.mulf %612, %625 : vector<8x256xf32>
    %627 = arith.mulf %606, %606 : vector<8x256xf32>
    %cst_204 = arith.constant 0.000000e+00 : f32
    %628 = vector.broadcast %cst_204 : f32 to vector<8x256xf32>
    %629 = arith.subf %628, %627 : vector<8x256xf32>
    %630 = math.exp %629 : vector<8x256xf32>
    %631 = arith.mulf %626, %630 : vector<8x256xf32>
    %cst_205 = arith.constant 1.000000e+00 : f32
    %632 = vector.broadcast %cst_205 : f32 to vector<8x256xf32>
    %633 = arith.subf %632, %631 : vector<8x256xf32>
    %cst_206 = arith.constant 0.000000e+00 : f32
    %634 = vector.broadcast %cst_206 : f32 to vector<8x256xf32>
    %635 = arith.cmpf olt, %605, %634 : vector<8x256xf32>
    %cst_207 = arith.constant 0.000000e+00 : f32
    %636 = vector.broadcast %cst_207 : f32 to vector<8x256xf32>
    %637 = arith.subf %636, %633 : vector<8x256xf32>
    %638 = arith.select %635, %637, %633 : vector<8x256xi1>, vector<8x256xf32>
    %cst_208 = arith.constant 1.000000e+00 : f32
    %639 = vector.broadcast %cst_208 : f32 to vector<8x256xf32>
    %640 = arith.addf %639, %638 : vector<8x256xf32>
    %641 = arith.mulf %603, %640 : vector<8x256xf32>
    %642 = vector.extract_strided_slice %600 {offsets = [0, 0], sizes = [256, 256], strides = [1, 1]} : vector<256x640xbf16> to vector<256x256xbf16>
    %643 = arith.truncf %641 : vector<8x256xf32> to vector<8x256xbf16>
    %cst_209 = arith.constant dense<0.000000e+00> : vector<8x256xf32>
    %644 = tpu.matmul %643, %642, %cst_209 {dimension_numbers = #tpu.dot_dimension_numbers<[1], [0], [0], [1], [0, 0, 1, 1], [], []>} : vector<8x256xbf16>, vector<256x256xbf16>, vector<8x256xf32> -> vector<8x256xf32>
    %645 = vector.extract_strided_slice %512 {offsets = [2, 0], sizes = [1, 256], strides = [1, 1]} : vector<16x256xf32> to vector<1x256xf32>
    %646 = vector.broadcast %645 : vector<1x256xf32> to vector<8x256xf32>
    %647 = arith.addf %644, %646 : vector<8x256xf32>
    %648 = vector.extract_strided_slice %512 {offsets = [3, 0], sizes = [1, 256], strides = [1, 1]} : vector<16x256xf32> to vector<1x256xf32>
    %649 = vector.extract_strided_slice %512 {offsets = [4, 0], sizes = [1, 256], strides = [1, 1]} : vector<16x256xf32> to vector<1x256xf32>
    %cst_210 = arith.constant dense<0.000000e+00> : vector<8xf32>
    %650 = vector.multi_reduction <add>, %647, %cst_210 [1] : vector<8x256xf32> to vector<8xf32>
    %651 = vector.shape_cast %650 : vector<8xf32> to vector<8x1xf32>
    %cst_211 = arith.constant 3.906250e-03 : f32
    %652 = vector.broadcast %cst_211 : f32 to vector<8x1xf32>
    %653 = arith.mulf %651, %652 : vector<8x1xf32>
    %654 = vector.broadcast %653 : vector<8x1xf32> to vector<8x256xf32>
    %655 = arith.subf %647, %654 : vector<8x256xf32>
    %656 = arith.mulf %655, %655 : vector<8x256xf32>
    %cst_212 = arith.constant dense<0.000000e+00> : vector<8xf32>
    %657 = vector.multi_reduction <add>, %656, %cst_212 [1] : vector<8x256xf32> to vector<8xf32>
    %658 = vector.shape_cast %657 : vector<8xf32> to vector<8x1xf32>
    %cst_213 = arith.constant 3.906250e-03 : f32
    %659 = vector.broadcast %cst_213 : f32 to vector<8x1xf32>
    %660 = arith.mulf %658, %659 : vector<8x1xf32>
    %cst_214 = arith.constant 9.99999974E-6 : f32
    %661 = vector.broadcast %cst_214 : f32 to vector<8x1xf32>
    %662 = arith.addf %660, %661 : vector<8x1xf32>
    %663 = math.rsqrt %662 : vector<8x1xf32>
    %664 = vector.broadcast %663 : vector<8x1xf32> to vector<8x256xf32>
    %665 = arith.mulf %655, %664 : vector<8x256xf32>
    %666 = vector.broadcast %648 : vector<1x256xf32> to vector<8x256xf32>
    %667 = arith.mulf %665, %666 : vector<8x256xf32>
    %668 = vector.broadcast %649 : vector<1x256xf32> to vector<8x256xf32>
    %669 = arith.addf %667, %668 : vector<8x256xf32>
    %cst_215 = arith.constant 5.000000e-01 : f32
    %670 = vector.broadcast %cst_215 : f32 to vector<8x256xf32>
    %671 = arith.mulf %670, %669 : vector<8x256xf32>
    %cst_216 = arith.constant 0.707106769 : f32
    %672 = vector.broadcast %cst_216 : f32 to vector<8x256xf32>
    %673 = arith.mulf %669, %672 : vector<8x256xf32>
    %674 = math.absf %673 : vector<8x256xf32>
    %cst_217 = arith.constant 0.327591091 : f32
    %675 = vector.broadcast %cst_217 : f32 to vector<8x256xf32>
    %676 = arith.mulf %675, %674 : vector<8x256xf32>
    %cst_218 = arith.constant 1.000000e+00 : f32
    %677 = vector.broadcast %cst_218 : f32 to vector<8x256xf32>
    %678 = arith.addf %677, %676 : vector<8x256xf32>
    %cst_219 = arith.constant 1.000000e+00 : f32
    %679 = vector.broadcast %cst_219 : f32 to vector<8x256xf32>
    %680 = arith.divf %679, %678 : vector<8x256xf32>
    %cst_220 = arith.constant 1.06140542 : f32
    %681 = vector.broadcast %cst_220 : f32 to vector<8x256xf32>
    %682 = arith.mulf %680, %681 : vector<8x256xf32>
    %cst_221 = arith.constant -1.45315206 : f32
    %683 = vector.broadcast %cst_221 : f32 to vector<8x256xf32>
    %684 = arith.addf %683, %682 : vector<8x256xf32>
    %685 = arith.mulf %680, %684 : vector<8x256xf32>
    %cst_222 = arith.constant 1.42141378 : f32
    %686 = vector.broadcast %cst_222 : f32 to vector<8x256xf32>
    %687 = arith.addf %686, %685 : vector<8x256xf32>
    %688 = arith.mulf %680, %687 : vector<8x256xf32>
    %cst_223 = arith.constant -0.284496725 : f32
    %689 = vector.broadcast %cst_223 : f32 to vector<8x256xf32>
    %690 = arith.addf %689, %688 : vector<8x256xf32>
    %691 = arith.mulf %680, %690 : vector<8x256xf32>
    %cst_224 = arith.constant 0.254829586 : f32
    %692 = vector.broadcast %cst_224 : f32 to vector<8x256xf32>
    %693 = arith.addf %692, %691 : vector<8x256xf32>
    %694 = arith.mulf %680, %693 : vector<8x256xf32>
    %695 = arith.mulf %674, %674 : vector<8x256xf32>
    %cst_225 = arith.constant 0.000000e+00 : f32
    %696 = vector.broadcast %cst_225 : f32 to vector<8x256xf32>
    %697 = arith.subf %696, %695 : vector<8x256xf32>
    %698 = math.exp %697 : vector<8x256xf32>
    %699 = arith.mulf %694, %698 : vector<8x256xf32>
    %cst_226 = arith.constant 1.000000e+00 : f32
    %700 = vector.broadcast %cst_226 : f32 to vector<8x256xf32>
    %701 = arith.subf %700, %699 : vector<8x256xf32>
    %cst_227 = arith.constant 0.000000e+00 : f32
    %702 = vector.broadcast %cst_227 : f32 to vector<8x256xf32>
    %703 = arith.cmpf olt, %673, %702 : vector<8x256xf32>
    %cst_228 = arith.constant 0.000000e+00 : f32
    %704 = vector.broadcast %cst_228 : f32 to vector<8x256xf32>
    %705 = arith.subf %704, %701 : vector<8x256xf32>
    %706 = arith.select %703, %705, %701 : vector<8x256xi1>, vector<8x256xf32>
    %cst_229 = arith.constant 1.000000e+00 : f32
    %707 = vector.broadcast %cst_229 : f32 to vector<8x256xf32>
    %708 = arith.addf %707, %706 : vector<8x256xf32>
    %709 = arith.mulf %671, %708 : vector<8x256xf32>
    %710 = vector.broadcast %596 : vector<8x1xf32> to vector<8x256xf32>
    %711 = arith.mulf %709, %710 : vector<8x256xf32>
    %c0_230 = arith.constant 0 : index
    %c0_231 = arith.constant 0 : index
    %c0_232 = arith.constant 0 : index
    %712 = vector.load %arg13[%c0_230, %c0_231, %c0_232] : memref<4x256x128xbf16, #tpu.memory_space<vmem>>, vector<1x256x128xbf16>
    %713 = vector.shape_cast %712 : vector<1x256x128xbf16> to vector<256x128xbf16>
    %714 = arith.truncf %711 : vector<8x256xf32> to vector<8x256xbf16>
    %cst_233 = arith.constant dense<0.000000e+00> : vector<8x128xf32>
    %715 = tpu.matmul %714, %713, %cst_233 {dimension_numbers = #tpu.dot_dimension_numbers<[1], [0], [0], [1], [0, 0, 1, 1], [], []>} : vector<8x256xbf16>, vector<256x128xbf16>, vector<8x128xf32> -> vector<8x128xf32>
    %716 = vector.extract_strided_slice %512 {offsets = [10, 0], sizes = [1, 128], strides = [1, 1]} : vector<16x256xf32> to vector<1x128xf32>
    %717 = vector.broadcast %596 : vector<8x1xf32> to vector<8x128xf32>
    %718 = vector.broadcast %716 : vector<1x128xf32> to vector<8x128xf32>
    %719 = arith.mulf %717, %718 : vector<8x128xf32>
    %720 = vector.extract_strided_slice %540 {offsets = [0, 384], sizes = [8, 256], strides = [1, 1]} : vector<8x1152xf32> to vector<8x256xf32>
    %cst_234 = arith.constant 5.000000e-01 : f32
    %721 = vector.broadcast %cst_234 : f32 to vector<8x256xf32>
    %722 = arith.mulf %721, %720 : vector<8x256xf32>
    %cst_235 = arith.constant 0.707106769 : f32
    %723 = vector.broadcast %cst_235 : f32 to vector<8x256xf32>
    %724 = arith.mulf %720, %723 : vector<8x256xf32>
    %725 = math.absf %724 : vector<8x256xf32>
    %cst_236 = arith.constant 0.327591091 : f32
    %726 = vector.broadcast %cst_236 : f32 to vector<8x256xf32>
    %727 = arith.mulf %726, %725 : vector<8x256xf32>
    %cst_237 = arith.constant 1.000000e+00 : f32
    %728 = vector.broadcast %cst_237 : f32 to vector<8x256xf32>
    %729 = arith.addf %728, %727 : vector<8x256xf32>
    %cst_238 = arith.constant 1.000000e+00 : f32
    %730 = vector.broadcast %cst_238 : f32 to vector<8x256xf32>
    %731 = arith.divf %730, %729 : vector<8x256xf32>
    %cst_239 = arith.constant 1.06140542 : f32
    %732 = vector.broadcast %cst_239 : f32 to vector<8x256xf32>
    %733 = arith.mulf %731, %732 : vector<8x256xf32>
    %cst_240 = arith.constant -1.45315206 : f32
    %734 = vector.broadcast %cst_240 : f32 to vector<8x256xf32>
    %735 = arith.addf %734, %733 : vector<8x256xf32>
    %736 = arith.mulf %731, %735 : vector<8x256xf32>
    %cst_241 = arith.constant 1.42141378 : f32
    %737 = vector.broadcast %cst_241 : f32 to vector<8x256xf32>
    %738 = arith.addf %737, %736 : vector<8x256xf32>
    %739 = arith.mulf %731, %738 : vector<8x256xf32>
    %cst_242 = arith.constant -0.284496725 : f32
    %740 = vector.broadcast %cst_242 : f32 to vector<8x256xf32>
    %741 = arith.addf %740, %739 : vector<8x256xf32>
    %742 = arith.mulf %731, %741 : vector<8x256xf32>
    %cst_243 = arith.constant 0.254829586 : f32
    %743 = vector.broadcast %cst_243 : f32 to vector<8x256xf32>
    %744 = arith.addf %743, %742 : vector<8x256xf32>
    %745 = arith.mulf %731, %744 : vector<8x256xf32>
    %746 = arith.mulf %725, %725 : vector<8x256xf32>
    %cst_244 = arith.constant 0.000000e+00 : f32
    %747 = vector.broadcast %cst_244 : f32 to vector<8x256xf32>
    %748 = arith.subf %747, %746 : vector<8x256xf32>
    %749 = math.exp %748 : vector<8x256xf32>
    %750 = arith.mulf %745, %749 : vector<8x256xf32>
    %cst_245 = arith.constant 1.000000e+00 : f32
    %751 = vector.broadcast %cst_245 : f32 to vector<8x256xf32>
    %752 = arith.subf %751, %750 : vector<8x256xf32>
    %cst_246 = arith.constant 0.000000e+00 : f32
    %753 = vector.broadcast %cst_246 : f32 to vector<8x256xf32>
    %754 = arith.cmpf olt, %724, %753 : vector<8x256xf32>
    %cst_247 = arith.constant 0.000000e+00 : f32
    %755 = vector.broadcast %cst_247 : f32 to vector<8x256xf32>
    %756 = arith.subf %755, %752 : vector<8x256xf32>
    %757 = arith.select %754, %756, %752 : vector<8x256xi1>, vector<8x256xf32>
    %cst_248 = arith.constant 1.000000e+00 : f32
    %758 = vector.broadcast %cst_248 : f32 to vector<8x256xf32>
    %759 = arith.addf %758, %757 : vector<8x256xf32>
    %760 = arith.mulf %722, %759 : vector<8x256xf32>
    %761 = vector.extract_strided_slice %600 {offsets = [0, 512], sizes = [256, 128], strides = [1, 1]} : vector<256x640xbf16> to vector<256x128xbf16>
    %762 = arith.truncf %760 : vector<8x256xf32> to vector<8x256xbf16>
    %cst_249 = arith.constant dense<0.000000e+00> : vector<8x128xf32>
    %763 = tpu.matmul %762, %761, %cst_249 {dimension_numbers = #tpu.dot_dimension_numbers<[1], [0], [0], [1], [0, 0, 1, 1], [], []>} : vector<8x256xbf16>, vector<256x128xbf16>, vector<8x128xf32> -> vector<8x128xf32>
    %764 = vector.extract_strided_slice %512 {offsets = [5, 0], sizes = [1, 128], strides = [1, 1]} : vector<16x256xf32> to vector<1x128xf32>
    %765 = vector.broadcast %764 : vector<1x128xf32> to vector<8x128xf32>
    %766 = arith.addf %763, %765 : vector<8x128xf32>
    %cst_250 = arith.constant 5.000000e-01 : f32
    %767 = vector.broadcast %cst_250 : f32 to vector<8x128xf32>
    %768 = arith.mulf %767, %766 : vector<8x128xf32>
    %cst_251 = arith.constant 0.707106769 : f32
    %769 = vector.broadcast %cst_251 : f32 to vector<8x128xf32>
    %770 = arith.mulf %766, %769 : vector<8x128xf32>
    %771 = math.absf %770 : vector<8x128xf32>
    %cst_252 = arith.constant 0.327591091 : f32
    %772 = vector.broadcast %cst_252 : f32 to vector<8x128xf32>
    %773 = arith.mulf %772, %771 : vector<8x128xf32>
    %cst_253 = arith.constant 1.000000e+00 : f32
    %774 = vector.broadcast %cst_253 : f32 to vector<8x128xf32>
    %775 = arith.addf %774, %773 : vector<8x128xf32>
    %cst_254 = arith.constant 1.000000e+00 : f32
    %776 = vector.broadcast %cst_254 : f32 to vector<8x128xf32>
    %777 = arith.divf %776, %775 : vector<8x128xf32>
    %cst_255 = arith.constant 1.06140542 : f32
    %778 = vector.broadcast %cst_255 : f32 to vector<8x128xf32>
    %779 = arith.mulf %777, %778 : vector<8x128xf32>
    %cst_256 = arith.constant -1.45315206 : f32
    %780 = vector.broadcast %cst_256 : f32 to vector<8x128xf32>
    %781 = arith.addf %780, %779 : vector<8x128xf32>
    %782 = arith.mulf %777, %781 : vector<8x128xf32>
    %cst_257 = arith.constant 1.42141378 : f32
    %783 = vector.broadcast %cst_257 : f32 to vector<8x128xf32>
    %784 = arith.addf %783, %782 : vector<8x128xf32>
    %785 = arith.mulf %777, %784 : vector<8x128xf32>
    %cst_258 = arith.constant -0.284496725 : f32
    %786 = vector.broadcast %cst_258 : f32 to vector<8x128xf32>
    %787 = arith.addf %786, %785 : vector<8x128xf32>
    %788 = arith.mulf %777, %787 : vector<8x128xf32>
    %cst_259 = arith.constant 0.254829586 : f32
    %789 = vector.broadcast %cst_259 : f32 to vector<8x128xf32>
    %790 = arith.addf %789, %788 : vector<8x128xf32>
    %791 = arith.mulf %777, %790 : vector<8x128xf32>
    %792 = arith.mulf %771, %771 : vector<8x128xf32>
    %cst_260 = arith.constant 0.000000e+00 : f32
    %793 = vector.broadcast %cst_260 : f32 to vector<8x128xf32>
    %794 = arith.subf %793, %792 : vector<8x128xf32>
    %795 = math.exp %794 : vector<8x128xf32>
    %796 = arith.mulf %791, %795 : vector<8x128xf32>
    %cst_261 = arith.constant 1.000000e+00 : f32
    %797 = vector.broadcast %cst_261 : f32 to vector<8x128xf32>
    %798 = arith.subf %797, %796 : vector<8x128xf32>
    %cst_262 = arith.constant 0.000000e+00 : f32
    %799 = vector.broadcast %cst_262 : f32 to vector<8x128xf32>
    %800 = arith.cmpf olt, %770, %799 : vector<8x128xf32>
    %cst_263 = arith.constant 0.000000e+00 : f32
    %801 = vector.broadcast %cst_263 : f32 to vector<8x128xf32>
    %802 = arith.subf %801, %798 : vector<8x128xf32>
    %803 = arith.select %800, %802, %798 : vector<8x128xi1>, vector<8x128xf32>
    %cst_264 = arith.constant 1.000000e+00 : f32
    %804 = vector.broadcast %cst_264 : f32 to vector<8x128xf32>
    %805 = arith.addf %804, %803 : vector<8x128xf32>
    %806 = arith.mulf %768, %805 : vector<8x128xf32>
    %c0_265 = arith.constant 0 : index
    %c0_266 = arith.constant 0 : index
    %807 = vector.load %arg12[%c0_265, %c0_266] : memref<128x256xbf16, #tpu.memory_space<vmem>>, vector<128x256xbf16>
    %808 = arith.truncf %806 : vector<8x128xf32> to vector<8x128xbf16>
    %cst_267 = arith.constant dense<0.000000e+00> : vector<8x256xf32>
    %809 = tpu.matmul %808, %807, %cst_267 {dimension_numbers = #tpu.dot_dimension_numbers<[1], [0], [0], [1], [0, 0, 1, 1], [], []>} : vector<8x128xbf16>, vector<128x256xbf16>, vector<8x256xf32> -> vector<8x256xf32>
    %810 = vector.extract_strided_slice %512 {offsets = [6, 0], sizes = [1, 256], strides = [1, 1]} : vector<16x256xf32> to vector<1x256xf32>
    %811 = vector.broadcast %810 : vector<1x256xf32> to vector<8x256xf32>
    %812 = arith.addf %809, %811 : vector<8x256xf32>
    %813 = vector.extract_strided_slice %512 {offsets = [7, 0], sizes = [1, 256], strides = [1, 1]} : vector<16x256xf32> to vector<1x256xf32>
    %814 = vector.extract_strided_slice %512 {offsets = [8, 0], sizes = [1, 256], strides = [1, 1]} : vector<16x256xf32> to vector<1x256xf32>
    %cst_268 = arith.constant dense<0.000000e+00> : vector<8xf32>
    %815 = vector.multi_reduction <add>, %812, %cst_268 [1] : vector<8x256xf32> to vector<8xf32>
    %816 = vector.shape_cast %815 : vector<8xf32> to vector<8x1xf32>
    %cst_269 = arith.constant 3.906250e-03 : f32
    %817 = vector.broadcast %cst_269 : f32 to vector<8x1xf32>
    %818 = arith.mulf %816, %817 : vector<8x1xf32>
    %819 = vector.broadcast %818 : vector<8x1xf32> to vector<8x256xf32>
    %820 = arith.subf %812, %819 : vector<8x256xf32>
    %821 = arith.mulf %820, %820 : vector<8x256xf32>
    %cst_270 = arith.constant dense<0.000000e+00> : vector<8xf32>
    %822 = vector.multi_reduction <add>, %821, %cst_270 [1] : vector<8x256xf32> to vector<8xf32>
    %823 = vector.shape_cast %822 : vector<8xf32> to vector<8x1xf32>
    %cst_271 = arith.constant 3.906250e-03 : f32
    %824 = vector.broadcast %cst_271 : f32 to vector<8x1xf32>
    %825 = arith.mulf %823, %824 : vector<8x1xf32>
    %cst_272 = arith.constant 9.99999974E-6 : f32
    %826 = vector.broadcast %cst_272 : f32 to vector<8x1xf32>
    %827 = arith.addf %825, %826 : vector<8x1xf32>
    %828 = math.rsqrt %827 : vector<8x1xf32>
    %829 = vector.broadcast %828 : vector<8x1xf32> to vector<8x256xf32>
    %830 = arith.mulf %820, %829 : vector<8x256xf32>
    %831 = vector.broadcast %813 : vector<1x256xf32> to vector<8x256xf32>
    %832 = arith.mulf %830, %831 : vector<8x256xf32>
    %833 = vector.broadcast %814 : vector<1x256xf32> to vector<8x256xf32>
    %834 = arith.addf %832, %833 : vector<8x256xf32>
    %835 = vector.broadcast %597 : vector<8x1xf32> to vector<8x256xf32>
    %836 = arith.mulf %834, %835 : vector<8x256xf32>
    %c1_273 = arith.constant 1 : index
    %c0_274 = arith.constant 0 : index
    %c0_275 = arith.constant 0 : index
    %837 = vector.load %arg13[%c1_273, %c0_274, %c0_275] : memref<4x256x128xbf16, #tpu.memory_space<vmem>>, vector<1x256x128xbf16>
    %838 = vector.shape_cast %837 : vector<1x256x128xbf16> to vector<256x128xbf16>
    %839 = arith.truncf %836 : vector<8x256xf32> to vector<8x256xbf16>
    %cst_276 = arith.constant dense<0.000000e+00> : vector<8x128xf32>
    %840 = tpu.matmul %839, %838, %cst_276 {dimension_numbers = #tpu.dot_dimension_numbers<[1], [0], [0], [1], [0, 0, 1, 1], [], []>} : vector<8x256xbf16>, vector<256x128xbf16>, vector<8x128xf32> -> vector<8x128xf32>
    %841 = arith.addf %715, %840 : vector<8x128xf32>
    %842 = vector.extract_strided_slice %512 {offsets = [11, 0], sizes = [1, 128], strides = [1, 1]} : vector<16x256xf32> to vector<1x128xf32>
    %843 = vector.broadcast %597 : vector<8x1xf32> to vector<8x128xf32>
    %844 = vector.broadcast %842 : vector<1x128xf32> to vector<8x128xf32>
    %845 = arith.mulf %843, %844 : vector<8x128xf32>
    %846 = arith.addf %719, %845 : vector<8x128xf32>
    %847 = vector.extract_strided_slice %540 {offsets = [0, 640], sizes = [8, 256], strides = [1, 1]} : vector<8x1152xf32> to vector<8x256xf32>
    %cst_277 = arith.constant 5.000000e-01 : f32
    %848 = vector.broadcast %cst_277 : f32 to vector<8x256xf32>
    %849 = arith.mulf %848, %847 : vector<8x256xf32>
    %cst_278 = arith.constant 0.707106769 : f32
    %850 = vector.broadcast %cst_278 : f32 to vector<8x256xf32>
    %851 = arith.mulf %847, %850 : vector<8x256xf32>
    %852 = math.absf %851 : vector<8x256xf32>
    %cst_279 = arith.constant 0.327591091 : f32
    %853 = vector.broadcast %cst_279 : f32 to vector<8x256xf32>
    %854 = arith.mulf %853, %852 : vector<8x256xf32>
    %cst_280 = arith.constant 1.000000e+00 : f32
    %855 = vector.broadcast %cst_280 : f32 to vector<8x256xf32>
    %856 = arith.addf %855, %854 : vector<8x256xf32>
    %cst_281 = arith.constant 1.000000e+00 : f32
    %857 = vector.broadcast %cst_281 : f32 to vector<8x256xf32>
    %858 = arith.divf %857, %856 : vector<8x256xf32>
    %cst_282 = arith.constant 1.06140542 : f32
    %859 = vector.broadcast %cst_282 : f32 to vector<8x256xf32>
    %860 = arith.mulf %858, %859 : vector<8x256xf32>
    %cst_283 = arith.constant -1.45315206 : f32
    %861 = vector.broadcast %cst_283 : f32 to vector<8x256xf32>
    %862 = arith.addf %861, %860 : vector<8x256xf32>
    %863 = arith.mulf %858, %862 : vector<8x256xf32>
    %cst_284 = arith.constant 1.42141378 : f32
    %864 = vector.broadcast %cst_284 : f32 to vector<8x256xf32>
    %865 = arith.addf %864, %863 : vector<8x256xf32>
    %866 = arith.mulf %858, %865 : vector<8x256xf32>
    %cst_285 = arith.constant -0.284496725 : f32
    %867 = vector.broadcast %cst_285 : f32 to vector<8x256xf32>
    %868 = arith.addf %867, %866 : vector<8x256xf32>
    %869 = arith.mulf %858, %868 : vector<8x256xf32>
    %cst_286 = arith.constant 0.254829586 : f32
    %870 = vector.broadcast %cst_286 : f32 to vector<8x256xf32>
    %871 = arith.addf %870, %869 : vector<8x256xf32>
    %872 = arith.mulf %858, %871 : vector<8x256xf32>
    %873 = arith.mulf %852, %852 : vector<8x256xf32>
    %cst_287 = arith.constant 0.000000e+00 : f32
    %874 = vector.broadcast %cst_287 : f32 to vector<8x256xf32>
    %875 = arith.subf %874, %873 : vector<8x256xf32>
    %876 = math.exp %875 : vector<8x256xf32>
    %877 = arith.mulf %872, %876 : vector<8x256xf32>
    %cst_288 = arith.constant 1.000000e+00 : f32
    %878 = vector.broadcast %cst_288 : f32 to vector<8x256xf32>
    %879 = arith.subf %878, %877 : vector<8x256xf32>
    %cst_289 = arith.constant 0.000000e+00 : f32
    %880 = vector.broadcast %cst_289 : f32 to vector<8x256xf32>
    %881 = arith.cmpf olt, %851, %880 : vector<8x256xf32>
    %cst_290 = arith.constant 0.000000e+00 : f32
    %882 = vector.broadcast %cst_290 : f32 to vector<8x256xf32>
    %883 = arith.subf %882, %879 : vector<8x256xf32>
    %884 = arith.select %881, %883, %879 : vector<8x256xi1>, vector<8x256xf32>
    %cst_291 = arith.constant 1.000000e+00 : f32
    %885 = vector.broadcast %cst_291 : f32 to vector<8x256xf32>
    %886 = arith.addf %885, %884 : vector<8x256xf32>
    %887 = arith.mulf %849, %886 : vector<8x256xf32>
    %888 = vector.extract_strided_slice %600 {offsets = [0, 256], sizes = [256, 256], strides = [1, 1]} : vector<256x640xbf16> to vector<256x256xbf16>
    %889 = arith.truncf %887 : vector<8x256xf32> to vector<8x256xbf16>
    %cst_292 = arith.constant dense<0.000000e+00> : vector<8x256xf32>
    %890 = tpu.matmul %889, %888, %cst_292 {dimension_numbers = #tpu.dot_dimension_numbers<[1], [0], [0], [1], [0, 0, 1, 1], [], []>} : vector<8x256xbf16>, vector<256x256xbf16>, vector<8x256xf32> -> vector<8x256xf32>
    %891 = vector.extract_strided_slice %512 {offsets = [9, 0], sizes = [1, 256], strides = [1, 1]} : vector<16x256xf32> to vector<1x256xf32>
    %892 = vector.broadcast %891 : vector<1x256xf32> to vector<8x256xf32>
    %893 = arith.addf %890, %892 : vector<8x256xf32>
    %cst_293 = arith.constant 5.000000e-01 : f32
    %894 = vector.broadcast %cst_293 : f32 to vector<8x256xf32>
    %895 = arith.mulf %894, %893 : vector<8x256xf32>
    %cst_294 = arith.constant 0.707106769 : f32
    %896 = vector.broadcast %cst_294 : f32 to vector<8x256xf32>
    %897 = arith.mulf %893, %896 : vector<8x256xf32>
    %898 = math.absf %897 : vector<8x256xf32>
    %cst_295 = arith.constant 0.327591091 : f32
    %899 = vector.broadcast %cst_295 : f32 to vector<8x256xf32>
    %900 = arith.mulf %899, %898 : vector<8x256xf32>
    %cst_296 = arith.constant 1.000000e+00 : f32
    %901 = vector.broadcast %cst_296 : f32 to vector<8x256xf32>
    %902 = arith.addf %901, %900 : vector<8x256xf32>
    %cst_297 = arith.constant 1.000000e+00 : f32
    %903 = vector.broadcast %cst_297 : f32 to vector<8x256xf32>
    %904 = arith.divf %903, %902 : vector<8x256xf32>
    %cst_298 = arith.constant 1.06140542 : f32
    %905 = vector.broadcast %cst_298 : f32 to vector<8x256xf32>
    %906 = arith.mulf %904, %905 : vector<8x256xf32>
    %cst_299 = arith.constant -1.45315206 : f32
    %907 = vector.broadcast %cst_299 : f32 to vector<8x256xf32>
    %908 = arith.addf %907, %906 : vector<8x256xf32>
    %909 = arith.mulf %904, %908 : vector<8x256xf32>
    %cst_300 = arith.constant 1.42141378 : f32
    %910 = vector.broadcast %cst_300 : f32 to vector<8x256xf32>
    %911 = arith.addf %910, %909 : vector<8x256xf32>
    %912 = arith.mulf %904, %911 : vector<8x256xf32>
    %cst_301 = arith.constant -0.284496725 : f32
    %913 = vector.broadcast %cst_301 : f32 to vector<8x256xf32>
    %914 = arith.addf %913, %912 : vector<8x256xf32>
    %915 = arith.mulf %904, %914 : vector<8x256xf32>
    %cst_302 = arith.constant 0.254829586 : f32
    %916 = vector.broadcast %cst_302 : f32 to vector<8x256xf32>
    %917 = arith.addf %916, %915 : vector<8x256xf32>
    %918 = arith.mulf %904, %917 : vector<8x256xf32>
    %919 = arith.mulf %898, %898 : vector<8x256xf32>
    %cst_303 = arith.constant 0.000000e+00 : f32
    %920 = vector.broadcast %cst_303 : f32 to vector<8x256xf32>
    %921 = arith.subf %920, %919 : vector<8x256xf32>
    %922 = math.exp %921 : vector<8x256xf32>
    %923 = arith.mulf %918, %922 : vector<8x256xf32>
    %cst_304 = arith.constant 1.000000e+00 : f32
    %924 = vector.broadcast %cst_304 : f32 to vector<8x256xf32>
    %925 = arith.subf %924, %923 : vector<8x256xf32>
    %cst_305 = arith.constant 0.000000e+00 : f32
    %926 = vector.broadcast %cst_305 : f32 to vector<8x256xf32>
    %927 = arith.cmpf olt, %897, %926 : vector<8x256xf32>
    %cst_306 = arith.constant 0.000000e+00 : f32
    %928 = vector.broadcast %cst_306 : f32 to vector<8x256xf32>
    %929 = arith.subf %928, %925 : vector<8x256xf32>
    %930 = arith.select %927, %929, %925 : vector<8x256xi1>, vector<8x256xf32>
    %cst_307 = arith.constant 1.000000e+00 : f32
    %931 = vector.broadcast %cst_307 : f32 to vector<8x256xf32>
    %932 = arith.addf %931, %930 : vector<8x256xf32>
    %933 = arith.mulf %895, %932 : vector<8x256xf32>
    %934 = vector.broadcast %598 : vector<8x1xf32> to vector<8x256xf32>
    %935 = arith.mulf %933, %934 : vector<8x256xf32>
    %c2_308 = arith.constant 2 : index
    %c0_309 = arith.constant 0 : index
    %c0_310 = arith.constant 0 : index
    %936 = vector.load %arg13[%c2_308, %c0_309, %c0_310] : memref<4x256x128xbf16, #tpu.memory_space<vmem>>, vector<1x256x128xbf16>
    %937 = vector.shape_cast %936 : vector<1x256x128xbf16> to vector<256x128xbf16>
    %938 = arith.truncf %935 : vector<8x256xf32> to vector<8x256xbf16>
    %cst_311 = arith.constant dense<0.000000e+00> : vector<8x128xf32>
    %939 = tpu.matmul %938, %937, %cst_311 {dimension_numbers = #tpu.dot_dimension_numbers<[1], [0], [0], [1], [0, 0, 1, 1], [], []>} : vector<8x256xbf16>, vector<256x128xbf16>, vector<8x128xf32> -> vector<8x128xf32>
    %940 = arith.addf %841, %939 : vector<8x128xf32>
    %941 = vector.extract_strided_slice %512 {offsets = [12, 0], sizes = [1, 128], strides = [1, 1]} : vector<16x256xf32> to vector<1x128xf32>
    %942 = vector.broadcast %598 : vector<8x1xf32> to vector<8x128xf32>
    %943 = vector.broadcast %941 : vector<1x128xf32> to vector<8x128xf32>
    %944 = arith.mulf %942, %943 : vector<8x128xf32>
    %945 = arith.addf %846, %944 : vector<8x128xf32>
    %946 = vector.extract_strided_slice %540 {offsets = [0, 896], sizes = [8, 256], strides = [1, 1]} : vector<8x1152xf32> to vector<8x256xf32>
    %cst_312 = arith.constant 5.000000e-01 : f32
    %947 = vector.broadcast %cst_312 : f32 to vector<8x256xf32>
    %948 = arith.mulf %947, %946 : vector<8x256xf32>
    %cst_313 = arith.constant 0.707106769 : f32
    %949 = vector.broadcast %cst_313 : f32 to vector<8x256xf32>
    %950 = arith.mulf %946, %949 : vector<8x256xf32>
    %951 = math.absf %950 : vector<8x256xf32>
    %cst_314 = arith.constant 0.327591091 : f32
    %952 = vector.broadcast %cst_314 : f32 to vector<8x256xf32>
    %953 = arith.mulf %952, %951 : vector<8x256xf32>
    %cst_315 = arith.constant 1.000000e+00 : f32
    %954 = vector.broadcast %cst_315 : f32 to vector<8x256xf32>
    %955 = arith.addf %954, %953 : vector<8x256xf32>
    %cst_316 = arith.constant 1.000000e+00 : f32
    %956 = vector.broadcast %cst_316 : f32 to vector<8x256xf32>
    %957 = arith.divf %956, %955 : vector<8x256xf32>
    %cst_317 = arith.constant 1.06140542 : f32
    %958 = vector.broadcast %cst_317 : f32 to vector<8x256xf32>
    %959 = arith.mulf %957, %958 : vector<8x256xf32>
    %cst_318 = arith.constant -1.45315206 : f32
    %960 = vector.broadcast %cst_318 : f32 to vector<8x256xf32>
    %961 = arith.addf %960, %959 : vector<8x256xf32>
    %962 = arith.mulf %957, %961 : vector<8x256xf32>
    %cst_319 = arith.constant 1.42141378 : f32
    %963 = vector.broadcast %cst_319 : f32 to vector<8x256xf32>
    %964 = arith.addf %963, %962 : vector<8x256xf32>
    %965 = arith.mulf %957, %964 : vector<8x256xf32>
    %cst_320 = arith.constant -0.284496725 : f32
    %966 = vector.broadcast %cst_320 : f32 to vector<8x256xf32>
    %967 = arith.addf %966, %965 : vector<8x256xf32>
    %968 = arith.mulf %957, %967 : vector<8x256xf32>
    %cst_321 = arith.constant 0.254829586 : f32
    %969 = vector.broadcast %cst_321 : f32 to vector<8x256xf32>
    %970 = arith.addf %969, %968 : vector<8x256xf32>
    %971 = arith.mulf %957, %970 : vector<8x256xf32>
    %972 = arith.mulf %951, %951 : vector<8x256xf32>
    %cst_322 = arith.constant 0.000000e+00 : f32
    %973 = vector.broadcast %cst_322 : f32 to vector<8x256xf32>
    %974 = arith.subf %973, %972 : vector<8x256xf32>
    %975 = math.exp %974 : vector<8x256xf32>
    %976 = arith.mulf %971, %975 : vector<8x256xf32>
    %cst_323 = arith.constant 1.000000e+00 : f32
    %977 = vector.broadcast %cst_323 : f32 to vector<8x256xf32>
    %978 = arith.subf %977, %976 : vector<8x256xf32>
    %cst_324 = arith.constant 0.000000e+00 : f32
    %979 = vector.broadcast %cst_324 : f32 to vector<8x256xf32>
    %980 = arith.cmpf olt, %950, %979 : vector<8x256xf32>
    %cst_325 = arith.constant 0.000000e+00 : f32
    %981 = vector.broadcast %cst_325 : f32 to vector<8x256xf32>
    %982 = arith.subf %981, %978 : vector<8x256xf32>
    %983 = arith.select %980, %982, %978 : vector<8x256xi1>, vector<8x256xf32>
    %cst_326 = arith.constant 1.000000e+00 : f32
    %984 = vector.broadcast %cst_326 : f32 to vector<8x256xf32>
    %985 = arith.addf %984, %983 : vector<8x256xf32>
    %986 = arith.mulf %948, %985 : vector<8x256xf32>
    %987 = vector.broadcast %599 : vector<8x1xf32> to vector<8x256xf32>
    %988 = arith.mulf %986, %987 : vector<8x256xf32>
    %c3_327 = arith.constant 3 : index
    %c0_328 = arith.constant 0 : index
    %c0_329 = arith.constant 0 : index
    %989 = vector.load %arg13[%c3_327, %c0_328, %c0_329] : memref<4x256x128xbf16, #tpu.memory_space<vmem>>, vector<1x256x128xbf16>
    %990 = vector.shape_cast %989 : vector<1x256x128xbf16> to vector<256x128xbf16>
    %991 = arith.truncf %988 : vector<8x256xf32> to vector<8x256xbf16>
    %cst_330 = arith.constant dense<0.000000e+00> : vector<8x128xf32>
    %992 = tpu.matmul %991, %990, %cst_330 {dimension_numbers = #tpu.dot_dimension_numbers<[1], [0], [0], [1], [0, 0, 1, 1], [], []>} : vector<8x256xbf16>, vector<256x128xbf16>, vector<8x128xf32> -> vector<8x128xf32>
    %993 = arith.addf %940, %992 : vector<8x128xf32>
    %994 = vector.extract_strided_slice %512 {offsets = [13, 0], sizes = [1, 128], strides = [1, 1]} : vector<16x256xf32> to vector<1x128xf32>
    %995 = vector.broadcast %599 : vector<8x1xf32> to vector<8x128xf32>
    %996 = vector.broadcast %994 : vector<1x128xf32> to vector<8x128xf32>
    %997 = arith.mulf %995, %996 : vector<8x128xf32>
    %998 = arith.addf %945, %997 : vector<8x128xf32>
    %999 = arith.addf %993, %998 : vector<8x128xf32>
    %1000 = arith.addf %999, %491 : vector<8x128xf32>
    %1001 = math.log %553 : vector<8x1xf32>
    %1002 = arith.addf %548, %1001 : vector<8x1xf32>
    %1003 = arith.mulf %1002, %1002 : vector<8x1xf32>
    %cst_331 = arith.constant dense<0.000000e+00> : vector<128xf32>
    %1004 = vector.multi_reduction <add>, %556, %cst_331 [0] : vector<8x128xf32> to vector<128xf32>
    %1005 = vector.shape_cast %1004 : vector<128xf32> to vector<1x128xf32>
    %cst_332 = arith.constant dense<0.000000e+00> : vector<1xf32>
    %1006 = vector.multi_reduction <add>, %1003, %cst_332 [0] : vector<8x1xf32> to vector<1xf32>
    %1007 = vector.shape_cast %1006 : vector<1xf32> to vector<1x1xf32>
    %1008 = tpu.iota {dimensions = array<i32: 1>} : vector<1x128xi32>
    %c4_i32_333 = arith.constant 4 : i32
    %1009 = vector.broadcast %c4_i32_333 : i32 to vector<1x128xi32>
    %1010 = arith.cmpi eq, %1008, %1009 : vector<1x128xi32>
    %cst_334 = arith.constant 0.000000e+00 : f32
    %1011 = vector.shape_cast %1007 : vector<1x1xf32> to vector<1x1xf32>
    %1012 = vector.broadcast %1011 : vector<1x1xf32> to vector<1x128xf32>
    %1013 = vector.broadcast %cst_334 : f32 to vector<1x128xf32>
    %1014 = arith.select %1010, %1012, %1013 : vector<1x128xi1>, vector<1x128xf32>
    %1015 = arith.addf %1005, %1014 : vector<1x128xf32>
    %c1_i32 = arith.constant 1 : i32
    %1016 = vector.broadcast %c1_i32 : i32 to vector<8x128xi32>
    %1017 = arith.cmpi eq, %2, %1016 : vector<8x128xi32>
    %1018 = vector.shape_cast %1015 : vector<1x128xf32> to vector<1x128xf32>
    %1019 = vector.broadcast %1018 : vector<1x128xf32> to vector<8x128xf32>
    %1020 = arith.select %1017, %1019, %511 : vector<8x128xi1>, vector<8x128xf32>
    %c0_335 = arith.constant 0 : index
    %c0_336 = arith.constant 0 : index
    %1021 = vector.load %arg14[%c0_335, %c0_336] : memref<2x128xf32, #tpu.memory_space<vmem>>, vector<2x128xf32>
    %1022 = vector.extract_strided_slice %1021 {offsets = [0, 0], sizes = [1, 128], strides = [1, 1]} : vector<2x128xf32> to vector<1x128xf32>
    %1023 = vector.extract_strided_slice %1021 {offsets = [1, 0], sizes = [1, 128], strides = [1, 1]} : vector<2x128xf32> to vector<1x128xf32>
    %cst_337 = arith.constant dense<0.000000e+00> : vector<8xf32>
    %1024 = vector.multi_reduction <add>, %1000, %cst_337 [1] : vector<8x128xf32> to vector<8xf32>
    %1025 = vector.shape_cast %1024 : vector<8xf32> to vector<8x1xf32>
    %cst_338 = arith.constant 7.812500e-03 : f32
    %1026 = vector.broadcast %cst_338 : f32 to vector<8x1xf32>
    %1027 = arith.mulf %1025, %1026 : vector<8x1xf32>
    %1028 = vector.broadcast %1027 : vector<8x1xf32> to vector<8x128xf32>
    %1029 = arith.subf %1000, %1028 : vector<8x128xf32>
    %1030 = arith.mulf %1029, %1029 : vector<8x128xf32>
    %cst_339 = arith.constant dense<0.000000e+00> : vector<8xf32>
    %1031 = vector.multi_reduction <add>, %1030, %cst_339 [1] : vector<8x128xf32> to vector<8xf32>
    %1032 = vector.shape_cast %1031 : vector<8xf32> to vector<8x1xf32>
    %cst_340 = arith.constant 7.812500e-03 : f32
    %1033 = vector.broadcast %cst_340 : f32 to vector<8x1xf32>
    %1034 = arith.mulf %1032, %1033 : vector<8x1xf32>
    %cst_341 = arith.constant 9.99999974E-6 : f32
    %1035 = vector.broadcast %cst_341 : f32 to vector<8x1xf32>
    %1036 = arith.addf %1034, %1035 : vector<8x1xf32>
    %1037 = math.rsqrt %1036 : vector<8x1xf32>
    %1038 = vector.broadcast %1037 : vector<8x1xf32> to vector<8x128xf32>
    %1039 = arith.mulf %1029, %1038 : vector<8x128xf32>
    %1040 = vector.broadcast %1022 : vector<1x128xf32> to vector<8x128xf32>
    %1041 = arith.mulf %1039, %1040 : vector<8x128xf32>
    %1042 = vector.broadcast %1023 : vector<1x128xf32> to vector<8x128xf32>
    %1043 = arith.addf %1041, %1042 : vector<8x128xf32>
    %c0_342 = arith.constant 0 : index
    %c0_343 = arith.constant 0 : index
    %1044 = vector.load %arg15[%c0_342, %c0_343] : memref<8x128xf32, #tpu.memory_space<vmem>>, vector<8x128xf32>
    tpu.vector_store %arg15[%c0_342, %c0_343], %1043 {strides = array<i32>} : memref<8x128xf32, #tpu.memory_space<vmem>>, vector<8x128xf32>,
    %c0_344 = arith.constant 0 : index
    %c0_345 = arith.constant 0 : index
    %c0_346 = arith.constant 0 : index
    %1045 = vector.load %arg16[%c0_344, %c0_345, %c0_346] : memref<1x8x128xf32, #tpu.memory_space<vmem>>, vector<1x8x128xf32>
    %1046 = vector.shape_cast %1045 : vector<1x8x128xf32> to vector<8x128xf32>
    %1047 = vector.shape_cast %1020 : vector<8x128xf32> to vector<1x8x128xf32>
    tpu.vector_store %arg16[%c0_344, %c0_345, %c0_346], %1047 {strides = array<i32>} : memref<1x8x128xf32, #tpu.memory_space<vmem>>, vector<1x8x128xf32>,
    return
  }
  func.func @transform_0(%arg0: i32) -> (i32, i32) {
    %c0_i32 = arith.constant 0 : i32
    %c0_i32_0 = arith.constant 0 : i32
    return %arg0, %c0_i32 : i32, i32
  }
  func.func @transform_1(%arg0: i32) -> (i32, i32) {
    %c0_i32 = arith.constant 0 : i32
    %c0_i32_0 = arith.constant 0 : i32
    %c0_i32_1 = arith.constant 0 : i32
    return %c0_i32, %c0_i32_0 : i32, i32
  }
  func.func @transform_2(%arg0: i32) -> (i32, i32) {
    %c0_i32 = arith.constant 0 : i32
    %c0_i32_0 = arith.constant 0 : i32
    %c0_i32_1 = arith.constant 0 : i32
    return %c0_i32, %c0_i32_0 : i32, i32
  }
  func.func @transform_3(%arg0: i32) -> (i32, i32) {
    %c0_i32 = arith.constant 0 : i32
    %c0_i32_0 = arith.constant 0 : i32
    %c0_i32_1 = arith.constant 0 : i32
    return %c0_i32, %c0_i32_0 : i32, i32
  }
  func.func @transform_4(%arg0: i32) -> (i32, i32) {
    %c0_i32 = arith.constant 0 : i32
    %c0_i32_0 = arith.constant 0 : i32
    %c0_i32_1 = arith.constant 0 : i32
    return %c0_i32, %c0_i32_0 : i32, i32
  }
  func.func @transform_5(%arg0: i32) -> (i32, i32) {
    %c0_i32 = arith.constant 0 : i32
    %c0_i32_0 = arith.constant 0 : i32
    %c0_i32_1 = arith.constant 0 : i32
    return %c0_i32, %c0_i32_0 : i32, i32
  }
  func.func @transform_6(%arg0: i32) -> (i32, i32, i32) {
    %c0_i32 = arith.constant 0 : i32
    %c0_i32_0 = arith.constant 0 : i32
    %c0_i32_1 = arith.constant 0 : i32
    %c0_i32_2 = arith.constant 0 : i32
    return %c0_i32, %c0_i32_0, %c0_i32_1 : i32, i32, i32
  }
  func.func @transform_7(%arg0: i32) -> (i32, i32) {
    %c0_i32 = arith.constant 0 : i32
    %c0_i32_0 = arith.constant 0 : i32
    %c0_i32_1 = arith.constant 0 : i32
    return %c0_i32, %c0_i32_0 : i32, i32
  }
  func.func @transform_8(%arg0: i32) -> (i32, i32) {
    %c0_i32 = arith.constant 0 : i32
    %c0_i32_0 = arith.constant 0 : i32
    %c0_i32_1 = arith.constant 0 : i32
    return %c0_i32, %c0_i32_0 : i32, i32
  }
  func.func @transform_9(%arg0: i32) -> (i32, i32) {
    %c0_i32 = arith.constant 0 : i32
    %c0_i32_0 = arith.constant 0 : i32
    %c0_i32_1 = arith.constant 0 : i32
    return %c0_i32, %c0_i32_0 : i32, i32
  }
  func.func @transform_10(%arg0: i32) -> (i32, i32) {
    %c0_i32 = arith.constant 0 : i32
    %c0_i32_0 = arith.constant 0 : i32
    %c0_i32_1 = arith.constant 0 : i32
    return %c0_i32, %c0_i32_0 : i32, i32
  }
  func.func @transform_11(%arg0: i32) -> (i32, i32) {
    %c0_i32 = arith.constant 0 : i32
    %c0_i32_0 = arith.constant 0 : i32
    %c0_i32_1 = arith.constant 0 : i32
    return %c0_i32, %c0_i32_0 : i32, i32
  }
  func.func @transform_12(%arg0: i32) -> (i32, i32, i32) {
    %c0_i32 = arith.constant 0 : i32
    %c0_i32_0 = arith.constant 0 : i32
    %c0_i32_1 = arith.constant 0 : i32
    %c0_i32_2 = arith.constant 0 : i32
    return %c0_i32, %c0_i32_0, %c0_i32_1 : i32, i32, i32
  }
  func.func @transform_13(%arg0: i32) -> (i32, i32) {
    %c0_i32 = arith.constant 0 : i32
    %c0_i32_0 = arith.constant 0 : i32
    %c0_i32_1 = arith.constant 0 : i32
    return %c0_i32, %c0_i32_0 : i32, i32
  }
  func.func @transform_14(%arg0: i32) -> (i32, i32) {
    %c0_i32 = arith.constant 0 : i32
    %c0_i32_0 = arith.constant 0 : i32
    return %arg0, %c0_i32 : i32, i32
  }
  func.func @transform_15(%arg0: i32) -> (i32, i32, i32) {
    %c0_i32 = arith.constant 0 : i32
    %c0_i32_0 = arith.constant 0 : i32
    %c0_i32_1 = arith.constant 0 : i32
    return %arg0, %c0_i32, %c0_i32_0 : i32, i32, i32
  }
}

</mosaic_0001>

<bundles_post_ra>
// kernel: reasoning_moe_forward.1
= control target key start
LH: loop header
LB: loop body
LE: loop exit
PB: predicated region body
PF: predicated region fallthrough
CT: control target
= control target key end

     0   :  { %s9846_s0 = inlined_call_operand.hbm [shape: f32[16,128], index: 0, kind: input, shape index: {}]   ;;  %s9847_s1 = inlined_call_operand.hbm [shape: f32[16,256], index: 1, kind: input, shape index: {}]   ;;  %s9848_s2 = inlined_call_operand.hbm [shape: f32[1,1152], index: 2, kind: input, shape index: {}]   ;;  %s9849_s3 = inlined_call_operand.hbm [shape: bf16[128,1152], index: 3, kind: input, shape index: {}]   ;;  %s9850_s4 = inlined_call_operand.hbm [shape: bf16[256,640], index: 4, kind: input, shape index: {}]   ;;  %s9851_s5 = inlined_call_operand.hbm [shape: bf16[128,256], index: 5, kind: input, shape index: {}]   ;;  %s9852_s6 = inlined_call_operand.hbm [shape: bf16[4,256,128], index: 6, kind: input, shape index: {}]   ;;  %s9853_s7 = inlined_call_operand.vmem [shape: f32[16,256], index: 7, kind: input, shape index: {}]   ;;  %s9854_s8 = inlined_call_operand.hbm [shape: f32[1,1152], index: 8, kind: input, shape index: {}]   ;;  %s9855_s9 = inlined_call_operand.hbm [shape: bf16[128,1152], index: 9, kind: input, shape index: {}]   ;;  %s9856_s10 = inlined_call_operand.hbm [shape: bf16[256,640], index: 10, kind: input, shape index: {}]   ;;  %s9857_s11 = inlined_call_operand.hbm [shape: bf16[128,256], index: 11, kind: input, shape index: {}]   ;;  %s9858_s12 = inlined_call_operand.hbm [shape: bf16[4,256,128], index: 12, kind: input, shape index: {}]   ;;  %s9859_s13 = inlined_call_operand.vmem [shape: f32[2,128], index: 13, kind: input, shape index: {}]   ;;  %s9860_s14 = inlined_call_operand.hbm [shape: f32[16,128], index: 14, kind: output, shape index: {0}]   ;;  %s9861_s15 = inlined_call_operand.vmem [shape: f32[2,8,128], index: 15, kind: output, shape index: {1}]  }
   0x1   :  { %9878 = sst [smem:[#allocation33_spill]] %s9846_s0 }
   0x2   :  { %9879 = sst [smem:[#allocation34_spill]] %s9847_s1 }
   0x3   :  { %9880 = sst [smem:[#allocation35_spill]] %s9848_s2 }
   0x4   :  { %9881 = sst [smem:[#allocation36_spill]] %s9849_s3 }
   0x5   :  { %9882 = sst [smem:[#allocation37_spill]] %s9853_s7 }
   0x6   :  { %9883 = sst [smem:[#allocation38_spill]] %s9859_s13 }
   0x7   :  { %9884 = sst [smem:[#allocation39_spill]] %s9860_s14 }
   0x8   :  { %9885 = sst [smem:[#allocation40_spill]] %s9861_s15 }
   0x9   :  { %21 = vsyncpa [#allocation3], 0 }
   0xa   :  { %23 = vsyncpa [#allocation3 + $0x1], 0 }
   0xb   :  { %24 = vsyncpa [#allocation6], 0 }
   0xc   :  { %25 = vsyncpa [#allocation9], 0 }
   0xd   :  { %26 = vsyncpa [#allocation12], 0 }
   0xe   :  { %27 = vsyncpa [#allocation15], 0 }
   0xf   :  { %28 = vsyncpa [#allocation18], 0 }
  0x10   :  { %29 = vsyncpa [#allocation21], 0 }
  0x11   :  { %30 = vsyncpa [#allocation4], 0 }
  0x12   :  { %32 = vsyncpa [#allocation4 + $0x1], 0  ;;  %s8677_s18 = smov 0   ;;  %s8679_s19 = smov 0  }
  0x13   :  { %s8681_s20 = smov 0   ;;  %s8683_s21 = smov 0  }
  0x14 LB: > { %s8568_s22 = smov [#allocation5]   ;;  %s8698_s24 = sadd.s32 4294967295, %s8566_s21   ;;  %s8566_s21 = sphi %s8683_s21, %s9932_s21   ;;  %s8562_s20 = sphi %s8681_s20, %s9931_s20   ;;  %s8558_s19 = sphi %s8679_s19, %s9930_s19   ;;  %s8554_s18 = sphi %s8677_s18, %s9929_s18  }
  0x15   : > { %s406_s23 = sshll.u32 %s8568_s22, 4  ;;  %9886 = sst [smem:[#allocation31_spill]] %s8698_s24  ;;  %s8703_s23 = int_to_ptr.vmem [resolvable:$true] %s406_s23 }
  0x16   : > { %p6427_p0 = scmp.ge.s32.totalorder %s8566_s21, 1  ;;  %p9869_p1 = scmp.eq.s32.totalorder %s8698_s24, 0 }
  0x17   : > { %p394_p2 = scmp.lt.s32.totalorder %s8566_s21, 3  ;;  %s8569_s26 = smov [#allocation8]  }
  0x18   : > { %s430_s27 = sshll.u32 %s8569_s26, 4  ;;  %s8570_s29 = smov [#allocation11]   ;;  %s8718_s27 = int_to_ptr.vmem [resolvable:$true] %s430_s27 }
  0x19   : > { %p8705_p3 = pnand %p6427_p0, %p394_p2  ;;  %s8720_s30 = sshll.u32 %s8570_s29, 4  ;;  %s457_s30 = int_to_ptr.vmem [resolvable:$true] %s8720_s30 }
  0x1a   : > { %s9890_s1 = sld [smem:[#allocation34_spill]] }
  0x1b   : > { %s9887_s25 = scalar_select %p8705_p3, 1, 0 }
  0x1c   : > { %p7257_p5 = pneg %p8705_p3 }
  0x1d   : > { %9888 = sst [smem:[#allocation32_spill]] %s9887_s25 }
  0x1e   : > { %p8714_p6 = pnand %p7257_p5, %p9869_p1 }
  0x20   : > { %s8138_s22 = scalar_lea.hbm %s9890_s1, 512  ;;  %p8730_p8 = pneg %p8714_p6 }
  0x21   : > { %p8139_p7 = scmp.ne.s32.totalorder %s9890_s1, %s8138_s22  ;;  %p8145_p11 = scmp.lt.u32.totalorder %s8138_s22, %s9890_s1 }
  0x23   : > { %p8141_p9 = pnand %p8730_p8, %p8139_p7 }
  0x25   : > { %p8142_p10 = pneg %p8141_p9 }
  0x27   : > { %p8147_p12 = pnand %p8145_p11, %p8142_p10 }
  0x29   : > { %8150 = shalt.err (!%p8147_p12)
}
  0x2a   : > { %s8151_s13 = scalar_lea.vmem %s8703_s23, 512  ;;  %p8159_p5 = scmp.lt.s32.totalorder %s8703_s23, %s8703_s23 }
  0x2b   : > { %p8152_p13 = scmp.ne.s32.totalorder %s8703_s23, %s8151_s13  ;;  %p8160_p4 = scmp.lt.s32.totalorder %s8151_s13, %s8151_s13 }
  0x2d   : > { %p8154_p0 = pnand %p8152_p13, %p8730_p8  ;;  %p8161_p7 = por %p8160_p4, %p8159_p5 }
  0x2f   : > { %p8155_p2 = pneg %p8154_p0 }
  0x31   : > { %p8162_p9 = pnand %p8161_p7, %p8155_p2 }
  0x33   : > { %8165 = shalt.err (!%p8162_p9)
}
  0x34   : > { %s8571_s14 = smov 256   ;;  %s8572_s15 = smov 16  }
  0x35   : > { %7260 = dma.hbm_to_vmem [thread:$0]  (!%p8714_p6), %s9890_s1, 512, %s8703_s23, [#allocation6], %s8571_s14, %s8571_s14, %s8572_s15  }
  0x36   : > { %s9892_s3 = sld [smem:[#allocation36_spill]] }
  0x3c   : > { %s8166_s7 = scalar_lea.hbm %s9892_s3, 9216 }
  0x3d   : > { %p8167_p4 = scmp.ne.s32.totalorder %s9892_s3, %s8166_s7  ;;  %p8173_p12 = scmp.lt.u32.totalorder %s8166_s7, %s9892_s3 }
  0x3f   : > { %p8169_p10 = pnand %p8167_p4, %p8730_p8 }
  0x41   : > { %p8170_p11 = pneg %p8169_p10 }
  0x43   : > { %p8175_p13 = pnand %p8173_p12, %p8170_p11 }
  0x45   : > { %8178 = shalt.err (!%p8175_p13)
}
  0x46   : > { %s8179_s23 = scalar_lea.vmem %s8718_s27, 9216  ;;  %p8187_p7 = scmp.lt.s32.totalorder %s8718_s27, %s8718_s27 }
  0x47   : > { %p8180_p0 = scmp.ne.s32.totalorder %s8718_s27, %s8179_s23  ;;  %p8188_p9 = scmp.lt.s32.totalorder %s8179_s23, %s8179_s23 }
  0x49   : > { %p8182_p2 = pnand %p8180_p0, %p8730_p8  ;;  %p8189_p4 = por %p8188_p9, %p8187_p7 }
  0x4b   : > { %p8183_p5 = pneg %p8182_p2 }
  0x4d   : > { %p8190_p10 = pnand %p8189_p4, %p8183_p5 }
  0x4f   : > { %8193 = shalt.err (!%p8190_p10)
}
  0x50   : > { %s9871_s0 = smov 576   ;;  %s9872_s7 = smov 36  }
  0x51   : > { %7266 = dma.hbm_to_vmem [thread:$0]  (!%p8714_p6), %s9892_s3, 9216, %s8718_s27, [#allocation9], %s9871_s0, %s9871_s0, %s9872_s7  }
  0x52   : > { %s8194_s16 = scalar_lea.hbm %s9851_s5, 2048 }
  0x53   : > { %p8195_p11 = scmp.ne.s32.totalorder %s9851_s5, %s8194_s16  ;;  %p8201_p0 = scmp.lt.u32.totalorder %s8194_s16, %s9851_s5 }
  0x55   : > { %p8197_p12 = pnand %p8195_p11, %p8730_p8 }
  0x57   : > { %p8198_p13 = pneg %p8197_p12 }
  0x59   : > { %p8203_p2 = pnand %p8201_p0, %p8198_p13 }
  0x5b   : > { %8206 = shalt.err (!%p8203_p2)
}
  0x5c   : > { %s8207_s23 = scalar_lea.vmem %s457_s30, 2048  ;;  %p8215_p4 = scmp.lt.s32.totalorder %s457_s30, %s457_s30 }
  0x5d   : > { %p8208_p5 = scmp.ne.s32.totalorder %s457_s30, %s8207_s23  ;;  %p8216_p10 = scmp.lt.s32.totalorder %s8207_s23, %s8207_s23 }
  0x5f   : > { %p8210_p7 = pnand %p8208_p5, %p8730_p8  ;;  %p8217_p1 = por %p8216_p10, %p8215_p4 }
  0x61   : > { %p8211_p9 = pneg %p8210_p7 }
  0x63   : > { %p8218_p3 = pnand %p8217_p1, %p8211_p9 }
  0x65   : > { %8221 = shalt.err (!%p8218_p3)
}
  0x66   : > { %s9873_s27 = smov 128   ;;  %s9874_s24 = smov 8  }
  0x67   : > { %7272 = dma.hbm_to_vmem [thread:$0]  (!%p8714_p6), %s9851_s5, 2048, %s457_s30, [#allocation12], %s9873_s27, %s9873_s27, %s9874_s24  }
  0x68   : > { %s8577_s15 = smov [#allocation14]   ;;  %s8222_s29 = scalar_lea.hbm %s9854_s8, 144 }
  0x69   : > { %s486_s16 = sshll.u32 %s8577_s15, 4  ;;  %p8223_p1 = scmp.ne.s32.totalorder %s9854_s8, %s8222_s29  ;;  %s487_s16 = int_to_ptr.vmem [resolvable:$true] %s486_s16 }
  0x6a   : > { %p8229_p12 = scmp.lt.u32.totalorder %s8222_s29, %s9854_s8 }
  0x6b   : > { %p8225_p3 = pnand %p8223_p1, %p8730_p8 }
  0x6d   : > { %p8226_p11 = pneg %p8225_p3 }
  0x6f   : > { %p8231_p13 = pnand %p8229_p12, %p8226_p11 }
  0x71   : > { %8234 = shalt.err (!%p8231_p13)
}
  0x72   : > { %s8235_s30 = scalar_lea.vmem %s487_s16, 144  ;;  %s8242_s25 = scalar_lea.vmem %s487_s16, 160 }
  0x73   : > { %p8236_p0 = scmp.ne.s32.totalorder %s487_s16, %s8235_s30  ;;  %p8243_p7 = scmp.lt.s32.totalorder %s487_s16, %s487_s16 }
  0x74   : > { %p8244_p9 = scmp.lt.s32.totalorder %s8242_s25, %s8235_s30 }
  0x75   : > { %p8238_p2 = pnand %p8236_p0, %p8730_p8 }
  0x76   : > { %p8245_p4 = por %p8244_p9, %p8243_p7 }
  0x77   : > { %p8239_p5 = pneg %p8238_p2 }
  0x79   : > { %p8246_p10 = pnand %p8245_p4, %p8239_p5 }
  0x7b   : > { %8249 = shalt.err (!%p8246_p10)
}
  0x7c   : > { %7278 = dma.hbm_to_vmem [thread:$0]  (!%p8714_p6), %s9854_s8, 144, %s487_s16, [#allocation15]  }
  0x7d   : > { %s8578_s0 = smov [#allocation17]   ;;  %s8579_s17 = smov [#allocation7]  }
  0x7e   : > { %s509_s7 = sshll.u32 %s8578_s0, 4  ;;  %s420_s22 = sshll.u32 %s8579_s17, 4  ;;  %s510_s7 = int_to_ptr.vmem [resolvable:$true] %s509_s7  ;;  %s8817_s22 = int_to_ptr.vmem [resolvable:$true] %s420_s22 }
  0x7f   : > { %s8250_s23 = scalar_lea.hbm %s9856_s10, 10240 }
  0x80   : > { %p8251_p1 = scmp.ne.s32.totalorder %s9856_s10, %s8250_s23  ;;  %p8257_p12 = scmp.lt.u32.totalorder %s8250_s23, %s9856_s10 }
  0x82   : > { %p8253_p3 = pnand %p8251_p1, %p8730_p8 }
  0x84   : > { %p8254_p11 = pneg %p8253_p3 }
  0x86   : > { %p8259_p13 = pnand %p8257_p12, %p8254_p11 }
  0x88   : > { %8262 = shalt.err (!%p8259_p13)
}
  0x89   : > { %s8263_s15 = scalar_lea.vmem %s510_s7, 10240  ;;  %p8271_p7 = scmp.lt.s32.totalorder %s510_s7, %s510_s7 }
  0x8a   : > { %p8264_p0 = scmp.ne.s32.totalorder %s510_s7, %s8263_s15  ;;  %p8272_p9 = scmp.lt.s32.totalorder %s8263_s15, %s8263_s15 }
  0x8c   : > { %p8266_p2 = pnand %p8264_p0, %p8730_p8  ;;  %p8273_p4 = por %p8272_p9, %p8271_p7 }
  0x8e   : > { %p8267_p5 = pneg %p8266_p2 }
  0x90   : > { %p8274_p10 = pnand %p8273_p4, %p8267_p5 }
  0x92   : > { %8277 = shalt.err (!%p8274_p10)
}
  0x93   : > { %s8580_s0 = smov 320   ;;  %s8581_s17 = smov 20  }
  0x94   : > { %7284 = dma.hbm_to_vmem [thread:$0]  (!%p8714_p6), %s9856_s10, 10240, %s510_s7, [#allocation18], %s8580_s0, %s8580_s0, %s8581_s17  }
  0x95   : > { %s9893_s2 = sld [smem:[#allocation35_spill]] }
  0x9b   : > { %s8278_s25 = scalar_lea.hbm %s9893_s2, 144 }
  0x9c   : > { %p8279_p1 = scmp.ne.s32.totalorder %s9893_s2, %s8278_s25  ;;  %p8285_p12 = scmp.lt.u32.totalorder %s8278_s25, %s9893_s2 }
  0x9e   : > { %p8281_p3 = pnand %p8279_p1, %p8730_p8 }
  0xa0   : > { %p8282_p11 = pneg %p8281_p3 }
  0xa2   : > { %p8287_p13 = pnand %p8285_p12, %p8282_p11 }
  0xa4   : > { %8290 = shalt.err (!%p8287_p13)
}
  0xa5   : > { %s8291_s7 = scalar_lea.vmem %s8817_s22, 144  ;;  %s8298_s29 = scalar_lea.vmem %s8817_s22, 160 }
  0xa6   : > { %p8292_p0 = scmp.ne.s32.totalorder %s8817_s22, %s8291_s7  ;;  %p8299_p7 = scmp.lt.s32.totalorder %s8817_s22, %s8817_s22 }
  0xa7   : > { %p8300_p9 = scmp.lt.s32.totalorder %s8298_s29, %s8291_s7 }
  0xa8   : > { %p8294_p2 = pnand %p8292_p0, %p8730_p8 }
  0xa9   : > { %p8301_p4 = por %p8300_p9, %p8299_p7 }
  0xaa   : > { %p8295_p5 = pneg %p8294_p2 }
  0xac   : > { %p8302_p10 = pnand %p8301_p4, %p8295_p5 }
  0xae   : > { %8305 = shalt.err (!%p8302_p10)
}
  0xaf   : > { %7263 = dma.hbm_to_vmem [thread:$0]  (!%p8714_p6), %s9893_s2, 144, %s8817_s22, [#allocation6]  }
  0xb0   : > { %s8582_s23 = smov [#allocation10]   ;;  %s8583_s25 = smov [#allocation13]  }
  0xb1   : > { %s443_s30 = sshll.u32 %s8582_s23, 4  ;;  %s469_s14 = sshll.u32 %s8583_s25, 4  ;;  %s444_s30 = int_to_ptr.vmem [resolvable:$true] %s443_s30  ;;  %s8864_s14 = int_to_ptr.vmem [resolvable:$true] %s469_s14 }
  0xb2   : > { %s8306_s7 = scalar_lea.hbm %s9850_s4, 10240 }
  0xb3   : > { %p8307_p1 = scmp.ne.s32.totalorder %s9850_s4, %s8306_s7  ;;  %p8313_p12 = scmp.lt.u32.totalorder %s8306_s7, %s9850_s4 }
  0xb5   : > { %p8309_p3 = pnand %p8307_p1, %p8730_p8 }
  0xb7   : > { %p8310_p11 = pneg %p8309_p3 }
  0xb9   : > { %p8315_p13 = pnand %p8313_p12, %p8310_p11 }
  0xbb   : > { %8318 = shalt.err (!%p8315_p13)
}
  0xbc   : > { %s8319_s13 = scalar_lea.vmem %s444_s30, 10240  ;;  %p8327_p7 = scmp.lt.s32.totalorder %s444_s30, %s444_s30 }
  0xbd   : > { %p8320_p0 = scmp.ne.s32.totalorder %s444_s30, %s8319_s13  ;;  %p8328_p9 = scmp.lt.s32.totalorder %s8319_s13, %s8319_s13 }
  0xbf   : > { %p8322_p2 = pnand %p8320_p0, %p8730_p8  ;;  %p8329_p4 = por %p8328_p9, %p8327_p7 }
  0xc1   : > { %p8323_p5 = pneg %p8322_p2 }
  0xc3   : > { %p8330_p10 = pnand %p8329_p4, %p8323_p5 }
  0xc5   : > { %8333 = shalt.err (!%p8330_p10)
}
  0xc6   : > { %7269 = dma.hbm_to_vmem [thread:$0]  (!%p8714_p6), %s9850_s4, 10240, %s444_s30, [#allocation9], %s8580_s0, %s8580_s0, %s8581_s17  }
  0xc7   : > { %s8334_s15 = scalar_lea.hbm %s9852_s6, 8192 }
  0xc8   : > { %p8335_p1 = scmp.ne.s32.totalorder %s9852_s6, %s8334_s15  ;;  %p8341_p12 = scmp.lt.u32.totalorder %s8334_s15, %s9852_s6 }
  0xca   : > { %p8337_p3 = pnand %p8335_p1, %p8730_p8 }
  0xcc   : > { %p8338_p11 = pneg %p8337_p3 }
  0xce   : > { %p8343_p13 = pnand %p8341_p12, %p8338_p11 }
  0xd0   : > { %8346 = shalt.err (!%p8343_p13)
}
  0xd1   : > { %s8347_s0 = scalar_lea.vmem %s8864_s14, 8192  ;;  %p8355_p7 = scmp.lt.s32.totalorder %s8864_s14, %s8864_s14 }
  0xd2   : > { %p8348_p0 = scmp.ne.s32.totalorder %s8864_s14, %s8347_s0  ;;  %p8356_p9 = scmp.lt.s32.totalorder %s8347_s0, %s8347_s0 }
  0xd4   : > { %p8350_p2 = pnand %p8348_p0, %p8730_p8  ;;  %p8357_p4 = por %p8356_p9, %p8355_p7 }
  0xd6   : > { %p8351_p5 = pneg %p8350_p2 }
  0xd8   : > { %p8358_p10 = pnand %p8357_p4, %p8351_p5 }
  0xda   : > { %8361 = shalt.err (!%p8358_p10)
}
  0xdb   : > { %s9875_s17 = smov 64   ;;  %s9876_s30 = smov 4  }
  0xdc   : > { %7275 = dma.hbm_to_vmem [thread:$0]  (!%p8714_p6), %s9852_s6, 8192, %s8864_s14, [#allocation12], %s9875_s17, %s9875_s17, %s9876_s30  }
  0xdd   : > { %s8586_s23 = smov [#allocation16]   ;;  %s8587_s16 = smov [#allocation19]  }
  0xde   : > { %s496_s25 = sshll.u32 %s8586_s23, 4  ;;  %s522_s15 = sshll.u32 %s8587_s16, 4  ;;  %s497_s25 = int_to_ptr.vmem [resolvable:$true] %s496_s25  ;;  %s8913_s15 = int_to_ptr.vmem [resolvable:$true] %s522_s15 }
  0xdf   : > { %s8362_s27 = scalar_lea.hbm %s9855_s9, 9216 }
  0xe0   : > { %p8363_p1 = scmp.ne.s32.totalorder %s9855_s9, %s8362_s27  ;;  %p8369_p12 = scmp.lt.u32.totalorder %s8362_s27, %s9855_s9 }
  0xe2   : > { %p8365_p3 = pnand %p8363_p1, %p8730_p8 }
  0xe4   : > { %p8366_p11 = pneg %p8365_p3 }
  0xe6   : > { %p8371_p13 = pnand %p8369_p12, %p8366_p11 }
  0xe8   : > { %8374 = shalt.err (!%p8371_p13)
}
  0xe9   : > { %s8375_s24 = scalar_lea.vmem %s497_s25, 9216  ;;  %p8383_p7 = scmp.lt.s32.totalorder %s497_s25, %s497_s25 }
  0xea   : > { %p8376_p0 = scmp.ne.s32.totalorder %s497_s25, %s8375_s24  ;;  %p8384_p9 = scmp.lt.s32.totalorder %s8375_s24, %s8375_s24 }
  0xec   : > { %p8378_p2 = pnand %p8376_p0, %p8730_p8  ;;  %p8385_p4 = por %p8384_p9, %p8383_p7 }
  0xee   : > { %p8379_p5 = pneg %p8378_p2 }
  0xf0   : > { %p8386_p10 = pnand %p8385_p4, %p8379_p5 }
  0xf2   : > { %8389 = shalt.err (!%p8386_p10)
}
  0xf3   : > { %s9894_s23 = smov 36   ;;  %s9895_s16 = smov 576  }
  0xf4   : > { %7281 = dma.hbm_to_vmem [thread:$0]  (!%p8714_p6), %s9855_s9, 9216, %s497_s25, [#allocation15], %s9895_s16, %s9895_s16, %s9894_s23  }
  0xf5   : > { %s8390_s0 = scalar_lea.hbm %s9857_s11, 2048 }
  0xf6   : > { %p8391_p1 = scmp.ne.s32.totalorder %s9857_s11, %s8390_s0  ;;  %p8397_p12 = scmp.lt.u32.totalorder %s8390_s0, %s9857_s11 }
  0xf8   : > { %p8393_p3 = pnand %p8391_p1, %p8730_p8 }
  0xfa   : > { %p8394_p11 = pneg %p8393_p3 }
  0xfc   : > { %p8399_p13 = pnand %p8397_p12, %p8394_p11 }
  0xfe   : > { %8402 = shalt.err (!%p8399_p13)
}
  0xff   : > { %s8403_s25 = scalar_lea.vmem %s8913_s15, 2048  ;;  %p8411_p7 = scmp.lt.s32.totalorder %s8913_s15, %s8913_s15 }
 0x100   : > { %p8404_p0 = scmp.ne.s32.totalorder %s8913_s15, %s8403_s25  ;;  %p8412_p9 = scmp.lt.s32.totalorder %s8403_s25, %s8403_s25 }
 0x102   : > { %p8406_p2 = pnand %p8404_p0, %p8730_p8  ;;  %p8413_p4 = por %p8412_p9, %p8411_p7 }
 0x104   : > { %p8407_p5 = pneg %p8406_p2 }
 0x106   : > { %p8414_p10 = pnand %p8413_p4, %p8407_p5 }
 0x108   : > { %8417 = shalt.err (!%p8414_p10)
}
 0x109   : > { %s9896_s17 = smov 8   ;;  %s9897_s23 = smov 128  }
 0x10a   : > { %7287 = dma.hbm_to_vmem [thread:$0]  (!%p8714_p6), %s9857_s11, 2048, %s8913_s15, [#allocation18], %s9897_s23, %s9897_s23, %s9896_s17  }
 0x10b   : > { %s8588_s29 = smov [#allocation20]   ;;  %s8418_s13 = scalar_lea.hbm %s9858_s12, 8192 }
 0x10c   : > { %s535_s27 = sshll.u32 %s8588_s29, 4  ;;  %p8419_p1 = scmp.ne.s32.totalorder %s9858_s12, %s8418_s13  ;;  %s536_s27 = int_to_ptr.vmem [resolvable:$true] %s535_s27 }
 0x10d   : > { %p8425_p12 = scmp.lt.u32.totalorder %s8418_s13, %s9858_s12 }
 0x10e   : > { %p8421_p3 = pnand %p8419_p1, %p8730_p8 }
 0x110   : > { %p8422_p11 = pneg %p8421_p3 }
 0x112   : > { %p8427_p13 = pnand %p8425_p12, %p8422_p11 }
 0x114   : > { %8430 = shalt.err (!%p8427_p13)
}
 0x115   : > { %s8431_s15 = scalar_lea.vmem %s536_s27, 8192  ;;  %p8439_p7 = scmp.lt.s32.totalorder %s536_s27, %s536_s27 }
 0x116   : > { %p8432_p0 = scmp.ne.s32.totalorder %s536_s27, %s8431_s15  ;;  %p8440_p9 = scmp.lt.s32.totalorder %s8431_s15, %s8431_s15 }
 0x118   : > { %p8434_p2 = pnand %p8432_p0, %p8730_p8  ;;  %p8441_p4 = por %p8440_p9, %p8439_p7 }
 0x11a   : > { %p8435_p5 = pneg %p8434_p2 }
 0x11c   : > { %p8442_p10 = pnand %p8441_p4, %p8435_p5 }
 0x11e   : > { %8445 = shalt.err (!%p8442_p10)
}
 0x11f   : > { %s9898_s17 = smov 4   ;;  %s9899_s23 = smov 64  }
 0x120   : > { %s9900_s26 = sld [smem:[#allocation31_spill]]  ;;  %s6426_s28 = sadd.s32 4294967294, %s8566_s21  }
 0x121   : > { %7290 = dma.hbm_to_vmem [thread:$0]  (!%p8714_p6), %s9858_s12, 8192, %s536_s27, [#allocation21], %s9899_s23, %s9899_s23, %s9898_s17  }
 0x122   : > { %s8985_s7 = sadd.s32 1, %s8566_s21   ;;  %s45_s29 = sadd.s32 1, %s8562_s20 }
 0x123   : > { %s42_s22 = ssub.s32 %s8566_s21, %s8985_s7  ;;  %p52_p8 = scmp.ne.s32.totalorder %s8562_s20, %s8558_s19 }
 0x124   : > { %p43_p1 = scmp.eq.s32.totalorder %s42_s22, 0  ;;  %p53_p3 = scmp.eq.s32.totalorder %s8566_s21, 0 }
 0x125   : > { %p58_p11 = scmp.ne.s32.totalorder %s8558_s19, %s8554_s18  ;;  %p361_p5 = scmp.eq.s32.totalorder %s6426_s28, 1 }
 0x126   : > { %p355_p12 = scmp.eq.s32.totalorder %s9900_s26, 1  ;;  %p54_p13 = por %p53_p3, %p52_p8 }
 0x127   : > { %s8997_s0 = scalar_select %p43_p1, %s8562_s20, %s45_s29  }
 0x128   : > { %p9901_p0 = scmp.eq.s32.totalorder %s9900_s26, 0  ;;  %p9005_p6 = por %p355_p12, %p52_p8 }
 0x129   : > { %p7310_p7 = scmp.lt.s32.totalorder %s8566_s21, 2  ;;  %s552_s14 = sand.u32 1, %s8562_s20  }
 0x12a   : > { %p9001_p2 = por %p9901_p0, %p58_p11  ;;  %p9011_p9 = por %p361_p5, %p58_p11 }
 0x12b   : > { %s9903_s27 = scalar_select %p9005_p6, 1, 0 }
 0x12c   : > { %s9904_s24 = scalar_select %p9011_p9, 1, 0 }
 0x12d   : > { %s6440_s25 = sshll.u32 %s552_s14, 3  ;;  %s6441_s15 = sshll.u32 %s8566_s21, 7 }
 0x12e   : > { %s9905_s30 = sld [smem:[#allocation33_spill]]  ;;  %s556_s26 = scalar_lea.vmem [#allocation2], %s6440_s25 }
 0x12f   : > { %s563_s29 = sshll.u32 %s556_s26, 4  ;;  %p9021_p4 = pnand %p7310_p7, %p54_p13  ;;  %s9025_s29 = int_to_ptr.vmem [resolvable:$true] %s563_s29 }
 0x130   : > { %s553_s22 = scalar_lea.sflag [#allocation3], %s552_s14 }
 0x131   : > { %p8448_p8 = pneg %p9021_p4 }
 0x134   : > { %s9019_s16 = scalar_lea.hbm %s9905_s30, %s6441_s15  ;;  %s8451_s17 = scalar_lea.hbm %s9905_s30, 256 }
 0x135   : > { %s8446_s1 = scalar_lea.hbm %s9019_s16, 128  ;;  %p8452_p11 = scmp.lt.u32.totalorder %s9019_s16, %s9905_s30 }
 0x136   : > { %p8447_p10 = scmp.ne.s32.totalorder %s9019_s16, %s8446_s1  ;;  %p8453_p12 = scmp.lt.u32.totalorder %s8451_s17, %s8446_s1 }
 0x137   : > { %p8455_p0 = scmp.lt.u32.totalorder %s8446_s1, %s9019_s16 }
 0x138   : > { %p8449_p1 = pnand %p8448_p8, %p8447_p10  ;;  %p8454_p13 = por %p8453_p12, %p8452_p11 }
 0x13a   : > { %p8450_p3 = pneg %p8449_p1  ;;  %p8456_p5 = por %p8455_p0, %p8454_p13 }
 0x13c   : > { %p8457_p7 = pnand %p8456_p5, %p8450_p3 }
 0x13e   : > { %8460 = shalt.err (!%p8457_p7)
}
 0x13f   : > { %s8461_s14 = scalar_lea.vmem %s9025_s29, 128  ;;  %s8589_s15 = smov [#allocation2]  }
 0x140   : > { %p8462_p10 = scmp.ne.s32.totalorder %s9025_s29, %s8461_s14  ;;  %s8466_s25 = sshll.u32 %s8589_s15, 4  ;;  %s8467_s25 = int_to_ptr.vmem [resolvable:$false] %s8466_s25 }
 0x141   : > { %s8468_s23 = scalar_lea.vmem %s8467_s25, 256  ;;  %p8469_p6 = scmp.lt.s32.totalorder %s9025_s29, %s8467_s25 }
 0x142   : > { %p8464_p1 = pnand %p8462_p10, %p8448_p8  ;;  %p8470_p11 = scmp.lt.s32.totalorder %s8468_s23, %s8461_s14 }
 0x144   : > { %p8465_p9 = pneg %p8464_p1  ;;  %p8471_p12 = por %p8470_p11, %p8469_p6 }
 0x146   : > { %p8472_p13 = pnand %p8471_p12, %p8465_p9 }
 0x148   : > { %8475 = shalt.err (!%p8472_p13)
}
 0x149   : > { %7294 = dma.hbm_to_vmem [thread:$0]  (!%p9021_p4), %s9019_s16, 128, %s9025_s29, %s553_s22  }
 0x14a   : > { %s9907_s1 = sld [smem:[#allocation32_spill]] }
 0x150   : > { %p9908_p3 = scmp.ne.s32.totalorder %s9907_s1, 0 }
 0x151   : > { %s9055_s17 = sand.u32 (!%p9908_p3), 1, %s8558_s19  }
 0x152   : > { %572 = sbr.rel (%p9908_p3) target bundleno = 5286 (0x14a6), region = 76  ;;  %s6443_s26 = sshll.u32 (!%p9908_p3), %s9055_s17, 3 }
 0x153   : > { %s575_s14 = scalar_lea.sflag (!%p9908_p3), [#allocation3], %s9055_s17  ;;  %s9061_s15 = scalar_lea.vmem (!%p9908_p3), [#allocation2], %s6443_s26 }
 0x159   : > { %8521 = dma.done.wait (%p9001_p2), %s575_s14, 128  }
 0x15a   : > { %8523 = vsyncadd (%p9001_p2), %s575_s14, 4294967168  ;;  %s9909_s16 = sld [smem:[#allocation31_spill]] }
 0x160   : > { %p9910_p6 = scmp.eq.s32.totalorder %s9909_s16, 0 }
 0x162   : > { %8525 = dma.done.wait (%p9910_p6), [#allocation6], 656   ;;  %p9911_p9 = pmov %p9910_p6 }
 0x163   : > { %p9912_p4 = pmov %p9910_p6 }
 0x164   : > { %8527 = vsyncadd (%p9911_p9), [#allocation6], 4294966640 }
 0x165   : > { %8529 = dma.done.wait (%p9912_p4), [#allocation9], 19456   ;;  %p9913_p8 = pmov %p9912_p4 }
 0x166   : > { %p9914_p0 = pmov %p9912_p4 }
 0x167   : > { %8531 = vsyncadd (%p9913_p8), [#allocation9], 4294947840 }
 0x168   : > { %8533 = dma.done.wait (%p9914_p0), [#allocation12], 10240   ;;  %p9915_p5 = pmov %p9914_p0 }
 0x169   : > { %p9916_p2 = pmov %p9914_p0 }
 0x16a   : > { %8535 = vsyncadd (%p9915_p5), [#allocation12], 4294957056 }
 0x16b   : > { %8537 = dma.done.wait (%p9916_p2), [#allocation15], 9360   ;;  %p9917_p7 = pmov %p9914_p0 }
 0x16c   : > { %p9918_p10 = pmov %p9914_p0 }
 0x16d   : > { %8539 = vsyncadd (%p9917_p7), [#allocation15], 4294957936 }
 0x16e   : > { %8541 = dma.done.wait (%p9918_p10), [#allocation18], 12288   ;;  %p9919_p1 = pmov %p9914_p0 }
 0x16f   : > { %p9920_p11 = pmov %p9914_p0 }
 0x170   : > { %8543 = vsyncadd (%p9919_p1), [#allocation18], 4294955008 }
 0x171   : > { %8545 = dma.done.wait (%p9920_p11), [#allocation21], 8192   ;;  %p9921_p12 = pmov %p9914_p0 }
 0x172   : > { %v678_v0 = vld [vmem:[%s9061_s15] sm:$0xff]  ;;  %v7405_v10 = vld [vmem:[#allocation8 + $0x9c] ss:$36 sps:$4 sm:$0xff]   ;;  %v8590_v39 = vmov 0   ;;  %v679_v42 = vlaneseq  ;;  %vm8592_vm0 = vmmov 0   ;;  %s9922_s28 = sld [smem:[#allocation37_spill]] }
 0x173   : > { %8547 = vsyncadd (%p9921_p12), [#allocation21], 4294959104  ;;  %685 = vadd.xlane.f32.xlu0 %v678_v0  ;;  %v7391_v1 = vld [vmem:[#allocation8 + $0x4] ss:$36 sps:$4 sm:$0xff]   ;;  %v7393_v2 = vld [vmem:[#allocation8 + $0xc] ss:$36 sps:$4 sm:$0xff]   ;;  %1236 = vmatprep.mubr.bf16.mxu0 %v8590_v39 }
 0x174   : > { %v7395_v3 = vld [vmem:[#allocation8] ss:$36 sps:$4 sm:$0xff]   ;;  %v7396_v4 = vld [vmem:[#allocation8 + $0x8] ss:$36 sps:$4 sm:$0xff]   ;;  %v7399_v6 = vld [vmem:[#allocation8 + $0x54] ss:$36 sps:$4 sm:$0xff]   ;;  %1204 = vmatprep.subr.bf16.mxu0 %v7391_v1  ;;  %1245 = vmatprep.subr.bf16.mxu1 %v7393_v2 }
 0x175   : > { %v7397_v5 = vld [vmem:[#allocation8 + $0x4c] ss:$36 sps:$4 sm:$0xff]   ;;  %1205 = vmatpush1.bf16.msra.mxu0 %v7395_v3  ;;  %1246 = vmatpush1.bf16.msra.mxu1 %v7396_v4  ;;  %v7403_v9 = vld [vmem:[#allocation8 + $0x94] ss:$36 sps:$4 sm:$0xff]   ;;  %v7409_v17 = vld [vmem:[#allocation8 + $0xdc] ss:$36 sps:$4 sm:$0xff]  }
 0x176   : > { %v7401_v7 = vld [vmem:[#allocation8 + $0x48] ss:$36 sps:$4 sm:$0xff]   ;;  %v7402_v8 = vld [vmem:[#allocation8 + $0x50] ss:$36 sps:$4 sm:$0xff]   ;;  %1206 = vmatprep.subr.bf16.mxu0 %v7397_v5  ;;  %1247 = vmatprep.subr.bf16.mxu1 %v7399_v6  ;;  %v7408_v12 = vld [vmem:[#allocation8 + $0x98] ss:$36 sps:$4 sm:$0xff]  }
 0x177   : > { %v7407_v11 = vld [vmem:[#allocation8 + $0x90] ss:$36 sps:$4 sm:$0xff]   ;;  %v7411_v18 = vld [vmem:[#allocation8 + $0xe4] ss:$36 sps:$4 sm:$0xff]   ;;  %v7413_v19 = vld [vmem:[#allocation8 + $0xd8] ss:$36 sps:$4 sm:$0xff]   ;;  %1277 = vmatprep.mubr.bf16.mxu1 %v8590_v39  ;;  %7383 = vset.pattern.permute.xlu0 %v8590_v39 }
 0x178   : > { %v7414_v20 = vld [vmem:[#allocation8 + $0xe0] ss:$36 sps:$4 sm:$0xff]   ;;  %v7417_v22 = vld [vmem:[#allocation8 + $0x12c] ss:$36 sps:$4 sm:$0xff]   ;;  %v7423_v26 = vld [vmem:[#allocation8 + $0x174] ss:$36 sps:$4 sm:$0xff]  }
 0x179   : > { %1207 = vmatpush1.bf16.msra.mxu0 %v7401_v7  ;;  %1248 = vmatpush1.bf16.msra.mxu1 %v7402_v8  ;;  %v7415_v21 = vld [vmem:[#allocation8 + $0x124] ss:$36 sps:$4 sm:$0xff]   ;;  %v7421_v25 = vld [vmem:[#allocation8 + $0x16c] ss:$36 sps:$4 sm:$0xff]   ;;  %v7427_v29 = vld [vmem:[#allocation8 + $0x1b4] ss:$36 sps:$4 sm:$0xff]  }
 0x17a   : > { %1208 = vmatprep.subr.bf16.mxu0 %v7403_v9  ;;  %1249 = vmatprep.subr.bf16.mxu1 %v7405_v10  ;;  %v7419_v23 = vld [vmem:[#allocation8 + $0x120] ss:$36 sps:$4 sm:$0xff]   ;;  %v7420_v24 = vld [vmem:[#allocation8 + $0x128] ss:$36 sps:$4 sm:$0xff]   ;;  %v7426_v28 = vld [vmem:[#allocation8 + $0x170] ss:$36 sps:$4 sm:$0xff]  }
 0x17b   : > { %v7425_v27 = vld [vmem:[#allocation8 + $0x168] ss:$36 sps:$4 sm:$0xff]   ;;  %v7429_v30 = vld [vmem:[#allocation8 + $0x1bc] ss:$36 sps:$4 sm:$0xff]   ;;  %v7431_v31 = vld [vmem:[#allocation8 + $0x1b0] ss:$36 sps:$4 sm:$0xff]  }
 0x17c   : > { %v7432_v32 = vld [vmem:[#allocation8 + $0x1b8] ss:$36 sps:$4 sm:$0xff]   ;;  %v7435_v34 = vld [vmem:[#allocation8 + $0x204] ss:$36 sps:$4 sm:$0xff]   ;;  %v9096_v44 = vshrl.u32 %v679_v42, 7  ;;  %p673_p13 = scmp.lt.s32.totalorder %s9909_s16, 1 }
 0x17d   : > { %1209 = vmatpush1.bf16.msra.mxu0 %v7407_v11  ;;  %1250 = vmatpush1.bf16.msra.mxu1 %v7408_v12  ;;  %v7433_v33 = vld [vmem:[#allocation8 + $0x1fc] ss:$36 sps:$4 sm:$0xff]   ;;  %v7441_v37 = vld [vmem:[#allocation8 + $0x14] ss:$36 sps:$4 sm:$0xff]   ;;  %v7450_v58 = vld [vmem:[#allocation8 + $0x64] ss:$36 sps:$4 sm:$0xff]  }
 0x17e   : > { %1210 = vmatprep.subr.bf16.mxu0 %v7409_v17  ;;  %1251 = vmatprep.subr.bf16.mxu1 %v7411_v18  ;;  %v7437_v35 = vld [vmem:[#allocation8 + $0x1f8] ss:$36 sps:$4 sm:$0xff]   ;;  %v7438_v36 = vld [vmem:[#allocation8 + $0x200] ss:$36 sps:$4 sm:$0xff]   ;;  %v9099_v45 = vsub.s32 0, %v9096_v44  ;;  %v9104_v47 = vsub.s32 1, %v9096_v44 }
 0x17f   : > { %v7444_v38 = vld [vmem:[#allocation8 + $0x1c] ss:$36 sps:$4 sm:$0xff]   ;;  %v7439_v54 = vld [vmem:[#allocation8 + $0x10] ss:$36 sps:$4 sm:$0xff]   ;;  %v7453_v61 = vld [vmem:[#allocation8 + $0xa4] ss:$36 sps:$4 sm:$0xff]  }
 0x180   : > { %v9101_v46 = vld [vmem:[#allocation5] sm:$0xff]  ;;  %v7448_v60 = vld [vmem:[#allocation8 + $0x60] ss:$36 sps:$4 sm:$0xff]   ;;  %v7456_v62 = vld [vmem:[#allocation8 + $0xac] ss:$36 sps:$4 sm:$0xff]   ;;  %s674_s22 = scalar_select %p673_p13, %s9909_s16, 1 }
 0x181   : > { %1211 = vmatpush1.bf16.msra.mxu0 %v7413_v19  ;;  %1252 = vmatpush1.bf16.msra.mxu1 %v7414_v20  ;;  %v699_v48 = vrot.slane %v9101_v46, %v9099_v45  ;;  %v704_v51 = vrot.slane %v9101_v46, %v9104_v47  ;;  %v7442_v55 = vld [vmem:[#allocation8 + $0x18] ss:$36 sps:$4 sm:$0xff]   ;;  %v7451_v63 = vld [vmem:[#allocation8 + $0xa0] ss:$36 sps:$4 sm:$0xff]   ;;  %v7459_v1 = vld [vmem:[#allocation8 + $0xec] ss:$36 sps:$4 sm:$0xff]  }
 0x182   : > { %1212 = vmatprep.subr.bf16.mxu0 %v7415_v21  ;;  %1253 = vmatprep.subr.bf16.mxu1 %v7417_v22  ;;  %v7447_v57 = vld [vmem:[#allocation8 + $0x5c] ss:$36 sps:$4 sm:$0xff]   ;;  %v7462_v2 = vld [vmem:[#allocation8 + $0xf4] ss:$36 sps:$4 sm:$0xff]   ;;  %v7457_v3 = vld [vmem:[#allocation8 + $0xe8] ss:$36 sps:$4 sm:$0xff]  }
 0x183   : > { %v7445_v59 = vld [vmem:[#allocation8 + $0x58] ss:$36 sps:$4 sm:$0xff]   ;;  %v7460_v4 = vld [vmem:[#allocation8 + $0xf0] ss:$36 sps:$4 sm:$0xff]   ;;  %v7474_v10 = vld [vmem:[#allocation8 + $0x184] ss:$36 sps:$4 sm:$0xff]  }
 0x184   : > { %v7465_v5 = vld [vmem:[#allocation8 + $0x134] ss:$36 sps:$4 sm:$0xff]   ;;  %v7468_v6 = vld [vmem:[#allocation8 + $0x13c] ss:$36 sps:$4 sm:$0xff]   ;;  %v7483_v17 = vld [vmem:[#allocation8 + $0x20c] ss:$36 sps:$4 sm:$0xff]  }
 0x185   : > { %1213 = vmatpush1.bf16.msra.mxu0 %v7419_v23  ;;  %1254 = vmatpush1.bf16.msra.mxu1 %v7420_v24  ;;  %v7463_v7 = vld [vmem:[#allocation8 + $0x130] ss:$36 sps:$4 sm:$0xff]   ;;  %v7466_v8 = vld [vmem:[#allocation8 + $0x138] ss:$36 sps:$4 sm:$0xff]   ;;  %v7472_v12 = vld [vmem:[#allocation8 + $0x180] ss:$36 sps:$4 sm:$0xff]  }
 0x186   : > { %1214 = vmatprep.subr.bf16.mxu0 %v7421_v25  ;;  %1255 = vmatprep.subr.bf16.mxu1 %v7423_v26  ;;  %v7471_v9 = vld [vmem:[#allocation8 + $0x17c] ss:$36 sps:$4 sm:$0xff]   ;;  %v7486_v18 = vld [vmem:[#allocation8 + $0x214] ss:$36 sps:$4 sm:$0xff]   ;;  %v7481_v19 = vld [vmem:[#allocation8 + $0x208] ss:$36 sps:$4 sm:$0xff]  }
 0x187   : > { %v7469_v11 = vld [vmem:[#allocation8 + $0x178] ss:$36 sps:$4 sm:$0xff]   ;;  %v7484_v20 = vld [vmem:[#allocation8 + $0x210] ss:$36 sps:$4 sm:$0xff]   ;;  %v7487_v22 = vld [vmem:[#allocation8 + $0x20] ss:$36 sps:$4 sm:$0xff]  }
 0x188   : > { %v7497_v21 = vld [vmem:[#allocation10 + $0x4] ss:$20 sps:$4 sm:$0xff]   ;;  %v8591_v23 = vmov 0.0   ;;  %v7495_v24 = vld [vmem:[#allocation10] ss:$20 sps:$4 sm:$0xff]   ;;  %s6456_s25 = sshll.u32 %s674_s22, 3 }
 0x189   : > { %1215 = vmatpush1.bf16.msra.mxu0 %v7425_v27  ;;  %1256 = vmatpush1.bf16.msra.mxu1 %v7426_v28  ;;  %v7500_v25 = vld [vmem:[#allocation10 + $0x2c] ss:$20 sps:$4 sm:$0xff]   ;;  %v7498_v27 = vld [vmem:[#allocation10 + $0x28] ss:$20 sps:$4 sm:$0xff]   ;;  %s9923_s14 = sld [smem:[#allocation40_spill]]  ;;  %s9924_s22 = sld [smem:[#allocation38_spill]] }
 0x18a   : > { %1216 = vmatprep.subr.bf16.mxu0 %v7427_v29  ;;  %1257 = vmatprep.subr.bf16.mxu1 %v7429_v30  ;;  %v7488_v26 = vld [vmem:[#allocation8 + $0x68] ss:$36 sps:$4 sm:$0xff]   ;;  %v7489_v29 = vld [vmem:[#allocation8 + $0xb0] ss:$36 sps:$4 sm:$0xff]   ;;  %s666_s23 = scalar_lea.vmem [#allocation22], %s6443_s26  ;;  %s9925_s2 = sld [smem:[#allocation39_spill]] }
 0x18b   : > { %v7503_v28 = vld [vmem:[#allocation10 + $0x54] ss:$20 sps:$4 sm:$0xff]   ;;  %v7501_v30 = vld [vmem:[#allocation10 + $0x50] ss:$20 sps:$4 sm:$0xff]   ;;  %s6224_s1 = sshll.u32 %s666_s23, 4  ;;  %s6207_s13 = scalar_lea.sflag [#allocation4], %s9055_s17  ;;  %s9804_s1 = int_to_ptr.vmem [resolvable:$true] %s6224_s1 }
 0x18c   : > { %s8476_s29 = scalar_lea.vmem %s9804_s1, 128  ;;  %p9926_p6 = scmp.ne.s32.totalorder %s9903_s27, 0 }
 0x18d   : > { %1217 = vmatpush1.bf16.msra.mxu0 %v7431_v31  ;;  %1258 = vmatpush1.bf16.msra.mxu1 %v7432_v32  ;;  %v7490_v31 = vld [vmem:[#allocation8 + $0xf8] ss:$36 sps:$4 sm:$0xff]   ;;  %v7491_v32 = vld [vmem:[#allocation8 + $0x140] ss:$36 sps:$4 sm:$0xff]   ;;  %p8477_p3 = scmp.ne.s32.totalorder %s9804_s1, %s8476_s29  ;;  %s8596_s26 = smov [#allocation22]  }
 0x18e   : > { %1218 = vmatprep.subr.bf16.mxu0 %v7433_v33  ;;  %1259 = vmatprep.subr.bf16.mxu1 %v7435_v34  ;;  %v7492_v33 = vld [vmem:[#allocation8 + $0x188] ss:$36 sps:$4 sm:$0xff]   ;;  %v7493_v34 = vld [vmem:[#allocation8 + $0x1d0] ss:$36 sps:$4 sm:$0xff]  }
 0x18f   : > { %p8478_p9 = pnand %p8477_p3, %p9926_p6 }
 0x191   : > { %1219 = vmatpush1.bf16.msra.mxu0 %v7437_v35  ;;  %1260 = vmatpush1.bf16.msra.mxu1 %v7438_v36  ;;  %v7494_v35 = vld [vmem:[#allocation8 + $0x218] ss:$36 sps:$4 sm:$0xff]   ;;  %p8479_p4 = pneg %p8478_p9 }
 0x192   : > { %1286 = vmatprep.subr.bf16.mxu0 %v7441_v37  ;;  %1327 = vmatprep.subr.bf16.mxu1 %v7444_v38  ;;  %v7506_v36 = vld [vmem:[#allocation10 + $0x7c] ss:$20 sps:$4 sm:$0xff]   ;;  %v7504_v37 = vld [vmem:[#allocation10 + $0x78] ss:$20 sps:$4 sm:$0xff]  }
 0x193   : > { %v7509_v38 = vld [vmem:[#allocation10 + $0xa4] ss:$20 sps:$4 sm:$0xff]  }
 0x200   : > { %v686_v13 = vpop.xlane.xlu0 %685 }
 0x201   : > { %v687_v14 = vmul.f32 0.0078125, %v686_v13  ;;  %v7477_v13 = vld [vmem:[#allocation8 + $0x1c4] ss:$36 sps:$4 sm:$0xff]  }
 0x203   : > { %v688_v15 = vsub.f32 %v678_v0, %v687_v14  ;;  %v7454_v0 = vld [vmem:[#allocation8 + $0xa8] ss:$36 sps:$4 sm:$0xff]  }
 0x204   : > { %v7480_v14 = vld [vmem:[#allocation8 + $0x1cc] ss:$36 sps:$4 sm:$0xff]  }
 0x205   : > { %v689_v16 = vmul.f32 %v688_v15, %v688_v15 }
 0x207   : > { %690 = vadd.xlane.f32.xlu0 %v689_v16  ;;  %v7478_v16 = vld [vmem:[#allocation8 + $0x1c8] ss:$36 sps:$4 sm:$0xff]  }
 0x294   : > { %v691_v40 = vpop.xlane.xlu0 %690 }
 0x295   : > { %v692_v41 = vmul.f32 0.0078125, %v691_v40  ;;  %v7507_v40 = vld [vmem:[#allocation10 + $0xa0] ss:$20 sps:$4 sm:$0xff]  }
 0x297   : > { %v693_v43 = vadd.f32 1e-05, %v692_v41  ;;  %v7512_v41 = vld [vmem:[#allocation10 + $0xcc] ss:$20 sps:$4 sm:$0xff]  }
 0x299   : > { %7999 = vrsqrt.f32 %v693_v43  ;;  %v7510_v43 = vld [vmem:[#allocation10 + $0xc8] ss:$20 sps:$4 sm:$0xff]  }
 0x2a3   : > { %v8000_v49 = vpop.eup %7999 }
 0x2a4   : > { %v695_v50 = vmul.f32 %v8000_v49, %v688_v15  ;;  %v7475_v15 = vld [vmem:[#allocation8 + $0x1c0] ss:$36 sps:$4 sm:$0xff]  }
 0x2a5   : > { %v7513_v49 = vld [vmem:[#allocation10 + $0xf0] ss:$20 sps:$4 sm:$0xff]  }
 0x2a6   : > { %v700_v52 = vmul.f32 %v699_v48, %v695_v50  ;;  %v7515_v48 = vld [vmem:[#allocation10 + $0xf4] ss:$20 sps:$4 sm:$0xff]   ;;  %v7518_v50 = vld [vmem:[#allocation10 + $0x11c] ss:$20 sps:$4 sm:$0xff]  }
 0x2a8   : > { %v705_v53 = vadd.f32 %v704_v51, %v700_v52  ;;  %v7516_v51 = vld [vmem:[#allocation10 + $0x118] ss:$20 sps:$4 sm:$0xff]  }
 0x2a9   : > { %v7521_v52 = vld [vmem:[#allocation10 + $0x144] ss:$20 sps:$4 sm:$0xff]  }
 0x2aa   : > { %v9110_v56 = vpack.c.bf16 %v705_v53, %v705_v53  ;;  %v7519_v53 = vld [vmem:[#allocation10 + $0x140] ss:$20 sps:$4 sm:$0xff]  }
 0x2ac   : > { %1237 = vmatmul.mubr.bf16.vlgmr.msra.gmra.mrb[0].mxu0 %v9110_v56  ;;  %1278 = vmatmul.mubr.bf16.vlgmr.msra.gmra.mrb[0].mxu1 %v9110_v56 }
 0x2ad   : > { %1287 = vmatpush1.bf16.msra.mxu0 %v7439_v54  ;;  %1328 = vmatpush1.bf16.msra.mxu1 %v7442_v55  ;;  %v7524_v54 = vld [vmem:[#allocation10 + $0x16c] ss:$20 sps:$4 sm:$0xff]   ;;  %v7522_v55 = vld [vmem:[#allocation10 + $0x168] ss:$20 sps:$4 sm:$0xff]  }
 0x2ae   : > { %1288 = vmatprep.subr.bf16.mxu0 %v7447_v57  ;;  %1329 = vmatprep.subr.bf16.mxu1 %v7450_v58  ;;  %v7525_v57 = vld [vmem:[#allocation10 + $0x190] ss:$20 sps:$4 sm:$0xff]  }
 0x2af   : > { %1318 = vmatprep.mubr.bf16.mxu0 %v8590_v39  ;;  %1359 = vmatprep.mubr.bf16.mxu1 %v8590_v39  ;;  %v7530_v58 = vld [vmem:[#allocation10 + $0x1bc] ss:$20 sps:$4 sm:$0xff]  }
 0x2b1   : > { %1289 = vmatpush1.bf16.msra.mxu0 %v7445_v59  ;;  %1330 = vmatpush1.bf16.msra.mxu1 %v7448_v60  ;;  %v7528_v59 = vld [vmem:[#allocation10 + $0x1b8] ss:$20 sps:$4 sm:$0xff]  }
 0x2b2   : > { %1290 = vmatprep.subr.bf16.mxu0 %v7453_v61  ;;  %1331 = vmatprep.subr.bf16.mxu1 %v7456_v62  ;;  %v7533_v60 = vld [vmem:[#allocation10 + $0x1e4] ss:$20 sps:$4 sm:$0xff]   ;;  %v7531_v61 = vld [vmem:[#allocation10 + $0x1e0] ss:$20 sps:$4 sm:$0xff]  }
 0x2b3   : > { %v7536_v62 = vld [vmem:[#allocation10 + $0x20c] ss:$20 sps:$4 sm:$0xff]  }
 0x2b5   : > { %1291 = vmatpush1.bf16.msra.mxu0 %v7451_v63  ;;  %1332 = vmatpush1.bf16.msra.mxu1 %v7454_v0  ;;  %v7534_v63 = vld [vmem:[#allocation10 + $0x208] ss:$20 sps:$4 sm:$0xff]  }
 0x2b6   : > { %1292 = vmatprep.subr.bf16.mxu0 %v7459_v1  ;;  %1333 = vmatprep.subr.bf16.mxu1 %v7462_v2  ;;  %v7539_v0 = vld [vmem:[#allocation10 + $0x234] ss:$20 sps:$4 sm:$0xff]   ;;  %v7537_v1 = vld [vmem:[#allocation10 + $0x230] ss:$20 sps:$4 sm:$0xff]  }
 0x2b7   : > { %v7542_v2 = vld [vmem:[#allocation10 + $0x25c] ss:$20 sps:$4 sm:$0xff]  }
 0x2b9   : > { %1293 = vmatpush1.bf16.msra.mxu0 %v7457_v3  ;;  %1334 = vmatpush1.bf16.msra.mxu1 %v7460_v4  ;;  %v7540_v3 = vld [vmem:[#allocation10 + $0x258] ss:$20 sps:$4 sm:$0xff]   ;;  %v7543_v4 = vld [vmem:[#allocation10 + $0x150] ss:$20 sps:$4 sm:$0xff]  }
 0x2ba   : > { %1294 = vmatprep.subr.bf16.mxu0 %v7465_v5  ;;  %1335 = vmatprep.subr.bf16.mxu1 %v7468_v6  ;;  %v7544_v5 = vld [vmem:[#allocation10 + $0x10] ss:$20 sps:$4 sm:$0xff]   ;;  %v7545_v6 = vld [vmem:[#allocation10 + $0x178] ss:$20 sps:$4 sm:$0xff]  }
 0x2bd   : > { %1295 = vmatpush1.bf16.msra.mxu0 %v7463_v7  ;;  %1336 = vmatpush1.bf16.msra.mxu1 %v7466_v8  ;;  %v7546_v7 = vld [vmem:[#allocation10 + $0x38] ss:$20 sps:$4 sm:$0xff]   ;;  %v7547_v8 = vld [vmem:[#allocation10 + $0x1a0] ss:$20 sps:$4 sm:$0xff]  }
 0x2be   : > { %1296 = vmatprep.subr.bf16.mxu0 %v7471_v9  ;;  %1337 = vmatprep.subr.bf16.mxu1 %v7474_v10  ;;  %v7548_v9 = vld [vmem:[#allocation10 + $0x60] ss:$20 sps:$4 sm:$0xff]   ;;  %v7549_v10 = vld [vmem:[#allocation10 + $0x1c8] ss:$20 sps:$4 sm:$0xff]  }
 0x2c1   : > { %1297 = vmatpush1.bf16.msra.mxu0 %v7469_v11  ;;  %1338 = vmatpush1.bf16.msra.mxu1 %v7472_v12  ;;  %v7550_v11 = vld [vmem:[#allocation10 + $0x88] ss:$20 sps:$4 sm:$0xff]   ;;  %v7551_v12 = vld [vmem:[#allocation10 + $0x1f0] ss:$20 sps:$4 sm:$0xff]  }
 0x2c2   : > { %1298 = vmatprep.subr.bf16.mxu0 %v7477_v13  ;;  %1339 = vmatprep.subr.bf16.mxu1 %v7480_v14  ;;  %v7552_v13 = vld [vmem:[#allocation10 + $0xb0] ss:$20 sps:$4 sm:$0xff]   ;;  %v7553_v14 = vld [vmem:[#allocation10 + $0x218] ss:$20 sps:$4 sm:$0xff]  }
 0x2c5   : > { %1299 = vmatpush1.bf16.msra.mxu0 %v7475_v15  ;;  %1340 = vmatpush1.bf16.msra.mxu1 %v7478_v16  ;;  %v7554_v15 = vld [vmem:[#allocation10 + $0xd8] ss:$20 sps:$4 sm:$0xff]   ;;  %v7555_v16 = vld [vmem:[#allocation10 + $0x240] ss:$20 sps:$4 sm:$0xff]  }
 0x2c6   : > { %1300 = vmatprep.subr.bf16.mxu0 %v7483_v17  ;;  %1341 = vmatprep.subr.bf16.mxu1 %v7486_v18  ;;  %v7556_v17 = vld [vmem:[#allocation10 + $0x100] ss:$20 sps:$4 sm:$0xff]   ;;  %v7557_v18 = vld [vmem:[#allocation10 + $0x268] ss:$20 sps:$4 sm:$0xff]  }
 0x2c9   : > { %1301 = vmatpush1.bf16.msra.mxu0 %v7481_v19  ;;  %1342 = vmatpush1.bf16.msra.mxu1 %v7484_v20  ;;  %v7558_v19 = vld [vmem:[#allocation10 + $0x128] ss:$20 sps:$4 sm:$0xff]   ;;  %v9130_v20 = vsub.s32 2, %v9096_v44 }
 0x2ca   : > { %7169 = vmatprep.subr.bf16.mxu0 %v8591_v23  ;;  %1769 = vmatprep.subr.bf16.mxu1 %v7497_v21  ;;  %v9132_v21 = vld [vmem:[#allocation7] sm:$0xff] }
 0x2cc   : > { %1319 = vmatmul.mubr.bf16.vlgmr.msra.gmra.mrb[4].mxu0 %v9110_v56  ;;  %1360 = vmatmul.mubr.bf16.vlgmr.msra.gmra.mrb[4].mxu1 %v9110_v56 }
 0x2cd   : > { %7170 = vmatpush3.bf16.msra.mxu0 %v7487_v22  ;;  %7185 = vmatprep.mubr.msk.bf16.mxu0 %vm8592_vm0, %v8591_v23  ;;  %v9135_v22 = vsub.s32 3, %v9096_v44 }
 0x2ce   : > { %7171 = vmatprep.subr.bf16.mxu0 %v8591_v23  ;;  %1770 = vmatpush1.bf16.msra.mxu1 %v7495_v24  ;;  %v794_v24 = vrot.slane %v9132_v21, %v9099_v45 }
 0x2cf   : > { %1771 = vmatprep.subr.bf16.mxu1 %v7500_v25  ;;  %v802_v25 = vrot.slane %v9132_v21, %v9130_v20 }
 0x2d1   : > { %7172 = vmatpush3.bf16.msra.mxu0 %v7488_v26  ;;  %v798_v26 = vrot.slane %v9132_v21, %v9104_v47 }
 0x2d2   : > { %7173 = vmatprep.subr.bf16.mxu0 %v8591_v23  ;;  %1772 = vmatpush1.bf16.msra.mxu1 %v7498_v27  ;;  %v806_v27 = vrot.slane %v9132_v21, %v9135_v22 }
 0x2d3   : > { %1773 = vmatprep.subr.bf16.mxu1 %v7503_v28  ;;  %v9146_v28 = vand.u32 127, %v679_v42 }
 0x2d5   : > { %7174 = vmatpush3.bf16.msra.mxu0 %v7489_v29  ;;  %vm1410_vm1 = vcmp.lt.s32.totalorder %v9146_v28, 4 }
 0x2d6   : > { %7175 = vmatprep.subr.bf16.mxu0 %v8591_v23  ;;  %1774 = vmatpush1.bf16.msra.mxu1 %v7501_v30 }
 0x2d7   : > { %1775 = vmatprep.subr.bf16.mxu1 %v7506_v36 }
 0x2d9   : > { %7176 = vmatpush3.bf16.msra.mxu0 %v7490_v31 }
 0x2da   : > { %7177 = vmatprep.subr.bf16.mxu0 %v8591_v23  ;;  %1776 = vmatpush1.bf16.msra.mxu1 %v7504_v37 }
 0x2db   : > { %1777 = vmatprep.subr.bf16.mxu1 %v7509_v38 }
 0x2dd   : > { %7178 = vmatpush3.bf16.msra.mxu0 %v7491_v32 }
 0x2de   : > { %7179 = vmatprep.subr.bf16.mxu0 %v8591_v23  ;;  %1778 = vmatpush1.bf16.msra.mxu1 %v7507_v40 }
 0x2df   : > { %1779 = vmatprep.subr.bf16.mxu1 %v7512_v41 }
 0x2e1   : > { %7180 = vmatpush3.bf16.msra.mxu0 %v7492_v33 }
 0x2e2   : > { %7181 = vmatprep.subr.bf16.mxu0 %v8591_v23  ;;  %1780 = vmatpush1.bf16.msra.mxu1 %v7510_v43 }
 0x2e3   : > { %1781 = vmatprep.subr.bf16.mxu1 %v7515_v48 }
 0x2e5   : > { %7182 = vmatpush3.bf16.msra.mxu0 %v7493_v34 }
 0x2e6   : > { %7183 = vmatprep.subr.bf16.mxu0 %v8591_v23  ;;  %1782 = vmatpush1.bf16.msra.mxu1 %v7513_v49 }
 0x2e7   : > { %1783 = vmatprep.subr.bf16.mxu1 %v7518_v50 }
 0x2e9   : > { %7184 = vmatpush3.bf16.msra.mxu0 %v7494_v35 }
 0x2ea   : > { %1784 = vmatpush1.bf16.msra.mxu1 %v7516_v51  ;;  %6940 = vmatprep.subr.bf16.mxu0 %v7543_v4  ;;  %v9175_v4 = vsub.s32 4, %v9096_v44 }
 0x2eb   : > { %1785 = vmatprep.subr.bf16.mxu1 %v7521_v52 }
 0x2ec   : > { %7186 = vmatmul.mubr.bf16.vlgmr.msra.gmra.mrb[8].mxu0 %v9110_v56  ;;  %v7527_v56 = vld [vmem:[#allocation10 + $0x194] ss:$20 sps:$4 sm:$0xff]  }
 0x2ed   : > { %6941 = vmatpush3.bf16.msra.mxu0 %v7544_v5 }
 0x2ee   : > { %1786 = vmatpush1.bf16.msra.mxu1 %v7519_v53  ;;  %6942 = vmatprep.subr.bf16.mxu0 %v7545_v6 }
 0x2ef   : > { %1787 = vmatprep.subr.bf16.mxu1 %v7524_v54 }
 0x2f1   : > { %6943 = vmatpush3.bf16.msra.mxu0 %v7546_v7 }
 0x2f2   : > { %1788 = vmatpush1.bf16.msra.mxu1 %v7522_v55  ;;  %6944 = vmatprep.subr.bf16.mxu0 %v7547_v8 }
 0x2f3   : > { %1789 = vmatprep.subr.bf16.mxu1 %v7527_v56 }
 0x2f5   : > { %6945 = vmatpush3.bf16.msra.mxu0 %v7548_v9 }
 0x2f6   : > { %1790 = vmatpush1.bf16.msra.mxu1 %v7525_v57  ;;  %6946 = vmatprep.subr.bf16.mxu0 %v7549_v10 }
 0x2f7   : > { %1791 = vmatprep.subr.bf16.mxu1 %v7530_v58 }
 0x2f9   : > { %6947 = vmatpush3.bf16.msra.mxu0 %v7550_v11  ;;  %v810_v11 = vrot.slane %v9132_v21, %v9175_v4 }
 0x2fa   : > { %1792 = vmatpush1.bf16.msra.mxu1 %v7528_v59  ;;  %6948 = vmatprep.subr.bf16.mxu0 %v7551_v12 }
 0x2fb   : > { %1793 = vmatprep.subr.bf16.mxu1 %v7533_v60 }
 0x2fd   : > { %6949 = vmatpush3.bf16.msra.mxu0 %v7552_v13 }
 0x2fe   : > { %1794 = vmatpush1.bf16.msra.mxu1 %v7531_v61  ;;  %6950 = vmatprep.subr.bf16.mxu0 %v7553_v14 }
 0x2ff   : > { %1795 = vmatprep.subr.bf16.mxu1 %v7536_v62 }
 0x301   : > { %6951 = vmatpush3.bf16.msra.mxu0 %v7554_v15 }
 0x302   : > { %1796 = vmatpush1.bf16.msra.mxu1 %v7534_v63  ;;  %6952 = vmatprep.subr.bf16.mxu0 %v7555_v16 }
 0x303   : > { %1797 = vmatprep.subr.bf16.mxu1 %v7539_v0 }
 0x305   : > { %6953 = vmatpush3.bf16.msra.mxu0 %v7556_v17 }
 0x306   : > { %1798 = vmatpush1.bf16.msra.mxu1 %v7537_v1  ;;  %6954 = vmatprep.subr.bf16.mxu0 %v7557_v18 }
 0x307   : > { %1799 = vmatprep.subr.bf16.mxu1 %v7542_v2 }
 0x309   : > { %6955 = vmatpush3.bf16.msra.mxu0 %v7558_v19 }
 0x30a   : > { %1800 = vmatpush1.bf16.msra.mxu1 %v7540_v3 }
 0x37f   : > { %v1238_v29 = vpop.f32.mrb[0].mxu0  ;;  %v1279_v30 = vpop.f32.mrb[0].mxu1 }
 0x380   : > { %v1239_v31 = vadd.f32 %v1238_v29, %v794_v24  ;;  %v9148_v32 = vadd.f32 %v1279_v30, %v802_v25  ;;  %v1240_v33 = vpop.f32.mrb[1].mxu0  ;;  %v1281_v34 = vpop.f32.mrb[1].mxu1 }
 0x381   : > { %v9150_v35 = vadd.f32 %v1240_v33, %v798_v26  ;;  %v9152_v36 = vadd.f32 %v1281_v34, %v806_v27  ;;  %v1242_v37 = vpop.f32.mrb[2].mxu0  ;;  %v1283_v38 = vpop.f32.mrb[2].mxu1 }
 0x382   : > { %v9156_v40 = vmul.f32 0.70710677, %v9148_v32  ;;  %v1243_v42 = vpop.f32.mrb[3].mxu0  ;;  %v1284_v41 = vpop.f32.mrb[3].mxu1  ;;  %v9167_v50 = vsel %vm1410_vm1, %v1239_v31, -1e+30 }
 0x383   : > { %v9159_v43 = vmul.f32 0.70710677, %v9150_v35  ;;  %v9162_v48 = vmul.f32 0.70710677, %v9152_v36  ;;  %1412 = vmax.xlane.f32.xlu1 %v9167_v50 }
 0x384   : > { %v1550_v49 = vand.u32 2147483647, %v9156_v40  ;;  %vm1590_vm3 = vcmp.lt.f32.partialorder %v9156_v40, 0.0 }
 0x385   : > { %v1549_v51 = vand.u32 2147483647, %v9159_v43  ;;  %v1950_v52 = vand.u32 2147483647, %v9162_v48  ;;  %vm1589_vm2 = vcmp.lt.f32.partialorder %v9159_v43, 0.0  ;;  %vm1990_vm4 = vcmp.lt.f32.partialorder %v9162_v48, 0.0 }
 0x386   : > { %v1552_v53 = vmul.f32 0.3275911, %v1550_v49  ;;  %v1578_v8 = vmul.f32 %v1550_v49, %v1550_v49 }
 0x387   : > { %v1551_v54 = vmul.f32 0.3275911, %v1549_v51  ;;  %v1952_v55 = vmul.f32 0.3275911, %v1950_v52  ;;  %v1577_v59 = vmul.f32 %v1549_v51, %v1549_v51 }
 0x388   : > { %v1554_v56 = vadd.f32 1.0, %v1552_v53  ;;  %v1580_v14 = vsub.f32 0.0, %v1578_v8 }
 0x389   : > { %v1553_v57 = vadd.f32 1.0, %v1551_v54  ;;  %v1954_v58 = vadd.f32 1.0, %v1952_v55  ;;  %v1579_v62 = vsub.f32 0.0, %v1577_v59  ;;  %v1978_v54 = vmul.f32 %v1950_v52, %v1950_v52 }
 0x38a   : > { %8001 = vrcp.f32 %v1554_v56  ;;  %v1583_v31 = vmul.f32 1.442695, %v1580_v14  ;;  %v1545_v14 = vmul.f32 0.5, %v9150_v35 }
 0x38b   : > { %8003 = vrcp.f32 %v1553_v57  ;;  %v1581_v5 = vmul.f32 1.442695, %v1579_v62 }
 0x38c   : > { %8005 = vrcp.f32 %v1954_v58 }
 0x38d   : > { %8007 = vpow2.f32 %v1581_v5 }
 0x38e   : > { %8009 = vpow2.f32 %v1583_v31 }
 0x394   : > { %v8002_v60 = vpop.eup %8001 }
 0x395   : > { %v8004_v61 = vpop.eup %8003  ;;  %v1560_v63 = vmul.f32 1.0614054, %v8002_v60 }
 0x396   : > { %v1559_v0 = vmul.f32 1.0614054, %v8004_v61  ;;  %v9172_v2 = vpop.eup %8005 }
 0x397   : > { %v1562_v1 = vadd.f32 -1.4531521, %v1560_v63  ;;  %v1960_v6 = vmul.f32 1.0614054, %v9172_v2  ;;  %v8008_v56 = vpop.eup %8007 }
 0x398   : > { %v1561_v3 = vadd.f32 -1.4531521, %v1559_v0  ;;  %v1980_v0 = vsub.f32 0.0, %v1978_v54  ;;  %v8010_v8 = vpop.eup %8009 }
 0x399   : > { %v1564_v7 = vmul.f32 %v8002_v60, %v1562_v1  ;;  %v1962_v12 = vadd.f32 -1.4531521, %v1960_v6 }
 0x39a   : > { %v1563_v9 = vmul.f32 %v8004_v61, %v1561_v3  ;;  %v1982_v6 = vmul.f32 1.442695, %v1980_v0 }
 0x39b   : > { %v1566_v13 = vadd.f32 1.4214138, %v1564_v7  ;;  %v1964_v26 = vmul.f32 %v9172_v2, %v1962_v12 }
 0x39c   : > { %v1565_v10 = vadd.f32 1.4214138, %v1563_v9 }
 0x39d   : > { %v1568_v30 = vmul.f32 %v8002_v60, %v1566_v13  ;;  %v1966_v49 = vadd.f32 1.4214138, %v1964_v26 }
 0x39e   : > { %v1567_v15 = vmul.f32 %v8004_v61, %v1565_v10 }
 0x39f   : > { %v1320_v16 = vpop.f32.mrb[4].mxu0  ;;  %v9180_v17 = vpop.f32.mrb[4].mxu1  ;;  %v1570_v51 = vadd.f32 -0.28449672, %v1568_v30  ;;  %v1968_v59 = vmul.f32 %v9172_v2, %v1966_v49 }
 0x3a0   : > { %v1569_v18 = vadd.f32 -0.28449672, %v1567_v15  ;;  %v9182_v19 = vadd.f32 %v1320_v16, %v810_v11  ;;  %v9184_v24 = vpop.f32.mrb[5].mxu0  ;;  %v9186_v25 = vpop.f32.mrb[5].mxu1 }
 0x3a1   : > { %v1324_v27 = vpop.f32.mrb[6].mxu0  ;;  %v1365_v29 = vpop.f32.mrb[6].mxu1  ;;  %v1572_v62 = vmul.f32 %v8002_v60, %v1570_v51  ;;  %v1970_v3 = vadd.f32 -0.28449672, %v1968_v59 }
 0x3a2   : > { %v1571_v33 = vmul.f32 %v8004_v61, %v1569_v18  ;;  %v9190_v34 = vmul.f32 0.70710677, %v9182_v19  ;;  %v1325_v37 = vpop.f32.mrb[7].mxu0  ;;  %v1366_v38 = vpop.f32.mrb[7].mxu1  ;;  %v1546_v29 = vmul.f32 0.5, %v9148_v32 }
 0x3a3   : > { %v1574_v5 = vadd.f32 0.2548296, %v1572_v62  ;;  %v1972_v52 = vmul.f32 %v9172_v2, %v1970_v3 }
 0x3a4   : > { %v1573_v42 = vadd.f32 0.2548296, %v1571_v33  ;;  %v1951_v41 = vand.u32 2147483647, %v9190_v34  ;;  %vm1991_vm5 = vcmp.lt.f32.partialorder %v9190_v34, 0.0 }
 0x3a5   : > { %v1576_v7 = vmul.f32 %v8002_v60, %v1574_v5  ;;  %v1974_v15 = vadd.f32 0.2548296, %v1972_v52 }
 0x3a6   : > { %v1575_v53 = vmul.f32 %v8004_v61, %v1573_v42  ;;  %v1953_v55 = vmul.f32 0.3275911, %v1951_v41  ;;  %v1979_v9 = vmul.f32 %v1951_v41, %v1951_v41 }
 0x3a7   : > { %v1586_v10 = vmul.f32 %v8010_v8, %v1576_v7  ;;  %v1976_v31 = vmul.f32 %v9172_v2, %v1974_v15  ;;  %v1946_v7 = vmul.f32 0.5, %v9152_v36  ;;  %v7564_v15 = vld [vmem:[#allocation11 + $0x14] ss:$8 sps:$4 sm:$0xff]  }
 0x3a8   : > { %v1585_v57 = vmul.f32 %v8008_v56, %v1575_v53  ;;  %v1955_v58 = vadd.f32 1.0, %v1953_v55  ;;  %v1981_v16 = vsub.f32 0.0, %v1979_v9 }
 0x3a9   : > { %v1588_v12 = vsub.f32 1.0, %v1586_v10 }
 0x3aa   : > { %v1587_v63 = vsub.f32 1.0, %v1585_v57  ;;  %8011 = vrcp.f32 %v1955_v58  ;;  %v1984_v33 = vmul.f32 1.442695, %v1981_v16  ;;  %v7562_v16 = vld [vmem:[#allocation11 + $0x10] ss:$8 sps:$4 sm:$0xff]  }
 0x3ab   : > { %8013 = vpow2.f32 %v1982_v6  ;;  %v1592_v18 = vsub.f32 0.0, %v1588_v12 }
 0x3ac   : > { %v1591_v1 = vsub.f32 0.0, %v1587_v63  ;;  %8015 = vpow2.f32 %v1984_v33  ;;  %v7579_v33 = vld [vmem:[#allocation11 + $0x64] ss:$8 sps:$4 sm:$0xff]  }
 0x3ad   : > { %v1594_v60 = vsel %vm1590_vm3, %v1592_v18, %v1588_v12  ;;  %v7567_v18 = vld [vmem:[#allocation11 + $0x24] ss:$8 sps:$4 sm:$0xff]  }
 0x3ae   : > { %v1593_v61 = vsel %vm1589_vm2, %v1591_v1, %v1587_v63  ;;  %v1596_v30 = vadd.f32 1.0, %v1594_v60  ;;  %v7568_v60 = vld [vmem:[#allocation11 + $0x30] ss:$8 sps:$4 sm:$0xff]  }
 0x3af   : > { %v1595_v11 = vadd.f32 1.0, %v1593_v61  ;;  %v1947_v61 = vmul.f32 0.5, %v9182_v19  ;;  %v7559_v19 = vld [vmem:[#allocation11] ss:$8 sps:$4 sm:$0xff]  }
 0x3b0   : > { %v1598_v38 = vmul.f32 %v1596_v30, %v1546_v29  ;;  %v7576_v29 = vld [vmem:[#allocation11 + $0x54] ss:$8 sps:$4 sm:$0xff]   ;;  %v7574_v30 = vld [vmem:[#allocation11 + $0x50] ss:$8 sps:$4 sm:$0xff]  }
 0x3b1   : > { %v1597_v43 = vmul.f32 %v1595_v11, %v1545_v14  ;;  %v7561_v14 = vld [vmem:[#allocation11 + $0x4] ss:$8 sps:$4 sm:$0xff]  }
 0x3b2   : > { %v1600_v49 = vpack.c.bf16 %v1598_v38, %v1598_v38  ;;  %2274 = vmatprep.subr.bf16.mxu0 %v7561_v14  ;;  %v7580_v38 = vld [vmem:[#allocation11 + $0x70] ss:$8 sps:$4 sm:$0xff]  }
 0x3b3   : > { %v1599_v42 = vpack.c.bf16 %v1597_v43, %v1597_v43  ;;  %v7570_v43 = vld [vmem:[#allocation11 + $0x34] ss:$8 sps:$4 sm:$0xff]  }
 0x3b4   : > { %v8012_v13 = vpop.eup %8011  ;;  %1801 = vmatprep.mubr.bf16.mxu1 %v1600_v49 }
 0x3b5   : > { %v1961_v26 = vmul.f32 1.0614054, %v8012_v13  ;;  %v8014_v35 = vpop.eup %8013  ;;  %1802 = vmatmul.mubr.bf16.vlgmr.msra.gmra.mrb[8].mxu1 %v1599_v42 }
 0x3b6   : > { %v1986_v51 = vmul.f32 %v8014_v35, %v1976_v31  ;;  %v8016_v63 = vpop.eup %8015  ;;  %v7577_v31 = vld [vmem:[#allocation11 + $0x60] ss:$8 sps:$4 sm:$0xff]  }
 0x3b7   : > { %v1963_v27 = vadd.f32 -1.4531521, %v1961_v26  ;;  %v7565_v26 = vld [vmem:[#allocation11 + $0x20] ss:$8 sps:$4 sm:$0xff]  }
 0x3b8   : > { %v1988_v32 = vsub.f32 1.0, %v1986_v51  ;;  %v9216_v51 = vsub.s32 5, %v9096_v44 }
 0x3b9   : > { %v1965_v37 = vmul.f32 %v8012_v13, %v1963_v27  ;;  %v7571_v27 = vld [vmem:[#allocation11 + $0x40] ss:$8 sps:$4 sm:$0xff]  }
 0x3ba   : > { %v1992_v59 = vsub.f32 0.0, %v1988_v32 }
 0x3bb   : > { %v1967_v41 = vadd.f32 1.4214138, %v1965_v37  ;;  %v7582_v37 = vld [vmem:[#allocation11 + $0x74] ss:$8 sps:$4 sm:$0xff]  }
 0x3bc   : > { %v1994_v1 = vsel %vm1990_vm4, %v1992_v59, %v1988_v32 }
 0x3bd   : > { %v1969_v53 = vmul.f32 %v8012_v13, %v1967_v41  ;;  %v1996_v5 = vadd.f32 1.0, %v1994_v1 }
 0x3bf   : > { %v9200_v40 = vpop.f32.mrb[8].mxu0  ;;  %v1971_v55 = vadd.f32 -0.28449672, %v1969_v53  ;;  %v1998_v9 = vmul.f32 %v1996_v5, %v1946_v7 }
 0x3c0   : > { %v7187_v54 = vpop.f32.mrb[9].mxu0 }
 0x3c1   : > { %v1405_v56 = vpop.f32.mrb[10].mxu0  ;;  %v1973_v2 = vmul.f32 %v8012_v13, %v1971_v55  ;;  %v2000_v12 = vpack.c.bf16 %v1998_v9, %v1998_v9  ;;  %v2005_v54 = vrot.slane %v9101_v46, %v9216_v51 }
 0x3c2   : > { %v7188_v57 = vpop.f32.mrb[11].mxu0 }
 0x3c3   : > { %v1975_v58 = vadd.f32 0.2548296, %v1973_v2 }
 0x3c5   : > { %v1977_v62 = vmul.f32 %v8012_v13, %v1975_v58 }
 0x3c7   : > { %v1987_v0 = vmul.f32 %v8016_v63, %v1977_v62 }
 0x3c9   : > { %v1989_v3 = vsub.f32 1.0, %v1987_v0 }
 0x3cb   : > { %v1993_v6 = vsub.f32 0.0, %v1989_v3 }
 0x3cd   : > { %v1995_v8 = vsel %vm1991_vm5, %v1993_v6, %v1989_v3 }
 0x3ce   : > { %v1997_v52 = vadd.f32 1.0, %v1995_v8 }
 0x3d0   : > { %v1999_v10 = vmul.f32 %v1997_v52, %v1947_v61 }
 0x3d2   : > { %v2001_v11 = vpack.c.bf16 %v1999_v10, %v1999_v10 }
 0x3d4   : > { %2134 = vmatprep.mubr.bf16.mxu0 %v2001_v11 }
 0x3d5   : > { %2135 = vmatmul.mubr.bf16.vlgmr.msra.gmra.mrb[12].mxu0 %v2000_v12 }
 0x3d6   : > { %2306 = vmatprep.mubr.bf16.mxu0 %v8590_v39  ;;  %2275 = vmatpush1.bf16.msra.mxu0 %v7559_v19 }
 0x3d7   : > { %2276 = vmatprep.subr.bf16.mxu0 %v7564_v15 }
 0x3da   : > { %2277 = vmatpush1.bf16.msra.mxu0 %v7562_v16 }
 0x3db   : > { %2278 = vmatprep.subr.bf16.mxu0 %v7567_v18 }
 0x3de   : > { %2279 = vmatpush1.bf16.msra.mxu0 %v7565_v26 }
 0x3df   : > { %2280 = vmatprep.subr.bf16.mxu0 %v7570_v43 }
 0x3e2   : > { %2281 = vmatpush1.bf16.msra.mxu0 %v7568_v60 }
 0x410   : > { %v9207_v48 = vpop.xlane.xlu1 %1412 }
 0x411   : > { %v1414_v13 = vsub.f32 %v9167_v50, %v9207_v48  ;;  %v7573_v50 = vld [vmem:[#allocation11 + $0x44] ss:$8 sps:$4 sm:$0xff]  }
 0x412   : > { %2282 = vmatprep.subr.bf16.mxu0 %v7573_v50 }
 0x413   : > { %v1415_v34 = vmul.f32 1.442695, %v1414_v13  ;;  %2283 = vmatpush1.bf16.msra.mxu0 %v7571_v27  ;;  %v9227_v27 = vcvt.s32.f32 %v9146_v28 }
 0x414   : > { %2284 = vmatprep.subr.bf16.mxu0 %v7576_v29 }
 0x415   : > { %8017 = vpow2.f32 %v1415_v34 }
 0x417   : > { %2285 = vmatpush1.bf16.msra.mxu0 %v7574_v30 }
 0x418   : > { %2286 = vmatprep.subr.bf16.mxu0 %v7579_v33 }
 0x41b   : > { %2287 = vmatpush1.bf16.msra.mxu0 %v7577_v31 }
 0x41c   : > { %2288 = vmatprep.subr.bf16.mxu0 %v7582_v37 }
 0x41f   : > { %v8018_v36 = vpop.eup %8017  ;;  %2289 = vmatpush1.bf16.msra.mxu0 %v7580_v38 }
 0x420   : > { %1417 = vadd.xlane.f32.xlu1 %v8018_v36 }
 0x488   : > { %v9211_v42 = vpop.f32.mrb[8].mxu1 }
 0x489   : > { %v9213_v41 = vpop.f32.mrb[9].mxu1 }
 0x48a   : > { %v1807_v35 = vpop.f32.mrb[10].mxu1 }
 0x48b   : > { %v1808_v49 = vpop.f32.mrb[11].mxu1  ;;  %v9232_v35 = vsub.s32 6, %v9096_v44 }
 0x48c   : > { %v9234_v49 = vld [vmem:[#allocation5 + $0x8] sm:$0xff] }
 0x4a8   : > { %v6956_v53 = vpop.f32.mrb[12].mxu0 }
 0x4a9   : > { %v6957_v55 = vpop.f32.mrb[13].mxu0 }
 0x4aa   : > { %v6958_v32 = vadd.f32 %v6957_v55, %v6956_v53  ;;  %v6959_v56 = vpop.f32.mrb[14].mxu0  ;;  %v2189_v53 = vrot.slane %v9101_v46, %v9232_v35 }
 0x4ab   : > { %v6960_v57 = vpop.f32.mrb[15].mxu0 }
 0x4ac   : > { %v2137_v2 = vadd.f32 %v6958_v32, %v2005_v54  ;;  %v2193_v54 = vrot.slane %v9234_v49, %v9232_v35 }
 0x4ad   : > { %v9220_v59 = vpop.xlane.xlu1 %1417 }
 0x4ae   : > { %v2143_v58 = vmul.f32 0.70710677, %v2137_v2  ;;  %8019 = vrcp.f32 %v9220_v59  ;;  %v2142_v26 = vmul.f32 0.5, %v2137_v2 }
 0x4b0   : > { %v2144_v62 = vand.u32 2147483647, %v2143_v58  ;;  %vm2164_vm6 = vcmp.lt.f32.partialorder %v2143_v58, 0.0 }
 0x4b2   : > { %v2145_v63 = vmul.f32 0.3275911, %v2144_v62  ;;  %v2158_v5 = vmul.f32 %v2144_v62, %v2144_v62 }
 0x4b4   : > { %v2146_v0 = vadd.f32 1.0, %v2145_v63  ;;  %v2159_v7 = vsub.f32 0.0, %v2158_v5  ;;  %v1604_v5 = vrot.slane %v9101_v46, %v9130_v20 }
 0x4b6   : > { %8021 = vrcp.f32 %v2146_v0  ;;  %v2160_v52 = vmul.f32 1.442695, %v2159_v7 }
 0x4b8   : > { %v8020_v1 = vpop.eup %8019  ;;  %8023 = vpow2.f32 %v2160_v52 }
 0x4b9   : > { %v9223_v3 = vmul.f32 %v8020_v1, %v8018_v36 }
 0x4bb   : > { %1422 = vmax.xlane.f32.xlu0 %v9223_v3 }
 0x4c0   : > { %v8022_v6 = vpop.eup %8021 }
 0x4c1   : > { %v2149_v8 = vmul.f32 1.0614054, %v8022_v6 }
 0x4c2   : > { %v8024_v19 = vpop.eup %8023 }
 0x4c3   : > { %v2150_v61 = vadd.f32 -1.4531521, %v2149_v8 }
 0x4c5   : > { %v2151_v9 = vmul.f32 %v8022_v6, %v2150_v61 }
 0x4c7   : > { %v2152_v10 = vadd.f32 1.4214138, %v2151_v9  ;;  %v1804_v9 = vadd.f32 %v9211_v42, %v1604_v5  ;;  %v7603_v5 = vld [vmem:[#allocation13 + $0xe8] sm:$0xff]  }
 0x4c9   : > { %v2153_v11 = vmul.f32 %v8022_v6, %v2152_v10 }
 0x4cb   : > { %v2154_v12 = vadd.f32 -0.28449672, %v2153_v11 }
 0x4cd   : > { %v2155_v13 = vmul.f32 %v8022_v6, %v2154_v12 }
 0x4cf   : > { %v2156_v34 = vadd.f32 0.2548296, %v2155_v13 }
 0x4d1   : > { %v2157_v14 = vmul.f32 %v8022_v6, %v2156_v34  ;;  %v1608_v6 = vrot.slane %v9234_v49, %v9130_v20 }
 0x4d3   : > { %v2162_v15 = vmul.f32 %v8024_v19, %v2157_v14  ;;  %v1806_v10 = vadd.f32 %v9213_v41, %v1608_v6  ;;  %v7605_v6 = vld [vmem:[#allocation13 + $0x68] sm:$0xff]  }
 0x4d5   : > { %v2163_v36 = vsub.f32 1.0, %v2162_v15  ;;  %v1810_v46 = vadd.f32 %v1806_v10, %v1804_v9 }
 0x4d7   : > { %v2165_v16 = vsub.f32 0.0, %v2163_v36 }
 0x4d9   : > { %v2166_v18 = vsel %vm2164_vm6, %v2165_v16, %v2163_v36 }
 0x4da   : > { %v2167_v43 = vadd.f32 1.0, %v2166_v18 }
 0x4dc   : > { %v2168_v60 = vmul.f32 %v2167_v43, %v2142_v26  ;;  %v8593_v43 = vmov 1  }
 0x4dd   : > { %7382 = vset.pattern.permute.xlu1 %v8593_v43 }
 0x4de   : > { %v2185_v50 = vpack.c.bf16 %v2168_v60, %v2168_v60  ;;  %v7583_v60 = vld [vmem:[#allocation13 + $0xc0] sm:$0xff]  }
 0x4df   : > { %6962 = vmatprep.subr.bf16.mxu1 %v7583_v60  ;;  %v7617_v60 = vld [vmem:[#allocation10 + $0xc] ss:$20 sps:$4 sm:$0xff]  }
 0x4e0   : > { %2307 = vmatmul.mubr.bf16.vlgmr.msra.gmra.mrb[16].mxu0 %v2185_v50  ;;  %v7584_v50 = vld [vmem:[#allocation13 + $0x80] sm:$0xff]  }
 0x4e1   : > { %6963 = vmatpush3.bf16.msra.mxu1 %v7584_v50 }
 0x548   : > { %v1423_v29 = vpop.xlane.xlu0 %1422 }
 0x549   : > { %vm1424_vm7 = vcmp.eq.f32.partialorder %v9223_v3, %v1423_v29  ;;  %v7585_v29 = vld [vmem:[#allocation13 + $0x40] sm:$0xff]  }
 0x54a   : > { %v1425_v30 = vsel %vm1424_vm7, %v9227_v27, 128.0  ;;  %6984 = vmatprep.subr.bf16.mxu0 %v7585_v29  ;;  %v8595_v29 = vmov 3  }
 0x54b   : > { %1426 = vmin.xlane.f32.xlu1 %v1425_v30  ;;  %v7586_v30 = vld [vmem:[#allocation13] sm:$0xff]  }
 0x54c   : > { %6985 = vmatpush3.bf16.msra.mxu0 %v7586_v30 }
 0x5b3   : > { %v2308_v31 = vpop.f32.mrb[16].mxu0 }
 0x5b4   : > { %v2310_v33 = vpop.f32.mrb[17].mxu0  ;;  %v2309_v56 = vadd.f32 %v2308_v31, %v2189_v53  ;;  %v7587_v31 = vld [vmem:[#allocation13 + $0xc8] sm:$0xff]   ;;  %v7591_v53 = vld [vmem:[#allocation13 + $0xd0] sm:$0xff]  }
 0x5b5   : > { %v2312_v37 = vpop.f32.mrb[18].mxu0  ;;  %v2311_v57 = vadd.f32 %v2310_v33, %v2193_v54  ;;  %v7589_v33 = vld [vmem:[#allocation13 + $0x48] sm:$0xff]   ;;  %6964 = vmatprep.subr.bf16.mxu1 %v7587_v31  ;;  %v7593_v54 = vld [vmem:[#allocation13 + $0x50] sm:$0xff]  }
 0x5b6   : > { %v2313_v38 = vpop.f32.mrb[19].mxu0  ;;  %v7588_v37 = vld [vmem:[#allocation13 + $0x88] sm:$0xff]   ;;  %6986 = vmatprep.subr.bf16.mxu0 %v7589_v33 }
 0x5b7   : > { %v2315_v58 = vadd.f32 %v2311_v57, %v2309_v56  ;;  %v7590_v38 = vld [vmem:[#allocation13 + $0x8] sm:$0xff]   ;;  %6965 = vmatpush3.bf16.msra.mxu1 %v7588_v37 }
 0x5b8   : > { %6987 = vmatpush3.bf16.msra.mxu0 %v7590_v38  ;;  %6966 = vmatprep.subr.bf16.mxu1 %v7591_v53  ;;  %v1833_v53 = vrot.slane %v9234_v49, %v9135_v22 }
 0x5b9   : > { %6988 = vmatprep.subr.bf16.mxu0 %v7593_v54 }
 0x5d8   : > { %v1427_v55 = vpop.xlane.xlu1 %1426 }
 0x5d9   : > { %vm1428_vm8 = vcmp.eq.f32.partialorder %v9227_v27, %v1427_v55  ;;  %v7592_v55 = vld [vmem:[#allocation13 + $0x90] sm:$0xff]  }
 0x5da   : > { %v6530_v32 = vsel %vm1428_vm8, 1.0, %v8591_v23  ;;  %6967 = vmatpush3.bf16.msra.mxu1 %v7592_v55  ;;  %vm3429_vm8 = vcmp.eq.s32.totalorder %v9146_v28, 4 }
 0x5db   : > { %vm1432_vm9 = vcmp.gt.f32.partialorder %v6530_v32, 0.0 }
 0x5dc   : > { %v1433_v2 = vsel %vm1432_vm9, -1.0, %v9223_v3  ;;  %vm3432_vm9 = vcmp.eq.s32.totalorder %v9096_v44, 0 }
 0x5dd   : > { %1434 = vmax.xlane.f32.xlu0 %v1433_v2 }
 0x5e1   : > { %2316 = vadd.xlane.f32.xlu0 %v2315_v58  ;;  %v7598_v58 = vld [vmem:[#allocation13 + $0x18] sm:$0xff]  }
 0x66a   : > { %v1435_v62 = vpop.xlane.xlu0 %1434 }
 0x66b   : > { %vm1436_vm10 = vcmp.eq.f32.partialorder %v1433_v2, %v1435_v62  ;;  %v7596_v2 = vld [vmem:[#allocation13 + $0x98] sm:$0xff]   ;;  %v7599_v62 = vld [vmem:[#allocation13 + $0xe0] sm:$0xff]  }
 0x66c   : > { %v1437_v63 = vsel %vm1436_vm10, %v9227_v27, 128.0  ;;  %vm6180_vm10 = vcmp.eq.s32.totalorder %v9096_v44, 1 }
 0x66d   : > { %1438 = vmin.xlane.f32.xlu1 %v1437_v63  ;;  %v7601_v63 = vld [vmem:[#allocation13 + $0x60] sm:$0xff]  }
 0x66e   : > { %v2317_v0 = vpop.xlane.xlu0 %2316 }
 0x66f   : > { %v2318_v1 = vmul.f32 0.00390625, %v2317_v0  ;;  %v7600_v0 = vld [vmem:[#allocation13 + $0xa0] sm:$0xff]  }
 0x671   : > { %v9248_v7 = vsub.f32 %v2309_v56, %v2318_v1  ;;  %v9250_v8 = vsub.f32 %v2311_v57, %v2318_v1  ;;  %v7595_v56 = vld [vmem:[#allocation13 + $0xd8] sm:$0xff]   ;;  %v7602_v1 = vld [vmem:[#allocation13 + $0x20] sm:$0xff]  }
 0x672   : > { %v7597_v57 = vld [vmem:[#allocation13 + $0x58] sm:$0xff]   ;;  %6968 = vmatprep.subr.bf16.mxu1 %v7595_v56  ;;  %v1843_v56 = vrot.slane %v9234_v49, %v9175_v4 }
 0x673   : > { %v2321_v61 = vmul.f32 %v9248_v7, %v9248_v7  ;;  %v2322_v52 = vmul.f32 %v9250_v8, %v9250_v8  ;;  %6969 = vmatpush3.bf16.msra.mxu1 %v7596_v2 }
 0x674   : > { %6970 = vmatprep.subr.bf16.mxu1 %v7599_v62 }
 0x675   : > { %v2323_v11 = vadd.f32 %v2322_v52, %v2321_v61  ;;  %v7604_v61 = vld [vmem:[#allocation13 + $0xa8] sm:$0xff]  }
 0x676   : > { %v7606_v52 = vld [vmem:[#allocation13 + $0x28] sm:$0xff]  }
 0x677   : > { %2324 = vadd.xlane.f32.xlu0 %v2323_v11  ;;  %6971 = vmatpush3.bf16.msra.mxu1 %v7600_v0  ;;  %v7608_v11 = vld [vmem:[#allocation13 + $0xb0] sm:$0xff]  }
 0x678   : > { %6972 = vmatprep.subr.bf16.mxu1 %v7603_v5 }
 0x67b   : > { %1811 = vadd.xlane.f32.xlu0 %v1810_v46  ;;  %6973 = vmatpush3.bf16.msra.mxu1 %v7604_v61  ;;  %v7610_v46 = vld [vmem:[#allocation13 + $0x30] sm:$0xff]  }
 0x6fa   : > { %v1439_v12 = vpop.xlane.xlu1 %1438 }
 0x6fb   : > { %vm1440_vm11 = vcmp.eq.f32.partialorder %v9227_v27, %v1439_v12 }
 0x6fc   : > { %v6531_v13 = vsel %vm1440_vm11, 1.0, %v8591_v23 }
 0x6fd   : > { %v1443_v34 = vadd.f32 %v6531_v13, %v6530_v32  ;;  %v7594_v32 = vld [vmem:[#allocation13 + $0x10] sm:$0xff]  }
 0x6fe   : > { %6989 = vmatpush3.bf16.msra.mxu0 %v7594_v32 }
 0x6ff   : > { %v9261_v14 = vmul.f32 %v1443_v34, %v9223_v3  ;;  %6990 = vmatprep.subr.bf16.mxu0 %v7597_v57 }
 0x701   : > { %1445 = vadd.xlane.f32.xlu1 %v9261_v14 }
 0x702   : > { %6991 = vmatpush3.bf16.msra.mxu0 %v7598_v58 }
 0x703   : > { %6992 = vmatprep.subr.bf16.mxu0 %v7601_v63 }
 0x704   : > { %v9264_v19 = vpop.xlane.xlu0 %2324 }
 0x706   : > { %6993 = vmatpush3.bf16.msra.mxu0 %v7602_v1 }
 0x707   : > { %6994 = vmatprep.subr.bf16.mxu0 %v7605_v6 }
 0x708   : > { %v1812_v42 = vpop.xlane.xlu0 %1811 }
 0x709   : > { %v1813_v15 = vmul.f32 0.00390625, %v1812_v42  ;;  %v7611_v42 = vld [vmem:[#allocation13 + $0xf8] sm:$0xff]  }
 0x70a   : > { %6995 = vmatpush3.bf16.msra.mxu0 %v7606_v52 }
 0x70b   : > { %v9266_v41 = vsub.f32 %v1804_v9, %v1813_v15  ;;  %v9268_v36 = vsub.f32 %v1806_v10, %v1813_v15  ;;  %v7607_v9 = vld [vmem:[#allocation13 + $0xf0] sm:$0xff]   ;;  %v7612_v15 = vld [vmem:[#allocation13 + $0xb8] sm:$0xff]  }
 0x70c   : > { %v7609_v10 = vld [vmem:[#allocation13 + $0x70] sm:$0xff]   ;;  %6974 = vmatprep.subr.bf16.mxu1 %v7607_v9 }
 0x70d   : > { %v1816_v16 = vmul.f32 %v9266_v41, %v9266_v41  ;;  %v1817_v18 = vmul.f32 %v9268_v36, %v9268_v36  ;;  %6996 = vmatprep.subr.bf16.mxu0 %v7609_v10  ;;  %6975 = vmatpush3.bf16.msra.mxu1 %v7608_v11 }
 0x70e   : > { %6997 = vmatpush3.bf16.msra.mxu0 %v7610_v46  ;;  %6976 = vmatprep.subr.bf16.mxu1 %v7611_v42 }
 0x70f   : > { %v1818_v26 = vadd.f32 %v1817_v18, %v1816_v16  ;;  %v7613_v16 = vld [vmem:[#allocation13 + $0x78] sm:$0xff]   ;;  %v8594_v18 = vmov 2  }
 0x710   : > { %6998 = vmatprep.subr.bf16.mxu0 %v7613_v16 }
 0x711   : > { %1819 = vadd.xlane.f32.xlu0 %v1818_v26  ;;  %v7614_v26 = vld [vmem:[#allocation13 + $0x38] sm:$0xff]   ;;  %6977 = vmatpush3.bf16.msra.mxu1 %v7612_v15 }
 0x712   : > { %6999 = vmatpush3.bf16.msra.mxu0 %v7614_v26  ;;  %2894 = vmatprep.subr.bf16.mxu1 %v7617_v60 }
 0x78e   : > { %v1446_v12 = vpop.xlane.xlu1 %1445 }
 0x78f   : > { %8025 = vrcp.f32 %v1446_v12 }
 0x799   : > { %v8026_v13 = vpop.eup %8025 }
 0x79a   : > { %v1448_v34 = vmul.f32 %v8026_v13, %v9261_v14 }
 0x79c   : > { %2352 = vperm.xlu1 %7382, %v1448_v34   ;;  %1902 = vperm.xlu0 %7383, %v1448_v34  }
 0x79e   : > { %v1820_v50 = vpop.xlane.xlu0 %1819 }
 0x79f   : > { %v1821_v14 = vmul.f32 0.00390625, %v1820_v50 }
 0x7a0   : > { %7384 = vset.pattern.permute.xlu1 %v8594_v18  ;;  %7386 = vset.pattern.permute.xlu0 %v8593_v43  ;;  %v9281_v43 = vld [vmem:[#allocation5] sm:$0xff] }
 0x7a1   : > { %2990 = vperm.xlu1 %7384, %v1448_v34   ;;  %v1822_v30 = vadd.f32 1e-05, %v1821_v14  ;;  %v1829_v37 = vrot.slane %v9281_v43, %v9135_v22  ;;  %v1839_v55 = vrot.slane %v9281_v43, %v9175_v4 }
 0x7a3   : > { %8027 = vrsqrt.f32 %v1822_v30 }
 0x7a5   : > { %7385 = vset.pattern.permute.xlu1 %v8595_v29 }
 0x7a6   : > { %3228 = vperm.xlu1 %7385, %v1448_v34  }
 0x7aa   : > { %7387 = vset.pattern.permute.xlu1 %v8590_v39 }
 0x7ad   : > { %v8028_v31 = vpop.eup %8027 }
 0x7ae   : > { %v1824_v33 = vmul.f32 %v8028_v31, %v9266_v41  ;;  %v1825_v38 = vmul.f32 %v8028_v31, %v9268_v36  ;;  %v818_v41 = vrot.slane %v9132_v21, %v9232_v35 }
 0x7b0   : > { %v1834_v54 = vmul.f32 %v1829_v37, %v1824_v33  ;;  %v1835_v32 = vmul.f32 %v1833_v53, %v1825_v38  ;;  %v9299_v36 = vadd.f32 %v9180_v17, %v818_v41 }
 0x7b2   : > { %v9294_v57 = vadd.f32 %v1839_v55, %v1834_v54  ;;  %v9296_v2 = vadd.f32 %v1843_v56, %v1835_v32  ;;  %v9308_v63 = vmul.f32 0.70710677, %v9299_v36 }
 0x7b4   : > { %v9302_v58 = vmul.f32 0.70710677, %v9294_v57  ;;  %v9305_v62 = vmul.f32 0.70710677, %v9296_v2  ;;  %v2675_v5 = vand.u32 2147483647, %v9308_v63 }
 0x7b5   : > { %vm2715_vm14 = vcmp.lt.f32.partialorder %v9308_v63, 0.0 }
 0x7b6   : > { %v1850_v0 = vand.u32 2147483647, %v9302_v58  ;;  %v1851_v1 = vand.u32 2147483647, %v9305_v62  ;;  %v2677_v52 = vmul.f32 0.3275911, %v2675_v5  ;;  %v2703_v53 = vmul.f32 %v2675_v5, %v2675_v5 }
 0x7b7   : > { %v814_v5 = vrot.slane %v9132_v21, %v9216_v51  ;;  %vm1890_vm12 = vcmp.lt.f32.partialorder %v9302_v58, 0.0  ;;  %vm1891_vm13 = vcmp.lt.f32.partialorder %v9305_v62, 0.0  ;;  %v1847_v62 = vmul.f32 0.5, %v9296_v2 }
 0x7b8   : > { %v1852_v6 = vmul.f32 0.3275911, %v1850_v0  ;;  %v1853_v61 = vmul.f32 0.3275911, %v1851_v1  ;;  %v2679_v10 = vadd.f32 1.0, %v2677_v52  ;;  %v1878_v33 = vmul.f32 %v1850_v0, %v1850_v0 }
 0x7b9   : > { %v1879_v37 = vmul.f32 %v1851_v1, %v1851_v1  ;;  %v2326_v0 = vmul.f32 0.00390625, %v9264_v19 }
 0x7ba   : > { %v1854_v17 = vadd.f32 1.0, %v1852_v6  ;;  %v1855_v9 = vadd.f32 1.0, %v1853_v61  ;;  %v1880_v32 = vsub.f32 0.0, %v1878_v33  ;;  %v2705_v6 = vsub.f32 0.0, %v2703_v53 }
 0x7bb   : > { %v1881_v56 = vsub.f32 0.0, %v1879_v37 }
 0x7bc   : > { %8029 = vrcp.f32 %v1854_v17  ;;  %v1882_v17 = vmul.f32 1.442695, %v1880_v32 }
 0x7bd   : > { %8031 = vrcp.f32 %v1855_v9  ;;  %v1884_v9 = vmul.f32 1.442695, %v1881_v56 }
 0x7be   : > { %8033 = vrcp.f32 %v2679_v10 }
 0x7bf   : > { %8035 = vpow2.f32 %v1882_v17  ;;  %v9331_v17 = vld [vmem:[#allocation5 + $0x10] sm:$0xff] }
 0x7c0   : > { %8037 = vpow2.f32 %v1884_v9 }
 0x7c6   : > { %v8030_v11 = vpop.eup %8029 }
 0x7c7   : > { %v8032_v46 = vpop.eup %8031  ;;  %v1860_v13 = vmul.f32 1.0614054, %v8030_v11 }
 0x7c8   : > { %v8034_v12 = vpop.eup %8033  ;;  %v1861_v34 = vmul.f32 1.0614054, %v8032_v46 }
 0x7c9   : > { %v2685_v42 = vmul.f32 1.0614054, %v8034_v12  ;;  %v1862_v15 = vadd.f32 -1.4531521, %v1860_v13  ;;  %v2708_v13 = vmul.f32 1.442695, %v2705_v6  ;;  %v8036_v33 = vpop.eup %8035 }
 0x7ca   : > { %v1863_v16 = vadd.f32 -1.4531521, %v1861_v34  ;;  %v8038_v37 = vpop.eup %8037 }
 0x7cb   : > { %v2687_v26 = vadd.f32 -1.4531521, %v2685_v42  ;;  %v1864_v60 = vmul.f32 %v8030_v11, %v1862_v15  ;;  %8039 = vpow2.f32 %v2708_v13 }
 0x7cc   : > { %v1865_v50 = vmul.f32 %v8032_v46, %v1863_v16 }
 0x7cd   : > { %v2689_v14 = vmul.f32 %v8034_v12, %v2687_v26  ;;  %v1866_v30 = vadd.f32 1.4214138, %v1864_v60  ;;  %v2327_v26 = vadd.f32 1e-05, %v2326_v0 }
 0x7ce   : > { %v1867_v31 = vadd.f32 1.4214138, %v1865_v50  ;;  %v9317_v50 = vadd.f32 %v9184_v24, %v814_v5 }
 0x7cf   : > { %v2691_v38 = vadd.f32 1.4214138, %v2689_v14  ;;  %v1868_v54 = vmul.f32 %v8030_v11, %v1866_v30  ;;  %8041 = vrsqrt.f32 %v2327_v26 }
 0x7d0   : > { %v1869_v55 = vmul.f32 %v8032_v46, %v1867_v31  ;;  %v9320_v19 = vmul.f32 0.70710677, %v9317_v50 }
 0x7d1   : > { %v2693_v41 = vmul.f32 %v8034_v12, %v2691_v38  ;;  %v1870_v61 = vadd.f32 -0.28449672, %v1868_v54 }
 0x7d2   : > { %v1871_v52 = vadd.f32 -0.28449672, %v1869_v55  ;;  %v9323_v55 = vand.u32 2147483647, %v9320_v19  ;;  %vm2714_vm15 = vcmp.lt.f32.partialorder %v9320_v19, 0.0  ;;  %v7663_v19 = vld [vmem:[#allocation13 + $0x140] sm:$0xff]  }
 0x7d3   : > { %v2695_v10 = vadd.f32 -0.28449672, %v2693_v41  ;;  %v1872_v34 = vmul.f32 %v8030_v11, %v1870_v61  ;;  %7006 = vmatprep.subr.bf16.mxu0 %v7663_v19 }
 0x7d4   : > { %v1873_v42 = vmul.f32 %v8032_v46, %v1871_v52 }
 0x7d5   : > { %v2697_v1 = vmul.f32 %v8034_v12, %v2695_v10  ;;  %v1874_v15 = vadd.f32 0.2548296, %v1872_v34  ;;  %v8040_v53 = vpop.eup %8039 }
 0x7d6   : > { %v1875_v16 = vadd.f32 0.2548296, %v1873_v42  ;;  %v9338_v42 = vld [vmem:[#allocation5 + $0x18] sm:$0xff] }
 0x7d7   : > { %v2699_v60 = vadd.f32 0.2548296, %v2697_v1  ;;  %v1876_v14 = vmul.f32 %v8030_v11, %v1874_v15  ;;  %v2676_v11 = vmul.f32 0.3275911, %v9323_v55  ;;  %v2344_v1 = vrot.slane %v9331_v17, %v9099_v45 }
 0x7d8   : > { %v1877_v30 = vmul.f32 %v8032_v46, %v1875_v16  ;;  %v9327_v46 = vsub.s32 7, %v9096_v44  ;;  %v1846_v16 = vmul.f32 0.5, %v9294_v57  ;;  %v2733_v19 = vrot.slane %v9338_v42, %v9104_v47 }
 0x7d9   : > { %v2701_v31 = vmul.f32 %v8034_v12, %v2699_v60  ;;  %v1886_v38 = vmul.f32 %v8036_v33, %v1876_v14  ;;  %v8042_v41 = vpop.eup %8041  ;;  %v2678_v34 = vadd.f32 1.0, %v2676_v11 }
 0x7da   : > { %v1887_v54 = vmul.f32 %v8038_v37, %v1877_v30  ;;  %v2334_v61 = vrot.slane %v9281_v43, %v9327_v46  ;;  %v2338_v9 = vrot.slane %v9234_v49, %v9327_v46  ;;  %v2329_v10 = vmul.f32 %v8042_v41, %v9248_v7 }
 0x7db   : > { %v2711_v21 = vmul.f32 %v8040_v53, %v2701_v31  ;;  %v1888_v32 = vsub.f32 1.0, %v1886_v38  ;;  %v2330_v13 = vmul.f32 %v8042_v41, %v9250_v8  ;;  %v2348_v49 = vrot.slane %v9338_v42, %v9099_v45 }
 0x7dc   : > { %v1889_v56 = vsub.f32 1.0, %v1887_v54  ;;  %v2339_v7 = vmul.f32 %v2334_v61, %v2329_v10  ;;  %8043 = vrcp.f32 %v2678_v34  ;;  %v2671_v30 = vmul.f32 0.5, %v9299_v36  ;;  %v7620_v36 = vld [vmem:[#allocation10 + $0x34] ss:$20 sps:$4 sm:$0xff]   ;;  %v7623_v61 = vld [vmem:[#allocation10 + $0x5c] ss:$20 sps:$4 sm:$0xff]  }
 0x7dd   : > { %v2713_v24 = vsub.f32 1.0, %v2711_v21  ;;  %v1892_v12 = vsub.f32 0.0, %v1888_v32  ;;  %v2340_v8 = vmul.f32 %v2338_v9, %v2330_v13  ;;  %v7621_v9 = vld [vmem:[#allocation10 + $0x58] ss:$20 sps:$4 sm:$0xff]   ;;  %v7624_v34 = vld [vmem:[#allocation10 + $0x80] ss:$20 sps:$4 sm:$0xff]  }
 0x7de   : > { %v1893_v6 = vsub.f32 0.0, %v1889_v56  ;;  %v2349_v60 = vadd.f32 %v2344_v1, %v2339_v7  ;;  %v7626_v10 = vld [vmem:[#allocation10 + $0x84] ss:$20 sps:$4 sm:$0xff]   ;;  %v7627_v1 = vld [vmem:[#allocation10 + $0xa8] ss:$20 sps:$4 sm:$0xff]   ;;  %v2702_v7 = vmul.f32 %v9323_v55, %v9323_v55 }
 0x7df   : > { %v2717_v52 = vsub.f32 0.0, %v2713_v24  ;;  %v1894_v0 = vsel %vm1890_vm12, %v1892_v12, %v1888_v32  ;;  %v2350_v63 = vadd.f32 %v2348_v49, %v2340_v8  ;;  %v7630_v8 = vld [vmem:[#allocation10 + $0xd0] ss:$20 sps:$4 sm:$0xff]   ;;  %v7639_v55 = vld [vmem:[#allocation10 + $0x148] ss:$20 sps:$4 sm:$0xff]  }
 0x7e0   : > { %v1895_v43 = vsel %vm1891_vm13, %v1893_v6, %v1889_v56  ;;  %v1896_v15 = vadd.f32 1.0, %v1894_v0  ;;  %v7615_v56 = vld [vmem:[#allocation10 + $0x8] ss:$20 sps:$4 sm:$0xff]   ;;  %v7618_v6 = vld [vmem:[#allocation10 + $0x30] ss:$20 sps:$4 sm:$0xff]  }
 0x7e1   : > { %v2719_v5 = vsel %vm2715_vm14, %v2717_v52, %v2713_v24  ;;  %v1897_v58 = vadd.f32 1.0, %v1895_v43  ;;  %v7629_v0 = vld [vmem:[#allocation10 + $0xac] ss:$20 sps:$4 sm:$0xff]  }
 0x7e2   : > { %v2721_v26 = vadd.f32 1.0, %v2719_v5  ;;  %v1898_v14 = vmul.f32 %v1896_v15, %v1846_v16  ;;  %v7632_v5 = vld [vmem:[#allocation10 + $0xd4] ss:$20 sps:$4 sm:$0xff]   ;;  %v7635_v15 = vld [vmem:[#allocation10 + $0xfc] ss:$20 sps:$4 sm:$0xff]   ;;  %v2704_v16 = vsub.f32 0.0, %v2702_v7 }
 0x7e3   : > { %v1899_v33 = vmul.f32 %v1897_v58, %v1847_v62  ;;  %v7633_v62 = vld [vmem:[#allocation10 + $0xf8] ss:$20 sps:$4 sm:$0xff]   ;;  %v7664_v7 = vld [vmem:[#allocation13 + $0x100] sm:$0xff]  }
 0x7e4   : > { %v2723_v2 = vmul.f32 %v2721_v26, %v2671_v30  ;;  %v7638_v26 = vld [vmem:[#allocation10 + $0x124] ss:$20 sps:$4 sm:$0xff]   ;;  %v7641_v30 = vld [vmem:[#allocation10 + $0x14c] ss:$20 sps:$4 sm:$0xff]  }
 0x7e6   : > { %v8044_v11 = vpop.eup %8043  ;;  %v2725_v12 = vpack.c.bf16 %v2723_v2, %v2723_v2 }
 0x7e7   : > { %v2684_v52 = vmul.f32 1.0614054, %v8044_v11 }
 0x7e9   : > { %v2686_v13 = vadd.f32 -1.4531521, %v2684_v52 }
 0x7eb   : > { %v2688_v43 = vmul.f32 %v8044_v11, %v2686_v13  ;;  %v7657_v13 = vld [vmem:[#allocation10 + $0x238] ss:$20 sps:$4 sm:$0xff]  }
 0x7ed   : > { %v2690_v49 = vadd.f32 1.4214138, %v2688_v43  ;;  %v2670_v43 = vmul.f32 0.5, %v9317_v50  ;;  %v7669_v50 = vld [vmem:[#allocation13 + $0x158] sm:$0xff]  }
 0x7ef   : > { %v2692_v58 = vmul.f32 %v8044_v11, %v2690_v49 }
 0x81b   : > { %v9349_v31 = vpop.permute.xlu1 %2352  ;;  %v9351_v37 = vpop.permute.xlu0 %1902 }
 0x81c   : > { %v2355_v38 = vmul.f32 %v9349_v31, %v2349_v60  ;;  %v2356_v53 = vmul.f32 %v9349_v31, %v2350_v63  ;;  %v1905_v54 = vmul.f32 %v9351_v37, %v1898_v14  ;;  %v1906_v57 = vmul.f32 %v9351_v37, %v1899_v33  ;;  %v7636_v14 = vld [vmem:[#allocation10 + $0x120] ss:$20 sps:$4 sm:$0xff]  }
 0x81d   : > { %v2694_v60 = vadd.f32 -0.28449672, %v2692_v58  ;;  %v2706_v63 = vmul.f32 1.442695, %v2704_v16  ;;  %v7667_v58 = vld [vmem:[#allocation13 + $0x150] sm:$0xff]  }
 0x81e   : > { %v2390_v21 = vpack.c.bf16 %v2355_v38, %v2355_v38  ;;  %v1939_v32 = vpack.c.bf16 %v1905_v54, %v1905_v54  ;;  %v2391_v24 = vpack.c.bf16 %v2356_v53, %v2356_v53  ;;  %v1940_v41 = vpack.c.bf16 %v1906_v57, %v1906_v57  ;;  %v7644_v38 = vld [vmem:[#allocation10 + $0x174] ss:$20 sps:$4 sm:$0xff]   ;;  %v7642_v54 = vld [vmem:[#allocation10 + $0x170] ss:$20 sps:$4 sm:$0xff]  }
 0x81f   : > { %v2696_v33 = vmul.f32 %v8044_v11, %v2694_v60  ;;  %8045 = vpow2.f32 %v2706_v63  ;;  %v7647_v57 = vld [vmem:[#allocation10 + $0x19c] ss:$20 sps:$4 sm:$0xff]   ;;  %v7672_v60 = vld [vmem:[#allocation13 + $0x120] sm:$0xff]   ;;  %v7673_v63 = vld [vmem:[#allocation13 + $0x168] sm:$0xff]  }
 0x820   : > { %2520 = vmatprep.mubr.bf16.mxu1 %v2391_v24  ;;  %2656 = vmatprep.mubr.bf16.mxu0 %v1940_v41  ;;  %v7648_v41 = vld [vmem:[#allocation10 + $0x1c0] ss:$20 sps:$4 sm:$0xff]  }
 0x821   : > { %2521 = vmatmul.mubr.bf16.vlgmr.msra.gmra.mrb[12].mxu1 %v2390_v21  ;;  %2657 = vmatmul.mubr.bf16.vlgmr.msra.gmra.mrb[20].mxu0 %v1939_v32  ;;  %v2698_v53 = vadd.f32 0.2548296, %v2696_v33  ;;  %v7645_v21 = vld [vmem:[#allocation10 + $0x198] ss:$20 sps:$4 sm:$0xff]   ;;  %v7668_v16 = vld [vmem:[#allocation13 + $0x110] sm:$0xff]  }
 0x822   : > { %2895 = vmatpush1.bf16.msra.mxu1 %v7615_v56  ;;  %2926 = vmatprep.mubr.bf16.mxu1 %v2725_v12  ;;  %v7650_v56 = vld [vmem:[#allocation10 + $0x1c4] ss:$20 sps:$4 sm:$0xff]   ;;  %v7676_v33 = vld [vmem:[#allocation13 + $0x130] sm:$0xff]  }
 0x823   : > { %2896 = vmatprep.subr.bf16.mxu1 %v7620_v36  ;;  %v2700_v2 = vmul.f32 %v8044_v11, %v2698_v53  ;;  %v7653_v36 = vld [vmem:[#allocation10 + $0x1ec] ss:$20 sps:$4 sm:$0xff]   ;;  %v7659_v11 = vld [vmem:[#allocation10 + $0x23c] ss:$20 sps:$4 sm:$0xff]   ;;  %7007 = vmatpush3.bf16.msra.mxu0 %v7664_v7 }
 0x824   : > { %v7679_v53 = vld [vmem:[#allocation13 + $0x1c0] sm:$0xff]  }
 0x826   : > { %2897 = vmatpush1.bf16.msra.mxu1 %v7618_v6  ;;  %v7651_v6 = vld [vmem:[#allocation10 + $0x1e8] ss:$20 sps:$4 sm:$0xff]  }
 0x827   : > { %2898 = vmatprep.subr.bf16.mxu1 %v7623_v61  ;;  %v7656_v61 = vld [vmem:[#allocation10 + $0x214] ss:$20 sps:$4 sm:$0xff]  }
 0x829   : > { %v8046_v32 = vpop.eup %8045 }
 0x82a   : > { %2899 = vmatpush1.bf16.msra.mxu1 %v7621_v9  ;;  %v2710_v24 = vmul.f32 %v8046_v32, %v2700_v2  ;;  %v7654_v9 = vld [vmem:[#allocation10 + $0x210] ss:$20 sps:$4 sm:$0xff]  }
 0x82b   : > { %2900 = vmatprep.subr.bf16.mxu1 %v7626_v10 }
 0x82c   : > { %v2712_v12 = vsub.f32 1.0, %v2710_v24 }
 0x82e   : > { %2901 = vmatpush1.bf16.msra.mxu1 %v7624_v34  ;;  %v2716_v52 = vsub.f32 0.0, %v2712_v12 }
 0x82f   : > { %2902 = vmatprep.subr.bf16.mxu1 %v7629_v0  ;;  %v7662_v0 = vld [vmem:[#allocation10 + $0x264] ss:$20 sps:$4 sm:$0xff]  }
 0x830   : > { %v2718_v10 = vsel %vm2714_vm15, %v2716_v52, %v2712_v12 }
 0x831   : > { %v2720_v34 = vadd.f32 1.0, %v2718_v10 }
 0x832   : > { %2903 = vmatpush1.bf16.msra.mxu1 %v7627_v1  ;;  %v7660_v1 = vld [vmem:[#allocation10 + $0x260] ss:$20 sps:$4 sm:$0xff]  }
 0x833   : > { %2904 = vmatprep.subr.bf16.mxu1 %v7632_v5  ;;  %v2722_v5 = vmul.f32 %v2720_v34, %v2670_v43  ;;  %v8134_v34 = vld [vmem:[#allocation7] sm:$0xff] }
 0x835   : > { %v2724_v49 = vpack.c.bf16 %v2722_v5, %v2722_v5 }
 0x836   : > { %2905 = vmatpush1.bf16.msra.mxu1 %v7630_v8  ;;  %v7665_v8 = vld [vmem:[#allocation13 + $0x148] sm:$0xff]  }
 0x837   : > { %2906 = vmatprep.subr.bf16.mxu1 %v7635_v15  ;;  %v7666_v15 = vld [vmem:[#allocation13 + $0x108] sm:$0xff]   ;;  %7008 = vmatprep.subr.bf16.mxu0 %v7665_v8 }
 0x838   : > { %7009 = vmatpush3.bf16.msra.mxu0 %v7666_v15 }
 0x839   : > { %7010 = vmatprep.subr.bf16.mxu0 %v7667_v58 }
 0x83a   : > { %2907 = vmatpush1.bf16.msra.mxu1 %v7633_v62  ;;  %v7670_v62 = vld [vmem:[#allocation13 + $0x118] sm:$0xff]  }
 0x83b   : > { %2908 = vmatprep.subr.bf16.mxu1 %v7638_v26  ;;  %v7671_v26 = vld [vmem:[#allocation13 + $0x160] sm:$0xff]  }
 0x83c   : > { %7011 = vmatpush3.bf16.msra.mxu0 %v7668_v16 }
 0x83d   : > { %7012 = vmatprep.subr.bf16.mxu0 %v7669_v50 }
 0x83e   : > { %2909 = vmatpush1.bf16.msra.mxu1 %v7636_v14  ;;  %v7674_v14 = vld [vmem:[#allocation13 + $0x128] sm:$0xff]  }
 0x83f   : > { %2910 = vmatprep.subr.bf16.mxu1 %v7641_v30  ;;  %v7675_v30 = vld [vmem:[#allocation13 + $0x170] sm:$0xff]  }
 0x840   : > { %7013 = vmatpush3.bf16.msra.mxu0 %v7670_v62 }
 0x841   : > { %7014 = vmatprep.subr.bf16.mxu0 %v7671_v26 }
 0x842   : > { %2911 = vmatpush1.bf16.msra.mxu1 %v7639_v55  ;;  %v7677_v55 = vld [vmem:[#allocation13 + $0x178] sm:$0xff]  }
 0x843   : > { %2912 = vmatprep.subr.bf16.mxu1 %v7644_v38  ;;  %v7678_v38 = vld [vmem:[#allocation13 + $0x138] sm:$0xff]  }
 0x844   : > { %7015 = vmatpush3.bf16.msra.mxu0 %v7672_v60 }
 0x845   : > { %7016 = vmatprep.subr.bf16.mxu0 %v7673_v63 }
 0x846   : > { %2913 = vmatpush1.bf16.msra.mxu1 %v7642_v54 }
 0x847   : > { %2914 = vmatprep.subr.bf16.mxu1 %v7647_v57 }
 0x848   : > { %7017 = vmatpush3.bf16.msra.mxu0 %v7674_v14 }
 0x849   : > { %7018 = vmatprep.subr.bf16.mxu0 %v7675_v30 }
 0x84a   : > { %2915 = vmatpush1.bf16.msra.mxu1 %v7645_v21 }
 0x84b   : > { %2916 = vmatprep.subr.bf16.mxu1 %v7650_v56 }
 0x84c   : > { %7019 = vmatpush3.bf16.msra.mxu0 %v7676_v33 }
 0x84d   : > { %7020 = vmatprep.subr.bf16.mxu0 %v7677_v55 }
 0x84e   : > { %2917 = vmatpush1.bf16.msra.mxu1 %v7648_v41 }
 0x84f   : > { %2918 = vmatprep.subr.bf16.mxu1 %v7653_v36 }
 0x850   : > { %7021 = vmatpush3.bf16.msra.mxu0 %v7678_v38 }
 0x851   : > { %7028 = vmatprep.subr.bf16.mxu0 %v7679_v53 }
 0x852   : > { %2919 = vmatpush1.bf16.msra.mxu1 %v7651_v6 }
 0x853   : > { %2920 = vmatprep.subr.bf16.mxu1 %v7656_v61  ;;  %v6457_v61 = vld [vmem:[#allocation7 + $0x8] ss:$0 sm:$0xff] }
 0x854   : > { %v9365_v52 = vadd.f32 %v6457_v61, %v9200_v40  ;;  %v2729_v40 = vrot.slane %v9331_v17, %v9104_v47 }
 0x856   : > { %2921 = vmatpush1.bf16.msra.mxu1 %v7654_v9  ;;  %v9368_v9 = vmul.f32 0.70710677, %v9365_v52 }
 0x857   : > { %2922 = vmatprep.subr.bf16.mxu1 %v7659_v11 }
 0x858   : > { %v3178_v11 = vand.u32 2147483647, %v9368_v9  ;;  %vm3218_vm2 = vcmp.lt.f32.partialorder %v9368_v9, 0.0 }
 0x85a   : > { %2923 = vmatpush1.bf16.msra.mxu1 %v7657_v13  ;;  %v3180_v10 = vmul.f32 0.3275911, %v3178_v11  ;;  %v3206_v38 = vmul.f32 %v3178_v11, %v3178_v11 }
 0x85b   : > { %2924 = vmatprep.subr.bf16.mxu1 %v7662_v0  ;;  %v822_v0 = vrot.slane %v8134_v34, %v9327_v46 }
 0x85c   : > { %v3182_v13 = vadd.f32 1.0, %v3180_v10 }
 0x85e   : > { %2925 = vmatpush1.bf16.msra.mxu1 %v7660_v1  ;;  %8047 = vrcp.f32 %v3182_v13  ;;  %v9373_v1 = vadd.f32 %v9186_v25, %v822_v0 }
 0x861   : > { %2927 = vmatmul.mubr.bf16.vlgmr.msra.gmra.mrb[16].mxu1 %v2724_v49  ;;  %v9376_v49 = vmul.f32 0.70710677, %v9373_v1 }
 0x862   : > { %3989 = vmatprep.mubr.bf16.mxu1 %v8590_v39 }
 0x863   : > { %v9383_v15 = vand.u32 2147483647, %v9376_v49  ;;  %vm3217_vm5 = vcmp.lt.f32.partialorder %v9376_v49, 0.0 }
 0x865   : > { %v3179_v42 = vmul.f32 0.3275911, %v9383_v15 }
 0x868   : > { %v8048_v43 = vpop.eup %8047 }
 0x869   : > { %v3188_v5 = vmul.f32 1.0614054, %v8048_v43 }
 0x86b   : > { %v3190_v7 = vadd.f32 -1.4531521, %v3188_v5 }
 0x86d   : > { %v3192_v62 = vmul.f32 %v8048_v43, %v3190_v7 }
 0x86f   : > { %v3194_v33 = vadd.f32 1.4214138, %v3192_v62 }
 0x8f4   : > { %v6978_v54 = vpop.f32.mrb[12].mxu1  ;;  %v7000_v57 = vpop.f32.mrb[20].mxu0 }
 0x8f5   : > { %v6979_v2 = vpop.f32.mrb[13].mxu1  ;;  %v7001_v32 = vpop.f32.mrb[21].mxu0 }
 0x8f6   : > { %v6980_v21 = vadd.f32 %v6979_v2, %v6978_v54  ;;  %v6981_v56 = vpop.f32.mrb[14].mxu1  ;;  %v7002_v24 = vadd.f32 %v7001_v32, %v7000_v57  ;;  %v7003_v41 = vpop.f32.mrb[22].mxu0  ;;  %v3181_v54 = vadd.f32 1.0, %v3179_v42  ;;  %v3208_v32 = vsub.f32 0.0, %v3206_v38 }
 0x8f7   : > { %v6982_v36 = vpop.f32.mrb[15].mxu1  ;;  %v7004_v12 = vpop.f32.mrb[23].mxu0 }
 0x8f8   : > { %v9362_v6 = vadd.f32 %v7002_v24, %v6980_v21  ;;  %v3196_v21 = vmul.f32 %v8048_v43, %v3194_v33  ;;  %v3211_v24 = vmul.f32 1.442695, %v3208_v32 }
 0x8fa   : > { %v3198_v56 = vadd.f32 -0.28449672, %v3196_v21 }
 0x8fc   : > { %v3200_v12 = vmul.f32 %v8048_v43, %v3198_v56 }
 0x8fe   : > { %v3202_v5 = vadd.f32 0.2548296, %v3200_v12 }
 0x934   : > { %v2928_v8 = vpop.f32.mrb[16].mxu1 }
 0x935   : > { %v9385_v58 = vadd.f32 %v2928_v8, %v2729_v40  ;;  %v2930_v16 = vpop.f32.mrb[17].mxu1 }
 0x936   : > { %v9387_v25 = vadd.f32 %v2930_v16, %v2733_v19  ;;  %v2932_v50 = vpop.f32.mrb[18].mxu1 }
 0x937   : > { %v9390_v26 = vmul.f32 0.70710677, %v9385_v58  ;;  %v2933_v60 = vpop.f32.mrb[19].mxu1 }
 0x938   : > { %v9393_v63 = vmul.f32 0.70710677, %v9387_v25  ;;  %v3204_v60 = vmul.f32 %v8048_v43, %v3202_v5 }
 0x939   : > { %v2939_v14 = vand.u32 2147483647, %v9390_v26  ;;  %vm2979_vm3 = vcmp.lt.f32.partialorder %v9390_v26, 0.0 }
 0x93a   : > { %v2940_v30 = vand.u32 2147483647, %v9393_v63  ;;  %vm2980_vm4 = vcmp.lt.f32.partialorder %v9393_v63, 0.0 }
 0x93b   : > { %v2941_v55 = vmul.f32 0.3275911, %v2939_v14  ;;  %v2967_v41 = vmul.f32 %v2939_v14, %v2939_v14 }
 0x93c   : > { %v2942_v53 = vmul.f32 0.3275911, %v2940_v30  ;;  %v2968_v36 = vmul.f32 %v2940_v30, %v2940_v30 }
 0x93d   : > { %v2943_v57 = vadd.f32 1.0, %v2941_v55  ;;  %v2969_v10 = vsub.f32 0.0, %v2967_v41 }
 0x93e   : > { %v2944_v2 = vadd.f32 1.0, %v2942_v53  ;;  %v2970_v11 = vsub.f32 0.0, %v2968_v36 }
 0x93f   : > { %8049 = vrcp.f32 %v2943_v57  ;;  %v2971_v7 = vmul.f32 1.442695, %v2969_v10 }
 0x940   : > { %8051 = vrcp.f32 %v2944_v2  ;;  %v2973_v62 = vmul.f32 1.442695, %v2970_v11 }
 0x941   : > { %8053 = vrcp.f32 %v3181_v54 }
 0x942   : > { %8055 = vpow2.f32 %v3211_v24 }
 0x943   : > { %8057 = vpow2.f32 %v2971_v7 }
 0x944   : > { %8059 = vpow2.f32 %v2973_v62 }
 0x949   : > { %v8050_v61 = vpop.eup %8049 }
 0x94a   : > { %v8052_v13 = vpop.eup %8051  ;;  %v2949_v34 = vmul.f32 1.0614054, %v8050_v61 }
 0x94b   : > { %v9398_v0 = vpop.eup %8053  ;;  %v2950_v40 = vmul.f32 1.0614054, %v8052_v13 }
 0x94c   : > { %v2951_v19 = vadd.f32 -1.4531521, %v2949_v34  ;;  %v3187_v16 = vmul.f32 1.0614054, %v9398_v0  ;;  %v8056_v33 = vpop.eup %8055  ;;  %v3205_v34 = vmul.f32 %v9383_v15, %v9383_v15 }
 0x94d   : > { %v2952_v8 = vadd.f32 -1.4531521, %v2950_v40  ;;  %v3214_v53 = vmul.f32 %v8056_v33, %v3204_v60  ;;  %v8058_v10 = vpop.eup %8057  ;;  %v9406_v60 = vpop.permute.xlu1 %2990 }
 0x94e   : > { %v2953_v50 = vmul.f32 %v8050_v61, %v2951_v19  ;;  %v3189_v55 = vadd.f32 -1.4531521, %v3187_v16  ;;  %v8060_v40 = vpop.eup %8059 }
 0x94f   : > { %v2954_v42 = vmul.f32 %v8052_v13, %v2952_v8  ;;  %v3216_v56 = vsub.f32 1.0, %v3214_v53  ;;  %v3174_v53 = vmul.f32 0.5, %v9365_v52  ;;  %v7680_v52 = vld [vmem:[#allocation13 + $0x180] sm:$0xff]  }
 0x950   : > { %v2955_v14 = vadd.f32 1.4214138, %v2953_v50  ;;  %v3191_v21 = vmul.f32 %v9398_v0, %v3189_v55  ;;  %v3207_v50 = vsub.f32 0.0, %v3205_v34  ;;  %v2935_v55 = vmul.f32 0.5, %v9385_v58  ;;  %v7682_v34 = vld [vmem:[#allocation13 + $0x188] sm:$0xff]  }
 0x951   : > { %v2956_v30 = vadd.f32 1.4214138, %v2954_v42  ;;  %v3220_v11 = vsub.f32 0.0, %v3216_v56 }
 0x952   : > { %v2957_v38 = vmul.f32 %v8050_v61, %v2955_v14  ;;  %v3193_v43 = vadd.f32 1.4214138, %v3191_v21  ;;  %v3209_v33 = vmul.f32 1.442695, %v3207_v50  ;;  %v7687_v50 = vld [vmem:[#allocation13 + $0x1e0] sm:$0xff]  }
 0x953   : > { %v2958_v54 = vmul.f32 %v8052_v13, %v2956_v30  ;;  %v3222_v62 = vsel %vm3218_vm2, %v3220_v11, %v3216_v56  ;;  %v7683_v11 = vld [vmem:[#allocation13 + $0x1d0] sm:$0xff]  }
 0x954   : > { %v2959_v57 = vadd.f32 -0.28449672, %v2957_v38  ;;  %v3195_v8 = vmul.f32 %v9398_v0, %v3193_v43  ;;  %v3224_v30 = vadd.f32 1.0, %v3222_v62  ;;  %8061 = vpow2.f32 %v3209_v33 }
 0x955   : > { %v2960_v2 = vadd.f32 -0.28449672, %v2958_v54  ;;  %v2936_v54 = vmul.f32 0.5, %v9387_v25  ;;  %v7681_v25 = vld [vmem:[#allocation13 + $0x1c8] sm:$0xff]   ;;  %v3173_v33 = vmul.f32 0.5, %v9373_v1 }
 0x956   : > { %v2961_v32 = vmul.f32 %v8050_v61, %v2959_v57  ;;  %v3197_v15 = vadd.f32 -0.28449672, %v3195_v8 }
 0x957   : > { %v2962_v24 = vmul.f32 %v8052_v13, %v2960_v2  ;;  %v9413_v2 = vpop.permute.xlu1 %3228 }
 0x958   : > { %v2963_v41 = vadd.f32 0.2548296, %v2961_v32  ;;  %v3199_v26 = vmul.f32 %v9398_v0, %v3197_v15  ;;  %v3226_v32 = vmul.f32 %v3224_v30, %v3174_v53  ;;  %v7691_v15 = vld [vmem:[#allocation13 + $0x1f0] sm:$0xff]  }
 0x959   : > { %v2964_v36 = vadd.f32 0.2548296, %v2962_v24 }
 0x95a   : > { %v2965_v12 = vmul.f32 %v8050_v61, %v2963_v41  ;;  %v3232_v24 = vmul.f32 %v9413_v2, %v3226_v32  ;;  %v3201_v41 = vadd.f32 0.2548296, %v3199_v26 }
 0x95b   : > { %v2966_v5 = vmul.f32 %v8052_v13, %v2964_v36 }
 0x95c   : > { %v2975_v19 = vmul.f32 %v8058_v10, %v2965_v12  ;;  %v3267_v12 = vpack.c.bf16 %v3232_v24, %v3232_v24  ;;  %v3203_v10 = vmul.f32 %v9398_v0, %v3201_v41  ;;  %v7689_v0 = vld [vmem:[#allocation13 + $0x1e8] sm:$0xff]   ;;  %v3170_v24 = vrot.slane %v9331_v17, %v9175_v4 }
 0x95d   : > { %v2976_v7 = vmul.f32 %v8060_v40, %v2966_v5 }
 0x95e   : > { %v2977_v16 = vsub.f32 1.0, %v2975_v19  ;;  %v8062_v5 = vpop.eup %8061  ;;  %v7684_v19 = vld [vmem:[#allocation13 + $0x190] sm:$0xff]  }
 0x95f   : > { %v2978_v42 = vsub.f32 1.0, %v2976_v7  ;;  %v3213_v40 = vmul.f32 %v8062_v5, %v3203_v10  ;;  %v7685_v7 = vld [vmem:[#allocation13 + $0x1d8] sm:$0xff]  }
 0x960   : > { %v2981_v61 = vsub.f32 0.0, %v2977_v16 }
 0x961   : > { %v2982_v14 = vsub.f32 0.0, %v2978_v42  ;;  %v3215_v8 = vsub.f32 1.0, %v3213_v40 }
 0x962   : > { %v2983_v13 = vsel %vm2979_vm3, %v2981_v61, %v2977_v16  ;;  %v7686_v16 = vld [vmem:[#allocation13 + $0x198] sm:$0xff]  }
 0x963   : > { %v2985_v38 = vadd.f32 1.0, %v2983_v13  ;;  %v2984_v9 = vsel %vm2980_vm4, %v2982_v14, %v2978_v42  ;;  %v3219_v62 = vsub.f32 0.0, %v3215_v8  ;;  %v7688_v42 = vld [vmem:[#allocation13 + $0x1a0] sm:$0xff]   ;;  %v7690_v14 = vld [vmem:[#allocation13 + $0x1a8] sm:$0xff]   ;;  %v7692_v13 = vld [vmem:[#allocation13 + $0x1b0] sm:$0xff]  }
 0x964   : > { %v2986_v57 = vadd.f32 1.0, %v2984_v9  ;;  %v7694_v9 = vld [vmem:[#allocation13 + $0x1b8] sm:$0xff]  }
 0x965   : > { %v2987_v21 = vmul.f32 %v2985_v38, %v2935_v55  ;;  %v3221_v61 = vsel %vm3217_vm5, %v3219_v62, %v3215_v8  ;;  %v7693_v55 = vld [vmem:[#allocation13 + $0x1f8] sm:$0xff]  }
 0x966   : > { %v2988_v56 = vmul.f32 %v2986_v57, %v2936_v54  ;;  %v3223_v30 = vadd.f32 1.0, %v3221_v61  ;;  %v7701_v62 = vld [vmem:[#allocation16 + $0x48] ss:$36 sps:$4 sm:$0xff]   ;;  %v7712_v61 = vld [vmem:[#allocation16 + $0x9c] ss:$36 sps:$4 sm:$0xff]  }
 0x967   : > { %v2993_v63 = vmul.f32 %v9406_v60, %v2987_v21 }
 0x968   : > { %v2994_v58 = vmul.f32 %v9406_v60, %v2988_v56  ;;  %v3225_v38 = vmul.f32 %v3223_v30, %v3173_v33  ;;  %v2667_v56 = vrot.slane %v9331_v17, %v9135_v22 }
 0x969   : > { %v3028_v43 = vpack.c.bf16 %v2993_v63, %v2993_v63  ;;  %v1944_v63 = vrot.slane %v9331_v17, %v9130_v20 }
 0x96a   : > { %v3029_v36 = vpack.c.bf16 %v2994_v58, %v2994_v58  ;;  %v3231_v53 = vmul.f32 %v9413_v2, %v3225_v38  ;;  %v2668_v58 = vmul.f32 %v2667_v56, %v9349_v31  ;;  %v8135_v31 = vld [vmem:[%s9061_s15] sm:$0xff]  ;;  %s676_s15 = scalar_lea.vmem %s9923_s14, %s6456_s25  ;;  %s6928_s25 = sshll.u32 %s9909_s16, 7 }
 0x96b   : > { %v1945_v41 = vmul.f32 %v1944_v63, %v9351_v37  ;;  %v7697_v37 = vld [vmem:[#allocation16 + $0x4] ss:$36 sps:$4 sm:$0xff]   ;;  %v7715_v38 = vld [vmem:[#allocation16 + $0xdc] ss:$36 sps:$4 sm:$0xff]   ;;  %v7728_v63 = vld [vmem:[#allocation16 + $0x170] ss:$36 sps:$4 sm:$0xff]   ;;  %s9802_s3 = scalar_lea.hbm %s9925_s2, %s6928_s25 }
 0x96c   : > { %3158 = vmatprep.mubr.bf16.mxu0 %v3029_v36  ;;  %v3266_v49 = vpack.c.bf16 %v3231_v53, %v3231_v53  ;;  %v3408_v36 = vrot.slane %v9331_v17, %v9216_v51  ;;  %v7695_v17 = vld [vmem:[#allocation16] ss:$36 sps:$4 sm:$0xff]   ;;  %3957 = vmatprep.subr.bf16.mxu1 %v7697_v37  ;;  %v7713_v53 = vld [vmem:[#allocation16 + $0xd8] ss:$36 sps:$4 sm:$0xff]   ;;  %v7725_v56 = vld [vmem:[#allocation16 + $0x168] ss:$36 sps:$4 sm:$0xff]  }
 0x96d   : > { %3159 = vmatmul.mubr.bf16.vlgmr.msra.gmra.mrb[24].mxu0 %v3028_v43  ;;  %3958 = vmatpush1.bf16.msra.mxu1 %v7695_v17  ;;  %s8480_s16 = sshll.u32 %s8596_s26, 4  ;;  %s8481_s16 = int_to_ptr.vmem [resolvable:$false] %s8480_s16 }
 0x96e   : > { %7029 = vmatpush3.bf16.msra.mxu0 %v7680_v52  ;;  %3396 = vmatprep.mubr.bf16.mxu0 %v3267_v12  ;;  %v3171_v52 = vmul.f32 %v3170_v24, %v9406_v60  ;;  %v3409_v43 = vmul.f32 %v3408_v36, %v9413_v2  ;;  %v7698_v60 = vld [vmem:[#allocation16 + $0x8] ss:$36 sps:$4 sm:$0xff]   ;;  %v7706_v2 = vld [vmem:[#allocation16 + $0x54] ss:$36 sps:$4 sm:$0xff]   ;;  %p8483_p8 = scmp.lt.s32.totalorder %s9804_s1, %s8481_s16 }
 0x96f   : > { %7030 = vmatprep.subr.bf16.mxu0 %v7681_v25  ;;  %v7733_v24 = vld [vmem:[#allocation16 + $0x1b4] ss:$36 sps:$4 sm:$0xff]  }
 0x970   : > { %v7734_v36 = vld [vmem:[#allocation16 + $0x1b8] ss:$36 sps:$4 sm:$0xff]  }
 0x972   : > { %7031 = vmatpush3.bf16.msra.mxu0 %v7682_v34 }
 0x973   : > { %7032 = vmatprep.subr.bf16.mxu0 %v7683_v11 }
 0x976   : > { %7033 = vmatpush3.bf16.msra.mxu0 %v7684_v19 }
 0x977   : > { %7034 = vmatprep.subr.bf16.mxu0 %v7685_v7 }
 0x97a   : > { %7035 = vmatpush3.bf16.msra.mxu0 %v7686_v16  ;;  %v7700_v16 = vld [vmem:[#allocation16 + $0xc] ss:$36 sps:$4 sm:$0xff]  }
 0x97b   : > { %7036 = vmatprep.subr.bf16.mxu0 %v7687_v50  ;;  %v7703_v50 = vld [vmem:[#allocation16 + $0x4c] ss:$36 sps:$4 sm:$0xff]  }
 0x97c   : > { %3959 = vmatprep.subr.bf16.mxu1 %v7703_v50  ;;  %v7746_v50 = vld [vmem:[#allocation16 + $0x18] ss:$36 sps:$4 sm:$0xff]  }
 0x97d   : > { %3960 = vmatpush1.bf16.msra.mxu1 %v7701_v62  ;;  %v7751_v62 = vld [vmem:[#allocation16 + $0x5c] ss:$36 sps:$4 sm:$0xff]  }
 0x97e   : > { %7037 = vmatpush3.bf16.msra.mxu0 %v7688_v42  ;;  %v7704_v42 = vld [vmem:[#allocation16 + $0x50] ss:$36 sps:$4 sm:$0xff]  }
 0x97f   : > { %7038 = vmatprep.subr.bf16.mxu0 %v7689_v0  ;;  %v7709_v0 = vld [vmem:[#allocation16 + $0x94] ss:$36 sps:$4 sm:$0xff]  }
 0x980   : > { %3961 = vmatprep.subr.bf16.mxu1 %v7709_v0  ;;  %v7749_v0 = vld [vmem:[#allocation16 + $0x58] ss:$36 sps:$4 sm:$0xff]  }
 0x982   : > { %7039 = vmatpush3.bf16.msra.mxu0 %v7690_v14  ;;  %v7707_v14 = vld [vmem:[#allocation16 + $0x90] ss:$36 sps:$4 sm:$0xff]  }
 0x983   : > { %7040 = vmatprep.subr.bf16.mxu0 %v7691_v15  ;;  %v7710_v15 = vld [vmem:[#allocation16 + $0x98] ss:$36 sps:$4 sm:$0xff]   ;;  %3962 = vmatpush1.bf16.msra.mxu1 %v7707_v14  ;;  %v7757_v14 = vld [vmem:[#allocation16 + $0xa4] ss:$36 sps:$4 sm:$0xff]  }
 0x984   : > { %3963 = vmatprep.subr.bf16.mxu1 %v7715_v38  ;;  %v7761_v38 = vld [vmem:[#allocation16 + $0xe8] ss:$36 sps:$4 sm:$0xff]  }
 0x986   : > { %7041 = vmatpush3.bf16.msra.mxu0 %v7692_v13 }
 0x987   : > { %7042 = vmatprep.subr.bf16.mxu0 %v7693_v55  ;;  %3964 = vmatpush1.bf16.msra.mxu1 %v7713_v53  ;;  %v7769_v53 = vld [vmem:[#allocation16 + $0x134] ss:$36 sps:$4 sm:$0xff]  }
 0x98a   : > { %7043 = vmatpush3.bf16.msra.mxu0 %v7694_v9  ;;  %v7718_v9 = vld [vmem:[#allocation16 + $0xe4] ss:$36 sps:$4 sm:$0xff]  }
 0x98b   : > { %3998 = vmatprep.subr.bf16.mxu0 %v7700_v16  ;;  %v7743_v16 = vld [vmem:[#allocation16 + $0x10] ss:$36 sps:$4 sm:$0xff]  }
 0x98d   : > { %3397 = vmatmul.mubr.bf16.vlgmr.msra.gmra.mrb[28].mxu0 %v3266_v49  ;;  %v7716_v49 = vld [vmem:[#allocation16 + $0xe0] ss:$36 sps:$4 sm:$0xff]  }
 0x98e   : > { %4030 = vmatprep.mubr.bf16.mxu0 %v8590_v39  ;;  %3999 = vmatpush1.bf16.msra.mxu0 %v7698_v60 }
 0x98f   : > { %4000 = vmatprep.subr.bf16.mxu0 %v7706_v2 }
 0x992   : > { %4001 = vmatpush1.bf16.msra.mxu0 %v7704_v42  ;;  %v7754_v42 = vld [vmem:[#allocation16 + $0x64] ss:$36 sps:$4 sm:$0xff]  }
 0x993   : > { %4002 = vmatprep.subr.bf16.mxu0 %v7712_v61  ;;  %v7752_v61 = vld [vmem:[#allocation16 + $0x60] ss:$36 sps:$4 sm:$0xff]  }
 0x996   : > { %4003 = vmatpush1.bf16.msra.mxu0 %v7710_v15  ;;  %v7760_v15 = vld [vmem:[#allocation16 + $0xac] ss:$36 sps:$4 sm:$0xff]  }
 0x997   : > { %4004 = vmatprep.subr.bf16.mxu0 %v7718_v9  ;;  %v7764_v9 = vld [vmem:[#allocation16 + $0xf0] ss:$36 sps:$4 sm:$0xff]  }
 0x99a   : > { %4005 = vmatpush1.bf16.msra.mxu0 %v7716_v49  ;;  %v7772_v49 = vld [vmem:[#allocation16 + $0x13c] ss:$36 sps:$4 sm:$0xff]  }
 0xa40   : > { %v7022_v54 = vpop.f32.mrb[24].mxu0 }
 0xa41   : > { %v7023_v57 = vpop.f32.mrb[25].mxu0 }
 0xa42   : > { %v7024_v21 = vadd.f32 %v7023_v57, %v7022_v54  ;;  %v7025_v26 = vpop.f32.mrb[26].mxu0  ;;  %v7721_v54 = vld [vmem:[#allocation16 + $0x124] ss:$36 sps:$4 sm:$0xff]   ;;  %v7724_v57 = vld [vmem:[#allocation16 + $0x12c] ss:$36 sps:$4 sm:$0xff]  }
 0xa43   : > { %v7026_v32 = vpop.f32.mrb[27].mxu0  ;;  %v7722_v26 = vld [vmem:[#allocation16 + $0x128] ss:$36 sps:$4 sm:$0xff]   ;;  %3965 = vmatprep.subr.bf16.mxu1 %v7721_v54  ;;  %4006 = vmatprep.subr.bf16.mxu0 %v7724_v57  ;;  %v7767_v54 = vld [vmem:[#allocation16 + $0x130] ss:$36 sps:$4 sm:$0xff]  }
 0xa44   : > { %v3166_v1 = vadd.f32 %v7024_v21, %v9362_v6  ;;  %v2669_v6 = vadd.f32 %v2668_v58, %v1945_v41  ;;  %v7719_v21 = vld [vmem:[#allocation16 + $0x120] ss:$36 sps:$4 sm:$0xff]   ;;  %4007 = vmatpush1.bf16.msra.mxu0 %v7722_v26  ;;  %v7727_v32 = vld [vmem:[#allocation16 + $0x16c] ss:$36 sps:$4 sm:$0xff]   ;;  %v7770_v57 = vld [vmem:[#allocation16 + $0x138] ss:$36 sps:$4 sm:$0xff]  }
 0xa45   : > { %3966 = vmatpush1.bf16.msra.mxu1 %v7719_v21  ;;  %v7736_v58 = vld [vmem:[#allocation16 + $0x1bc] ss:$36 sps:$4 sm:$0xff]   ;;  %v7731_v41 = vld [vmem:[#allocation16 + $0x1b0] ss:$36 sps:$4 sm:$0xff]   ;;  %v7778_v26 = vld [vmem:[#allocation16 + $0x184] ss:$36 sps:$4 sm:$0xff]  }
 0xa46   : > { %v3172_v10 = vadd.f32 %v3171_v52, %v2669_v6  ;;  %3967 = vmatprep.subr.bf16.mxu1 %v7727_v32  ;;  %v7739_v52 = vld [vmem:[#allocation16 + $0x1fc] ss:$36 sps:$4 sm:$0xff]   ;;  %v7742_v6 = vld [vmem:[#allocation16 + $0x204] ss:$36 sps:$4 sm:$0xff]  }
 0xa47   : > { %v7775_v21 = vld [vmem:[#allocation16 + $0x17c] ss:$36 sps:$4 sm:$0xff]  }
 0xa48   : > { %v3410_v40 = vadd.f32 %v3409_v43, %v3172_v10  ;;  %v7737_v43 = vld [vmem:[#allocation16 + $0x1f8] ss:$36 sps:$4 sm:$0xff]  }
 0xa49   : > { %3968 = vmatpush1.bf16.msra.mxu1 %v7725_v56  ;;  %v7748_v10 = vld [vmem:[#allocation16 + $0x1c] ss:$36 sps:$4 sm:$0xff]   ;;  %v7781_v56 = vld [vmem:[#allocation16 + $0x1c4] ss:$36 sps:$4 sm:$0xff]  }
 0xa4a   : > { %3969 = vmatprep.subr.bf16.mxu1 %v7733_v24  ;;  %v7773_v32 = vld [vmem:[#allocation16 + $0x178] ss:$36 sps:$4 sm:$0xff]   ;;  %v7779_v24 = vld [vmem:[#allocation16 + $0x1c0] ss:$36 sps:$4 sm:$0xff]  }
 0xa4d   : > { %3970 = vmatpush1.bf16.msra.mxu1 %v7731_v41  ;;  %v7787_v41 = vld [vmem:[#allocation16 + $0x20c] ss:$36 sps:$4 sm:$0xff]  }
 0xa4e   : > { %3971 = vmatprep.subr.bf16.mxu1 %v7739_v52  ;;  %v7785_v52 = vld [vmem:[#allocation16 + $0x208] ss:$36 sps:$4 sm:$0xff]  }
 0xa51   : > { %3972 = vmatpush1.bf16.msra.mxu1 %v7737_v43  ;;  %v7801_v43 = vld [vmem:[#allocation17 + $0x4] ss:$20 sps:$4 sm:$0xff]  }
 0xa60   : > { %v7044_v25 = vpop.f32.mrb[28].mxu0 }
 0xa61   : > { %v7045_v12 = vpop.f32.mrb[29].mxu0 }
 0xa62   : > { %v7046_v34 = vadd.f32 %v7045_v12, %v7044_v25  ;;  %v7047_v11 = vpop.f32.mrb[30].mxu0  ;;  %v7740_v25 = vld [vmem:[#allocation16 + $0x200] ss:$36 sps:$4 sm:$0xff]   ;;  %v7745_v12 = vld [vmem:[#allocation16 + $0x14] ss:$36 sps:$4 sm:$0xff]  }
 0xa63   : > { %v7048_v5 = vpop.f32.mrb[31].mxu0  ;;  %4039 = vmatprep.subr.bf16.mxu1 %v7745_v12  ;;  %v7799_v12 = vld [vmem:[#allocation17] ss:$20 sps:$4 sm:$0xff]  }
 0xa64   : > { %v3404_v19 = vadd.f32 %v7046_v34, %v3166_v1  ;;  %v7730_v1 = vld [vmem:[#allocation16 + $0x174] ss:$36 sps:$4 sm:$0xff]  }
 0xa65   : > { %4008 = vmatprep.subr.bf16.mxu0 %v7730_v1  ;;  %v7776_v1 = vld [vmem:[#allocation16 + $0x180] ss:$36 sps:$4 sm:$0xff]  }
 0xa66   : > { %v3411_v7 = vadd.f32 %v3410_v40, %v3404_v19  ;;  %4009 = vmatpush1.bf16.msra.mxu0 %v7728_v63  ;;  %v9445_v40 = vld [vmem:[%s9922_s28] sm:$0xff]  ;;  %v7784_v63 = vld [vmem:[#allocation16 + $0x1cc] ss:$36 sps:$4 sm:$0xff]  }
 0xa67   : > { %4010 = vmatprep.subr.bf16.mxu0 %v7736_v58  ;;  %v3452_v19 = vrot.slane %v9445_v40, %v9099_v45  ;;  %v3457_v17 = vrot.slane %v9445_v40, %v9104_v47  ;;  %v7782_v58 = vld [vmem:[#allocation16 + $0x1c8] ss:$36 sps:$4 sm:$0xff]  }
 0xa68   : > { %v9438_v8 = vadd.f32 %v8135_v31, %v3411_v7 }
 0xa6a   : > { %3438 = vadd.xlane.f32.xlu1 %v9438_v8  ;;  %4011 = vmatpush1.bf16.msra.mxu0 %v7734_v36  ;;  %v7790_v36 = vld [vmem:[#allocation16 + $0x214] ss:$36 sps:$4 sm:$0xff]  }
 0xa6b   : > { %4012 = vmatprep.subr.bf16.mxu0 %v7742_v6  ;;  %v7788_v6 = vld [vmem:[#allocation16 + $0x210] ss:$36 sps:$4 sm:$0xff]  }
 0xa6e   : > { %4013 = vmatpush1.bf16.msra.mxu0 %v7740_v25  ;;  %v7791_v25 = vld [vmem:[#allocation16 + $0x20] ss:$36 sps:$4 sm:$0xff]  }
 0xa6f   : > { %4080 = vmatprep.subr.bf16.mxu0 %v7748_v10  ;;  %v7804_v10 = vld [vmem:[#allocation17 + $0x2c] ss:$20 sps:$4 sm:$0xff]  }
 0xaf7   : > { %v3439_v30 = vpop.xlane.xlu1 %3438 }
 0xaf8   : > { %v3440_v13 = vmul.f32 0.0078125, %v3439_v30  ;;  %v7755_v30 = vld [vmem:[#allocation16 + $0xa0] ss:$36 sps:$4 sm:$0xff]  }
 0xafa   : > { %v3441_v33 = vsub.f32 %v9438_v8, %v3440_v13  ;;  %v7758_v13 = vld [vmem:[#allocation16 + $0xa8] ss:$36 sps:$4 sm:$0xff]  }
 0xafc   : > { %v3442_v55 = vmul.f32 %v3441_v33, %v3441_v33 }
 0xafe   : > { %3443 = vadd.xlane.f32.xlu0 %v3442_v55  ;;  %v7766_v55 = vld [vmem:[#allocation16 + $0xf4] ss:$36 sps:$4 sm:$0xff]  }
 0xb8b   : > { %v3444_v34 = vpop.xlane.xlu0 %3443 }
 0xb8c   : > { %v3445_v11 = vmul.f32 0.0078125, %v3444_v34  ;;  %v7792_v34 = vld [vmem:[#allocation16 + $0x68] ss:$36 sps:$4 sm:$0xff]  }
 0xb8e   : > { %v3446_v5 = vadd.f32 1e-05, %v3445_v11  ;;  %v7802_v11 = vld [vmem:[#allocation17 + $0x28] ss:$20 sps:$4 sm:$0xff]  }
 0xb90   : > { %8063 = vrsqrt.f32 %v3446_v5  ;;  %v7807_v5 = vld [vmem:[#allocation17 + $0x54] ss:$20 sps:$4 sm:$0xff]  }
 0xb9a   : > { %v8064_v7 = vpop.eup %8063 }
 0xb9b   : > { %v3448_v31 = vmul.f32 %v8064_v7, %v3441_v33  ;;  %v7763_v33 = vld [vmem:[#allocation16 + $0xec] ss:$36 sps:$4 sm:$0xff]  }
 0xb9c   : > { %v7805_v7 = vld [vmem:[#allocation17 + $0x50] ss:$20 sps:$4 sm:$0xff]  }
 0xb9d   : > { %v3453_v37 = vmul.f32 %v3452_v19, %v3448_v31  ;;  %v7793_v19 = vld [vmem:[#allocation16 + $0xb0] ss:$36 sps:$4 sm:$0xff]   ;;  %v7794_v31 = vld [vmem:[#allocation16 + $0xf8] ss:$36 sps:$4 sm:$0xff]  }
 0xb9f   : > { %v3458_v60 = vadd.f32 %v3457_v17, %v3453_v37  ;;  %v7795_v17 = vld [vmem:[#allocation16 + $0x140] ss:$36 sps:$4 sm:$0xff]   ;;  %v7796_v37 = vld [vmem:[#allocation16 + $0x188] ss:$36 sps:$4 sm:$0xff]  }
 0xba1   : > { %v9451_v2 = vpack.c.bf16 %v3458_v60, %v3458_v60  ;;  %v7797_v60 = vld [vmem:[#allocation16 + $0x1d0] ss:$36 sps:$4 sm:$0xff]  }
 0xba3   : > { %3990 = vmatmul.mubr.bf16.vlgmr.msra.gmra.mrb[20].mxu1 %v9451_v2  ;;  %4031 = vmatmul.mubr.bf16.vlgmr.msra.gmra.mrb[32].mxu0 %v9451_v2 }
 0xba4   : > { %4040 = vmatpush1.bf16.msra.mxu1 %v7743_v16  ;;  %4081 = vmatpush1.bf16.msra.mxu0 %v7746_v50  ;;  %v7798_v16 = vld [vmem:[#allocation16 + $0x218] ss:$36 sps:$4 sm:$0xff]  }
 0xba5   : > { %4041 = vmatprep.subr.bf16.mxu1 %v7751_v62  ;;  %4082 = vmatprep.subr.bf16.mxu0 %v7754_v42  ;;  %v7810_v50 = vld [vmem:[#allocation17 + $0x7c] ss:$20 sps:$4 sm:$0xff]   ;;  %v7808_v62 = vld [vmem:[#allocation17 + $0x78] ss:$20 sps:$4 sm:$0xff]  }
 0xba6   : > { %4071 = vmatprep.mubr.bf16.mxu1 %v8590_v39  ;;  %4112 = vmatprep.mubr.bf16.mxu0 %v8590_v39  ;;  %v7813_v42 = vld [vmem:[#allocation17 + $0xa4] ss:$20 sps:$4 sm:$0xff]  }
 0xba8   : > { %4042 = vmatpush1.bf16.msra.mxu1 %v7749_v0  ;;  %4083 = vmatpush1.bf16.msra.mxu0 %v7752_v61  ;;  %v7811_v0 = vld [vmem:[#allocation17 + $0xa0] ss:$20 sps:$4 sm:$0xff]  }
 0xba9   : > { %4043 = vmatprep.subr.bf16.mxu1 %v7757_v14  ;;  %4084 = vmatprep.subr.bf16.mxu0 %v7760_v15  ;;  %v7816_v61 = vld [vmem:[#allocation17 + $0xcc] ss:$20 sps:$4 sm:$0xff]   ;;  %v7814_v14 = vld [vmem:[#allocation17 + $0xc8] ss:$20 sps:$4 sm:$0xff]  }
 0xbaa   : > { %v7819_v15 = vld [vmem:[#allocation17 + $0xf4] ss:$20 sps:$4 sm:$0xff]  }
 0xbac   : > { %4044 = vmatpush1.bf16.msra.mxu1 %v7755_v30  ;;  %4085 = vmatpush1.bf16.msra.mxu0 %v7758_v13  ;;  %v7817_v30 = vld [vmem:[#allocation17 + $0xf0] ss:$20 sps:$4 sm:$0xff]  }
 0xbad   : > { %4045 = vmatprep.subr.bf16.mxu1 %v7763_v33  ;;  %4086 = vmatprep.subr.bf16.mxu0 %v7766_v55  ;;  %v7822_v13 = vld [vmem:[#allocation17 + $0x11c] ss:$20 sps:$4 sm:$0xff]   ;;  %v7820_v33 = vld [vmem:[#allocation17 + $0x118] ss:$20 sps:$4 sm:$0xff]   ;;  %v7823_v55 = vld [vmem:[#allocation17 + $0x140] ss:$20 sps:$4 sm:$0xff]  }
 0xbb0   : > { %4046 = vmatpush1.bf16.msra.mxu1 %v7761_v38  ;;  %4087 = vmatpush1.bf16.msra.mxu0 %v7764_v9  ;;  %v7828_v38 = vld [vmem:[#allocation17 + $0x16c] ss:$20 sps:$4 sm:$0xff]   ;;  %v7826_v9 = vld [vmem:[#allocation17 + $0x168] ss:$20 sps:$4 sm:$0xff]  }
 0xbb1   : > { %4047 = vmatprep.subr.bf16.mxu1 %v7769_v53  ;;  %4088 = vmatprep.subr.bf16.mxu0 %v7772_v49  ;;  %v7831_v53 = vld [vmem:[#allocation17 + $0x194] ss:$20 sps:$4 sm:$0xff]   ;;  %v7829_v49 = vld [vmem:[#allocation17 + $0x190] ss:$20 sps:$4 sm:$0xff]  }
 0xbb4   : > { %4048 = vmatpush1.bf16.msra.mxu1 %v7767_v54  ;;  %4089 = vmatpush1.bf16.msra.mxu0 %v7770_v57  ;;  %v7834_v54 = vld [vmem:[#allocation17 + $0x1bc] ss:$20 sps:$4 sm:$0xff]   ;;  %v7832_v57 = vld [vmem:[#allocation17 + $0x1b8] ss:$20 sps:$4 sm:$0xff]  }
 0xbb5   : > { %4049 = vmatprep.subr.bf16.mxu1 %v7775_v21  ;;  %4090 = vmatprep.subr.bf16.mxu0 %v7778_v26  ;;  %v7837_v21 = vld [vmem:[#allocation17 + $0x1e4] ss:$20 sps:$4 sm:$0xff]   ;;  %v7835_v26 = vld [vmem:[#allocation17 + $0x1e0] ss:$20 sps:$4 sm:$0xff]  }
 0xbb8   : > { %4050 = vmatpush1.bf16.msra.mxu1 %v7773_v32  ;;  %4091 = vmatpush1.bf16.msra.mxu0 %v7776_v1  ;;  %v7840_v32 = vld [vmem:[#allocation17 + $0x20c] ss:$20 sps:$4 sm:$0xff]   ;;  %v7838_v1 = vld [vmem:[#allocation17 + $0x208] ss:$20 sps:$4 sm:$0xff]  }
 0xbb9   : > { %4051 = vmatprep.subr.bf16.mxu1 %v7781_v56  ;;  %4092 = vmatprep.subr.bf16.mxu0 %v7784_v63  ;;  %v7843_v56 = vld [vmem:[#allocation17 + $0x234] ss:$20 sps:$4 sm:$0xff]   ;;  %v7841_v63 = vld [vmem:[#allocation17 + $0x230] ss:$20 sps:$4 sm:$0xff]  }
 0xbbc   : > { %4052 = vmatpush1.bf16.msra.mxu1 %v7779_v24  ;;  %4093 = vmatpush1.bf16.msra.mxu0 %v7782_v58  ;;  %v7846_v24 = vld [vmem:[#allocation17 + $0x25c] ss:$20 sps:$4 sm:$0xff]   ;;  %v7844_v58 = vld [vmem:[#allocation17 + $0x258] ss:$20 sps:$4 sm:$0xff]  }
 0xbbd   : > { %4053 = vmatprep.subr.bf16.mxu1 %v7787_v41  ;;  %4094 = vmatprep.subr.bf16.mxu0 %v7790_v36  ;;  %v7847_v41 = vld [vmem:[#allocation17 + $0x150] ss:$20 sps:$4 sm:$0xff]  }
 0xbbe   : > { %v7848_v36 = vld [vmem:[#allocation17 + $0x10] ss:$20 sps:$4 sm:$0xff]  }
 0xbc0   : > { %4054 = vmatpush1.bf16.msra.mxu1 %v7785_v52  ;;  %4095 = vmatpush1.bf16.msra.mxu0 %v7788_v6  ;;  %v7849_v52 = vld [vmem:[#allocation17 + $0x178] ss:$20 sps:$4 sm:$0xff]  }
 0xbc1   : > { %7189 = vmatprep.subr.bf16.mxu1 %v8591_v23  ;;  %4518 = vmatprep.subr.bf16.mxu0 %v7801_v43  ;;  %v7850_v6 = vld [vmem:[#allocation17 + $0x38] ss:$20 sps:$4 sm:$0xff]   ;;  %v7851_v43 = vld [vmem:[#allocation17 + $0x1a0] ss:$20 sps:$4 sm:$0xff]  }
 0xbc3   : > { %4072 = vmatmul.mubr.bf16.vlgmr.msra.gmra.mrb[24].mxu1 %v9451_v2  ;;  %4113 = vmatmul.mubr.bf16.vlgmr.msra.gmra.mrb[36].mxu0 %v9451_v2 }
 0xbc4   : > { %7190 = vmatpush3.bf16.msra.mxu1 %v7791_v25  ;;  %7205 = vmatprep.mubr.msk.bf16.mxu1 %vm8592_vm0, %v8591_v23  ;;  %v7852_v25 = vld [vmem:[#allocation17 + $0x60] ss:$20 sps:$4 sm:$0xff]  }
 0xbc5   : > { %7191 = vmatprep.subr.bf16.mxu1 %v8591_v23  ;;  %4519 = vmatpush1.bf16.msra.mxu0 %v7799_v12  ;;  %v7853_v12 = vld [vmem:[#allocation17 + $0x1c8] ss:$20 sps:$4 sm:$0xff]  }
 0xbc6   : > { %4520 = vmatprep.subr.bf16.mxu0 %v7804_v10  ;;  %v7854_v10 = vld [vmem:[#allocation17 + $0x88] ss:$20 sps:$4 sm:$0xff]  }
 0xbc8   : > { %7192 = vmatpush3.bf16.msra.mxu1 %v7792_v34  ;;  %v7855_v34 = vld [vmem:[#allocation17 + $0x1f0] ss:$20 sps:$4 sm:$0xff]  }
 0xbc9   : > { %7193 = vmatprep.subr.bf16.mxu1 %v8591_v23  ;;  %4521 = vmatpush1.bf16.msra.mxu0 %v7802_v11  ;;  %v7856_v11 = vld [vmem:[#allocation17 + $0xb0] ss:$20 sps:$4 sm:$0xff]  }
 0xbca   : > { %4522 = vmatprep.subr.bf16.mxu0 %v7807_v5  ;;  %v7857_v5 = vld [vmem:[#allocation17 + $0x218] ss:$20 sps:$4 sm:$0xff]  }
 0xbcc   : > { %7194 = vmatpush3.bf16.msra.mxu1 %v7793_v19  ;;  %v7858_v19 = vld [vmem:[#allocation17 + $0xd8] ss:$20 sps:$4 sm:$0xff]  }
 0xbcd   : > { %7195 = vmatprep.subr.bf16.mxu1 %v8591_v23  ;;  %4523 = vmatpush1.bf16.msra.mxu0 %v7805_v7  ;;  %v7859_v7 = vld [vmem:[#allocation17 + $0x240] ss:$20 sps:$4 sm:$0xff]  }
 0xbce   : > { %4524 = vmatprep.subr.bf16.mxu0 %v7810_v50 }
 0xbd0   : > { %7196 = vmatpush3.bf16.msra.mxu1 %v7794_v31  ;;  %v7860_v31 = vld [vmem:[#allocation17 + $0x100] ss:$20 sps:$4 sm:$0xff]  }
 0xbd1   : > { %7197 = vmatprep.subr.bf16.mxu1 %v8591_v23  ;;  %4525 = vmatpush1.bf16.msra.mxu0 %v7808_v62 }
 0xbd2   : > { %4526 = vmatprep.subr.bf16.mxu0 %v7813_v42 }
 0xbd4   : > { %7198 = vmatpush3.bf16.msra.mxu1 %v7795_v17  ;;  %v7861_v17 = vld [vmem:[#allocation17 + $0x268] ss:$20 sps:$4 sm:$0xff]  }
 0xbd5   : > { %7199 = vmatprep.subr.bf16.mxu1 %v8591_v23  ;;  %4527 = vmatpush1.bf16.msra.mxu0 %v7811_v0 }
 0xbd6   : > { %4528 = vmatprep.subr.bf16.mxu0 %v7816_v61 }
 0xbd8   : > { %7200 = vmatpush3.bf16.msra.mxu1 %v7796_v37  ;;  %v7862_v37 = vld [vmem:[#allocation17 + $0x128] ss:$20 sps:$4 sm:$0xff]  }
 0xbd9   : > { %7201 = vmatprep.subr.bf16.mxu1 %v8591_v23  ;;  %4529 = vmatpush1.bf16.msra.mxu0 %v7814_v14 }
 0xbda   : > { %4530 = vmatprep.subr.bf16.mxu0 %v7819_v15 }
 0xbdc   : > { %7202 = vmatpush3.bf16.msra.mxu1 %v7797_v60  ;;  %v9470_v60 = vld [vmem:[#allocation14] sm:$0xff] }
 0xbdd   : > { %7203 = vmatprep.subr.bf16.mxu1 %v8591_v23  ;;  %4531 = vmatpush1.bf16.msra.mxu0 %v7817_v30  ;;  %v3555_v50 = vrot.slane %v9470_v60, %v9130_v20  ;;  %v3551_v62 = vrot.slane %v9470_v60, %v9104_v47  ;;  %v3559_v42 = vrot.slane %v9470_v60, %v9135_v22 }
 0xbde   : > { %4532 = vmatprep.subr.bf16.mxu0 %v7822_v13 }
 0xbe0   : > { %7204 = vmatpush3.bf16.msra.mxu1 %v7798_v16  ;;  %v3547_v16 = vrot.slane %v9470_v60, %v9099_v45 }
 0xbe1   : > { %4533 = vmatpush1.bf16.msra.mxu0 %v7820_v33  ;;  %7059 = vmatprep.subr.bf16.mxu1 %v7847_v41 }
 0xbe3   : > { %7206 = vmatmul.mubr.bf16.vlgmr.msra.gmra.mrb[28].mxu1 %v9451_v2  ;;  %v7825_v2 = vld [vmem:[#allocation17 + $0x144] ss:$20 sps:$4 sm:$0xff]  }
 0xbe4   : > { %4534 = vmatprep.subr.bf16.mxu0 %v7825_v2  ;;  %7060 = vmatpush3.bf16.msra.mxu1 %v7848_v36 }
 0xbe5   : > { %4535 = vmatpush1.bf16.msra.mxu0 %v7823_v55  ;;  %7061 = vmatprep.subr.bf16.mxu1 %v7849_v52 }
 0xbe6   : > { %4536 = vmatprep.subr.bf16.mxu0 %v7828_v38 }
 0xbe8   : > { %7062 = vmatpush3.bf16.msra.mxu1 %v7850_v6 }
 0xbe9   : > { %4537 = vmatpush1.bf16.msra.mxu0 %v7826_v9  ;;  %7063 = vmatprep.subr.bf16.mxu1 %v7851_v43 }
 0xbea   : > { %4538 = vmatprep.subr.bf16.mxu0 %v7831_v53 }
 0xbec   : > { %7064 = vmatpush3.bf16.msra.mxu1 %v7852_v25 }
 0xbed   : > { %4539 = vmatpush1.bf16.msra.mxu0 %v7829_v49  ;;  %7065 = vmatprep.subr.bf16.mxu1 %v7853_v12 }
 0xbee   : > { %4540 = vmatprep.subr.bf16.mxu0 %v7834_v54 }
 0xbf0   : > { %7066 = vmatpush3.bf16.msra.mxu1 %v7854_v10 }
 0xbf1   : > { %4541 = vmatpush1.bf16.msra.mxu0 %v7832_v57  ;;  %7067 = vmatprep.subr.bf16.mxu1 %v7855_v34 }
 0xbf2   : > { %4542 = vmatprep.subr.bf16.mxu0 %v7837_v21 }
 0xbf4   : > { %7068 = vmatpush3.bf16.msra.mxu1 %v7856_v11 }
 0xbf5   : > { %4543 = vmatpush1.bf16.msra.mxu0 %v7835_v26  ;;  %7069 = vmatprep.subr.bf16.mxu1 %v7857_v5 }
 0xbf6   : > { %4544 = vmatprep.subr.bf16.mxu0 %v7840_v32 }
 0xbf8   : > { %7070 = vmatpush3.bf16.msra.mxu1 %v7858_v19 }
 0xbf9   : > { %4545 = vmatpush1.bf16.msra.mxu0 %v7838_v1  ;;  %7071 = vmatprep.subr.bf16.mxu1 %v7859_v7 }
 0xbfa   : > { %4546 = vmatprep.subr.bf16.mxu0 %v7843_v56 }
 0xbfc   : > { %7072 = vmatpush3.bf16.msra.mxu1 %v7860_v31 }
 0xbfd   : > { %4547 = vmatpush1.bf16.msra.mxu0 %v7841_v63  ;;  %7073 = vmatprep.subr.bf16.mxu1 %v7861_v17 }
 0xbfe   : > { %4548 = vmatprep.subr.bf16.mxu0 %v7846_v24 }
 0xc00   : > { %7074 = vmatpush3.bf16.msra.mxu1 %v7862_v37 }
 0xc01   : > { %4549 = vmatpush1.bf16.msra.mxu0 %v7844_v58 }
 0xc76   : > { %v3991_v0 = vpop.f32.mrb[20].mxu1  ;;  %v4032_v61 = vpop.f32.mrb[32].mxu0 }
 0xc77   : > { %v3992_v14 = vadd.f32 %v3991_v0, %v3547_v16  ;;  %v9480_v15 = vadd.f32 %v4032_v61, %v3555_v50  ;;  %v3993_v30 = vpop.f32.mrb[21].mxu1  ;;  %v4034_v13 = vpop.f32.mrb[33].mxu0  ;;  %v3563_v50 = vrot.slane %v9470_v60, %v9175_v4 }
 0xc78   : > { %v9482_v33 = vadd.f32 %v3993_v30, %v3551_v62  ;;  %v9484_v2 = vadd.f32 %v4034_v13, %v3559_v42  ;;  %v3995_v55 = vpop.f32.mrb[22].mxu1  ;;  %v4036_v38 = vpop.f32.mrb[34].mxu0 }
 0xc79   : > { %v9487_v9 = vmul.f32 0.70710677, %v9480_v15  ;;  %v3996_v53 = vpop.f32.mrb[23].mxu1  ;;  %v4037_v49 = vpop.f32.mrb[35].mxu0  ;;  %v9498_v26 = vsel %vm1410_vm1, %v3992_v14, -1e+30 }
 0xc7a   : > { %v9490_v54 = vmul.f32 0.70710677, %v9482_v33  ;;  %v9493_v57 = vmul.f32 0.70710677, %v9484_v2  ;;  %4162 = vmax.xlane.f32.xlu1 %v9498_v26 }
 0xc7b   : > { %v4299_v21 = vand.u32 2147483647, %v9487_v9  ;;  %vm4339_vm1 = vcmp.lt.f32.partialorder %v9487_v9, 0.0 }
 0xc7c   : > { %v4298_v32 = vand.u32 2147483647, %v9490_v54  ;;  %v4699_v1 = vand.u32 2147483647, %v9493_v57  ;;  %vm4338_vm0 = vcmp.lt.f32.partialorder %v9490_v54, 0.0  ;;  %vm4739_vm6 = vcmp.lt.f32.partialorder %v9493_v57, 0.0 }
 0xc7d   : > { %v4301_v56 = vmul.f32 0.3275911, %v4299_v21  ;;  %v4327_v17 = vmul.f32 %v4299_v21, %v4299_v21 }
 0xc7e   : > { %v4300_v63 = vmul.f32 0.3275911, %v4298_v32  ;;  %v4701_v24 = vmul.f32 0.3275911, %v4699_v1  ;;  %v4326_v52 = vmul.f32 %v4298_v32, %v4298_v32 }
 0xc7f   : > { %v4303_v58 = vadd.f32 1.0, %v4301_v56  ;;  %v4329_v0 = vsub.f32 0.0, %v4327_v17 }
 0xc80   : > { %v4302_v41 = vadd.f32 1.0, %v4300_v63  ;;  %v4703_v36 = vadd.f32 1.0, %v4701_v24  ;;  %v4328_v25 = vsub.f32 0.0, %v4326_v52 }
 0xc81   : > { %8065 = vrcp.f32 %v4303_v58  ;;  %v4332_v63 = vmul.f32 1.442695, %v4329_v0 }
 0xc82   : > { %8067 = vrcp.f32 %v4302_v41  ;;  %v4330_v19 = vmul.f32 1.442695, %v4328_v25 }
 0xc83   : > { %8069 = vrcp.f32 %v4703_v36 }
 0xc84   : > { %8071 = vpow2.f32 %v4330_v19 }
 0xc85   : > { %8073 = vpow2.f32 %v4332_v63 }
 0xc8b   : > { %v8066_v6 = vpop.eup %8065 }
 0xc8c   : > { %v8068_v43 = vpop.eup %8067  ;;  %v4309_v12 = vmul.f32 1.0614054, %v8066_v6 }
 0xc8d   : > { %v4308_v10 = vmul.f32 1.0614054, %v8068_v43  ;;  %v9503_v11 = vpop.eup %8069 }
 0xc8e   : > { %v4311_v34 = vadd.f32 -1.4531521, %v4309_v12  ;;  %v4709_v7 = vmul.f32 1.0614054, %v9503_v11 }
 0xc8f   : > { %v4310_v5 = vadd.f32 -1.4531521, %v4308_v10 }
 0xc90   : > { %v4313_v31 = vmul.f32 %v8066_v6, %v4311_v34  ;;  %v4711_v62 = vadd.f32 -1.4531521, %v4709_v7  ;;  %v8072_v7 = vpop.eup %8071 }
 0xc91   : > { %v4312_v37 = vmul.f32 %v8068_v43, %v4310_v5  ;;  %v4727_v5 = vmul.f32 %v4699_v1, %v4699_v1 }
 0xc92   : > { %v4315_v42 = vadd.f32 1.4214138, %v4313_v31  ;;  %v4713_v49 = vmul.f32 %v9503_v11, %v4711_v62 }
 0xc93   : > { %v4314_v16 = vadd.f32 1.4214138, %v4312_v37  ;;  %v4729_v62 = vsub.f32 0.0, %v4727_v5  ;;  %v4295_v5 = vmul.f32 0.5, %v9480_v15 }
 0xc94   : > { %v4317_v56 = vmul.f32 %v8066_v6, %v4315_v42  ;;  %v4715_v12 = vadd.f32 1.4214138, %v4713_v49  ;;  %v8074_v49 = vpop.eup %8073 }
 0xc95   : > { %v4316_v61 = vmul.f32 %v8068_v43, %v4314_v16 }
 0xc96   : > { %v4073_v14 = vpop.f32.mrb[24].mxu1  ;;  %v9508_v30 = vpop.f32.mrb[36].mxu0  ;;  %v4319_v10 = vadd.f32 -0.28449672, %v4317_v56  ;;  %v4717_v37 = vmul.f32 %v9503_v11, %v4715_v12 }
 0xc97   : > { %v4318_v13 = vadd.f32 -0.28449672, %v4316_v61  ;;  %v9510_v55 = vadd.f32 %v4073_v14, %v3563_v50  ;;  %v9512_v38 = vpop.f32.mrb[25].mxu1  ;;  %v9514_v53 = vpop.f32.mrb[37].mxu0  ;;  %v4731_v14 = vmul.f32 1.442695, %v4729_v62 }
 0xc98   : > { %v4077_v21 = vpop.f32.mrb[26].mxu1  ;;  %v4118_v32 = vpop.f32.mrb[38].mxu0  ;;  %v4321_v16 = vmul.f32 %v8066_v6, %v4319_v10  ;;  %v4719_v0 = vadd.f32 -0.28449672, %v4717_v37 }
 0xc99   : > { %v4320_v24 = vmul.f32 %v8068_v43, %v4318_v13  ;;  %v9518_v58 = vmul.f32 0.70710677, %v9510_v55  ;;  %v4078_v41 = vpop.f32.mrb[27].mxu1  ;;  %v4119_v36 = vpop.f32.mrb[39].mxu0 }
 0xc9a   : > { %v4323_v61 = vadd.f32 0.2548296, %v4321_v16  ;;  %v4721_v1 = vmul.f32 %v9503_v11, %v4719_v0  ;;  %v4294_v41 = vmul.f32 0.5, %v9482_v33 }
 0xc9b   : > { %v4322_v52 = vadd.f32 0.2548296, %v4320_v24  ;;  %v4700_v25 = vand.u32 2147483647, %v9518_v58  ;;  %vm4740_vm7 = vcmp.lt.f32.partialorder %v9518_v58, 0.0 }
 0xc9c   : > { %v4325_v13 = vmul.f32 %v8066_v6, %v4323_v61  ;;  %v4723_v36 = vadd.f32 0.2548296, %v4721_v1 }
 0xc9d   : > { %v4324_v34 = vmul.f32 %v8068_v43, %v4322_v52  ;;  %v4702_v19 = vmul.f32 0.3275911, %v4700_v25  ;;  %v4728_v21 = vmul.f32 %v4700_v25, %v4700_v25 }
 0xc9e   : > { %v4335_v32 = vmul.f32 %v8074_v49, %v4325_v13  ;;  %v4725_v25 = vmul.f32 %v9503_v11, %v4723_v36 }
 0xc9f   : > { %v4334_v31 = vmul.f32 %v8072_v7, %v4324_v34  ;;  %v4704_v17 = vadd.f32 1.0, %v4702_v19  ;;  %v4730_v52 = vsub.f32 0.0, %v4728_v21 }
 0xca0   : > { %v4337_v63 = vsub.f32 1.0, %v4335_v32 }
 0xca1   : > { %v4336_v50 = vsub.f32 1.0, %v4334_v31  ;;  %8075 = vrcp.f32 %v4704_v17  ;;  %v4733_v7 = vmul.f32 1.442695, %v4730_v52  ;;  %v4695_v52 = vmul.f32 0.5, %v9484_v2 }
 0xca2   : > { %8077 = vpow2.f32 %v4731_v14  ;;  %v4341_v12 = vsub.f32 0.0, %v4337_v63 }
 0xca3   : > { %v4340_v42 = vsub.f32 0.0, %v4336_v50  ;;  %8079 = vpow2.f32 %v4733_v7  ;;  %v7868_v7 = vld [vmem:[#allocation19 + $0x14] ss:$8 sps:$4 sm:$0xff]  }
 0xca4   : > { %v4343_v6 = vsel %vm4339_vm1, %v4341_v12, %v4337_v63 }
 0xca5   : > { %v4342_v43 = vsel %vm4338_vm0, %v4340_v42, %v4336_v50  ;;  %v4345_v19 = vadd.f32 1.0, %v4343_v6 }
 0xca6   : > { %v4344_v56 = vadd.f32 1.0, %v4342_v43 }
 0xca7   : > { %v4347_v17 = vmul.f32 %v4345_v19, %v4295_v5 }
 0xca8   : > { %v4346_v54 = vmul.f32 %v4344_v56, %v4294_v41 }
 0xca9   : > { %v4349_v50 = vpack.c.bf16 %v4347_v17, %v4347_v17  ;;  %v7869_v17 = vld [vmem:[#allocation19 + $0x20] ss:$8 sps:$4 sm:$0xff]  }
 0xcaa   : > { %v4348_v37 = vpack.c.bf16 %v4346_v54, %v4346_v54 }
 0xcab   : > { %v8076_v24 = vpop.eup %8075  ;;  %4550 = vmatprep.mubr.bf16.mxu0 %v4349_v50  ;;  %v7880_v50 = vld [vmem:[#allocation19 + $0x54] ss:$8 sps:$4 sm:$0xff]  }
 0xcac   : > { %v4710_v10 = vmul.f32 1.0614054, %v8076_v24  ;;  %v8078_v33 = vpop.eup %8077  ;;  %4551 = vmatmul.mubr.bf16.vlgmr.msra.gmra.mrb[40].mxu0 %v4348_v37  ;;  %v7874_v37 = vld [vmem:[#allocation19 + $0x34] ss:$8 sps:$4 sm:$0xff]  }
 0xcad   : > { %v4735_v62 = vmul.f32 %v8078_v33, %v4725_v25  ;;  %v8080_v21 = vpop.eup %8079  ;;  %v7863_v25 = vld [vmem:[#allocation19] ss:$8 sps:$4 sm:$0xff]  }
 0xcae   : > { %v4712_v34 = vadd.f32 -1.4531521, %v4710_v10  ;;  %v4696_v10 = vmul.f32 0.5, %v9510_v55  ;;  %v7865_v55 = vld [vmem:[#allocation19 + $0x4] ss:$8 sps:$4 sm:$0xff]  }
 0xcaf   : > { %v4737_v15 = vsub.f32 1.0, %v4735_v62  ;;  %5023 = vmatprep.subr.bf16.mxu1 %v7865_v55  ;;  %v7875_v33 = vld [vmem:[#allocation19 + $0x40] ss:$8 sps:$4 sm:$0xff]   ;;  %v7878_v62 = vld [vmem:[#allocation19 + $0x50] ss:$8 sps:$4 sm:$0xff]  }
 0xcb0   : > { %v4714_v31 = vmul.f32 %v8076_v24, %v4712_v34 }
 0xcb1   : > { %v4741_v43 = vsub.f32 0.0, %v4737_v15 }
 0xcb2   : > { %v4716_v16 = vadd.f32 1.4214138, %v4714_v31  ;;  %v7866_v31 = vld [vmem:[#allocation19 + $0x10] ss:$8 sps:$4 sm:$0xff]  }
 0xcb3   : > { %v4743_v56 = vsel %vm4739_vm6, %v4741_v43, %v4737_v15  ;;  %v7884_v15 = vld [vmem:[#allocation19 + $0x70] ss:$8 sps:$4 sm:$0xff]  }
 0xcb4   : > { %v4718_v42 = vmul.f32 %v8076_v24, %v4716_v16  ;;  %v4745_v41 = vadd.f32 1.0, %v4743_v56  ;;  %v7877_v16 = vld [vmem:[#allocation19 + $0x44] ss:$8 sps:$4 sm:$0xff]   ;;  %v4754_v56 = vrot.slane %v9445_v40, %v9216_v51 }
 0xcb6   : > { %v9528_v9 = vpop.f32.mrb[28].mxu1  ;;  %v4720_v61 = vadd.f32 -0.28449672, %v4718_v42  ;;  %v4747_v6 = vmul.f32 %v4745_v41, %v4695_v52  ;;  %v7881_v42 = vld [vmem:[#allocation19 + $0x60] ss:$8 sps:$4 sm:$0xff]  }
 0xcb7   : > { %v7207_v0 = vpop.f32.mrb[29].mxu1 }
 0xcb8   : > { %v4158_v14 = vpop.f32.mrb[30].mxu1  ;;  %v4722_v11 = vmul.f32 %v8076_v24, %v4720_v61  ;;  %v7883_v0 = vld [vmem:[#allocation19 + $0x64] ss:$8 sps:$4 sm:$0xff]   ;;  %v7886_v61 = vld [vmem:[#allocation19 + $0x74] ss:$8 sps:$4 sm:$0xff]  }
 0xcb9   : > { %v7208_v13 = vpop.f32.mrb[31].mxu1 }
 0xcba   : > { %v4724_v49 = vadd.f32 0.2548296, %v4722_v11 }
 0xcbc   : > { %v4726_v1 = vmul.f32 %v8076_v24, %v4724_v49  ;;  %v4749_v24 = vpack.c.bf16 %v4747_v6, %v4747_v6 }
 0xcbe   : > { %v4736_v32 = vmul.f32 %v8080_v21, %v4726_v1 }
 0xcc0   : > { %v4738_v63 = vsub.f32 1.0, %v4736_v32 }
 0xcc2   : > { %v4742_v36 = vsub.f32 0.0, %v4738_v63 }
 0xcc4   : > { %v4744_v12 = vsel %vm4740_vm7, %v4742_v36, %v4738_v63 }
 0xcc5   : > { %v4746_v54 = vadd.f32 1.0, %v4744_v12 }
 0xcc7   : > { %v4748_v34 = vmul.f32 %v4746_v54, %v4696_v10 }
 0xcc9   : > { %v4750_v5 = vpack.c.bf16 %v4748_v34, %v4748_v34 }
 0xccb   : > { %4883 = vmatprep.mubr.bf16.mxu1 %v4750_v5 }
 0xccc   : > { %4884 = vmatmul.mubr.bf16.vlgmr.msra.gmra.mrb[32].mxu1 %v4749_v24 }
 0xccd   : > { %5055 = vmatprep.mubr.bf16.mxu1 %v8590_v39  ;;  %5024 = vmatpush1.bf16.msra.mxu1 %v7863_v25  ;;  %v7871_v39 = vld [vmem:[#allocation19 + $0x24] ss:$8 sps:$4 sm:$0xff]  }
 0xcce   : > { %5025 = vmatprep.subr.bf16.mxu1 %v7868_v7 }
 0xcd1   : > { %5026 = vmatpush1.bf16.msra.mxu1 %v7866_v31 }
 0xcd2   : > { %5027 = vmatprep.subr.bf16.mxu1 %v7871_v39 }
 0xcd5   : > { %5028 = vmatpush1.bf16.msra.mxu1 %v7869_v17 }
 0xcd6   : > { %5029 = vmatprep.subr.bf16.mxu1 %v7874_v37 }
 0xd07   : > { %v9535_v57 = vpop.xlane.xlu1 %4162 }
 0xd08   : > { %v4164_v19 = vsub.f32 %v9498_v26, %v9535_v57  ;;  %v7872_v26 = vld [vmem:[#allocation19 + $0x30] ss:$8 sps:$4 sm:$0xff]  }
 0xd09   : > { %5030 = vmatpush1.bf16.msra.mxu1 %v7872_v26 }
 0xd0a   : > { %v4165_v58 = vmul.f32 1.442695, %v4164_v19  ;;  %5031 = vmatprep.subr.bf16.mxu1 %v7877_v16  ;;  %v3417_v19 = vrot.slane %v9223_v3, 4 }
 0xd0c   : > { %8081 = vpow2.f32 %v4165_v58  ;;  %v3418_v25 = vadd.f32 %v3417_v19, %v9223_v3 }
 0xd0d   : > { %5032 = vmatpush1.bf16.msra.mxu1 %v7875_v33  ;;  %8083 = vlog2.f32 %v9220_v59 }
 0xd0e   : > { %5033 = vmatprep.subr.bf16.mxu1 %v7880_v50  ;;  %v3419_v16 = vrot.slane %v3418_v25, 2 }
 0xd11   : > { %5034 = vmatpush1.bf16.msra.mxu1 %v7878_v62 }
 0xd12   : > { %5035 = vmatprep.subr.bf16.mxu1 %v7883_v0 }
 0xd15   : > { %5036 = vmatpush1.bf16.msra.mxu1 %v7881_v42 }
 0xd16   : > { %v9539_v2 = vpop.eup %8081  ;;  %5037 = vmatprep.subr.bf16.mxu1 %v7886_v61  ;;  %v3420_v61 = vadd.f32 %v3419_v16, %v3418_v25 }
 0xd17   : > { %4167 = vadd.xlane.f32.xlu1 %v9539_v2  ;;  %v8084_v43 = vpop.eup %8083 }
 0xd18   : > { %v3414_v1 = vmul.f32 0.6931472, %v8084_v43 }
 0xd19   : > { %5038 = vmatpush1.bf16.msra.mxu1 %v7884_v15 }
 0xd1a   : > { %v3415_v21 = vadd.f32 %v3414_v1, %v9207_v48 }
 0xd1c   : > { %v3416_v12 = vmul.f32 %v3415_v21, %v3415_v21 }
 0xd1e   : > { %v3423_v59 = vrot.slane %v3416_v12, 4 }
 0xd20   : > { %v3424_v5 = vadd.f32 %v3423_v59, %v3416_v12 }
 0xd22   : > { %v3425_v58 = vrot.slane %v3424_v5, 2 }
 0xd24   : > { %v3426_v17 = vadd.f32 %v3425_v58, %v3424_v5 }
 0xd26   : > { %v3427_v3 = vrot.slane %v3426_v17, 1 }
 0xd28   : > { %v3428_v1 = vadd.f32 %v3427_v3, %v3426_v17 }
 0xd7f   : > { %v9542_v14 = vpop.f32.mrb[40].mxu0 }
 0xd80   : > { %v9544_v13 = vpop.f32.mrb[41].mxu0 }
 0xd81   : > { %v4556_v11 = vpop.f32.mrb[42].mxu0 }
 0xd82   : > { %v4557_v49 = vpop.f32.mrb[43].mxu0 }
 0xd9f   : > { %v7075_v32 = vpop.f32.mrb[32].mxu1 }
 0xda0   : > { %v7076_v63 = vpop.f32.mrb[33].mxu1 }
 0xda1   : > { %v7077_v41 = vadd.f32 %v7076_v63, %v7075_v32  ;;  %v7078_v36 = vpop.f32.mrb[34].mxu1 }
 0xda2   : > { %v7079_v52 = vpop.f32.mrb[35].mxu1 }
 0xda3   : > { %v9550_v10 = vadd.f32 %v7077_v41, %v4754_v56  ;;  %v3430_v52 = vsel %vm3429_vm8, %v3428_v1, 0.0  ;;  %v9587_v1 = vld [vmem:[%s9922_s28 + $0x8] sm:$0xff] }
 0xda4   : > { %v4168_v6 = vpop.xlane.xlu1 %4167 }
 0xda5   : > { %v9553_v54 = vmul.f32 0.70710677, %v9550_v10  ;;  %8085 = vrcp.f32 %v4168_v6  ;;  %v4891_v28 = vmul.f32 0.5, %v9550_v10 }
 0xda6   : > { %8087 = vlog2.f32 %v4168_v6 }
 0xda7   : > { %v4893_v34 = vand.u32 2147483647, %v9553_v54  ;;  %vm4913_vm11 = vcmp.lt.f32.partialorder %v9553_v54, 0.0 }
 0xda9   : > { %v4894_v48 = vmul.f32 0.3275911, %v4893_v34  ;;  %v4907_v37 = vmul.f32 %v4893_v34, %v4893_v34 }
 0xdab   : > { %v4895_v24 = vadd.f32 1.0, %v4894_v48  ;;  %v4908_v0 = vsub.f32 0.0, %v4907_v37 }
 0xdad   : > { %8089 = vrcp.f32 %v4895_v24  ;;  %v4909_v21 = vmul.f32 1.442695, %v4908_v0 }
 0xdaf   : > { %v8086_v55 = vpop.eup %8085  ;;  %8091 = vpow2.f32 %v4909_v21  ;;  %v4938_v21 = vrot.slane %v9445_v40, %v9232_v35 }
 0xdb0   : > { %v8088_v7 = vpop.eup %8087  ;;  %v9559_v31 = vmul.f32 %v8086_v55, %v9539_v2 }
 0xdb1   : > { %v6163_v39 = vmul.f32 0.6931472, %v8088_v7 }
 0xdb2   : > { %v6166_v26 = vrot.slane %v9559_v31, 4  ;;  %4171 = vmax.xlane.f32.xlu1 %v9559_v31 }
 0xdb3   : > { %v6164_v33 = vadd.f32 %v6163_v39, %v9535_v57  ;;  %v3421_v57 = vrot.slane %v3420_v61, 1 }
 0xdb4   : > { %v6167_v50 = vadd.f32 %v6166_v26, %v9559_v31 }
 0xdb5   : > { %v6165_v62 = vmul.f32 %v6164_v33, %v6164_v33  ;;  %v3422_v6 = vadd.f32 %v3421_v57, %v3420_v61 }
 0xdb6   : > { %v6168_v2 = vrot.slane %v6167_v50, 2 }
 0xdb7   : > { %v8090_v42 = vpop.eup %8089  ;;  %v6172_v11 = vrot.slane %v6165_v62, 4  ;;  %v3431_v48 = vadd.f32 %v3430_v52, %v3422_v6 }
 0xdb8   : > { %v4898_v15 = vmul.f32 1.0614054, %v8090_v42  ;;  %v6169_v32 = vadd.f32 %v6168_v2, %v6167_v50 }
 0xdb9   : > { %v6173_v43 = vadd.f32 %v6172_v11, %v6165_v62  ;;  %v3433_v7 = vsel %vm3432_vm9, %v3431_v48, 0.0  ;;  %v8092_v26 = vpop.eup %8091  ;;  %v9600_v48 = vld [vmem:[%s9922_s28] sm:$0xff] }
 0xdba   : > { %v4899_v49 = vadd.f32 -1.4531521, %v4898_v15  ;;  %v6170_v12 = vrot.slane %v6169_v32, 1 }
 0xdbb   : > { %v6174_v63 = vrot.slane %v6173_v43, 2 }
 0xdbc   : > { %v4900_v56 = vmul.f32 %v8090_v42, %v4899_v49  ;;  %v6171_v19 = vadd.f32 %v6170_v12, %v6169_v32  ;;  %v4942_v32 = vrot.slane %v9587_v1, %v9232_v35 }
 0xdbd   : > { %v6175_v36 = vadd.f32 %v6174_v63, %v6173_v43 }
 0xdbe   : > { %v4901_v41 = vadd.f32 1.4214138, %v4900_v56 }
 0xdbf   : > { %v6176_v34 = vrot.slane %v6175_v36, 1 }
 0xdc0   : > { %v4902_v59 = vmul.f32 %v8090_v42, %v4901_v41 }
 0xdc1   : > { %v6177_v24 = vadd.f32 %v6176_v34, %v6175_v36 }
 0xdc2   : > { %v4903_v5 = vadd.f32 -0.28449672, %v4902_v59 }
 0xdc3   : > { %v6178_v55 = vsel %vm3429_vm8, %v6177_v24, 0.0  ;;  %v4357_v24 = vrot.slane %v9587_v1, %v9130_v20 }
 0xdc4   : > { %v4904_v58 = vmul.f32 %v8090_v42, %v4903_v5  ;;  %v6179_v25 = vadd.f32 %v6178_v55, %v6171_v19  ;;  %v4353_v5 = vrot.slane %v9600_v48, %v9130_v20 }
 0xdc5   : > { %v4555_v55 = vadd.f32 %v9544_v13, %v4357_v24  ;;  %v7895_v13 = vld [vmem:[#allocation20 + $0xe0] sm:$0xff]  }
 0xdc6   : > { %v4905_v39 = vadd.f32 0.2548296, %v4904_v58  ;;  %v6181_v17 = vsel %vm6180_vm10, %v6179_v25, %v3433_v7  ;;  %v4553_v58 = vadd.f32 %v9542_v14, %v4353_v5  ;;  %v7894_v14 = vld [vmem:[#allocation20 + $0x98] sm:$0xff]   ;;  %v7954_v5 = vld [vmem:[#allocation20 + $0x8] sm:$0xff]  }
 0xdc7   : > { %6205 = vst [vmem:[%s676_s15] sm:$0xff] %v6181_v17  ;;  %v7888_v17 = vld [vmem:[#allocation20 + $0x80] sm:$0xff]  }
 0xdc8   : > { %v4906_v37 = vmul.f32 %v8090_v42, %v4905_v39  ;;  %v4559_v7 = vadd.f32 %v4555_v55, %v4553_v58  ;;  %v7887_v39 = vld [vmem:[#allocation20 + $0xc0] sm:$0xff]  }
 0xdc9   : > { %7081 = vmatprep.subr.bf16.mxu0 %v7887_v39 }
 0xdca   : > { %v4911_v16 = vmul.f32 %v8092_v26, %v4906_v37  ;;  %v7889_v37 = vld [vmem:[#allocation20 + $0xc8] sm:$0xff]   ;;  %7082 = vmatpush3.bf16.msra.mxu0 %v7888_v17 }
 0xdcb   : > { %v7890_v26 = vld [vmem:[#allocation20 + $0x88] sm:$0xff]   ;;  %7083 = vmatprep.subr.bf16.mxu0 %v7889_v37 }
 0xdcc   : > { %v4912_v33 = vsub.f32 1.0, %v4911_v16  ;;  %v7891_v16 = vld [vmem:[#allocation20 + $0xd0] sm:$0xff]   ;;  %v7961_v37 = vld [vmem:[#allocation20 + $0x68] sm:$0xff]  }
 0xdce   : > { %v4914_v50 = vsub.f32 0.0, %v4912_v33  ;;  %7084 = vmatpush3.bf16.msra.mxu0 %v7890_v26  ;;  %v7962_v26 = vld [vmem:[#allocation20 + $0x28] sm:$0xff]  }
 0xdcf   : > { %7085 = vmatprep.subr.bf16.mxu0 %v7891_v16 }
 0xdd0   : > { %v4915_v44 = vsel %vm4913_vm11, %v4914_v50, %v4912_v33  ;;  %v7892_v33 = vld [vmem:[#allocation20 + $0x90] sm:$0xff]   ;;  %v7893_v50 = vld [vmem:[#allocation20 + $0xd8] sm:$0xff]  }
 0xdd1   : > { %v4916_v62 = vadd.f32 1.0, %v4915_v44  ;;  %v7896_v44 = vld [vmem:[#allocation20 + $0xa0] sm:$0xff]  }
 0xdd2   : > { %7086 = vmatpush3.bf16.msra.mxu0 %v7892_v33 }
 0xdd3   : > { %v4917_v3 = vmul.f32 %v4916_v62, %v4891_v28  ;;  %7087 = vmatprep.subr.bf16.mxu0 %v7893_v50  ;;  %v7897_v28 = vld [vmem:[#allocation20 + $0xe8] sm:$0xff]   ;;  %v7963_v50 = vld [vmem:[#allocation20 + $0x70] sm:$0xff]  }
 0xdd4   : > { %v7898_v62 = vld [vmem:[#allocation20 + $0xa8] sm:$0xff]  }
 0xdd5   : > { %v4934_v0 = vpack.c.bf16 %v4917_v3, %v4917_v3  ;;  %v7899_v3 = vld [vmem:[#allocation20 + $0xf0] sm:$0xff]  }
 0xdd6   : > { %7088 = vmatpush3.bf16.msra.mxu0 %v7894_v14  ;;  %v7964_v14 = vld [vmem:[#allocation20 + $0x30] sm:$0xff]  }
 0xdd7   : > { %5056 = vmatmul.mubr.bf16.vlgmr.msra.gmra.mrb[36].mxu1 %v4934_v0  ;;  %7089 = vmatprep.subr.bf16.mxu0 %v7895_v13  ;;  %v7900_v0 = vld [vmem:[#allocation20 + $0xb0] sm:$0xff]   ;;  %v7965_v13 = vld [vmem:[#allocation20 + $0x78] sm:$0xff]  }
 0xdda   : > { %7090 = vmatpush3.bf16.msra.mxu0 %v7896_v44 }
 0xddb   : > { %7091 = vmatprep.subr.bf16.mxu0 %v7897_v28 }
 0xdde   : > { %7092 = vmatpush3.bf16.msra.mxu0 %v7898_v62  ;;  %v7966_v62 = vld [vmem:[#allocation20 + $0x38] sm:$0xff]  }
 0xddf   : > { %7093 = vmatprep.subr.bf16.mxu0 %v7899_v3 }
 0xde2   : > { %7094 = vmatpush3.bf16.msra.mxu0 %v7900_v0 }
 0xe3f   : > { %v4172_v2 = vpop.xlane.xlu1 %4171 }
 0xe40   : > { %vm4173_vm12 = vcmp.eq.f32.partialorder %v9559_v31, %v4172_v2 }
 0xe41   : > { %v4174_v61 = vsel %vm4173_vm12, %v9227_v27, 128.0 }
 0xe42   : > { %4175 = vmin.xlane.f32.xlu1 %v4174_v61 }
 0xeaa   : > { %v5057_v42 = vpop.f32.mrb[36].mxu1 }
 0xeab   : > { %v5059_v15 = vpop.f32.mrb[37].mxu1  ;;  %v5058_v56 = vadd.f32 %v5057_v42, %v4938_v21 }
 0xeac   : > { %v5061_v11 = vpop.f32.mrb[38].mxu1  ;;  %v5060_v63 = vadd.f32 %v5059_v15, %v4942_v32  ;;  %v7901_v32 = vld [vmem:[#allocation20 + $0xf8] sm:$0xff]  }
 0xead   : > { %v5062_v49 = vpop.f32.mrb[39].mxu1  ;;  %7095 = vmatprep.subr.bf16.mxu0 %v7901_v32 }
 0xeae   : > { %v5064_v36 = vadd.f32 %v5060_v63, %v5058_v56 }
 0xecf   : > { %v4176_v43 = vpop.xlane.xlu1 %4175 }
 0xed0   : > { %vm4177_vm13 = vcmp.eq.f32.partialorder %v9227_v27, %v4176_v43 }
 0xed1   : > { %v6765_v54 = vsel %vm4177_vm13, 1.0, %v8591_v23 }
 0xed2   : > { %vm4181_vm14 = vcmp.gt.f32.partialorder %v6765_v54, 0.0 }
 0xed3   : > { %v4182_v10 = vsel %vm4181_vm14, -1.0, %v9559_v31 }
 0xed4   : > { %4183 = vmax.xlane.f32.xlu1 %v4182_v10 }
 0xf61   : > { %v4184_v57 = vpop.xlane.xlu1 %4183 }
 0xf62   : > { %vm4185_vm15 = vcmp.eq.f32.partialorder %v4182_v10, %v4184_v57  ;;  %v7902_v57 = vld [vmem:[#allocation20 + $0xb8] sm:$0xff]  }
 0xf63   : > { %v4186_v41 = vsel %vm4185_vm15, %v9227_v27, 128.0  ;;  %7096 = vmatpush3.bf16.msra.mxu0 %v7902_v57 }
 0xf64   : > { %4187 = vmin.xlane.f32.xlu1 %v4186_v41  ;;  %v3571_v41 = vrot.slane %v9470_v60, %v9232_v35  ;;  %v7955_v35 = vld [vmem:[#allocation20 + $0x50] sm:$0xff]  }
 0xf68   : > { %5065 = vadd.xlane.f32.xlu1 %v5064_v36  ;;  %v9632_v36 = vadd.f32 %v9508_v30, %v3571_v41  ;;  %v7956_v30 = vld [vmem:[#allocation20 + $0x10] sm:$0xff]  }
 0xff1   : > { %v4188_v52 = vpop.xlane.xlu1 %4187 }
 0xff2   : > { %vm4189_vm2 = vcmp.eq.f32.partialorder %v9227_v27, %v4188_v52  ;;  %v9635_v52 = vmul.f32 0.70710677, %v9632_v36 }
 0xff3   : > { %v6766_v12 = vsel %vm4189_vm2, 1.0, %v8591_v23 }
 0xff4   : > { %v4192_v6 = vadd.f32 %v6766_v12, %v6765_v54  ;;  %v5424_v12 = vand.u32 2147483647, %v9635_v52  ;;  %vm5464_vm3 = vcmp.lt.f32.partialorder %v9635_v52, 0.0 }
 0xff5   : > { %v5066_v59 = vpop.xlane.xlu1 %5065 }
 0xff6   : > { %v5067_v40 = vmul.f32 0.00390625, %v5066_v59  ;;  %v4193_v34 = vmul.f32 %v4192_v6, %v9559_v31  ;;  %v5426_v6 = vmul.f32 0.3275911, %v5424_v12  ;;  %v5452_v17 = vmul.f32 %v5424_v12, %v5424_v12 }
 0xff8   : > { %v9606_v19 = vsub.f32 %v5058_v56, %v5067_v40  ;;  %v9608_v27 = vsub.f32 %v5060_v63, %v5067_v40  ;;  %4194 = vadd.xlane.f32.xlu0 %v4193_v34  ;;  %v7905_v63 = vld [vmem:[#allocation17 + $0xc] ss:$20 sps:$4 sm:$0xff]   ;;  %v5428_v59 = vadd.f32 1.0, %v5426_v6  ;;  %v5454_v33 = vsub.f32 0.0, %v5452_v17  ;;  %v7908_v17 = vld [vmem:[#allocation17 + $0x34] ss:$20 sps:$4 sm:$0xff]  }
 0xff9   : > { %5643 = vmatprep.subr.bf16.mxu0 %v7905_v63  ;;  %v7948_v40 = vld [vmem:[#allocation20 + $0x40] sm:$0xff]  }
 0xffa   : > { %v5070_v23 = vmul.f32 %v9606_v19, %v9606_v19  ;;  %v5071_v31 = vmul.f32 %v9608_v27, %v9608_v27  ;;  %7103 = vmatprep.subr.bf16.mxu1 %v7948_v40  ;;  %v5457_v28 = vmul.f32 1.442695, %v5454_v33  ;;  %v9657_v40 = vld [vmem:[%s9922_s28 + $0x10] sm:$0xff] }
 0xffc   : > { %v5072_v25 = vadd.f32 %v5071_v31, %v5070_v23  ;;  %v7957_v31 = vld [vmem:[#allocation20 + $0x58] sm:$0xff]  }
 0xffe   : > { %5073 = vadd.xlane.f32.xlu1 %v5072_v25  ;;  %v7959_v25 = vld [vmem:[#allocation20 + $0x60] sm:$0xff]  }
0x1002   : > { %4560 = vadd.xlane.f32.xlu1 %v4559_v7  ;;  %v7960_v7 = vld [vmem:[#allocation20 + $0x20] sm:$0xff]  }
0x1085   : > { %v4195_v2 = vpop.xlane.xlu0 %4194 }
0x1086   : > { %8093 = vrcp.f32 %v4195_v2  ;;  %v3567_v2 = vrot.slane %v9470_v60, %v9216_v51  ;;  %v5083_v60 = vrot.slane %v9600_v48, %v9327_v46 }
0x1087   : > { %8095 = vrcp.f32 %v5428_v59 }
0x1088   : > { %8097 = vpow2.f32 %v5457_v28  ;;  %v7917_v28 = vld [vmem:[#allocation17 + $0xac] ss:$20 sps:$4 sm:$0xff]  }
0x108b   : > { %v9616_v61 = vpop.xlane.xlu1 %5073 }
0x108c   : > { %v5075_v3 = vmul.f32 0.00390625, %v9616_v61 }
0x108f   : > { %v4561_v42 = vpop.xlane.xlu1 %4560 }
0x1090   : > { %v8094_v15 = vpop.eup %8093  ;;  %v4562_v11 = vmul.f32 0.00390625, %v4561_v42  ;;  %v5076_v42 = vadd.f32 1e-05, %v5075_v3 }
0x1091   : > { %v4197_v49 = vmul.f32 %v8094_v15, %v4193_v34  ;;  %v8096_v34 = vpop.eup %8095 }
0x1092   : > { %v9618_v43 = vsub.f32 %v4553_v58, %v4562_v11  ;;  %v9620_v54 = vsub.f32 %v4555_v55, %v4562_v11  ;;  %v5434_v24 = vmul.f32 1.0614054, %v8096_v34  ;;  %v7958_v58 = vld [vmem:[#allocation20 + $0x18] sm:$0xff]   ;;  %v9642_v11 = vadd.f32 %v9512_v38, %v3567_v2 }
0x1093   : > { %5101 = vperm.xlu0 %7386, %v4197_v49   ;;  %8099 = vrsqrt.f32 %v5076_v42  ;;  %v5087_v38 = vrot.slane %v9587_v1, %v9327_v46  ;;  %v7920_v42 = vld [vmem:[#allocation17 + $0xd4] ss:$20 sps:$4 sm:$0xff]  }
0x1094   : > { %v4565_v10 = vmul.f32 %v9618_v43, %v9618_v43  ;;  %v4566_v21 = vmul.f32 %v9620_v54, %v9620_v54  ;;  %v5436_v23 = vadd.f32 -1.4531521, %v5434_v24 }
0x1096   : > { %v4567_v56 = vadd.f32 %v4566_v21, %v4565_v10  ;;  %v5438_v55 = vmul.f32 %v8096_v34, %v5436_v23  ;;  %v9645_v10 = vmul.f32 0.70710677, %v9642_v11  ;;  %v8098_v21 = vpop.eup %8097 }
0x1097   : > { %7390 = vset.pattern.permute.xlu0 %v8595_v29 }
0x1098   : > { %4568 = vadd.xlane.f32.xlu1 %v4567_v56  ;;  %v5440_v39 = vadd.f32 1.4214138, %v5438_v55  ;;  %v5423_v61 = vand.u32 2147483647, %v9645_v10  ;;  %vm5463_vm4 = vcmp.lt.f32.partialorder %v9645_v10, 0.0 }
0x109a   : > { %v5442_v16 = vmul.f32 %v8096_v34, %v5440_v39  ;;  %v5425_v63 = vmul.f32 0.3275911, %v5423_v61  ;;  %v7903_v39 = vld [vmem:[#allocation17 + $0x8] ss:$20 sps:$4 sm:$0xff]  }
0x109c   : > { %v5444_v44 = vadd.f32 -0.28449672, %v5442_v16  ;;  %v5427_v59 = vadd.f32 1.0, %v5425_v63  ;;  %v7911_v16 = vld [vmem:[#allocation17 + $0x5c] ss:$20 sps:$4 sm:$0xff]  }
0x109d   : > { %v8100_v56 = vpop.eup %8099 }
0x109e   : > { %v5446_v0 = vmul.f32 %v8096_v34, %v5444_v44  ;;  %v5078_v12 = vmul.f32 %v8100_v56, %v9606_v19  ;;  %v5079_v6 = vmul.f32 %v8100_v56, %v9608_v27  ;;  %8101 = vrcp.f32 %v5427_v59  ;;  %v7912_v44 = vld [vmem:[#allocation17 + $0x80] ss:$20 sps:$4 sm:$0xff]  }
0x109f   : > { %v7929_v59 = vld [vmem:[#allocation17 + $0x14c] ss:$20 sps:$4 sm:$0xff]  }
0x10a0   : > { %v5448_v15 = vadd.f32 0.2548296, %v5446_v0  ;;  %v5088_v27 = vmul.f32 %v5083_v60, %v5078_v12  ;;  %v7915_v0 = vld [vmem:[#allocation17 + $0xa8] ss:$20 sps:$4 sm:$0xff]   ;;  %v7926_v60 = vld [vmem:[#allocation17 + $0x124] ss:$20 sps:$4 sm:$0xff]  }
0x10a9   : > { %4651 = vperm.xlu1 %7387, %v4197_v49  }
0x10ad   : > { %7388 = vset.pattern.permute.xlu1 %v8594_v18  ;;  %v7949_v18 = vld [vmem:[#allocation20] sm:$0xff]  }
0x10ae   : > { %5739 = vperm.xlu1 %7388, %v4197_v49   ;;  %7104 = vmatpush3.bf16.msra.mxu1 %v7949_v18  ;;  %v9662_v18 = vld [vmem:[%s9922_s28 + $0x18] sm:$0xff] }
0x10af   : > { %v5097_v19 = vrot.slane %v9662_v18, %v9099_v45 }
0x10b2   : > { %7389 = vset.pattern.permute.xlu1 %v8595_v29  ;;  %v7953_v29 = vld [vmem:[#allocation20 + $0x48] sm:$0xff]  }
0x10b3   : > { %5977 = vperm.xlu1 %7389, %v4197_v49   ;;  %7105 = vmatprep.subr.bf16.mxu1 %v7953_v29  ;;  %v5450_v49 = vmul.f32 %v8096_v34, %v5448_v15  ;;  %v5093_v29 = vrot.slane %v9657_v40, %v9099_v45 }
0x10b4   : > { %7106 = vmatpush3.bf16.msra.mxu1 %v7954_v5  ;;  %v5089_v5 = vmul.f32 %v5087_v38, %v5079_v6  ;;  %v7924_v6 = vld [vmem:[#allocation17 + $0x120] ss:$20 sps:$4 sm:$0xff]  }
0x10b5   : > { %7107 = vmatprep.subr.bf16.mxu1 %v7955_v35  ;;  %v5460_v32 = vmul.f32 %v8098_v21, %v5450_v49  ;;  %v5420_v35 = vmul.f32 0.5, %v9632_v36  ;;  %v7906_v36 = vld [vmem:[#allocation17 + $0x30] ss:$20 sps:$4 sm:$0xff]   ;;  %v5451_v49 = vmul.f32 %v5423_v61, %v5423_v61 }
0x10b6   : > { %v5099_v23 = vadd.f32 %v5097_v19, %v5089_v5 }
0x10b7   : > { %v5462_v57 = vsub.f32 1.0, %v5460_v32  ;;  %v7918_v32 = vld [vmem:[#allocation17 + $0xd0] ss:$20 sps:$4 sm:$0xff]   ;;  %v5453_v63 = vsub.f32 0.0, %v5451_v49 }
0x10b8   : > { %7108 = vmatpush3.bf16.msra.mxu1 %v7956_v30  ;;  %v5098_v30 = vadd.f32 %v5093_v29, %v5088_v27  ;;  %v4582_v29 = vrot.slane %v9587_v1, %v9135_v22  ;;  %v7942_v49 = vld [vmem:[#allocation17 + $0x210] ss:$20 sps:$4 sm:$0xff]  }
0x10b9   : > { %7109 = vmatprep.subr.bf16.mxu1 %v7957_v31  ;;  %v5466_v41 = vsub.f32 0.0, %v5462_v57  ;;  %v5455_v12 = vmul.f32 1.442695, %v5453_v63 }
0x10bb   : > { %v5468_v34 = vsel %vm5464_vm3, %v5466_v41, %v5462_v57  ;;  %v7923_v57 = vld [vmem:[#allocation17 + $0xfc] ss:$20 sps:$4 sm:$0xff]   ;;  %v7921_v41 = vld [vmem:[#allocation17 + $0xf8] ss:$20 sps:$4 sm:$0xff]  }
0x10bc   : > { %7110 = vmatpush3.bf16.msra.mxu1 %v7958_v58  ;;  %v5470_v24 = vadd.f32 1.0, %v5468_v34  ;;  %v4578_v34 = vrot.slane %v9600_v48, %v9135_v22 }
0x10bd   : > { %7111 = vmatprep.subr.bf16.mxu1 %v7959_v25 }
0x10be   : > { %v5472_v55 = vmul.f32 %v5470_v24, %v5420_v35  ;;  %v4588_v24 = vrot.slane %v9600_v48, %v9175_v4  ;;  %v4592_v35 = vrot.slane %v9587_v1, %v9175_v4 }
0x10c0   : > { %7112 = vmatpush3.bf16.msra.mxu1 %v7960_v7 }
0x10c1   : > { %7113 = vmatprep.subr.bf16.mxu1 %v7961_v37  ;;  %v5474_v37 = vpack.c.bf16 %v5472_v55, %v5472_v55 }
0x10c4   : > { %7114 = vmatpush3.bf16.msra.mxu1 %v7962_v26  ;;  %v9674_v26 = vpop.eup %8101 }
0x10c5   : > { %7115 = vmatprep.subr.bf16.mxu1 %v7963_v50  ;;  %v5433_v33 = vmul.f32 1.0614054, %v9674_v26  ;;  %v7909_v50 = vld [vmem:[#allocation17 + $0x58] ss:$20 sps:$4 sm:$0xff]  }
0x10c8   : > { %7116 = vmatpush3.bf16.msra.mxu1 %v7964_v14  ;;  %v7914_v14 = vld [vmem:[#allocation17 + $0x84] ss:$20 sps:$4 sm:$0xff]  }
0x10c9   : > { %7117 = vmatprep.subr.bf16.mxu1 %v7965_v13  ;;  %v5435_v13 = vadd.f32 -1.4531521, %v5433_v33  ;;  %v7938_v33 = vld [vmem:[#allocation17 + $0x1c4] ss:$20 sps:$4 sm:$0xff]  }
0x10cc   : > { %7118 = vmatpush3.bf16.msra.mxu1 %v7966_v62  ;;  %v5437_v62 = vmul.f32 %v9674_v26, %v5435_v13 }
0x10ce   : > { %v5439_v15 = vadd.f32 1.4214138, %v5437_v62  ;;  %v7941_v62 = vld [vmem:[#allocation17 + $0x1ec] ss:$20 sps:$4 sm:$0xff]  }
0x10d0   : > { %v5441_v56 = vmul.f32 %v9674_v26, %v5439_v15 }
0x10d2   : > { %v5443_v38 = vadd.f32 -0.28449672, %v5441_v56 }
0x10d4   : > { %v5445_v61 = vmul.f32 %v9674_v26, %v5443_v38 }
0x1112   : > { %v9670_v31 = vpop.permute.xlu0 %5101 }
0x1113   : > { %v5104_v58 = vmul.f32 %v9670_v31, %v5098_v30  ;;  %v5105_v52 = vmul.f32 %v9670_v31, %v5099_v23  ;;  %v7927_v30 = vld [vmem:[#allocation17 + $0x148] ss:$20 sps:$4 sm:$0xff]  }
0x1114   : > { %v7932_v23 = vld [vmem:[#allocation17 + $0x174] ss:$20 sps:$4 sm:$0xff]  }
0x1115   : > { %v5139_v25 = vpack.c.bf16 %v5104_v58, %v5104_v58  ;;  %v5140_v7 = vpack.c.bf16 %v5105_v52, %v5105_v52  ;;  %v5447_v58 = vadd.f32 0.2548296, %v5445_v61 }
0x1117   : > { %5269 = vmatprep.mubr.bf16.mxu0 %v5140_v7  ;;  %v5449_v48 = vmul.f32 %v9674_v26, %v5447_v58 }
0x1118   : > { %5270 = vmatmul.mubr.bf16.vlgmr.msra.gmra.mrb[44].mxu0 %v5139_v25 }
0x1119   : > { %5644 = vmatpush1.bf16.msra.mxu0 %v7903_v39  ;;  %5675 = vmatprep.mubr.bf16.mxu0 %v5474_v37 }
0x111a   : > { %5645 = vmatprep.subr.bf16.mxu0 %v7908_v17 }
0x111d   : > { %5646 = vmatpush1.bf16.msra.mxu0 %v7906_v36  ;;  %v7933_v36 = vld [vmem:[#allocation17 + $0x198] ss:$20 sps:$4 sm:$0xff]  }
0x111e   : > { %5647 = vmatprep.subr.bf16.mxu0 %v7911_v16 }
0x1121   : > { %5648 = vmatpush1.bf16.msra.mxu0 %v7909_v50 }
0x1122   : > { %5649 = vmatprep.subr.bf16.mxu0 %v7914_v14 }
0x1125   : > { %5650 = vmatpush1.bf16.msra.mxu0 %v7912_v44  ;;  %v4569_v3 = vpop.xlane.xlu1 %4568 }
0x1126   : > { %v4570_v2 = vmul.f32 0.00390625, %v4569_v3  ;;  %5651 = vmatprep.subr.bf16.mxu0 %v7917_v28  ;;  %v7936_v28 = vld [vmem:[#allocation17 + $0x1c0] ss:$20 sps:$4 sm:$0xff]  }
0x1128   : > { %v4571_v21 = vadd.f32 1e-05, %v4570_v2  ;;  %v7944_v2 = vld [vmem:[#allocation17 + $0x214] ss:$20 sps:$4 sm:$0xff]  }
0x1129   : > { %5652 = vmatpush1.bf16.msra.mxu0 %v7915_v0  ;;  %v7939_v0 = vld [vmem:[#allocation17 + $0x1e8] ss:$20 sps:$4 sm:$0xff]  }
0x112a   : > { %8103 = vrsqrt.f32 %v4571_v21  ;;  %5653 = vmatprep.subr.bf16.mxu0 %v7920_v42 }
0x112b   : > { %8105 = vpow2.f32 %v5455_v12 }
0x112d   : > { %5654 = vmatpush1.bf16.msra.mxu0 %v7918_v32  ;;  %v7947_v32 = vld [vmem:[#allocation17 + $0x23c] ss:$20 sps:$4 sm:$0xff]  }
0x112e   : > { %5655 = vmatprep.subr.bf16.mxu0 %v7923_v57 }
0x1131   : > { %5656 = vmatpush1.bf16.msra.mxu0 %v7921_v41  ;;  %v7945_v41 = vld [vmem:[#allocation17 + $0x238] ss:$20 sps:$4 sm:$0xff]  }
0x1132   : > { %5657 = vmatprep.subr.bf16.mxu0 %v7926_v60 }
0x1134   : > { %v8104_v19 = vpop.eup %8103 }
0x1135   : > { %v4573_v27 = vmul.f32 %v8104_v19, %v9618_v43  ;;  %v4574_v5 = vmul.f32 %v8104_v19, %v9620_v54  ;;  %5658 = vmatpush1.bf16.msra.mxu0 %v7924_v6  ;;  %v7930_v43 = vld [vmem:[#allocation17 + $0x170] ss:$20 sps:$4 sm:$0xff]   ;;  %v8106_v16 = vpop.eup %8105 }
0x1136   : > { %5659 = vmatprep.subr.bf16.mxu0 %v7929_v59  ;;  %v7935_v54 = vld [vmem:[#allocation17 + $0x19c] ss:$20 sps:$4 sm:$0xff]   ;;  %v5459_v50 = vmul.f32 %v8106_v16, %v5449_v48  ;;  %v7952_v59 = vld [vmem:[#allocation17 + $0x264] ss:$20 sps:$4 sm:$0xff]  }
0x1137   : > { %v4583_v52 = vmul.f32 %v4578_v34, %v4573_v27  ;;  %v4584_v55 = vmul.f32 %v4582_v29, %v4574_v5  ;;  %v5419_v34 = vmul.f32 0.5, %v9642_v11  ;;  %v7950_v27 = vld [vmem:[#allocation17 + $0x260] ss:$20 sps:$4 sm:$0xff]  }
0x1138   : > { %v5461_v3 = vsub.f32 1.0, %v5459_v50 }
0x1139   : > { %v9690_v25 = vadd.f32 %v4588_v24, %v4583_v52  ;;  %v9692_v7 = vadd.f32 %v4592_v35, %v4584_v55  ;;  %5660 = vmatpush1.bf16.msra.mxu0 %v7927_v30 }
0x113a   : > { %5661 = vmatprep.subr.bf16.mxu0 %v7932_v23  ;;  %v5465_v42 = vsub.f32 0.0, %v5461_v3 }
0x113b   : > { %v9696_v39 = vmul.f32 0.70710677, %v9690_v25  ;;  %v9699_v1 = vmul.f32 0.70710677, %v9692_v7 }
0x113c   : > { %v5467_v57 = vsel %vm5463_vm4, %v5465_v42, %v5461_v3 }
0x113d   : > { %v4599_v17 = vand.u32 2147483647, %v9696_v39  ;;  %v4600_v37 = vand.u32 2147483647, %v9699_v1  ;;  %5662 = vmatpush1.bf16.msra.mxu0 %v7930_v43  ;;  %v5469_v38 = vadd.f32 1.0, %v5467_v57  ;;  %vm4639_vm5 = vcmp.lt.f32.partialorder %v9696_v39, 0.0 }
0x113e   : > { %5663 = vmatprep.subr.bf16.mxu0 %v7935_v54  ;;  %vm4640_vm0 = vcmp.lt.f32.partialorder %v9699_v1, 0.0  ;;  %v7967_v1 = vld [vmem:[#allocation20 + $0x140] sm:$0xff]  }
0x113f   : > { %v4601_v14 = vmul.f32 0.3275911, %v4599_v17  ;;  %v4602_v13 = vmul.f32 0.3275911, %v4600_v37  ;;  %v4627_v15 = vmul.f32 %v4599_v17, %v4599_v17  ;;  %v4628_v21 = vmul.f32 %v4600_v37, %v4600_v37  ;;  %7125 = vmatprep.subr.bf16.mxu1 %v7967_v1 }
0x1140   : > { %v5471_v5 = vmul.f32 %v5469_v38, %v5419_v34  ;;  %v7968_v38 = vld [vmem:[#allocation20 + $0x100] sm:$0xff]  }
0x1141   : > { %v4603_v44 = vadd.f32 1.0, %v4601_v14  ;;  %v4604_v26 = vadd.f32 1.0, %v4602_v13  ;;  %5664 = vmatpush1.bf16.msra.mxu0 %v7933_v36  ;;  %v4629_v63 = vsub.f32 0.0, %v4627_v15  ;;  %v4630_v6 = vsub.f32 0.0, %v4628_v21  ;;  %v7975_v34 = vld [vmem:[#allocation20 + $0x160] sm:$0xff]  }
0x1142   : > { %5665 = vmatprep.subr.bf16.mxu0 %v7938_v33  ;;  %v5473_v52 = vpack.c.bf16 %v5471_v5, %v5471_v5  ;;  %v7980_v5 = vld [vmem:[#allocation20 + $0x130] sm:$0xff]  }
0x1143   : > { %8107 = vrcp.f32 %v4603_v44  ;;  %v4631_v10 = vmul.f32 1.442695, %v4629_v63  ;;  %v4633_v35 = vmul.f32 1.442695, %v4630_v6  ;;  %v7972_v6 = vld [vmem:[#allocation20 + $0x110] sm:$0xff]  }
0x1144   : > { %8109 = vrcp.f32 %v4604_v26 }
0x1145   : > { %5666 = vmatpush1.bf16.msra.mxu0 %v7936_v28  ;;  %8111 = vpow2.f32 %v4631_v10  ;;  %v7978_v10 = vld [vmem:[#allocation20 + $0x128] sm:$0xff]  }
0x1146   : > { %5667 = vmatprep.subr.bf16.mxu0 %v7941_v62  ;;  %8113 = vpow2.f32 %v4633_v35  ;;  %v7982_v35 = vld [vmem:[#allocation20 + $0x138] sm:$0xff]  }
0x1149   : > { %5668 = vmatpush1.bf16.msra.mxu0 %v7939_v0 }
0x114a   : > { %5669 = vmatprep.subr.bf16.mxu0 %v7944_v2  ;;  %v4595_v2 = vmul.f32 0.5, %v9690_v25  ;;  %v7969_v25 = vld [vmem:[#allocation20 + $0x148] sm:$0xff]  }
0x114d   : > { %v8108_v56 = vpop.eup %8107  ;;  %5670 = vmatpush1.bf16.msra.mxu0 %v7942_v49  ;;  %v4596_v49 = vmul.f32 0.5, %v9692_v7  ;;  %v7971_v7 = vld [vmem:[#allocation20 + $0x150] sm:$0xff]  }
0x114e   : > { %v8110_v60 = vpop.eup %8109  ;;  %v4609_v12 = vmul.f32 1.0614054, %v8108_v56  ;;  %5671 = vmatprep.subr.bf16.mxu0 %v7947_v32 }
0x114f   : > { %v4610_v61 = vmul.f32 1.0614054, %v8110_v60  ;;  %v8112_v33 = vpop.eup %8111 }
0x1150   : > { %v4611_v29 = vadd.f32 -1.4531521, %v4609_v12  ;;  %v8114_v14 = vpop.eup %8113  ;;  %v7970_v12 = vld [vmem:[#allocation20 + $0x108] sm:$0xff]  }
0x1151   : > { %v4612_v19 = vadd.f32 -1.4531521, %v4610_v61  ;;  %5672 = vmatpush1.bf16.msra.mxu0 %v7945_v41  ;;  %v7974_v61 = vld [vmem:[#allocation20 + $0x118] sm:$0xff]  }
0x1152   : > { %v4613_v24 = vmul.f32 %v8108_v56, %v4611_v29  ;;  %5673 = vmatprep.subr.bf16.mxu0 %v7952_v59  ;;  %v7973_v59 = vld [vmem:[#allocation20 + $0x158] sm:$0xff]   ;;  %v7976_v29 = vld [vmem:[#allocation20 + $0x120] sm:$0xff]  }
0x1153   : > { %v4614_v30 = vmul.f32 %v8110_v60, %v4612_v19  ;;  %v7977_v19 = vld [vmem:[#allocation20 + $0x168] sm:$0xff]  }
0x1154   : > { %v4615_v23 = vadd.f32 1.4214138, %v4613_v24  ;;  %v7981_v24 = vld [vmem:[#allocation20 + $0x178] sm:$0xff]  }
0x1155   : > { %v4616_v58 = vadd.f32 1.4214138, %v4614_v30  ;;  %5674 = vmatpush1.bf16.msra.mxu0 %v7950_v27  ;;  %v7979_v27 = vld [vmem:[#allocation20 + $0x170] sm:$0xff]   ;;  %v7983_v30 = vld [vmem:[#allocation20 + $0x1c0] sm:$0xff]  }
0x1156   : > { %v4617_v55 = vmul.f32 %v8108_v56, %v4615_v23 }
0x1157   : > { %v4618_v43 = vmul.f32 %v8110_v60, %v4616_v58 }
0x1158   : > { %v4619_v54 = vadd.f32 -0.28449672, %v4617_v55  ;;  %5676 = vmatmul.mubr.bf16.vlgmr.msra.gmra.mrb[48].mxu0 %v5473_v52 }
0x1159   : > { %v4620_v11 = vadd.f32 -0.28449672, %v4618_v43 }
0x115a   : > { %v4621_v48 = vmul.f32 %v8108_v56, %v4619_v54  ;;  %v6692_v54 = vld [vmem:[#allocation14 + $0x8] ss:$0 sm:$0xff] }
0x115b   : > { %v4622_v17 = vmul.f32 %v8110_v60, %v4620_v11  ;;  %v9716_v11 = vadd.f32 %v6692_v54, %v9528_v9  ;;  %v5478_v9 = vrot.slane %v9657_v40, %v9104_v47 }
0x115c   : > { %v4623_v37 = vadd.f32 0.2548296, %v4621_v48 }
0x115d   : > { %v4624_v36 = vadd.f32 0.2548296, %v4622_v17  ;;  %v9719_v48 = vmul.f32 0.70710677, %v9716_v11 }
0x115e   : > { %v4625_v16 = vmul.f32 %v8108_v56, %v4623_v37  ;;  %v9709_v56 = vpop.permute.xlu1 %4651 }
0x115f   : > { %v4626_v50 = vmul.f32 %v8110_v60, %v4624_v36  ;;  %v5927_v17 = vand.u32 2147483647, %v9719_v48  ;;  %vm5967_vm1 = vcmp.lt.f32.partialorder %v9719_v48, 0.0 }
0x1160   : > { %v4635_v13 = vmul.f32 %v8112_v33, %v4625_v16  ;;  %v8137_v16 = vld [vmem:[#allocation14] sm:$0xff] }
0x1161   : > { %v4636_v44 = vmul.f32 %v8114_v14, %v4626_v50  ;;  %v5929_v37 = vmul.f32 0.3275911, %v5927_v17  ;;  %v3575_v33 = vrot.slane %v8137_v16, %v9327_v46 }
0x1162   : > { %v4637_v26 = vsub.f32 1.0, %v4635_v13 }
0x1163   : > { %v4638_v28 = vsub.f32 1.0, %v4636_v44  ;;  %v5931_v36 = vadd.f32 1.0, %v5929_v37  ;;  %v9724_v14 = vadd.f32 %v9514_v53, %v3575_v33 }
0x1164   : > { %v4641_v62 = vsub.f32 0.0, %v4637_v26 }
0x1165   : > { %v4642_v3 = vsub.f32 0.0, %v4638_v28  ;;  %8115 = vrcp.f32 %v5931_v36  ;;  %v9727_v44 = vmul.f32 0.70710677, %v9724_v14 }
0x1166   : > { %v4643_v0 = vsel %vm4639_vm5, %v4641_v62, %v4637_v26  ;;  %v5482_v26 = vrot.slane %v9662_v18, %v9104_v47 }
0x1167   : > { %v4644_v42 = vsel %vm4640_vm0, %v4642_v3, %v4638_v28  ;;  %v4645_v15 = vadd.f32 1.0, %v4643_v0  ;;  %v9734_v3 = vand.u32 2147483647, %v9727_v44  ;;  %vm5966_vm8 = vcmp.lt.f32.partialorder %v9727_v44, 0.0 }
0x1168   : > { %v4646_v21 = vadd.f32 1.0, %v4644_v42 }
0x1169   : > { %v4647_v32 = vmul.f32 %v4645_v15, %v4595_v2  ;;  %v5928_v18 = vmul.f32 0.3275911, %v9734_v3 }
0x116a   : > { %v4648_v57 = vmul.f32 %v4646_v21, %v4596_v49 }
0x116b   : > { %v4654_v63 = vmul.f32 %v9709_v56, %v4647_v32  ;;  %v5930_v1 = vadd.f32 1.0, %v5928_v18 }
0x116c   : > { %v4655_v41 = vmul.f32 %v9709_v56, %v4648_v57 }
0x116d   : > { %v4688_v39 = vpack.c.bf16 %v4654_v63, %v4654_v63 }
0x116e   : > { %v4689_v60 = vpack.c.bf16 %v4655_v41, %v4655_v41 }
0x116f   : > { %v8116_v50 = vpop.eup %8115 }
0x1170   : > { %5405 = vmatprep.mubr.bf16.mxu1 %v4689_v60  ;;  %v5937_v13 = vmul.f32 1.0614054, %v8116_v50 }
0x1171   : > { %5406 = vmatmul.mubr.bf16.vlgmr.msra.gmra.mrb[40].mxu1 %v4688_v39  ;;  %v5955_v39 = vmul.f32 %v5927_v17, %v5927_v17 }
0x1172   : > { %7126 = vmatpush3.bf16.msra.mxu1 %v7968_v38  ;;  %v5939_v28 = vadd.f32 -1.4531521, %v5937_v13 }
0x1173   : > { %7127 = vmatprep.subr.bf16.mxu1 %v7969_v25 }
0x1174   : > { %v5941_v42 = vmul.f32 %v8116_v50, %v5939_v28 }
0x1176   : > { %7128 = vmatpush3.bf16.msra.mxu1 %v7970_v12  ;;  %v5943_v63 = vadd.f32 1.4214138, %v5941_v42 }
0x1177   : > { %7129 = vmatprep.subr.bf16.mxu1 %v7971_v7  ;;  %v5957_v7 = vsub.f32 0.0, %v5955_v39 }
0x1178   : > { %v5945_v12 = vmul.f32 %v8116_v50, %v5943_v63 }
0x117a   : > { %7130 = vmatpush3.bf16.msra.mxu1 %v7972_v6  ;;  %v5947_v6 = vadd.f32 -0.28449672, %v5945_v12 }
0x117b   : > { %7131 = vmatprep.subr.bf16.mxu1 %v7973_v59  ;;  %v5960_v59 = vmul.f32 1.442695, %v5957_v7 }
0x117e   : > { %7132 = vmatpush3.bf16.msra.mxu1 %v7974_v61 }
0x117f   : > { %7133 = vmatprep.subr.bf16.mxu1 %v7975_v34 }
0x1182   : > { %7134 = vmatpush3.bf16.msra.mxu1 %v7976_v29  ;;  %v5949_v29 = vmul.f32 %v8116_v50, %v5947_v6 }
0x1183   : > { %7135 = vmatprep.subr.bf16.mxu1 %v7977_v19 }
0x1186   : > { %7136 = vmatpush3.bf16.msra.mxu1 %v7978_v10 }
0x1187   : > { %7137 = vmatprep.subr.bf16.mxu1 %v7979_v27 }
0x118a   : > { %7138 = vmatpush3.bf16.msra.mxu1 %v7980_v5 }
0x118b   : > { %7139 = vmatprep.subr.bf16.mxu1 %v7981_v24 }
0x118e   : > { %7140 = vmatpush3.bf16.msra.mxu1 %v7982_v35 }
0x118f   : > { %7147 = vmatprep.subr.bf16.mxu1 %v7983_v30  ;;  %v5951_v30 = vadd.f32 0.2548296, %v5949_v29 }
0x1191   : > { %v5953_v33 = vmul.f32 %v8116_v50, %v5951_v30 }
0x11eb   : > { %v7097_v23 = vpop.f32.mrb[44].mxu0 }
0x11ec   : > { %v7098_v58 = vpop.f32.mrb[45].mxu0 }
0x11ed   : > { %v9713_v52 = vadd.f32 %v7098_v58, %v7097_v23  ;;  %v7100_v55 = vpop.f32.mrb[46].mxu0 }
0x11ee   : > { %v7101_v43 = vpop.f32.mrb[47].mxu0 }
0x122b   : > { %v5677_v62 = vpop.f32.mrb[48].mxu0 }
0x122c   : > { %v9736_v46 = vadd.f32 %v5677_v62, %v5478_v9  ;;  %v5679_v0 = vpop.f32.mrb[49].mxu0 }
0x122d   : > { %v9738_v53 = vadd.f32 %v5679_v0, %v5482_v26  ;;  %v5681_v2 = vpop.f32.mrb[50].mxu0 }
0x122e   : > { %v9741_v15 = vmul.f32 0.70710677, %v9736_v46  ;;  %v5682_v49 = vpop.f32.mrb[51].mxu0 }
0x122f   : > { %v9744_v21 = vmul.f32 0.70710677, %v9738_v53 }
0x1230   : > { %v5688_v32 = vand.u32 2147483647, %v9741_v15  ;;  %vm5728_vm6 = vcmp.lt.f32.partialorder %v9741_v15, 0.0 }
0x1231   : > { %v5689_v57 = vand.u32 2147483647, %v9744_v21  ;;  %vm5729_vm7 = vcmp.lt.f32.partialorder %v9744_v21, 0.0 }
0x1232   : > { %v5690_v41 = vmul.f32 0.3275911, %v5688_v32  ;;  %v5716_v61 = vmul.f32 %v5688_v32, %v5688_v32 }
0x1233   : > { %v5691_v60 = vmul.f32 0.3275911, %v5689_v57  ;;  %v5717_v34 = vmul.f32 %v5689_v57, %v5689_v57 }
0x1234   : > { %v5692_v38 = vadd.f32 1.0, %v5690_v41  ;;  %v5718_v10 = vsub.f32 0.0, %v5716_v61 }
0x1235   : > { %v5693_v25 = vadd.f32 1.0, %v5691_v60  ;;  %v5719_v24 = vsub.f32 0.0, %v5717_v34 }
0x1236   : > { %8117 = vrcp.f32 %v5692_v38  ;;  %v5720_v55 = vmul.f32 1.442695, %v5718_v10 }
0x1237   : > { %8119 = vrcp.f32 %v5693_v25  ;;  %v5722_v36 = vmul.f32 1.442695, %v5719_v24 }
0x1238   : > { %8121 = vrcp.f32 %v5930_v1 }
0x1239   : > { %8123 = vpow2.f32 %v5960_v59 }
0x123a   : > { %8125 = vpow2.f32 %v5720_v55 }
0x123b   : > { %8127 = vpow2.f32 %v5722_v36 }
0x1240   : > { %v8118_v19 = vpop.eup %8117 }
0x1241   : > { %v8120_v27 = vpop.eup %8119  ;;  %v5698_v5 = vmul.f32 1.0614054, %v8118_v19 }
0x1242   : > { %v9749_v35 = vpop.eup %8121  ;;  %v5699_v23 = vmul.f32 1.0614054, %v8120_v27 }
0x1243   : > { %v5700_v58 = vadd.f32 -1.4531521, %v5698_v5  ;;  %v5936_v17 = vmul.f32 1.0614054, %v9749_v35  ;;  %v8124_v42 = vpop.eup %8123 }
0x1244   : > { %v5701_v43 = vadd.f32 -1.4531521, %v5699_v23  ;;  %v7119_v54 = vpop.f32.mrb[40].mxu1  ;;  %v5963_v32 = vmul.f32 %v8124_v42, %v5953_v33  ;;  %v8126_v6 = vpop.eup %8125  ;;  %v5685_v33 = vmul.f32 0.5, %v9738_v53  ;;  %v7985_v53 = vld [vmem:[#allocation20 + $0x1c8] sm:$0xff]  }
0x1245   : > { %v5702_v37 = vmul.f32 %v8118_v19, %v5700_v58  ;;  %v7120_v16 = vpop.f32.mrb[41].mxu1  ;;  %v5938_v49 = vadd.f32 -1.4531521, %v5936_v17  ;;  %v8128_v34 = vpop.eup %8127 }
0x1246   : > { %v5703_v13 = vmul.f32 %v8120_v27, %v5701_v43  ;;  %v7121_v9 = vadd.f32 %v7120_v16, %v7119_v54  ;;  %v7122_v26 = vpop.f32.mrb[42].mxu1  ;;  %v5965_v60 = vsub.f32 1.0, %v5963_v32  ;;  %v9760_v58 = vpop.permute.xlu1 %5739  ;;  %v5923_v16 = vmul.f32 0.5, %v9716_v11  ;;  %v7984_v11 = vld [vmem:[#allocation20 + $0x180] sm:$0xff]  }
0x1247   : > { %v5704_v28 = vadd.f32 1.4214138, %v5702_v37  ;;  %v7123_v62 = vpop.f32.mrb[43].mxu1  ;;  %v5940_v50 = vmul.f32 %v9749_v35, %v5938_v49  ;;  %v5684_v37 = vmul.f32 0.5, %v9736_v46 }
0x1248   : > { %v5705_v0 = vadd.f32 1.4214138, %v5703_v13  ;;  %v9753_v2 = vadd.f32 %v7121_v9, %v9713_v52  ;;  %v5954_v52 = vmul.f32 %v9734_v3, %v9734_v3  ;;  %v5969_v59 = vsub.f32 0.0, %v5965_v60 }
0x1249   : > { %v5706_v18 = vmul.f32 %v8118_v19, %v5704_v28  ;;  %v5942_v12 = vadd.f32 1.4214138, %v5940_v50 }
0x124a   : > { %v5707_v57 = vmul.f32 %v8120_v27, %v5705_v0  ;;  %v5956_v30 = vsub.f32 0.0, %v5954_v52  ;;  %v5971_v23 = vsel %vm5967_vm1, %v5969_v59, %v5965_v60  ;;  %v9767_v9 = vpop.permute.xlu1 %5977  ;;  %v7988_v60 = vld [vmem:[#allocation20 + $0x190] sm:$0xff]   ;;  %v7994_v59 = vld [vmem:[#allocation20 + $0x1a8] sm:$0xff]  }
0x124b   : > { %v5708_v63 = vadd.f32 -0.28449672, %v5706_v18  ;;  %v5944_v5 = vmul.f32 %v9749_v35, %v5942_v12  ;;  %v5973_v54 = vadd.f32 1.0, %v5971_v23  ;;  %v7991_v12 = vld [vmem:[#allocation20 + $0x1e0] sm:$0xff]  }
0x124c   : > { %v5709_v41 = vadd.f32 -0.28449672, %v5707_v57  ;;  %v5958_v17 = vmul.f32 1.442695, %v5956_v30  ;;  %v7998_v30 = vld [vmem:[#allocation20 + $0x1b8] sm:$0xff]  }
0x124d   : > { %v5710_v39 = vmul.f32 %v8118_v19, %v5708_v63  ;;  %v5946_v3 = vadd.f32 -0.28449672, %v5944_v5  ;;  %v5975_v28 = vmul.f32 %v5973_v54, %v5923_v16  ;;  %v7986_v63 = vld [vmem:[#allocation20 + $0x188] sm:$0xff]   ;;  %v7997_v5 = vld [vmem:[#allocation20 + $0x1f8] sm:$0xff]  }
0x124e   : > { %v5711_v1 = vmul.f32 %v8120_v27, %v5709_v41  ;;  %8129 = vpow2.f32 %v5958_v17  ;;  %v7987_v41 = vld [vmem:[#allocation20 + $0x1d0] sm:$0xff]   ;;  %v5416_v17 = vrot.slane %v9657_v40, %v9135_v22 }
0x124f   : > { %v5712_v38 = vadd.f32 0.2548296, %v5710_v39  ;;  %v5948_v15 = vmul.f32 %v9749_v35, %v5946_v3  ;;  %v5981_v0 = vmul.f32 %v9767_v9, %v5975_v28 }
0x1250   : > { %v5713_v25 = vadd.f32 0.2548296, %v5711_v1  ;;  %v7989_v1 = vld [vmem:[#allocation20 + $0x1d8] sm:$0xff]   ;;  %v5417_v16 = vmul.f32 %v5416_v17, %v9670_v31 }
0x1251   : > { %v5714_v7 = vmul.f32 %v8118_v19, %v5712_v38  ;;  %v5950_v42 = vadd.f32 0.2548296, %v5948_v15  ;;  %v6016_v32 = vpack.c.bf16 %v5981_v0, %v5981_v0 }
0x1252   : > { %v5715_v61 = vmul.f32 %v8120_v27, %v5713_v25  ;;  %v7990_v25 = vld [vmem:[#allocation20 + $0x198] sm:$0xff]  }
0x1253   : > { %v5724_v29 = vmul.f32 %v8126_v6, %v5714_v7  ;;  %v5952_v57 = vmul.f32 %v9749_v35, %v5950_v42  ;;  %v7992_v6 = vld [vmem:[#allocation20 + $0x1a0] sm:$0xff]   ;;  %v7993_v35 = vld [vmem:[#allocation20 + $0x1e8] sm:$0xff]  }
0x1254   : > { %v5725_v10 = vmul.f32 %v8128_v34, %v5715_v61  ;;  %v7995_v61 = vld [vmem:[#allocation20 + $0x1f0] sm:$0xff]  }
0x1255   : > { %v5726_v24 = vsub.f32 1.0, %v5724_v29  ;;  %v7996_v29 = vld [vmem:[#allocation20 + $0x1b0] sm:$0xff]  }
0x1256   : > { %v5727_v55 = vsub.f32 1.0, %v5725_v10  ;;  %v5922_v10 = vmul.f32 0.5, %v9724_v14  ;;  %v4693_v14 = vrot.slane %v9657_v40, %v9130_v20 }
0x1257   : > { %v5730_v19 = vsub.f32 0.0, %v5726_v24 }
0x1258   : > { %v5731_v43 = vsub.f32 0.0, %v5727_v55  ;;  %v8130_v50 = vpop.eup %8129 }
0x1259   : > { %v5732_v27 = vsel %vm5728_vm6, %v5730_v19, %v5726_v24  ;;  %v5962_v39 = vmul.f32 %v8130_v50, %v5952_v57 }
0x125a   : > { %v5734_v36 = vadd.f32 1.0, %v5732_v27  ;;  %v5733_v48 = vsel %vm5729_vm7, %v5731_v43, %v5727_v55 }
0x125b   : > { %v5735_v13 = vadd.f32 1.0, %v5733_v48  ;;  %v5964_v38 = vsub.f32 1.0, %v5962_v39  ;;  %v6157_v48 = vrot.slane %v9657_v40, %v9216_v51 }
0x125c   : > { %v5736_v26 = vmul.f32 %v5734_v36, %v5684_v37  ;;  %v5919_v37 = vrot.slane %v9657_v40, %v9175_v4  ;;  %v4694_v36 = vmul.f32 %v4693_v14, %v9709_v56 }
0x125d   : > { %v5737_v62 = vmul.f32 %v5735_v13, %v5685_v33  ;;  %v5968_v7 = vsub.f32 0.0, %v5964_v38 }
0x125e   : > { %v5742_v21 = vmul.f32 %v9760_v58, %v5736_v26  ;;  %v5920_v33 = vmul.f32 %v5919_v37, %v9760_v58  ;;  %v5418_v13 = vadd.f32 %v5417_v16, %v4694_v36 }
0x125f   : > { %v5743_v46 = vmul.f32 %v9760_v58, %v5737_v62  ;;  %v5970_v52 = vsel %vm5966_vm8, %v5968_v7, %v5964_v38 }
0x1260   : > { %v5777_v18 = vpack.c.bf16 %v5742_v21, %v5742_v21  ;;  %v5972_v34 = vadd.f32 1.0, %v5970_v52  ;;  %v5921_v15 = vadd.f32 %v5920_v33, %v5418_v13 }
0x1261   : > { %v5778_v49 = vpack.c.bf16 %v5743_v46, %v5743_v46 }
0x1262   : > { %v5974_v24 = vmul.f32 %v5972_v34, %v5922_v10 }
0x1263   : > { %5907 = vmatprep.mubr.bf16.mxu1 %v5778_v49  ;;  %v6182_v49 = vld [vmem:[%s9924_s22] sm:$0x3]  ;;  %s8482_s22 = scalar_lea.vmem %s8481_s16, 256 }
0x1264   : > { %5908 = vmatmul.mubr.bf16.vlgmr.msra.gmra.mrb[44].mxu1 %v5777_v18  ;;  %v5980_v23 = vmul.f32 %v9767_v9, %v5974_v24  ;;  %p8484_p0 = scmp.lt.s32.totalorder %s8482_s22, %s8476_s29 }
0x1265   : > { %7148 = vmatpush3.bf16.msra.mxu1 %v7984_v11  ;;  %6145 = vmatprep.mubr.bf16.mxu1 %v6016_v32 }
0x1266   : > { %7149 = vmatprep.subr.bf16.mxu1 %v7985_v53  ;;  %v6015_v44 = vpack.c.bf16 %v5980_v23, %v5980_v23  ;;  %v6202_v53 = vrot.slane %v6182_v49, %v9104_v47  ;;  %p8485_p5 = por %p8484_p0, %p8483_p8 }
0x1268   : > { %p8486_p2 = pnand %p8485_p5, %p8479_p4 }
0x1269   : > { %7150 = vmatpush3.bf16.msra.mxu1 %v7986_v63 }
0x126a   : > { %7151 = vmatprep.subr.bf16.mxu1 %v7987_v41 }
0x126d   : > { %7152 = vmatpush3.bf16.msra.mxu1 %v7988_v60 }
0x126e   : > { %7153 = vmatprep.subr.bf16.mxu1 %v7989_v1 }
0x1271   : > { %7154 = vmatpush3.bf16.msra.mxu1 %v7990_v25 }
0x1272   : > { %7155 = vmatprep.subr.bf16.mxu1 %v7991_v12 }
0x1275   : > { %7156 = vmatpush3.bf16.msra.mxu1 %v7992_v6 }
0x1276   : > { %7157 = vmatprep.subr.bf16.mxu1 %v7993_v35 }
0x1279   : > { %7158 = vmatpush3.bf16.msra.mxu1 %v7994_v59 }
0x127a   : > { %7159 = vmatprep.subr.bf16.mxu1 %v7995_v61 }
0x127d   : > { %7160 = vmatpush3.bf16.msra.mxu1 %v7996_v29 }
0x127e   : > { %7161 = vmatprep.subr.bf16.mxu1 %v7997_v5 }
0x1281   : > { %7162 = vmatpush3.bf16.msra.mxu1 %v7998_v30 }
0x1284   : > { %6146 = vmatmul.mubr.bf16.vlgmr.msra.gmra.mrb[48].mxu1 %v6015_v44 }
0x1337   : > { %v7141_v55 = vpop.f32.mrb[44].mxu1 }
0x1338   : > { %v7142_v19 = vpop.f32.mrb[45].mxu1 }
0x1339   : > { %v7143_v43 = vadd.f32 %v7142_v19, %v7141_v55  ;;  %v7144_v3 = vpop.f32.mrb[46].mxu1 }
0x133a   : > { %v7145_v54 = vpop.f32.mrb[47].mxu1 }
0x133b   : > { %v5915_v27 = vadd.f32 %v7143_v43, %v9753_v2  ;;  %v6158_v2 = vmul.f32 %v6157_v48, %v9767_v9 }
0x133d   : > { %v6159_v4 = vadd.f32 %v6158_v2, %v5921_v15 }
0x1357   : > { %v7163_v26 = vpop.f32.mrb[48].mxu1 }
0x1358   : > { %v7164_v20 = vpop.f32.mrb[49].mxu1 }
0x1359   : > { %v7165_v28 = vadd.f32 %v7164_v20, %v7163_v26  ;;  %v7166_v22 = vpop.f32.mrb[50].mxu1 }
0x135a   : > { %v7167_v62 = vpop.f32.mrb[51].mxu1 }
0x135b   : > { %v6153_v21 = vadd.f32 %v7165_v28, %v5915_v27 }
0x135d   : > { %v6160_v0 = vadd.f32 %v6159_v4, %v6153_v21 }
0x135f   : > { %v6161_v56 = vadd.f32 %v6160_v0, %v9438_v8  ;;  %v6197_v8 = vrot.slane %v6182_v49, %v9099_v45 }
0x1361   : > { %6183 = vadd.xlane.f32.xlu1 %v6161_v56 }
0x13ee   : > { %v6184_v51 = vpop.xlane.xlu1 %6183 }
0x13ef   : > { %v6185_v40 = vmul.f32 0.0078125, %v6184_v51 }
0x13f1   : > { %v6186_v31 = vsub.f32 %v6161_v56, %v6185_v40 }
0x13f3   : > { %v6187_v58 = vmul.f32 %v6186_v31, %v6186_v31 }
0x13f5   : > { %6188 = vadd.xlane.f32.xlu0 %v6187_v58 }
0x1482   : > { %v6189_v9 = vpop.xlane.xlu0 %6188 }
0x1483   : > { %v6190_v46 = vmul.f32 0.0078125, %v6189_v9 }
0x1485   : > { %v6191_v42 = vadd.f32 1e-05, %v6190_v46 }
0x1487   : > { %8131 = vrsqrt.f32 %v6191_v42 }
0x1491   : > { %v8132_v11 = vpop.eup %8131 }
0x1492   : > { %v6193_v18 = vmul.f32 %v8132_v11, %v6186_v31 }
0x1494   : > { %v6198_v32 = vmul.f32 %v6197_v8, %v6193_v18 }
0x1496   : > { %v6203_v57 = vadd.f32 %v6202_v53, %v6198_v32 }
0x1498   : > { %6204 = vst [vmem:[%s666_s23] sm:$0xff] %v6203_v57 }
0x1499   : > { %8489 = shalt.err (!%p8486_p2)
}
0x149a   : > { %s8490_s17 = scalar_lea.hbm %s9802_s3, 128  ;;  %s8494_s14 = scalar_lea.hbm %s9925_s2, 256 }
0x149b   : > { %p8491_p7 = scmp.ne.s32.totalorder %s9802_s3, %s8490_s17  ;;  %p8495_p11 = scmp.lt.u32.totalorder %s9802_s3, %s9925_s2 }
0x149c   : > { %p8496_p12 = scmp.lt.u32.totalorder %s8494_s14, %s8490_s17  ;;  %p8498_p3 = scmp.lt.u32.totalorder %s8490_s17, %s9802_s3 }
0x149d   : > { %p8492_p10 = pnand %p8491_p7, %p9926_p6 }
0x149e   : > { %p8497_p13 = por %p8496_p12, %p8495_p11 }
0x149f   : > { %p8493_p1 = pneg %p8492_p10 }
0x14a0   : > { %p8499_p9 = por %p8498_p3, %p8497_p13 }
0x14a2   : > { %p8500_p4 = pnand %p8499_p9, %p8493_p1 }
0x14a4   : > { %8503 = shalt.err (!%p8500_p4)
}
0x14a5   : > { %7255 = dma.vmem_to_hbm [thread:$0]  (%p9926_p6), %s9804_s1, 128, %s9802_s3, %s6207_s13  }
0x14a6 PF: > { %s6239_s29 = sand.u32 1, %s8554_s18   ;;  %p9927_p8 = scmp.ne.s32.totalorder %s9904_s24, 0 }
0x14a7   : > { %p9928_p0 = scmp.ge.s32.totalorder %s8566_s21, 2  ;;  %s6240_s16 = scalar_lea.sflag [#allocation4], %s6239_s29 }
0x14a9   : > { %p7296_p5 = pnand %p9928_p0, %p9927_p8 }
0x14ab   : > { %8549 = dma.done.wait (!%p7296_p5), %s6240_s16, 128  }
0x14ac   : > { %8551 = vsyncadd (!%p7296_p5), %s6240_s16, 4294967168  ;;  %p35_p2 = scmp.ge.s32.totalorder %s8985_s7, 4   ;;  %s9929_s18 = smov %s8558_s19 }
0x14ad   : > { %s9930_s19 = smov %s8562_s20  ;;  %s9931_s20 = smov %s8997_s0 }
0x14ae   : > { %s9932_s21 = smov %s8985_s7  ;;  %37 = sbr.rel (!%p35_p2) target bundleno = 20 (0x14), region = 183 }
0x14b5   :  { %6252 = vsyncpa [#allocation3], 1 }
0x14b6   :  { %6254 = vsyncpa [#allocation3 + $0x1], 1 }
0x14b7   :  { %6255 = vsyncpa [#allocation6], 1 }
0x14b8   :  { %6256 = vsyncpa [#allocation9], 1 }
0x14b9   :  { %6257 = vsyncpa [#allocation12], 1 }
0x14ba   :  { %6258 = vsyncpa [#allocation15], 1 }
0x14bb   :  { %6259 = vsyncpa [#allocation18], 1 }
0x14bc   :  { %6260 = vsyncpa [#allocation21], 1 }
0x14bd   :  { %6261 = vsyncpa [#allocation4], 1 }
0x14be   :  { %6263 = vsyncpa [#allocation4 + $0x1], 1 }

</bundles_post_ra>
